<compile_context>
chip_gen: v6e
topology: v6e:2x2x1
jax: 0.10.0
libtpu: 0.0.40
codegen_flags: <defaults>
</compile_context>

<pallas_src>
import functools

import numpy as np
import jax
import jax.numpy as jnp
from jax import lax
from jax.experimental import pallas as pl
from jax.experimental.pallas import tpu as pltpu


def _residual_group_kernel(x_ref, w1_ref, b1_ref, w2_ref, b2_ref,
                           wd_ref, bd_ref, wu_ref, bu_ref, wf_ref, bf_ref,
                           o_ref, pad_ref, col_ref,
                           *, n_resblocks, H, W, C, K):
    P = K // 2
    HW = H * W
    KKC = K * K * C
    Hp, Wp = H + 2 * P, W + 2 * P
    f32 = jnp.float32
    bf16 = jnp.bfloat16

    # Zero only the halo of the padded scratch (the interior is fully rewritten
    # before every conv).  Done every grid step so megacore "parallel" sharding
    # stays correct (each core owns its own scratch).
    if P > 0:
        pad_ref[pl.ds(0, P), :, :] = jnp.zeros((P, Wp, C), f32)
        pad_ref[pl.ds(H + P, P), :, :] = jnp.zeros((P, Wp, C), f32)
        pad_ref[:, pl.ds(0, P), :] = jnp.zeros((Hp, P, C), f32)
        pad_ref[:, pl.ds(W + P, P), :] = jnp.zeros((Hp, P, C), f32)

    def conv(feat, w_col, bias):
        """feat: (HW, C) f32.  w_col: (K*K*C, C) bf16.  bias: (1, C) f32."""
        # im2col: write the feature map into the padded scratch, copy the K*K
        # shifted windows into the (H, W, K*K*C) staging buffer, then do ONE
        # MXU matmul with a K*K*C-deep contraction (f32 accumulation).
        pad_ref[pl.ds(P, H), pl.ds(P, W), :] = feat.reshape(H, W, C)
        for kh in range(K):
            for kw in range(K):
                tap = kh * K + kw
                col_ref[:, :, pl.ds(tap * C, C)] = pad_ref[pl.ds(kh, H),
                                                           pl.ds(kw, W), :]
        patches = col_ref[...].reshape(HW, KKC).astype(bf16)
        acc = jnp.dot(patches, w_col, preferred_element_type=f32)
        return acc + bias

    x = x_ref[...].astype(f32)                                    # (HW, C)

    def rcab(blk, feat):
        r = conv(feat, w1_ref[blk], b1_ref[blk])
        r = jnp.maximum(r, 0.0)
        r = conv(r, w2_ref[blk], b2_ref[blk])

        # Channel attention: global avg pool -> 1x1 -> ReLU -> 1x1 -> sigmoid.
        pooled = (jnp.sum(r, axis=0, keepdims=True) * (1.0 / HW)).astype(bf16)
        t = jnp.dot(pooled, wd_ref[blk], preferred_element_type=f32) + bd_ref[blk]
        t = jnp.maximum(t, 0.0).astype(bf16)
        z = jnp.dot(t, wu_ref[blk], preferred_element_type=f32) + bu_ref[blk]
        attn = pl.reciprocal(1.0 + jnp.exp(-z), approx=True)      # sigmoid

        return feat + r * attn                                    # RCAB residual

    feat = lax.fori_loop(0, n_resblocks, rcab, x)

    r = conv(feat, wf_ref[...], bf_ref[...])
    o_ref[...] = (x + r).astype(o_ref.dtype)                      # group residual


def residual_group(x_nchw, params, *, kernel_size=3):
    """Forward pass of ResidualGroup.  x_nchw: (N, C, H, W); params in PyTorch layout."""
    (w1, b1, w2, b2, wd, bd, wu, bu, wf, bf) = params
    N, C, H, W = x_nchw.shape
    K = kernel_size
    nb = w1.shape[0]
    Cr = wd.shape[1]
    HW = H * W
    KKC = K * K * C
    bf16 = jnp.bfloat16
    f32 = jnp.float32

    # ---- layout plumbing (plain XLA ops, outside the kernel) -----------------
    # NCHW -> (N, H*W, C): channels on the lane axis, pixels on sublanes.
    x = jnp.transpose(x_nchw, (0, 2, 3, 1)).reshape(N, HW, C)
    # Conv weights OIHW -> im2col matrices (K*K*Cin, Cout); row index is
    # (kh*K + kw)*Cin + ci to match the kernel's col layout.  Stored as bf16.
    w1_k = jnp.transpose(w1, (0, 3, 4, 2, 1)).reshape(nb, KKC, C).astype(bf16)
    w2_k = jnp.transpose(w2, (0, 3, 4, 2, 1)).reshape(nb, KKC, C).astype(bf16)
    wf_k = jnp.transpose(wf, (2, 3, 1, 0)).reshape(KKC, C).astype(bf16)
    b1_k = b1.reshape(nb, 1, C).astype(f32)
    b2_k = b2.reshape(nb, 1, C).astype(f32)
    bf_k = bf.reshape(1, C).astype(f32)
    # 1x1 channel-attention convs as (C_in, C_out) matrices (bf16 operands).
    wd_k = jnp.transpose(wd.reshape(nb, Cr, C), (0, 2, 1)).astype(bf16)    # (nb, C, Cr)
    wu_k = jnp.transpose(wu.reshape(nb, C, Cr), (0, 2, 1)).astype(bf16)    # (nb, Cr, C)
    bd_k = bd.reshape(nb, 1, Cr).astype(f32)
    bu_k = bu.reshape(nb, 1, C).astype(f32)

    def _whole(arr):
        nd = arr.ndim
        return pl.BlockSpec(arr.shape, lambda n, _nd=nd: (0,) * _nd)

    kernel = functools.partial(_residual_group_kernel,
                               n_resblocks=nb, H=H, W=W, C=C, K=K)

    # Advisory cost hint: (2*nb + 1) im2col convs + tiny CA matmuls per image.
    conv_flops = 2 * HW * KKC * C
    ca_flops = 4 * C * Cr
    flops = N * (nb * (2 * conv_flops + ca_flops) + conv_flops)
    weight_bytes = sum(int(np.prod(a.shape)) * a.dtype.itemsize
                       for a in (w1_k, w2_k, wf_k, wd_k, wu_k,
                                 b1_k, b2_k, bf_k, bd_k, bu_k))
    bytes_accessed = 2 * N * HW * C * x.dtype.itemsize + weight_bytes
    cost = pl.CostEstimate(flops=int(flops),
                           transcendentals=int(N * nb * C),
                           bytes_accessed=int(bytes_accessed))

    # Size scoped VMEM from the actual per-step working set (scratch +
    # double-buffered I/O blocks + resident weights), clamped to v7x's 64 MiB.
    scratch_bytes = ((H + K - 1) * (W + K - 1) * C + H * W * KKC) * 4
    io_bytes = 2 * 2 * HW * C * x.dtype.itemsize
    vmem_limit = int(min(max(2 * (scratch_bytes + io_bytes + weight_bytes),
                             16 * 1024 * 1024), 64 * 1024 * 1024))

    out = pl.pallas_call(
        kernel,
        out_shape=jax.ShapeDtypeStruct((N, HW, C), x_nchw.dtype),
        grid_spec=pltpu.PrefetchScalarGridSpec(
            num_scalar_prefetch=0,
            grid=(N,),
            in_specs=[
                pl.BlockSpec((None, HW, C), lambda n: (n, 0, 0)),
                _whole(w1_k), _whole(b1_k), _whole(w2_k), _whole(b2_k),
                _whole(wd_k), _whole(bd_k), _whole(wu_k), _whole(bu_k),
                _whole(wf_k), _whole(bf_k),
            ],
            out_specs=pl.BlockSpec((None, HW, C), lambda n: (n, 0, 0)),
            scratch_shapes=[
                pltpu.VMEM((H + K - 1, W + K - 1, C), jnp.float32),  # padded map
                pltpu.VMEM((H, W, KKC), jnp.float32),                # im2col staging
            ],
        ),
        compiler_params=pltpu.CompilerParams(
            dimension_semantics=("parallel",),
            vmem_limit_bytes=vmem_limit,
        ),
        cost_estimate=cost,
    )(x, w1_k, b1_k, w2_k, b2_k, wd_k, bd_k, wu_k, bu_k, wf_k, bf_k)

    # TODO(synk): for real RCAN sizes (large H*W) add a second, parallel row-tile
    # grid axis with K-1 halo rows per conv so the fused chain fits v7x's 64 MiB
    # VMEM and fills both of its TensorCores at batch 1.
    return jnp.transpose(out.reshape(N, H, W, C), (0, 3, 1, 2))    # back to NCHW


# ----------------------------- pure-JAX reference -----------------------------
def _conv2d_ref(x, w, b, pad):
    y = lax.conv_general_dilated(
        x, w, window_strides=(1, 1),
        padding=((pad, pad), (pad, pad)),
        dimension_numbers=("NCHW", "OIHW", "NCHW"),
        precision=lax.Precision.HIGHEST)
    return y + b.reshape(1, -1, 1, 1)


def residual_group_ref(x, params, *, kernel_size=3):
    (w1, b1, w2, b2, wd, bd, wu, bu, wf, bf) = params
    pad = kernel_size // 2
    nb = w1.shape[0]
    res = x
    for blk in range(nb):
        r = _conv2d_ref(res, w1[blk], b1[blk], pad)
        r = jnp.maximum(r, 0.0)
        r = _conv2d_ref(r, w2[blk], b2[blk], pad)
        # CALayer
        y = jnp.mean(r, axis=(2, 3), keepdims=True)
        y = _conv2d_ref(y, wd[blk], bd[blk], 0)
        y = jnp.maximum(y, 0.0)
        y = _conv2d_ref(y, wu[blk], bu[blk], 0)
        y = jax.nn.sigmoid(y)
        r = r * y
        res = res + r                       # RCAB residual
    res = _conv2d_ref(res, wf, bf, pad)
    return res + x                          # group residual


if __name__ == "__main__":
    N, C, H, W = 2, 32, 16, 16
    K = 3
    reduction = 4
    n_resblocks = 2
    Cr = C // reduction

    key = jax.random.PRNGKey(0)
    ks = jax.random.split(key, 11)
    conv_scale = 1.0 / np.sqrt(K * K * C)

    x = jax.random.normal(ks[0], (N, C, H, W), dtype=jnp.float32)
    w1 = jax.random.normal(ks[1], (n_resblocks, C, C, K, K), jnp.float32) * conv_scale
    b1 = jax.random.normal(ks[2], (n_resblocks, C), jnp.float32) * 0.1
    w2 = jax.random.normal(ks[3], (n_resblocks, C, C, K, K), jnp.float32) * conv_scale
    b2 = jax.random.normal(ks[4], (n_resblocks, C), jnp.float32) * 0.1
    wd = jax.random.normal(ks[5], (n_resblocks, Cr, C, 1, 1), jnp.float32) * (1.0 / np.sqrt(C))
    bd = jax.random.normal(ks[6], (n_resblocks, Cr), jnp.float32) * 0.1
    wu = jax.random.normal(ks[7], (n_resblocks, C, Cr, 1, 1), jnp.float32) * (1.0 / np.sqrt(Cr))
    bu = jax.random.normal(ks[8], (n_resblocks, C), jnp.float32) * 0.1
    wf = jax.random.normal(ks[9], (C, C, K, K), jnp.float32) * conv_scale
    bf = jax.random.normal(ks[10], (C,), jnp.float32) * 0.1

    params = (w1, b1, w2, b2, wd, bd, wu, bu, wf, bf)

    out = jax.block_until_ready(residual_group(x, params, kernel_size=K))
    ref = jax.block_until_ready(residual_group_ref(x, params, kernel_size=K))

    assert out.shape == x.shape
    # Tolerance loosened vs. the f32 reference because the kernel uses bf16
    # matmul operands with f32 accumulation (single-pass MXU fast path).
    np.testing.assert_allclose(np.asarray(out), np.asarray(ref), rtol=2e-2, atol=5e-2)
    print("KERNEL_OK")
</pallas_src>

<mosaic_0001>
module attributes {stable_mosaic.version = 11 : i64} {
  func.func @_residual_group_kernel(%arg0: i32, %arg1: memref<1x256x32xf32, #tpu.memory_space<vmem>>, %arg2: memref<2x288x32xbf16, #tpu.memory_space<vmem>>, %arg3: memref<2x1x32xf32, #tpu.memory_space<vmem>>, %arg4: memref<2x288x32xbf16, #tpu.memory_space<vmem>>, %arg5: memref<2x1x32xf32, #tpu.memory_space<vmem>>, %arg6: memref<2x32x8xbf16, #tpu.memory_space<vmem>>, %arg7: memref<2x1x8xf32, #tpu.memory_space<vmem>>, %arg8: memref<2x8x32xbf16, #tpu.memory_space<vmem>>, %arg9: memref<2x1x32xf32, #tpu.memory_space<vmem>>, %arg10: memref<288x32xbf16, #tpu.memory_space<vmem>>, %arg11: memref<1x32xf32, #tpu.memory_space<vmem>>, %arg12: memref<1x256x32xf32, #tpu.memory_space<vmem>>, %arg13: memref<18x18x32xf32, #tpu.memory_space<vmem>>, %arg14: memref<16x16x288xf32, #tpu.memory_space<vmem>>) attributes {dimension_semantics = [#tpu.dimension_semantics<parallel>], iteration_bounds = array<i64: 2>, scalar_prefetch = 0 : i64, scratch_operands = 2 : i64, tpu.core_type = #tpu.core_type<tc>, window_params = [{transform_indices = @transform_0, window_bounds = array<i64: 1, 256, 32>}, {pipeline_mode = #tpu.pipeline_mode<synchronous>, transform_indices = @transform_1, window_bounds = array<i64: 2, 288, 32>}, {pipeline_mode = #tpu.pipeline_mode<synchronous>, transform_indices = @transform_2, window_bounds = array<i64: 2, 1, 32>}, {pipeline_mode = #tpu.pipeline_mode<synchronous>, transform_indices = @transform_3, window_bounds = array<i64: 2, 288, 32>}, {pipeline_mode = #tpu.pipeline_mode<synchronous>, transform_indices = @transform_4, window_bounds = array<i64: 2, 1, 32>}, {pipeline_mode = #tpu.pipeline_mode<synchronous>, transform_indices = @transform_5, window_bounds = array<i64: 2, 32, 8>}, {pipeline_mode = #tpu.pipeline_mode<synchronous>, transform_indices = @transform_6, window_bounds = array<i64: 2, 1, 8>}, {pipeline_mode = #tpu.pipeline_mode<synchronous>, transform_indices = @transform_7, window_bounds = array<i64: 2, 8, 32>}, {pipeline_mode = #tpu.pipeline_mode<synchronous>, transform_indices = @transform_8, window_bounds = array<i64: 2, 1, 32>}, {pipeline_mode = #tpu.pipeline_mode<synchronous>, transform_indices = @transform_9, window_bounds = array<i64: 288, 32>}, {pipeline_mode = #tpu.pipeline_mode<synchronous>, transform_indices = @transform_10, window_bounds = array<i64: 1, 32>}, {transform_indices = @transform_11, window_bounds = array<i64: 1, 256, 32>}]} {
    %cst = arith.constant 0.000000e+00 : f32
    %0 = vector.broadcast %cst : f32 to vector<1x18x32xf32>
    %c0 = arith.constant 0 : index
    %c0_0 = arith.constant 0 : index
    %c0_1 = arith.constant 0 : index
    %1 = vector.load %arg13[%c0, %c0_0, %c0_1] : memref<18x18x32xf32, #tpu.memory_space<vmem>>, vector<1x18x32xf32>
    tpu.vector_store %arg13[%c0, %c0_0, %c0_1], %0 {strides = array<i32>} : memref<18x18x32xf32, #tpu.memory_space<vmem>>, vector<1x18x32xf32>,
    %cst_2 = arith.constant 0.000000e+00 : f32
    %2 = vector.broadcast %cst_2 : f32 to vector<1x18x32xf32>
    %c17 = arith.constant 17 : index
    %c0_3 = arith.constant 0 : index
    %c0_4 = arith.constant 0 : index
    %3 = vector.load %arg13[%c17, %c0_3, %c0_4] : memref<18x18x32xf32, #tpu.memory_space<vmem>>, vector<1x18x32xf32>
    tpu.vector_store %arg13[%c17, %c0_3, %c0_4], %2 {strides = array<i32>} : memref<18x18x32xf32, #tpu.memory_space<vmem>>, vector<1x18x32xf32>,
    %cst_5 = arith.constant 0.000000e+00 : f32
    %4 = vector.broadcast %cst_5 : f32 to vector<18x1x32xf32>
    %c0_6 = arith.constant 0 : index
    %c0_7 = arith.constant 0 : index
    %c0_8 = arith.constant 0 : index
    %5 = vector.load %arg13[%c0_6, %c0_7, %c0_8] : memref<18x18x32xf32, #tpu.memory_space<vmem>>, vector<18x1x32xf32>
    tpu.vector_store %arg13[%c0_6, %c0_7, %c0_8], %4 {strides = array<i32>} : memref<18x18x32xf32, #tpu.memory_space<vmem>>, vector<18x1x32xf32>,
    %cst_9 = arith.constant 0.000000e+00 : f32
    %6 = vector.broadcast %cst_9 : f32 to vector<18x1x32xf32>
    %c0_10 = arith.constant 0 : index
    %c17_11 = arith.constant 17 : index
    %c0_12 = arith.constant 0 : index
    %7 = vector.load %arg13[%c0_10, %c17_11, %c0_12] : memref<18x18x32xf32, #tpu.memory_space<vmem>>, vector<18x1x32xf32>
    tpu.vector_store %arg13[%c0_10, %c17_11, %c0_12], %6 {strides = array<i32>} : memref<18x18x32xf32, #tpu.memory_space<vmem>>, vector<18x1x32xf32>,
    %c0_13 = arith.constant 0 : index
    %c0_14 = arith.constant 0 : index
    %c0_15 = arith.constant 0 : index
    %8 = vector.load %arg1[%c0_13, %c0_14, %c0_15] : memref<1x256x32xf32, #tpu.memory_space<vmem>>, vector<1x256x32xf32>
    %9 = vector.shape_cast %8 : vector<1x256x32xf32> to vector<256x32xf32>
    %c0_i32 = arith.constant 0 : i32
    %c2_i32 = arith.constant 2 : i32
    %10 = arith.addi %c0_i32, %c2_i32 : i32
    %c1_i32 = arith.constant 1 : i32
    %11 = scf.for %arg15 = %c0_i32 to %10 step %c1_i32 iter_args(%arg16 = %9) -> (vector<256x32xf32>)  : i32 {
      %44 = arith.index_cast %arg15 : i32 to index
      %c0_75 = arith.constant 0 : index
      %c0_76 = arith.constant 0 : index
      %45 = vector.load %arg2[%44, %c0_75, %c0_76] : memref<2x288x32xbf16, #tpu.memory_space<vmem>>, vector<1x288x32xbf16>
      %46 = vector.shape_cast %45 : vector<1x288x32xbf16> to vector<288x32xbf16>
      %47 = arith.index_cast %arg15 : i32 to index
      %c0_77 = arith.constant 0 : index
      %c0_78 = arith.constant 0 : index
      %48 = vector.load %arg3[%47, %c0_77, %c0_78] : memref<2x1x32xf32, #tpu.memory_space<vmem>>, vector<1x1x32xf32>
      %49 = vector.shape_cast %48 : vector<1x1x32xf32> to vector<1x32xf32>
      %50 = vector.shape_cast %arg16 : vector<256x32xf32> to vector<16x16x32xf32>
      %c1_79 = arith.constant 1 : index
      %c1_80 = arith.constant 1 : index
      %c0_81 = arith.constant 0 : index
      %51 = vector.load %arg13[%c1_79, %c1_80, %c0_81] : memref<18x18x32xf32, #tpu.memory_space<vmem>>, vector<16x16x32xf32>
      tpu.vector_store %arg13[%c1_79, %c1_80, %c0_81], %50 {strides = array<i32>} : memref<18x18x32xf32, #tpu.memory_space<vmem>>, vector<16x16x32xf32>,
      %c0_82 = arith.constant 0 : index
      %c0_83 = arith.constant 0 : index
      %c0_84 = arith.constant 0 : index
      %52 = vector.load %arg13[%c0_82, %c0_83, %c0_84] : memref<18x18x32xf32, #tpu.memory_space<vmem>>, vector<16x16x32xf32>
      %c0_85 = arith.constant 0 : index
      %c0_86 = arith.constant 0 : index
      %c0_87 = arith.constant 0 : index
      %53 = vector.load %arg14[%c0_85, %c0_86, %c0_87] : memref<16x16x288xf32, #tpu.memory_space<vmem>>, vector<16x16x32xf32>
      tpu.vector_store %arg14[%c0_85, %c0_86, %c0_87], %52 {strides = array<i32>} : memref<16x16x288xf32, #tpu.memory_space<vmem>>, vector<16x16x32xf32>,
      %c0_88 = arith.constant 0 : index
      %c1_89 = arith.constant 1 : index
      %c0_90 = arith.constant 0 : index
      %54 = vector.load %arg13[%c0_88, %c1_89, %c0_90] : memref<18x18x32xf32, #tpu.memory_space<vmem>>, vector<16x16x32xf32>
      %c0_91 = arith.constant 0 : index
      %c0_92 = arith.constant 0 : index
      %c32_93 = arith.constant 32 : index
      %55 = vector.load %arg14[%c0_91, %c0_92, %c32_93] : memref<16x16x288xf32, #tpu.memory_space<vmem>>, vector<16x16x32xf32>
      tpu.vector_store %arg14[%c0_91, %c0_92, %c32_93], %54 {strides = array<i32>} : memref<16x16x288xf32, #tpu.memory_space<vmem>>, vector<16x16x32xf32>,
      %c0_94 = arith.constant 0 : index
      %c2_95 = arith.constant 2 : index
      %c0_96 = arith.constant 0 : index
      %56 = vector.load %arg13[%c0_94, %c2_95, %c0_96] : memref<18x18x32xf32, #tpu.memory_space<vmem>>, vector<16x16x32xf32>
      %c0_97 = arith.constant 0 : index
      %c0_98 = arith.constant 0 : index
      %c64_99 = arith.constant 64 : index
      %57 = vector.load %arg14[%c0_97, %c0_98, %c64_99] : memref<16x16x288xf32, #tpu.memory_space<vmem>>, vector<16x16x32xf32>
      tpu.vector_store %arg14[%c0_97, %c0_98, %c64_99], %56 {strides = array<i32>} : memref<16x16x288xf32, #tpu.memory_space<vmem>>, vector<16x16x32xf32>,
      %c1_100 = arith.constant 1 : index
      %c0_101 = arith.constant 0 : index
      %c0_102 = arith.constant 0 : index
      %58 = vector.load %arg13[%c1_100, %c0_101, %c0_102] : memref<18x18x32xf32, #tpu.memory_space<vmem>>, vector<16x16x32xf32>
      %c0_103 = arith.constant 0 : index
      %c0_104 = arith.constant 0 : index
      %c96_105 = arith.constant 96 : index
      %59 = vector.load %arg14[%c0_103, %c0_104, %c96_105] : memref<16x16x288xf32, #tpu.memory_space<vmem>>, vector<16x16x32xf32>
      tpu.vector_store %arg14[%c0_103, %c0_104, %c96_105], %58 {strides = array<i32>} : memref<16x16x288xf32, #tpu.memory_space<vmem>>, vector<16x16x32xf32>,
      %c1_106 = arith.constant 1 : index
      %c1_107 = arith.constant 1 : index
      %c0_108 = arith.constant 0 : index
      %60 = vector.load %arg13[%c1_106, %c1_107, %c0_108] : memref<18x18x32xf32, #tpu.memory_space<vmem>>, vector<16x16x32xf32>
      %c0_109 = arith.constant 0 : index
      %c0_110 = arith.constant 0 : index
      %c128_111 = arith.constant 128 : index
      %61 = vector.load %arg14[%c0_109, %c0_110, %c128_111] : memref<16x16x288xf32, #tpu.memory_space<vmem>>, vector<16x16x32xf32>
      tpu.vector_store %arg14[%c0_109, %c0_110, %c128_111], %60 {strides = array<i32>} : memref<16x16x288xf32, #tpu.memory_space<vmem>>, vector<16x16x32xf32>,
      %c1_112 = arith.constant 1 : index
      %c2_113 = arith.constant 2 : index
      %c0_114 = arith.constant 0 : index
      %62 = vector.load %arg13[%c1_112, %c2_113, %c0_114] : memref<18x18x32xf32, #tpu.memory_space<vmem>>, vector<16x16x32xf32>
      %c0_115 = arith.constant 0 : index
      %c0_116 = arith.constant 0 : index
      %c160_117 = arith.constant 160 : index
      %63 = vector.load %arg14[%c0_115, %c0_116, %c160_117] : memref<16x16x288xf32, #tpu.memory_space<vmem>>, vector<16x16x32xf32>
      tpu.vector_store %arg14[%c0_115, %c0_116, %c160_117], %62 {strides = array<i32>} : memref<16x16x288xf32, #tpu.memory_space<vmem>>, vector<16x16x32xf32>,
      %c2_118 = arith.constant 2 : index
      %c0_119 = arith.constant 0 : index
      %c0_120 = arith.constant 0 : index
      %64 = vector.load %arg13[%c2_118, %c0_119, %c0_120] : memref<18x18x32xf32, #tpu.memory_space<vmem>>, vector<16x16x32xf32>
      %c0_121 = arith.constant 0 : index
      %c0_122 = arith.constant 0 : index
      %c192_123 = arith.constant 192 : index
      %65 = vector.load %arg14[%c0_121, %c0_122, %c192_123] : memref<16x16x288xf32, #tpu.memory_space<vmem>>, vector<16x16x32xf32>
      tpu.vector_store %arg14[%c0_121, %c0_122, %c192_123], %64 {strides = array<i32>} : memref<16x16x288xf32, #tpu.memory_space<vmem>>, vector<16x16x32xf32>,
      %c2_124 = arith.constant 2 : index
      %c1_125 = arith.constant 1 : index
      %c0_126 = arith.constant 0 : index
      %66 = vector.load %arg13[%c2_124, %c1_125, %c0_126] : memref<18x18x32xf32, #tpu.memory_space<vmem>>, vector<16x16x32xf32>
      %c0_127 = arith.constant 0 : index
      %c0_128 = arith.constant 0 : index
      %c224_129 = arith.constant 224 : index
      %67 = vector.load %arg14[%c0_127, %c0_128, %c224_129] : memref<16x16x288xf32, #tpu.memory_space<vmem>>, vector<16x16x32xf32>
      tpu.vector_store %arg14[%c0_127, %c0_128, %c224_129], %66 {strides = array<i32>} : memref<16x16x288xf32, #tpu.memory_space<vmem>>, vector<16x16x32xf32>,
      %c2_130 = arith.constant 2 : index
      %c2_131 = arith.constant 2 : index
      %c0_132 = arith.constant 0 : index
      %68 = vector.load %arg13[%c2_130, %c2_131, %c0_132] : memref<18x18x32xf32, #tpu.memory_space<vmem>>, vector<16x16x32xf32>
      %c0_133 = arith.constant 0 : index
      %c0_134 = arith.constant 0 : index
      %c256_135 = arith.constant 256 : index
      %69 = vector.load %arg14[%c0_133, %c0_134, %c256_135] : memref<16x16x288xf32, #tpu.memory_space<vmem>>, vector<16x16x32xf32>
      tpu.vector_store %arg14[%c0_133, %c0_134, %c256_135], %68 {strides = array<i32>} : memref<16x16x288xf32, #tpu.memory_space<vmem>>, vector<16x16x32xf32>,
      %c0_136 = arith.constant 0 : index
      %c0_137 = arith.constant 0 : index
      %c0_138 = arith.constant 0 : index
      %70 = vector.load %arg14[%c0_136, %c0_137, %c0_138] : memref<16x16x288xf32, #tpu.memory_space<vmem>>, vector<16x16x288xf32>
      %71 = vector.shape_cast %70 : vector<16x16x288xf32> to vector<256x288xf32>
      %72 = arith.truncf %71 : vector<256x288xf32> to vector<256x288xbf16>
      %cst_139 = arith.constant dense<0.000000e+00> : vector<256x32xf32>
      %73 = tpu.matmul %72, %46, %cst_139 {dimension_numbers = #tpu.dot_dimension_numbers<[1], [0], [0], [1], [0, 0, 1, 1], [], []>} : vector<256x288xbf16>, vector<288x32xbf16>, vector<256x32xf32> -> vector<256x32xf32>
      %74 = vector.broadcast %49 : vector<1x32xf32> to vector<256x32xf32>
      %75 = arith.addf %73, %74 : vector<256x32xf32>
      %cst_140 = arith.constant 0.000000e+00 : f32
      %76 = vector.broadcast %cst_140 : f32 to vector<256x32xf32>
      %77 = arith.maximumf %75, %76 : vector<256x32xf32>
      %78 = arith.index_cast %arg15 : i32 to index
      %c0_141 = arith.constant 0 : index
      %c0_142 = arith.constant 0 : index
      %79 = vector.load %arg4[%78, %c0_141, %c0_142] : memref<2x288x32xbf16, #tpu.memory_space<vmem>>, vector<1x288x32xbf16>
      %80 = vector.shape_cast %79 : vector<1x288x32xbf16> to vector<288x32xbf16>
      %81 = arith.index_cast %arg15 : i32 to index
      %c0_143 = arith.constant 0 : index
      %c0_144 = arith.constant 0 : index
      %82 = vector.load %arg5[%81, %c0_143, %c0_144] : memref<2x1x32xf32, #tpu.memory_space<vmem>>, vector<1x1x32xf32>
      %83 = vector.shape_cast %82 : vector<1x1x32xf32> to vector<1x32xf32>
      %84 = vector.shape_cast %77 : vector<256x32xf32> to vector<16x16x32xf32>
      %c1_145 = arith.constant 1 : index
      %c1_146 = arith.constant 1 : index
      %c0_147 = arith.constant 0 : index
      %85 = vector.load %arg13[%c1_145, %c1_146, %c0_147] : memref<18x18x32xf32, #tpu.memory_space<vmem>>, vector<16x16x32xf32>
      tpu.vector_store %arg13[%c1_145, %c1_146, %c0_147], %84 {strides = array<i32>} : memref<18x18x32xf32, #tpu.memory_space<vmem>>, vector<16x16x32xf32>,
      %c0_148 = arith.constant 0 : index
      %c0_149 = arith.constant 0 : index
      %c0_150 = arith.constant 0 : index
      %86 = vector.load %arg13[%c0_148, %c0_149, %c0_150] : memref<18x18x32xf32, #tpu.memory_space<vmem>>, vector<16x16x32xf32>
      %c0_151 = arith.constant 0 : index
      %c0_152 = arith.constant 0 : index
      %c0_153 = arith.constant 0 : index
      %87 = vector.load %arg14[%c0_151, %c0_152, %c0_153] : memref<16x16x288xf32, #tpu.memory_space<vmem>>, vector<16x16x32xf32>
      tpu.vector_store %arg14[%c0_151, %c0_152, %c0_153], %86 {strides = array<i32>} : memref<16x16x288xf32, #tpu.memory_space<vmem>>, vector<16x16x32xf32>,
      %c0_154 = arith.constant 0 : index
      %c1_155 = arith.constant 1 : index
      %c0_156 = arith.constant 0 : index
      %88 = vector.load %arg13[%c0_154, %c1_155, %c0_156] : memref<18x18x32xf32, #tpu.memory_space<vmem>>, vector<16x16x32xf32>
      %c0_157 = arith.constant 0 : index
      %c0_158 = arith.constant 0 : index
      %c32_159 = arith.constant 32 : index
      %89 = vector.load %arg14[%c0_157, %c0_158, %c32_159] : memref<16x16x288xf32, #tpu.memory_space<vmem>>, vector<16x16x32xf32>
      tpu.vector_store %arg14[%c0_157, %c0_158, %c32_159], %88 {strides = array<i32>} : memref<16x16x288xf32, #tpu.memory_space<vmem>>, vector<16x16x32xf32>,
      %c0_160 = arith.constant 0 : index
      %c2_161 = arith.constant 2 : index
      %c0_162 = arith.constant 0 : index
      %90 = vector.load %arg13[%c0_160, %c2_161, %c0_162] : memref<18x18x32xf32, #tpu.memory_space<vmem>>, vector<16x16x32xf32>
      %c0_163 = arith.constant 0 : index
      %c0_164 = arith.constant 0 : index
      %c64_165 = arith.constant 64 : index
      %91 = vector.load %arg14[%c0_163, %c0_164, %c64_165] : memref<16x16x288xf32, #tpu.memory_space<vmem>>, vector<16x16x32xf32>
      tpu.vector_store %arg14[%c0_163, %c0_164, %c64_165], %90 {strides = array<i32>} : memref<16x16x288xf32, #tpu.memory_space<vmem>>, vector<16x16x32xf32>,
      %c1_166 = arith.constant 1 : index
      %c0_167 = arith.constant 0 : index
      %c0_168 = arith.constant 0 : index
      %92 = vector.load %arg13[%c1_166, %c0_167, %c0_168] : memref<18x18x32xf32, #tpu.memory_space<vmem>>, vector<16x16x32xf32>
      %c0_169 = arith.constant 0 : index
      %c0_170 = arith.constant 0 : index
      %c96_171 = arith.constant 96 : index
      %93 = vector.load %arg14[%c0_169, %c0_170, %c96_171] : memref<16x16x288xf32, #tpu.memory_space<vmem>>, vector<16x16x32xf32>
      tpu.vector_store %arg14[%c0_169, %c0_170, %c96_171], %92 {strides = array<i32>} : memref<16x16x288xf32, #tpu.memory_space<vmem>>, vector<16x16x32xf32>,
      %c1_172 = arith.constant 1 : index
      %c1_173 = arith.constant 1 : index
      %c0_174 = arith.constant 0 : index
      %94 = vector.load %arg13[%c1_172, %c1_173, %c0_174] : memref<18x18x32xf32, #tpu.memory_space<vmem>>, vector<16x16x32xf32>
      %c0_175 = arith.constant 0 : index
      %c0_176 = arith.constant 0 : index
      %c128_177 = arith.constant 128 : index
      %95 = vector.load %arg14[%c0_175, %c0_176, %c128_177] : memref<16x16x288xf32, #tpu.memory_space<vmem>>, vector<16x16x32xf32>
      tpu.vector_store %arg14[%c0_175, %c0_176, %c128_177], %94 {strides = array<i32>} : memref<16x16x288xf32, #tpu.memory_space<vmem>>, vector<16x16x32xf32>,
      %c1_178 = arith.constant 1 : index
      %c2_179 = arith.constant 2 : index
      %c0_180 = arith.constant 0 : index
      %96 = vector.load %arg13[%c1_178, %c2_179, %c0_180] : memref<18x18x32xf32, #tpu.memory_space<vmem>>, vector<16x16x32xf32>
      %c0_181 = arith.constant 0 : index
      %c0_182 = arith.constant 0 : index
      %c160_183 = arith.constant 160 : index
      %97 = vector.load %arg14[%c0_181, %c0_182, %c160_183] : memref<16x16x288xf32, #tpu.memory_space<vmem>>, vector<16x16x32xf32>
      tpu.vector_store %arg14[%c0_181, %c0_182, %c160_183], %96 {strides = array<i32>} : memref<16x16x288xf32, #tpu.memory_space<vmem>>, vector<16x16x32xf32>,
      %c2_184 = arith.constant 2 : index
      %c0_185 = arith.constant 0 : index
      %c0_186 = arith.constant 0 : index
      %98 = vector.load %arg13[%c2_184, %c0_185, %c0_186] : memref<18x18x32xf32, #tpu.memory_space<vmem>>, vector<16x16x32xf32>
      %c0_187 = arith.constant 0 : index
      %c0_188 = arith.constant 0 : index
      %c192_189 = arith.constant 192 : index
      %99 = vector.load %arg14[%c0_187, %c0_188, %c192_189] : memref<16x16x288xf32, #tpu.memory_space<vmem>>, vector<16x16x32xf32>
      tpu.vector_store %arg14[%c0_187, %c0_188, %c192_189], %98 {strides = array<i32>} : memref<16x16x288xf32, #tpu.memory_space<vmem>>, vector<16x16x32xf32>,
      %c2_190 = arith.constant 2 : index
      %c1_191 = arith.constant 1 : index
      %c0_192 = arith.constant 0 : index
      %100 = vector.load %arg13[%c2_190, %c1_191, %c0_192] : memref<18x18x32xf32, #tpu.memory_space<vmem>>, vector<16x16x32xf32>
      %c0_193 = arith.constant 0 : index
      %c0_194 = arith.constant 0 : index
      %c224_195 = arith.constant 224 : index
      %101 = vector.load %arg14[%c0_193, %c0_194, %c224_195] : memref<16x16x288xf32, #tpu.memory_space<vmem>>, vector<16x16x32xf32>
      tpu.vector_store %arg14[%c0_193, %c0_194, %c224_195], %100 {strides = array<i32>} : memref<16x16x288xf32, #tpu.memory_space<vmem>>, vector<16x16x32xf32>,
      %c2_196 = arith.constant 2 : index
      %c2_197 = arith.constant 2 : index
      %c0_198 = arith.constant 0 : index
      %102 = vector.load %arg13[%c2_196, %c2_197, %c0_198] : memref<18x18x32xf32, #tpu.memory_space<vmem>>, vector<16x16x32xf32>
      %c0_199 = arith.constant 0 : index
      %c0_200 = arith.constant 0 : index
      %c256_201 = arith.constant 256 : index
      %103 = vector.load %arg14[%c0_199, %c0_200, %c256_201] : memref<16x16x288xf32, #tpu.memory_space<vmem>>, vector<16x16x32xf32>
      tpu.vector_store %arg14[%c0_199, %c0_200, %c256_201], %102 {strides = array<i32>} : memref<16x16x288xf32, #tpu.memory_space<vmem>>, vector<16x16x32xf32>,
      %c0_202 = arith.constant 0 : index
      %c0_203 = arith.constant 0 : index
      %c0_204 = arith.constant 0 : index
      %104 = vector.load %arg14[%c0_202, %c0_203, %c0_204] : memref<16x16x288xf32, #tpu.memory_space<vmem>>, vector<16x16x288xf32>
      %105 = vector.shape_cast %104 : vector<16x16x288xf32> to vector<256x288xf32>
      %106 = arith.truncf %105 : vector<256x288xf32> to vector<256x288xbf16>
      %cst_205 = arith.constant dense<0.000000e+00> : vector<256x32xf32>
      %107 = tpu.matmul %106, %80, %cst_205 {dimension_numbers = #tpu.dot_dimension_numbers<[1], [0], [0], [1], [0, 0, 1, 1], [], []>} : vector<256x288xbf16>, vector<288x32xbf16>, vector<256x32xf32> -> vector<256x32xf32>
      %108 = vector.broadcast %83 : vector<1x32xf32> to vector<256x32xf32>
      %109 = arith.addf %107, %108 : vector<256x32xf32>
      %cst_206 = arith.constant dense<0.000000e+00> : vector<32xf32>
      %110 = vector.multi_reduction <add>, %109, %cst_206 [0] : vector<256x32xf32> to vector<32xf32>
      %111 = vector.shape_cast %110 : vector<32xf32> to vector<1x32xf32>
      %cst_207 = arith.constant 3.906250e-03 : f32
      %112 = vector.broadcast %cst_207 : f32 to vector<1x32xf32>
      %113 = arith.mulf %111, %112 : vector<1x32xf32>
      %114 = arith.truncf %113 : vector<1x32xf32> to vector<1x32xbf16>
      %115 = arith.index_cast %arg15 : i32 to index
      %c0_208 = arith.constant 0 : index
      %c0_209 = arith.constant 0 : index
      %116 = vector.load %arg6[%115, %c0_208, %c0_209] : memref<2x32x8xbf16, #tpu.memory_space<vmem>>, vector<1x32x8xbf16>
      %117 = vector.shape_cast %116 : vector<1x32x8xbf16> to vector<32x8xbf16>
      %cst_210 = arith.constant dense<0.000000e+00> : vector<1x8xf32>
      %118 = tpu.matmul %114, %117, %cst_210 {dimension_numbers = #tpu.dot_dimension_numbers<[1], [0], [0], [1], [0, 0, 1, 1], [], []>} : vector<1x32xbf16>, vector<32x8xbf16>, vector<1x8xf32> -> vector<1x8xf32>
      %119 = arith.index_cast %arg15 : i32 to index
      %c0_211 = arith.constant 0 : index
      %c0_212 = arith.constant 0 : index
      %120 = vector.load %arg7[%119, %c0_211, %c0_212] : memref<2x1x8xf32, #tpu.memory_space<vmem>>, vector<1x1x8xf32>
      %121 = vector.shape_cast %120 : vector<1x1x8xf32> to vector<1x8xf32>
      %122 = arith.addf %118, %121 : vector<1x8xf32>
      %cst_213 = arith.constant 0.000000e+00 : f32
      %123 = vector.broadcast %cst_213 : f32 to vector<1x8xf32>
      %124 = arith.maximumf %122, %123 : vector<1x8xf32>
      %125 = arith.truncf %124 : vector<1x8xf32> to vector<1x8xbf16>
      %126 = arith.index_cast %arg15 : i32 to index
      %c0_214 = arith.constant 0 : index
      %c0_215 = arith.constant 0 : index
      %127 = vector.load %arg8[%126, %c0_214, %c0_215] : memref<2x8x32xbf16, #tpu.memory_space<vmem>>, vector<1x8x32xbf16>
      %128 = vector.shape_cast %127 : vector<1x8x32xbf16> to vector<8x32xbf16>
      %cst_216 = arith.constant dense<0.000000e+00> : vector<1x32xf32>
      %129 = tpu.matmul %125, %128, %cst_216 {dimension_numbers = #tpu.dot_dimension_numbers<[1], [0], [0], [1], [0, 0, 1, 1], [], []>} : vector<1x8xbf16>, vector<8x32xbf16>, vector<1x32xf32> -> vector<1x32xf32>
      %130 = arith.index_cast %arg15 : i32 to index
      %c0_217 = arith.constant 0 : index
      %c0_218 = arith.constant 0 : index
      %131 = vector.load %arg9[%130, %c0_217, %c0_218] : memref<2x1x32xf32, #tpu.memory_space<vmem>>, vector<1x1x32xf32>
      %132 = vector.shape_cast %131 : vector<1x1x32xf32> to vector<1x32xf32>
      %133 = arith.addf %129, %132 : vector<1x32xf32>
      %cst_219 = arith.constant 0.000000e+00 : f32
      %134 = vector.broadcast %cst_219 : f32 to vector<1x32xf32>
      %135 = arith.subf %134, %133 : vector<1x32xf32>
      %136 = math.exp %135 : vector<1x32xf32>
      %cst_220 = arith.constant 1.000000e+00 : f32
      %137 = vector.broadcast %cst_220 : f32 to vector<1x32xf32>
      %138 = arith.addf %137, %136 : vector<1x32xf32>
      %139 = tpu.reciprocal %138 {approx = true} : vector<1x32xf32> -> vector<1x32xf32>
      %140 = vector.broadcast %139 : vector<1x32xf32> to vector<256x32xf32>
      %141 = arith.mulf %109, %140 : vector<256x32xf32>
      %142 = arith.addf %arg16, %141 : vector<256x32xf32>
      scf.yield %142 : vector<256x32xf32>
    }
    %c2_i32_16 = arith.constant 2 : i32
    %c0_17 = arith.constant 0 : index
    %c0_18 = arith.constant 0 : index
    %12 = vector.load %arg10[%c0_17, %c0_18] : memref<288x32xbf16, #tpu.memory_space<vmem>>, vector<288x32xbf16>
    %c0_19 = arith.constant 0 : index
    %c0_20 = arith.constant 0 : index
    %13 = vector.load %arg11[%c0_19, %c0_20] : memref<1x32xf32, #tpu.memory_space<vmem>>, vector<1x32xf32>
    %14 = vector.shape_cast %11 : vector<256x32xf32> to vector<16x16x32xf32>
    %c1 = arith.constant 1 : index
    %c1_21 = arith.constant 1 : index
    %c0_22 = arith.constant 0 : index
    %15 = vector.load %arg13[%c1, %c1_21, %c0_22] : memref<18x18x32xf32, #tpu.memory_space<vmem>>, vector<16x16x32xf32>
    tpu.vector_store %arg13[%c1, %c1_21, %c0_22], %14 {strides = array<i32>} : memref<18x18x32xf32, #tpu.memory_space<vmem>>, vector<16x16x32xf32>,
    %c0_23 = arith.constant 0 : index
    %c0_24 = arith.constant 0 : index
    %c0_25 = arith.constant 0 : index
    %16 = vector.load %arg13[%c0_23, %c0_24, %c0_25] : memref<18x18x32xf32, #tpu.memory_space<vmem>>, vector<16x16x32xf32>
    %c0_26 = arith.constant 0 : index
    %c0_27 = arith.constant 0 : index
    %c0_28 = arith.constant 0 : index
    %17 = vector.load %arg14[%c0_26, %c0_27, %c0_28] : memref<16x16x288xf32, #tpu.memory_space<vmem>>, vector<16x16x32xf32>
    tpu.vector_store %arg14[%c0_26, %c0_27, %c0_28], %16 {strides = array<i32>} : memref<16x16x288xf32, #tpu.memory_space<vmem>>, vector<16x16x32xf32>,
    %c0_29 = arith.constant 0 : index
    %c1_30 = arith.constant 1 : index
    %c0_31 = arith.constant 0 : index
    %18 = vector.load %arg13[%c0_29, %c1_30, %c0_31] : memref<18x18x32xf32, #tpu.memory_space<vmem>>, vector<16x16x32xf32>
    %c0_32 = arith.constant 0 : index
    %c0_33 = arith.constant 0 : index
    %c32 = arith.constant 32 : index
    %19 = vector.load %arg14[%c0_32, %c0_33, %c32] : memref<16x16x288xf32, #tpu.memory_space<vmem>>, vector<16x16x32xf32>
    tpu.vector_store %arg14[%c0_32, %c0_33, %c32], %18 {strides = array<i32>} : memref<16x16x288xf32, #tpu.memory_space<vmem>>, vector<16x16x32xf32>,
    %c0_34 = arith.constant 0 : index
    %c2 = arith.constant 2 : index
    %c0_35 = arith.constant 0 : index
    %20 = vector.load %arg13[%c0_34, %c2, %c0_35] : memref<18x18x32xf32, #tpu.memory_space<vmem>>, vector<16x16x32xf32>
    %c0_36 = arith.constant 0 : index
    %c0_37 = arith.constant 0 : index
    %c64 = arith.constant 64 : index
    %21 = vector.load %arg14[%c0_36, %c0_37, %c64] : memref<16x16x288xf32, #tpu.memory_space<vmem>>, vector<16x16x32xf32>
    tpu.vector_store %arg14[%c0_36, %c0_37, %c64], %20 {strides = array<i32>} : memref<16x16x288xf32, #tpu.memory_space<vmem>>, vector<16x16x32xf32>,
    %c1_38 = arith.constant 1 : index
    %c0_39 = arith.constant 0 : index
    %c0_40 = arith.constant 0 : index
    %22 = vector.load %arg13[%c1_38, %c0_39, %c0_40] : memref<18x18x32xf32, #tpu.memory_space<vmem>>, vector<16x16x32xf32>
    %c0_41 = arith.constant 0 : index
    %c0_42 = arith.constant 0 : index
    %c96 = arith.constant 96 : index
    %23 = vector.load %arg14[%c0_41, %c0_42, %c96] : memref<16x16x288xf32, #tpu.memory_space<vmem>>, vector<16x16x32xf32>
    tpu.vector_store %arg14[%c0_41, %c0_42, %c96], %22 {strides = array<i32>} : memref<16x16x288xf32, #tpu.memory_space<vmem>>, vector<16x16x32xf32>,
    %c1_43 = arith.constant 1 : index
    %c1_44 = arith.constant 1 : index
    %c0_45 = arith.constant 0 : index
    %24 = vector.load %arg13[%c1_43, %c1_44, %c0_45] : memref<18x18x32xf32, #tpu.memory_space<vmem>>, vector<16x16x32xf32>
    %c0_46 = arith.constant 0 : index
    %c0_47 = arith.constant 0 : index
    %c128 = arith.constant 128 : index
    %25 = vector.load %arg14[%c0_46, %c0_47, %c128] : memref<16x16x288xf32, #tpu.memory_space<vmem>>, vector<16x16x32xf32>
    tpu.vector_store %arg14[%c0_46, %c0_47, %c128], %24 {strides = array<i32>} : memref<16x16x288xf32, #tpu.memory_space<vmem>>, vector<16x16x32xf32>,
    %c1_48 = arith.constant 1 : index
    %c2_49 = arith.constant 2 : index
    %c0_50 = arith.constant 0 : index
    %26 = vector.load %arg13[%c1_48, %c2_49, %c0_50] : memref<18x18x32xf32, #tpu.memory_space<vmem>>, vector<16x16x32xf32>
    %c0_51 = arith.constant 0 : index
    %c0_52 = arith.constant 0 : index
    %c160 = arith.constant 160 : index
    %27 = vector.load %arg14[%c0_51, %c0_52, %c160] : memref<16x16x288xf32, #tpu.memory_space<vmem>>, vector<16x16x32xf32>
    tpu.vector_store %arg14[%c0_51, %c0_52, %c160], %26 {strides = array<i32>} : memref<16x16x288xf32, #tpu.memory_space<vmem>>, vector<16x16x32xf32>,
    %c2_53 = arith.constant 2 : index
    %c0_54 = arith.constant 0 : index
    %c0_55 = arith.constant 0 : index
    %28 = vector.load %arg13[%c2_53, %c0_54, %c0_55] : memref<18x18x32xf32, #tpu.memory_space<vmem>>, vector<16x16x32xf32>
    %c0_56 = arith.constant 0 : index
    %c0_57 = arith.constant 0 : index
    %c192 = arith.constant 192 : index
    %29 = vector.load %arg14[%c0_56, %c0_57, %c192] : memref<16x16x288xf32, #tpu.memory_space<vmem>>, vector<16x16x32xf32>
    tpu.vector_store %arg14[%c0_56, %c0_57, %c192], %28 {strides = array<i32>} : memref<16x16x288xf32, #tpu.memory_space<vmem>>, vector<16x16x32xf32>,
    %c2_58 = arith.constant 2 : index
    %c1_59 = arith.constant 1 : index
    %c0_60 = arith.constant 0 : index
    %30 = vector.load %arg13[%c2_58, %c1_59, %c0_60] : memref<18x18x32xf32, #tpu.memory_space<vmem>>, vector<16x16x32xf32>
    %c0_61 = arith.constant 0 : index
    %c0_62 = arith.constant 0 : index
    %c224 = arith.constant 224 : index
    %31 = vector.load %arg14[%c0_61, %c0_62, %c224] : memref<16x16x288xf32, #tpu.memory_space<vmem>>, vector<16x16x32xf32>
    tpu.vector_store %arg14[%c0_61, %c0_62, %c224], %30 {strides = array<i32>} : memref<16x16x288xf32, #tpu.memory_space<vmem>>, vector<16x16x32xf32>,
    %c2_63 = arith.constant 2 : index
    %c2_64 = arith.constant 2 : index
    %c0_65 = arith.constant 0 : index
    %32 = vector.load %arg13[%c2_63, %c2_64, %c0_65] : memref<18x18x32xf32, #tpu.memory_space<vmem>>, vector<16x16x32xf32>
    %c0_66 = arith.constant 0 : index
    %c0_67 = arith.constant 0 : index
    %c256 = arith.constant 256 : index
    %33 = vector.load %arg14[%c0_66, %c0_67, %c256] : memref<16x16x288xf32, #tpu.memory_space<vmem>>, vector<16x16x32xf32>
    tpu.vector_store %arg14[%c0_66, %c0_67, %c256], %32 {strides = array<i32>} : memref<16x16x288xf32, #tpu.memory_space<vmem>>, vector<16x16x32xf32>,
    %c0_68 = arith.constant 0 : index
    %c0_69 = arith.constant 0 : index
    %c0_70 = arith.constant 0 : index
    %34 = vector.load %arg14[%c0_68, %c0_69, %c0_70] : memref<16x16x288xf32, #tpu.memory_space<vmem>>, vector<16x16x288xf32>
    %35 = vector.shape_cast %34 : vector<16x16x288xf32> to vector<256x288xf32>
    %36 = arith.truncf %35 : vector<256x288xf32> to vector<256x288xbf16>
    %cst_71 = arith.constant dense<0.000000e+00> : vector<256x32xf32>
    %37 = tpu.matmul %36, %12, %cst_71 {dimension_numbers = #tpu.dot_dimension_numbers<[1], [0], [0], [1], [0, 0, 1, 1], [], []>} : vector<256x288xbf16>, vector<288x32xbf16>, vector<256x32xf32> -> vector<256x32xf32>
    %38 = vector.broadcast %13 : vector<1x32xf32> to vector<256x32xf32>
    %39 = arith.addf %37, %38 : vector<256x32xf32>
    %40 = arith.addf %9, %39 : vector<256x32xf32>
    %c0_72 = arith.constant 0 : index
    %c0_73 = arith.constant 0 : index
    %c0_74 = arith.constant 0 : index
    %41 = vector.load %arg12[%c0_72, %c0_73, %c0_74] : memref<1x256x32xf32, #tpu.memory_space<vmem>>, vector<1x256x32xf32>
    %42 = vector.shape_cast %41 : vector<1x256x32xf32> to vector<256x32xf32>
    %43 = vector.shape_cast %40 : vector<256x32xf32> to vector<1x256x32xf32>
    tpu.vector_store %arg12[%c0_72, %c0_73, %c0_74], %43 {strides = array<i32>} : memref<1x256x32xf32, #tpu.memory_space<vmem>>, vector<1x256x32xf32>,
    return
  }
  func.func @transform_0(%arg0: i32) -> (i32, i32, i32) {
    %c0_i32 = arith.constant 0 : i32
    %c0_i32_0 = arith.constant 0 : i32
    %c0_i32_1 = arith.constant 0 : i32
    return %arg0, %c0_i32, %c0_i32_0 : i32, i32, i32
  }
  func.func @transform_1(%arg0: i32) -> (i32, i32, i32) {
    %c0_i32 = arith.constant 0 : i32
    %c0_i32_0 = arith.constant 0 : i32
    %c0_i32_1 = arith.constant 0 : i32
    %c0_i32_2 = arith.constant 0 : i32
    return %c0_i32, %c0_i32_0, %c0_i32_1 : i32, i32, i32
  }
  func.func @transform_2(%arg0: i32) -> (i32, i32, i32) {
    %c0_i32 = arith.constant 0 : i32
    %c0_i32_0 = arith.constant 0 : i32
    %c0_i32_1 = arith.constant 0 : i32
    %c0_i32_2 = arith.constant 0 : i32
    return %c0_i32, %c0_i32_0, %c0_i32_1 : i32, i32, i32
  }
  func.func @transform_3(%arg0: i32) -> (i32, i32, i32) {
    %c0_i32 = arith.constant 0 : i32
    %c0_i32_0 = arith.constant 0 : i32
    %c0_i32_1 = arith.constant 0 : i32
    %c0_i32_2 = arith.constant 0 : i32
    return %c0_i32, %c0_i32_0, %c0_i32_1 : i32, i32, i32
  }
  func.func @transform_4(%arg0: i32) -> (i32, i32, i32) {
    %c0_i32 = arith.constant 0 : i32
    %c0_i32_0 = arith.constant 0 : i32
    %c0_i32_1 = arith.constant 0 : i32
    %c0_i32_2 = arith.constant 0 : i32
    return %c0_i32, %c0_i32_0, %c0_i32_1 : i32, i32, i32
  }
  func.func @transform_5(%arg0: i32) -> (i32, i32, i32) {
    %c0_i32 = arith.constant 0 : i32
    %c0_i32_0 = arith.constant 0 : i32
    %c0_i32_1 = arith.constant 0 : i32
    %c0_i32_2 = arith.constant 0 : i32
    return %c0_i32, %c0_i32_0, %c0_i32_1 : i32, i32, i32
  }
  func.func @transform_6(%arg0: i32) -> (i32, i32, i32) {
    %c0_i32 = arith.constant 0 : i32
    %c0_i32_0 = arith.constant 0 : i32
    %c0_i32_1 = arith.constant 0 : i32
    %c0_i32_2 = arith.constant 0 : i32
    return %c0_i32, %c0_i32_0, %c0_i32_1 : i32, i32, i32
  }
  func.func @transform_7(%arg0: i32) -> (i32, i32, i32) {
    %c0_i32 = arith.constant 0 : i32
    %c0_i32_0 = arith.constant 0 : i32
    %c0_i32_1 = arith.constant 0 : i32
    %c0_i32_2 = arith.constant 0 : i32
    return %c0_i32, %c0_i32_0, %c0_i32_1 : i32, i32, i32
  }
  func.func @transform_8(%arg0: i32) -> (i32, i32, i32) {
    %c0_i32 = arith.constant 0 : i32
    %c0_i32_0 = arith.constant 0 : i32
    %c0_i32_1 = arith.constant 0 : i32
    %c0_i32_2 = arith.constant 0 : i32
    return %c0_i32, %c0_i32_0, %c0_i32_1 : i32, i32, i32
  }
  func.func @transform_9(%arg0: i32) -> (i32, i32) {
    %c0_i32 = arith.constant 0 : i32
    %c0_i32_0 = arith.constant 0 : i32
    %c0_i32_1 = arith.constant 0 : i32
    return %c0_i32, %c0_i32_0 : i32, i32
  }
  func.func @transform_10(%arg0: i32) -> (i32, i32) {
    %c0_i32 = arith.constant 0 : i32
    %c0_i32_0 = arith.constant 0 : i32
    %c0_i32_1 = arith.constant 0 : i32
    return %c0_i32, %c0_i32_0 : i32, i32
  }
  func.func @transform_11(%arg0: i32) -> (i32, i32, i32) {
    %c0_i32 = arith.constant 0 : i32
    %c0_i32_0 = arith.constant 0 : i32
    %c0_i32_1 = arith.constant 0 : i32
    return %arg0, %c0_i32, %c0_i32_0 : i32, i32, i32
  }
}

</mosaic_0001>

<bundles_post_ra>
// kernel: tpu_custom_call.1
= control target key start
LH: loop header
LB: loop body
LE: loop exit
PB: predicated region body
PF: predicated region fallthrough
CT: control target
= control target key end

     0   :  { %s8518_s17 = smov 0   ;;  %s12790_s0 = inlined_call_operand.vmem [shape: f32[2,256,32], index: 0, kind: input, shape index: {}]   ;;  %s12791_s1 = inlined_call_operand.vmem [shape: bf16[2,288,32], index: 1, kind: input, shape index: {}]   ;;  %s12792_s2 = inlined_call_operand.vmem [shape: f32[2,1,32], index: 2, kind: input, shape index: {}]   ;;  %s12793_s3 = inlined_call_operand.vmem [shape: bf16[2,288,32], index: 3, kind: input, shape index: {}]   ;;  %s12794_s4 = inlined_call_operand.vmem [shape: f32[2,1,32], index: 4, kind: input, shape index: {}]   ;;  %s12795_s5 = inlined_call_operand.vmem [shape: bf16[2,32,8], index: 5, kind: input, shape index: {}]   ;;  %s12796_s6 = inlined_call_operand.vmem [shape: f32[2,1,8], index: 6, kind: input, shape index: {}]   ;;  %s12797_s7 = inlined_call_operand.vmem [shape: bf16[2,8,32], index: 7, kind: input, shape index: {}]   ;;  %s12798_s8 = inlined_call_operand.vmem [shape: f32[2,1,32], index: 8, kind: input, shape index: {}]   ;;  %s12799_s9 = inlined_call_operand.vmem [shape: bf16[288,32], index: 9, kind: input, shape index: {}]   ;;  %s12800_s10 = inlined_call_operand.vmem [shape: f32[1,32], index: 10, kind: input, shape index: {}]   ;;  %s12801_s11 = inlined_call_operand.vmem [shape: f32[2,256,32], index: 11, kind: output, shape index: {}]  }
   0x1 LB: > { %s7171_s18 = sadd.s32 4294967295, %s8315_s17   ;;  %p7175_p0 = scmp.ge.s32.totalorder %s8315_s17, 1  ;;  %s8315_s17 = sphi %s8518_s17, %s21_s17  }
   0x2   : > { %p337_p1 = scmp.lt.s32.totalorder %s8315_s17, 3 }
   0x4   : > { %p338_p2 = pnand %p7175_p0, %p337_p1 }
   0x6   : > { %341 = sbr.rel (%p338_p2) target bundleno = 2359 (0x937), region = 64 }
   0xb   : > { %p8528_p3 = scmp.lt.s32.totalorder %s7171_s18, 1  ;;  %vm388_vm0 = vcmask 261120   ;;  %vm391_vm1 = vcmask 254976   ;;  %vm397_vm2 = vcmask 253952   ;;  %v8449_v0 = vmov 0.0   ;;  %s8778_s27 = smov 0  }
   0xc   : > { %389 = vst.msk [vmem:[#allocation2] sm:$0xff] %vm388_vm0, %v8449_v0  ;;  %390 = vst.msk [vmem:[#allocation2 + $0x8] sm:$0xff] %vm388_vm0, %v8449_v0 }
   0xd   : > { %394 = vst.msk [vmem:[#allocation2 + $0x198] sm:$0xff] %vm388_vm0, %v8449_v0  ;;  %395 = vst.msk [vmem:[#allocation2 + $0x1a0] sm:$0xff] %vm388_vm0, %v8449_v0  ;;  %s13104_s18 = smov (!%p8528_p3, %s7171_s18), 1 }
   0xe   : > { %392 = vst.msk [vmem:[#allocation2 + $0x10] sm:$0x3] %vm391_vm1, %v8449_v0  ;;  %396 = vst.msk [vmem:[#allocation2 + $0x1a8] sm:$0x3] %vm391_vm1, %v8449_v0  ;;  %s7296_s20 = sshll.u32 %s13104_s18, 8 }
   0xf   : > { %399 = vst.msk [vmem:[#allocation2 + $0x18] sm:$0x1] %vm397_vm2, %v8449_v0  ;;  %400 = vst.msk [vmem:[#allocation2 + $0x30] sm:$0x1] %vm397_vm2, %v8449_v0  ;;  %s8579_s23 = scalar_lea.vmem %s12790_s0, %s7296_s20  ;;  %s8584_s26 = scalar_lea.vmem %s12801_s11, %s7296_s20 }
  0x10   : > { %401 = vst.msk [vmem:[#allocation2 + $0x48] sm:$0x1] %vm397_vm2, %v8449_v0  ;;  %402 = vst.msk [vmem:[#allocation2 + $0x60] sm:$0x1] %vm397_vm2, %v8449_v0  ;;  %v8587_v1 = vld [vmem:[%s8579_s23] sm:$0xff]   ;;  %v8590_v2 = vld [vmem:[%s8579_s23 + $0x8] sm:$0xff]  }
  0x11   : > { %403 = vst.msk [vmem:[#allocation2 + $0x78] sm:$0x1] %vm397_vm2, %v8449_v0  ;;  %404 = vst.msk [vmem:[#allocation2 + $0x90] sm:$0x1] %vm397_vm2, %v8449_v0  ;;  %v8593_v3 = vld [vmem:[%s8579_s23 + $0x10] sm:$0xff]   ;;  %v8596_v4 = vld [vmem:[%s8579_s23 + $0x18] sm:$0xff]   ;;  %v12930_v63 = vmov %v8590_v2 }
  0x12   : > { %405 = vst.msk [vmem:[#allocation2 + $0xa8] sm:$0x1] %vm397_vm2, %v8449_v0  ;;  %406 = vst.msk [vmem:[#allocation2 + $0xc0] sm:$0x1] %vm397_vm2, %v8449_v0  ;;  %v8599_v5 = vld [vmem:[%s8579_s23 + $0x20] sm:$0xff]   ;;  %v8602_v6 = vld [vmem:[%s8579_s23 + $0x28] sm:$0xff]   ;;  %v12928_v61 = vmov %v8596_v4  ;;  %v12929_v62 = vmov %v8593_v3 }
  0x13   : > { %407 = vst.msk [vmem:[#allocation2 + $0xd8] sm:$0x1] %vm397_vm2, %v8449_v0  ;;  %408 = vst.msk [vmem:[#allocation2 + $0xf0] sm:$0x1] %vm397_vm2, %v8449_v0  ;;  %v8605_v7 = vld [vmem:[%s8579_s23 + $0x30] sm:$0xff]   ;;  %v8608_v8 = vld [vmem:[%s8579_s23 + $0x38] sm:$0xff]   ;;  %v12926_v59 = vmov %v8602_v6  ;;  %v12927_v60 = vmov %v8599_v5 }
  0x14   : > { %409 = vst.msk [vmem:[#allocation2 + $0x108] sm:$0x1] %vm397_vm2, %v8449_v0  ;;  %410 = vst.msk [vmem:[#allocation2 + $0x120] sm:$0x1] %vm397_vm2, %v8449_v0  ;;  %v8611_v9 = vld [vmem:[%s8579_s23 + $0x40] sm:$0xff]   ;;  %v8614_v10 = vld [vmem:[%s8579_s23 + $0x48] sm:$0xff]   ;;  %v12924_v57 = vmov %v8608_v8  ;;  %v12925_v58 = vmov %v8605_v7 }
  0x15   : > { %411 = vst.msk [vmem:[#allocation2 + $0x138] sm:$0x1] %vm397_vm2, %v8449_v0  ;;  %412 = vst.msk [vmem:[#allocation2 + $0x150] sm:$0x1] %vm397_vm2, %v8449_v0  ;;  %v8617_v11 = vld [vmem:[%s8579_s23 + $0x50] sm:$0xff]   ;;  %v8620_v12 = vld [vmem:[%s8579_s23 + $0x58] sm:$0xff]   ;;  %v12922_v55 = vmov %v8614_v10  ;;  %v12923_v56 = vmov %v8611_v9 }
  0x16   : > { %413 = vst.msk [vmem:[#allocation2 + $0x168] sm:$0x1] %vm397_vm2, %v8449_v0  ;;  %414 = vst.msk [vmem:[#allocation2 + $0x180] sm:$0x1] %vm397_vm2, %v8449_v0  ;;  %v8623_v13 = vld [vmem:[%s8579_s23 + $0x60] sm:$0xff]   ;;  %v8626_v14 = vld [vmem:[%s8579_s23 + $0x68] sm:$0xff]   ;;  %v12920_v53 = vmov %v8620_v12  ;;  %v12921_v54 = vmov %v8617_v11 }
  0x17   : > { %417 = vst.msk [vmem:[#allocation2 + $0x29] sm:$0x1] %vm397_vm2, %v8449_v0  ;;  %418 = vst.msk [vmem:[#allocation2 + $0x41] sm:$0x1] %vm397_vm2, %v8449_v0  ;;  %v8629_v15 = vld [vmem:[%s8579_s23 + $0x70] sm:$0xff]   ;;  %v8632_v16 = vld [vmem:[%s8579_s23 + $0x78] sm:$0xff]   ;;  %v12918_v51 = vmov %v8626_v14  ;;  %v12919_v52 = vmov %v8623_v13 }
  0x18   : > { %419 = vst.msk [vmem:[#allocation2 + $0x59] sm:$0x1] %vm397_vm2, %v8449_v0  ;;  %420 = vst.msk [vmem:[#allocation2 + $0x71] sm:$0x1] %vm397_vm2, %v8449_v0  ;;  %v8635_v17 = vld [vmem:[%s8579_s23 + $0x80] sm:$0xff]   ;;  %v8638_v18 = vld [vmem:[%s8579_s23 + $0x88] sm:$0xff]   ;;  %v12916_v49 = vmov %v8632_v16  ;;  %v12917_v50 = vmov %v8629_v15 }
  0x19   : > { %421 = vst.msk [vmem:[#allocation2 + $0x89] sm:$0x1] %vm397_vm2, %v8449_v0  ;;  %422 = vst.msk [vmem:[#allocation2 + $0xa1] sm:$0x1] %vm397_vm2, %v8449_v0  ;;  %v8641_v19 = vld [vmem:[%s8579_s23 + $0x90] sm:$0xff]   ;;  %v8644_v20 = vld [vmem:[%s8579_s23 + $0x98] sm:$0xff]   ;;  %v12914_v47 = vmov %v8638_v18  ;;  %v12915_v48 = vmov %v8635_v17 }
  0x1a   : > { %423 = vst.msk [vmem:[#allocation2 + $0xb9] sm:$0x1] %vm397_vm2, %v8449_v0  ;;  %424 = vst.msk [vmem:[#allocation2 + $0xd1] sm:$0x1] %vm397_vm2, %v8449_v0  ;;  %v8647_v21 = vld [vmem:[%s8579_s23 + $0xa0] sm:$0xff]   ;;  %v8650_v22 = vld [vmem:[%s8579_s23 + $0xa8] sm:$0xff]   ;;  %v12912_v45 = vmov %v8644_v20  ;;  %v12913_v46 = vmov %v8641_v19 }
  0x1b   : > { %425 = vst.msk [vmem:[#allocation2 + $0xe9] sm:$0x1] %vm397_vm2, %v8449_v0  ;;  %426 = vst.msk [vmem:[#allocation2 + $0x101] sm:$0x1] %vm397_vm2, %v8449_v0  ;;  %v8653_v23 = vld [vmem:[%s8579_s23 + $0xb0] sm:$0xff]   ;;  %v8656_v24 = vld [vmem:[%s8579_s23 + $0xb8] sm:$0xff]   ;;  %v12910_v43 = vmov %v8650_v22  ;;  %v12911_v44 = vmov %v8647_v21 }
  0x1c   : > { %427 = vst.msk [vmem:[#allocation2 + $0x119] sm:$0x1] %vm397_vm2, %v8449_v0  ;;  %428 = vst.msk [vmem:[#allocation2 + $0x131] sm:$0x1] %vm397_vm2, %v8449_v0  ;;  %v8659_v25 = vld [vmem:[%s8579_s23 + $0xc0] sm:$0xff]   ;;  %v8662_v26 = vld [vmem:[%s8579_s23 + $0xc8] sm:$0xff]   ;;  %v12908_v41 = vmov %v8656_v24  ;;  %v12909_v42 = vmov %v8653_v23 }
  0x1d   : > { %429 = vst.msk [vmem:[#allocation2 + $0x149] sm:$0x1] %vm397_vm2, %v8449_v0  ;;  %430 = vst.msk [vmem:[#allocation2 + $0x161] sm:$0x1] %vm397_vm2, %v8449_v0  ;;  %v8665_v27 = vld [vmem:[%s8579_s23 + $0xd0] sm:$0xff]   ;;  %v8668_v28 = vld [vmem:[%s8579_s23 + $0xd8] sm:$0xff]   ;;  %v12906_v39 = vmov %v8662_v26  ;;  %v12907_v40 = vmov %v8659_v25 }
  0x1e   : > { %431 = vst.msk [vmem:[#allocation2 + $0x179] sm:$0x1] %vm397_vm2, %v8449_v0  ;;  %432 = vst.msk [vmem:[#allocation2 + $0x191] sm:$0x1] %vm397_vm2, %v8449_v0  ;;  %v8671_v29 = vld [vmem:[%s8579_s23 + $0xe0] sm:$0xff]   ;;  %v8674_v30 = vld [vmem:[%s8579_s23 + $0xe8] sm:$0xff]   ;;  %v12904_v37 = vmov %v8668_v28  ;;  %v12905_v38 = vmov %v8665_v27 }
  0x1f   : > { %398 = vst.msk [vmem:[#allocation2] sm:$0x1] %vm397_vm2, %v8449_v0  ;;  %415 = vst.msk [vmem:[#allocation2 + $0x198] sm:$0x1] %vm397_vm2, %v8449_v0  ;;  %v8677_v31 = vld [vmem:[%s8579_s23 + $0xf0] sm:$0xff]   ;;  %v8680_v32 = vld [vmem:[%s8579_s23 + $0xf8] sm:$0xff]   ;;  %v12902_v35 = vmov %v8674_v30  ;;  %v12903_v36 = vmov %v8671_v29 }
  0x20   : > { %416 = vst.msk [vmem:[#allocation2 + $0x11] sm:$0x1] %vm397_vm2, %v8449_v0  ;;  %433 = vst.msk [vmem:[#allocation2 + $0x1a9] sm:$0x1] %vm397_vm2, %v8449_v0  ;;  %v12900_v33 = vmov %v8680_v32  ;;  %v12901_v34 = vmov %v8677_v31  ;;  %v12931_v0 = vmov %v8587_v1 }
  0x21   : > { %12868 = vst [vmem:[#allocation4_spill] sm:$0xff] %v8587_v1  ;;  %12869 = vst [vmem:[#allocation5_spill] sm:$0xff] %v8590_v2 }
  0x22   : > { %12870 = vst [vmem:[#allocation6_spill] sm:$0xff] %v8593_v3  ;;  %12871 = vst [vmem:[#allocation7_spill] sm:$0xff] %v8596_v4 }
  0x23   : > { %12872 = vst [vmem:[#allocation8_spill] sm:$0xff] %v8599_v5  ;;  %12873 = vst [vmem:[#allocation9_spill] sm:$0xff] %v8602_v6 }
  0x24   : > { %12874 = vst [vmem:[#allocation10_spill] sm:$0xff] %v8605_v7  ;;  %12875 = vst [vmem:[#allocation11_spill] sm:$0xff] %v8608_v8 }
  0x25   : > { %12876 = vst [vmem:[#allocation12_spill] sm:$0xff] %v8611_v9  ;;  %12877 = vst [vmem:[#allocation13_spill] sm:$0xff] %v8614_v10 }
  0x26   : > { %12878 = vst [vmem:[#allocation14_spill] sm:$0xff] %v8617_v11  ;;  %12879 = vst [vmem:[#allocation15_spill] sm:$0xff] %v8620_v12 }
  0x27   : > { %12880 = vst [vmem:[#allocation16_spill] sm:$0xff] %v8623_v13  ;;  %12881 = vst [vmem:[#allocation17_spill] sm:$0xff] %v8626_v14 }
  0x28   : > { %12882 = vst [vmem:[#allocation18_spill] sm:$0xff] %v8629_v15  ;;  %12883 = vst [vmem:[#allocation19_spill] sm:$0xff] %v8632_v16 }
  0x29   : > { %12884 = vst [vmem:[#allocation20_spill] sm:$0xff] %v8635_v17  ;;  %12885 = vst [vmem:[#allocation21_spill] sm:$0xff] %v8638_v18 }
  0x2a   : > { %12886 = vst [vmem:[#allocation22_spill] sm:$0xff] %v8641_v19  ;;  %12887 = vst [vmem:[#allocation23_spill] sm:$0xff] %v8644_v20 }
  0x2b   : > { %12888 = vst [vmem:[#allocation24_spill] sm:$0xff] %v8647_v21  ;;  %12889 = vst [vmem:[#allocation25_spill] sm:$0xff] %v8650_v22 }
  0x2c   : > { %12890 = vst [vmem:[#allocation26_spill] sm:$0xff] %v8653_v23  ;;  %12891 = vst [vmem:[#allocation27_spill] sm:$0xff] %v8656_v24 }
  0x2d   : > { %12892 = vst [vmem:[#allocation28_spill] sm:$0xff] %v8659_v25  ;;  %12893 = vst [vmem:[#allocation29_spill] sm:$0xff] %v8662_v26 }
  0x2e   : > { %12894 = vst [vmem:[#allocation30_spill] sm:$0xff] %v8665_v27  ;;  %12895 = vst [vmem:[#allocation31_spill] sm:$0xff] %v8668_v28 }
  0x2f   : > { %12896 = vst [vmem:[#allocation32_spill] sm:$0xff] %v8671_v29  ;;  %12897 = vst [vmem:[#allocation33_spill] sm:$0xff] %v8674_v30 }
  0x30   : > { %12898 = vst [vmem:[#allocation34_spill] sm:$0xff] %v8677_v31  ;;  %12899 = vst [vmem:[#allocation35_spill] sm:$0xff] %v8680_v32 }
  0x31 LB: >> { %12932 = vst [vmem:[#allocation36_spill] sm:$0xff] %v8319_v33  ;;  %12933 = vst [vmem:[#allocation37_spill] sm:$0xff] %v8323_v34  ;;  %v642_v24 = vld [vmem:[#allocation2 + $0x1] sm:$0xff]  ;;  %s8450_s28 = smov 32   ;;  %v643_v21 = vld [vmem:[#allocation2 + $0x9] sm:$0xff]  ;;  %s7298_s29 = smul.u32 144, %s8447_s27  ;;  %s8447_s27 = sphi %s8778_s27, %s13062_s27   ;;  %v8443_v0 = vphi %v12931_v0, %v13061_v0   ;;  %v8439_v63 = vphi %v12930_v63, %v13060_v63   ;;  %v8435_v62 = vphi %v12929_v62, %v13059_v62   ;;  %v8431_v61 = vphi %v12928_v61, %v13058_v61   ;;  %v8427_v60 = vphi %v12927_v60, %v13057_v60   ;;  %v8423_v59 = vphi %v12926_v59, %v13056_v59   ;;  %v8419_v58 = vphi %v12925_v58, %v13055_v58   ;;  %v8415_v57 = vphi %v12924_v57, %v13054_v57   ;;  %v8411_v56 = vphi %v12923_v56, %v13053_v56   ;;  %v8407_v55 = vphi %v12922_v55, %v13052_v55   ;;  %v8403_v54 = vphi %v12921_v54, %v13051_v54   ;;  %v8399_v53 = vphi %v12920_v53, %v13050_v53   ;;  %v8395_v52 = vphi %v12919_v52, %v13049_v52   ;;  %v8391_v51 = vphi %v12918_v51, %v13048_v51   ;;  %v8387_v50 = vphi %v12917_v50, %v13047_v50   ;;  %v8383_v49 = vphi %v12916_v49, %v13046_v49   ;;  %v8379_v48 = vphi %v12915_v48, %v13045_v48   ;;  %v8375_v47 = vphi %v12914_v47, %v13044_v47   ;;  %v8371_v46 = vphi %v12913_v46, %v13043_v46   ;;  %v8367_v45 = vphi %v12912_v45, %v13042_v45   ;;  %v8363_v44 = vphi %v12911_v44, %v13041_v44   ;;  %v8359_v43 = vphi %v12910_v43, %v13040_v43   ;;  %v8355_v42 = vphi %v12909_v42, %v13039_v42   ;;  %v8351_v41 = vphi %v12908_v41, %v13038_v41   ;;  %v8347_v40 = vphi %v12907_v40, %v13037_v40   ;;  %v8343_v39 = vphi %v12906_v39, %v13036_v39   ;;  %v8339_v38 = vphi %v12905_v38, %v13035_v38   ;;  %v8335_v37 = vphi %v12904_v37, %v13034_v37   ;;  %v8331_v36 = vphi %v12903_v36, %v13033_v36   ;;  %v8327_v35 = vphi %v12902_v35, %v13032_v35   ;;  %v8323_v34 = vphi %v12901_v34, %v13031_v34   ;;  %v8319_v33 = vphi %v12900_v33, %v13030_v33  }
  0x32   : >> { %12934 = vst [vmem:[#allocation38_spill] sm:$0xff] %v8327_v35  ;;  %12935 = vst [vmem:[#allocation39_spill] sm:$0xff] %v8331_v36  ;;  %706 = vrot.lane.b32.xlu1 %v642_v24, %s8450_s28  ;;  %v578_v23 = vld [vmem:[#allocation2] sm:$0xff]  ;;  %v579_v22 = vld [vmem:[#allocation2 + $0x8] sm:$0xff]  ;;  %s8451_s14 = smov 64   ;;  %s8452_s15 = smov 96  }
  0x33   : >> { %12936 = vst [vmem:[#allocation40_spill] sm:$0xff] %v8335_v37  ;;  %12937 = vst [vmem:[#allocation41_spill] sm:$0xff] %v8339_v38  ;;  %s8905_s13 = scalar_lea.vmem %s12791_s1, %s7298_s29  ;;  %v836_v18 = vld [vmem:[#allocation2 + $0xa] sm:$0xff]  ;;  %v835_v4 = vld [vmem:[#allocation2 + $0x2] sm:$0xff]  ;;  %vm802_vm3 = vcmask 523520   ;;  %vm995_vm4 = vcmask 785920   ;;  %s9795_s19 = scalar_lea.vmem %s12792_s2, %s8447_s27 }
  0x34   : >> { %12938 = vst [vmem:[#allocation42_spill] sm:$0xff] %v8343_v39  ;;  %12939 = vst [vmem:[#allocation43_spill] sm:$0xff] %v8347_v40  ;;  %vm1188_vm5 = vcmask 1048320   ;;  %s9875_s22 = scalar_lea.vmem %s12793_s3, %s7298_s29  ;;  %s7300_s23 = sshll.u32 %s8447_s27, 4  ;;  %vm8454_vm6 = vmmov 0   ;;  %vm4776_vm7 = vcmask 1043456  }
  0x35   : >> { %12940 = vst [vmem:[#allocation44_spill] sm:$0xff] %v8351_v41  ;;  %12941 = vst [vmem:[#allocation45_spill] sm:$0xff] %v8355_v42  ;;  %s2624_s12 = scalar_lea.vmem %s12794_s4, %s8447_s27  ;;  %s4708_s20 = scalar_lea.vmem %s12796_s6, %s8447_s27  ;;  %vm4772_vm8 = vcmask 64512  }
  0x36   : >> { %12942 = vst [vmem:[#allocation46_spill] sm:$0xff] %v8359_v43  ;;  %12943 = vst [vmem:[#allocation47_spill] sm:$0xff] %v8363_v44  ;;  %708 = vrot.lane.b32.xlu1 %v643_v21, %s8450_s28  ;;  %v8115_v21 = vld [vmem:[%s8905_s13 + $0x78] sm:$0xff]   ;;  %s471_s24 = sadd.s32 1, %s8447_s27  }
  0x37   : >> { %12944 = vst [vmem:[#allocation48_spill] sm:$0xff] %v8367_v45  ;;  %12945 = vst [vmem:[#allocation49_spill] sm:$0xff] %v8371_v46  ;;  %7301 = vmatprep.subr.bf16.mxu0 %v8115_v21  ;;  %p11484_p4 = scmp.ge.s32.totalorder %s471_s24, 2  }
  0x38   : >> { %12946 = vst [vmem:[#allocation50_spill] sm:$0xff] %v8375_v47  ;;  %12947 = vst [vmem:[#allocation51_spill] sm:$0xff] %v8379_v48 }
  0x39   : >> { %12948 = vst [vmem:[#allocation52_spill] sm:$0xff] %v8383_v49  ;;  %12949 = vst [vmem:[#allocation53_spill] sm:$0xff] %v8387_v50 }
  0x3a   : >> { %12950 = vst [vmem:[#allocation54_spill] sm:$0xff] %v8391_v51  ;;  %12951 = vst [vmem:[#allocation55_spill] sm:$0xff] %v8395_v52 }
  0x3b   : >> { %12952 = vst [vmem:[#allocation56_spill] sm:$0xff] %v8399_v53  ;;  %12953 = vst [vmem:[#allocation57_spill] sm:$0xff] %v8403_v54 }
  0x3c   : >> { %12954 = vst [vmem:[#allocation58_spill] sm:$0xff] %v8407_v55  ;;  %12955 = vst [vmem:[#allocation59_spill] sm:$0xff] %v8411_v56 }
  0x3d   : >> { %12956 = vst [vmem:[#allocation60_spill] sm:$0xff] %v8415_v57  ;;  %12957 = vst [vmem:[#allocation61_spill] sm:$0xff] %v8419_v58 }
  0x3e   : >> { %12958 = vst [vmem:[#allocation62_spill] sm:$0xff] %v8423_v59  ;;  %12959 = vst [vmem:[#allocation63_spill] sm:$0xff] %v8427_v60 }
  0x3f   : >> { %12960 = vst [vmem:[#allocation64_spill] sm:$0xff] %v8431_v61  ;;  %12961 = vst [vmem:[#allocation65_spill] sm:$0xff] %v8435_v62 }
  0x40   : >> { %12962 = vst [vmem:[#allocation66_spill] sm:$0xff] %v8439_v63  ;;  %12963 = vst [vmem:[#allocation67_spill] sm:$0xff] %v8443_v0 }
  0x41   : >> { %546 = vst.msk [vmem:[#allocation2 + $0x19] sm:$0xff] %vm388_vm0, %v8443_v0  ;;  %547 = vst.msk [vmem:[#allocation2 + $0x21] sm:$0xff] %vm388_vm0, %v8439_v63 }
  0x42   : >> { %548 = vst.msk [vmem:[#allocation2 + $0x31] sm:$0xff] %vm388_vm0, %v8435_v62  ;;  %549 = vst.msk [vmem:[#allocation2 + $0x39] sm:$0xff] %vm388_vm0, %v8431_v61 }
  0x43   : >> { %610 = vst.msk [vmem:[#allocation3] sm:$0xff] %vm388_vm0, %v578_v23  ;;  %611 = vst.msk [vmem:[#allocation3 + $0x18] sm:$0xff] %vm388_vm0, %v579_v22  ;;  %v8116_v22 = vld [vmem:[%s8905_s13 + $0x38] sm:$0xff]   ;;  %v8117_v23 = vld [vmem:[%s8905_s13 + $0x70] sm:$0xff]  }
  0x44   : >> { %550 = vst.msk [vmem:[#allocation2 + $0x49] sm:$0xff] %vm388_vm0, %v8427_v60  ;;  %551 = vst.msk [vmem:[#allocation2 + $0x51] sm:$0xff] %vm388_vm0, %v8423_v59  ;;  %7302 = vmatpush3.bf16.msra.mxu0 %v8116_v22  ;;  %v8128_v59 = vld [vmem:[%s8905_s13 + $0x8] sm:$0xff]   ;;  %v8129_v60 = vld [vmem:[%s8905_s13 + $0x40] sm:$0xff]  }
  0x45   : >> { %552 = vst.msk [vmem:[#allocation2 + $0x61] sm:$0xff] %vm388_vm0, %v8419_v58  ;;  %553 = vst.msk [vmem:[#allocation2 + $0x69] sm:$0xff] %vm388_vm0, %v8415_v57  ;;  %7303 = vmatprep.subr.bf16.mxu0 %v8117_v23 }
  0x46   : >> { %554 = vst.msk [vmem:[#allocation2 + $0x79] sm:$0xff] %vm388_vm0, %v8411_v56  ;;  %555 = vst.msk [vmem:[#allocation2 + $0x81] sm:$0xff] %vm388_vm0, %v8407_v55  ;;  %v8124_v55 = vld [vmem:[%s8905_s13 + $0x18] sm:$0xff]   ;;  %v8132_v56 = vld [vmem:[%s8905_s13 + $0x80] sm:$0xff]  }
  0x47   : >> { %556 = vst.msk [vmem:[#allocation2 + $0x91] sm:$0xff] %vm388_vm0, %v8403_v54  ;;  %557 = vst.msk [vmem:[#allocation2 + $0x99] sm:$0xff] %vm388_vm0, %v8399_v53  ;;  %v8120_v53 = vld [vmem:[%s8905_s13 + $0x28] sm:$0xff]   ;;  %v8121_v54 = vld [vmem:[%s8905_s13 + $0x60] sm:$0xff]  }
  0x48   : >> { %558 = vst.msk [vmem:[#allocation2 + $0xa9] sm:$0xff] %vm388_vm0, %v8395_v52  ;;  %559 = vst.msk [vmem:[#allocation2 + $0xb1] sm:$0xff] %vm388_vm0, %v8391_v51  ;;  %v8922_v24 = vld [vmem:[#allocation2 + $0x1a] sm:$0xff]  ;;  %v8926_v19 = vld [vmem:[#allocation2 + $0x22] sm:$0xff] }
  0x49   : >> { %v8924_v20 = vld [vmem:[#allocation2 + $0x38] sm:$0xff]  ;;  %1349 = vrot.lane.b32.xlu0 %v8922_v24, %s8450_s28  ;;  %v8932_v21 = vld [vmem:[#allocation2 + $0x30] sm:$0xff]  ;;  %v8936_v16 = vld [vmem:[#allocation2 + $0x20] sm:$0xff]  ;;  %560 = vst.msk [vmem:[#allocation2 + $0xc1] sm:$0xff] %vm388_vm0, %v8387_v50 }
  0x4a   : >> { %1544 = vrot.lane.b32.xlu1 %v8924_v20, %s8451_s14  ;;  %v8934_v17 = vld [vmem:[#allocation2 + $0x39] sm:$0xff]  ;;  %615 = vst.msk [vmem:[#allocation3 + $0x78] sm:$0xff] %vm388_vm0, %v8924_v20  ;;  %v8940_v15 = vld [vmem:[#allocation2 + $0x31] sm:$0xff]  ;;  %613 = vst.msk [vmem:[#allocation3 + $0x48] sm:$0xff] %vm388_vm0, %v8936_v16 }
  0x4b   : >> { %v8942_v14 = vld [vmem:[#allocation2 + $0x3a] sm:$0xff]  ;;  %1256 = vst.msk [vmem:[#allocation3 + $0x50] sm:$0xff] %vm388_vm0, %v8934_v17  ;;  %614 = vst.msk [vmem:[#allocation3 + $0x60] sm:$0xff] %vm388_vm0, %v8932_v21  ;;  %v8954_v30 = vld [vmem:[#allocation2 + $0x32] sm:$0xff] }
  0x4c   : >> { %v8944_v22 = vld [vmem:[#allocation2 + $0x18] sm:$0xff]  ;;  %v8952_v13 = vld [vmem:[#allocation2 + $0x21] sm:$0xff]  ;;  %v8956_v32 = vld [vmem:[#allocation2 + $0x50] sm:$0xff]  ;;  %1255 = vst.msk [vmem:[#allocation3 + $0x38] sm:$0xff] %vm388_vm0, %v8940_v15 }
  0x4d   : >> { %612 = vst.msk [vmem:[#allocation3 + $0x30] sm:$0xff] %vm388_vm0, %v8944_v22  ;;  %1895 = vst.msk [vmem:[#allocation3 + $0x28] sm:$0xff] %vm388_vm0, %v8942_v14  ;;  %v8964_v23 = vld [vmem:[#allocation2 + $0x19] sm:$0xff]  ;;  %v8966_v29 = vld [vmem:[#allocation2 + $0x48] sm:$0xff]  ;;  %1351 = vrot.lane.b32.xlu0 %v8926_v19, %s8450_s28 }
  0x4e   : >> { %v8968_v31 = vld [vmem:[#allocation2 + $0x51] sm:$0xff]  ;;  %1254 = vst.msk [vmem:[#allocation3 + $0x20] sm:$0xff] %vm388_vm0, %v8952_v13  ;;  %1894 = vst.msk [vmem:[#allocation3 + $0x10] sm:$0xff] %vm388_vm0, %v8954_v30  ;;  %901 = vrot.lane.b32.xlu1 %v836_v18, %s8451_s14  ;;  %v8979_v26 = vld [vmem:[#allocation2 + $0x49] sm:$0xff] }
  0x4f   : >> { %617 = vst.msk [vmem:[#allocation3 + $0xa8] sm:$0xff] %vm388_vm0, %v8956_v32  ;;  %v8981_v28 = vld [vmem:[#allocation2 + $0x52] sm:$0xff]  ;;  %v8983_v25 = vld [vmem:[#allocation2 + $0x4a] sm:$0xff]  ;;  %1253 = vst.msk [vmem:[#allocation3 + $0x8] sm:$0xff] %vm388_vm0, %v8964_v23 }
  0x50   : >> { %1258 = vst.msk [vmem:[#allocation3 + $0x80] sm:$0xff] %vm388_vm0, %v8968_v31  ;;  %616 = vst.msk [vmem:[#allocation3 + $0x90] sm:$0xff] %vm388_vm0, %v8966_v29  ;;  %v8991_v12 = vld [vmem:[#allocation2 + $0x68] sm:$0xff]  ;;  %v8993_v27 = vld [vmem:[#allocation2 + $0x60] sm:$0xff] }
  0x51   : >> { %v8995_v18 = vld [vmem:[#allocation2 + $0x69] sm:$0xff]  ;;  %1896 = vst.msk [vmem:[#allocation3 + $0x40] sm:$0xff] %vm388_vm0, %v8983_v25  ;;  %1897 = vst.msk [vmem:[#allocation3 + $0x58] sm:$0xff] %vm388_vm0, %v8981_v28  ;;  %v9003_v11 = vld [vmem:[#allocation2 + $0x61] sm:$0xff]  ;;  %1542 = vrot.lane.b32.xlu0 %v8932_v21, %s8451_s14 }
  0x52   : >> { %1257 = vst.msk [vmem:[#allocation3 + $0x68] sm:$0xff] %vm388_vm0, %v8979_v26  ;;  %v9005_v10 = vld [vmem:[#allocation2 + $0x6a] sm:$0xff]  ;;  %v9007_v9 = vld [vmem:[#allocation2 + $0x62] sm:$0xff]  ;;  %1260 = vst.msk [vmem:[#allocation3 + $0xb0] sm:$0xff] %vm388_vm0, %v8995_v18  ;;  %1736 = vrot.lane.b32.xlu1 %v8934_v17, %s8452_s15 }
  0x53   : >> { %619 = vst.msk [vmem:[#allocation3 + $0xd8] sm:$0xff] %vm388_vm0, %v8991_v12  ;;  %618 = vst.msk [vmem:[#allocation3 + $0xc0] sm:$0xff] %vm388_vm0, %v8993_v27  ;;  %v9015_v6 = vld [vmem:[#allocation2 + $0x80] sm:$0xff]  ;;  %v9051_v3 = vld [vmem:[#allocation2 + $0x91] sm:$0xff] }
  0x54   : >> { %v9017_v8 = vld [vmem:[#allocation2 + $0x81] sm:$0xff]  ;;  %1259 = vst.msk [vmem:[#allocation3 + $0x98] sm:$0xff] %vm388_vm0, %v9003_v11  ;;  %1898 = vst.msk [vmem:[#allocation3 + $0x70] sm:$0xff] %vm388_vm0, %v9007_v9  ;;  %v9029_v5 = vld [vmem:[#allocation2 + $0x79] sm:$0xff] }
  0x55   : >> { %1899 = vst.msk [vmem:[#allocation3 + $0x88] sm:$0xff] %vm388_vm0, %v9005_v10  ;;  %v9031_v7 = vld [vmem:[#allocation2 + $0x82] sm:$0xff]  ;;  %v9033_v2 = vld [vmem:[#allocation2 + $0x7a] sm:$0xff]  ;;  %561 = vst.msk [vmem:[#allocation2 + $0xc9] sm:$0xff] %vm388_vm0, %v8383_v49  ;;  %899 = vrot.lane.b32.xlu0 %v835_v4, %s8451_s14 }
  0x56   : >> { %1262 = vst.msk [vmem:[#allocation3 + $0xe0] sm:$0xff] %vm388_vm0, %v9017_v8  ;;  %621 = vst.msk [vmem:[#allocation3 + $0x108] sm:$0xff] %vm388_vm0, %v9015_v6  ;;  %v9043_v1 = vld [vmem:[#allocation2 + $0x99] sm:$0xff]  ;;  %v8118_v50 = vld [vmem:[%s8905_s13 + $0x30] sm:$0xff]   ;;  %1094 = vrot.lane.b32.xlu1 %v8936_v16, %s8452_s15 }
  0x57   : >> { %1900 = vst.msk [vmem:[#allocation3 + $0xa0] sm:$0xff] %vm388_vm0, %v9033_v2  ;;  %1901 = vst.msk [vmem:[#allocation3 + $0xb8] sm:$0xff] %vm388_vm0, %v9031_v7  ;;  %v9053_v49 = vld [vmem:[#allocation2 + $0x9a] sm:$0xff]  ;;  %v9058_v51 = vld [vmem:[#allocation2 + $0x92] sm:$0xff]  ;;  %7304 = vmatpush3.bf16.msra.mxu0 %v8118_v50 }
  0x58   : >> { %1261 = vst.msk [vmem:[#allocation3 + $0xc8] sm:$0xff] %vm388_vm0, %v9029_v5  ;;  %1264 = vst.msk [vmem:[#allocation3 + $0x110] sm:$0xff] %vm388_vm0, %v9043_v1  ;;  %v8119_v52 = vld [vmem:[%s8905_s13 + $0x68] sm:$0xff]   ;;  %v9076_v4 = vld [vmem:[#allocation2 + $0xb1] sm:$0xff] }
  0x59   : >> { %1263 = vst.msk [vmem:[#allocation3 + $0xf8] sm:$0xff] %vm388_vm0, %v9051_v3  ;;  %1903 = vst.msk [vmem:[#allocation3 + $0xe8] sm:$0xff] %vm388_vm0, %v9053_v49  ;;  %7305 = vmatprep.subr.bf16.mxu0 %v8119_v52  ;;  %1734 = vrot.lane.b32.xlu0 %v8940_v15, %s8452_s15  ;;  %v8122_v16 = vld [vmem:[%s8905_s13 + $0x20] sm:$0xff]   ;;  %v8123_v50 = vld [vmem:[%s8905_s13 + $0x58] sm:$0xff]  }
  0x5a   : >> { %1902 = vst.msk [vmem:[#allocation3 + $0xd0] sm:$0xff] %vm388_vm0, %v9058_v51  ;;  %1355 = vrot.lane.b32.xlu1 %v8942_v14, %s8450_s28  ;;  %1266 = vst.msk [vmem:[#allocation3 + $0x140] sm:$0xff] %vm388_vm0, %v9076_v4  ;;  %v9086_v52 = vld [vmem:[#allocation2 + $0xa9] sm:$0xff]  ;;  %v1928_v57 = vld [vmem:[#allocation3 + $0x10] sm:$0xff] }
  0x5b   : >> { %7306 = vmatpush3.bf16.msra.mxu0 %v8120_v53  ;;  %v9089_v53 = vld [vmem:[#allocation2 + $0xb2] sm:$0xff]  ;;  %1265 = vst.msk [vmem:[#allocation3 + $0x128] sm:$0xff] %vm388_vm0, %v9086_v52  ;;  %v9114_v61 = vld [vmem:[#allocation2 + $0xc0] sm:$0xff]  ;;  %v1937_v62 = vld [vmem:[#allocation3 + $0x58] sm:$0xff] }
  0x5c   : >> { %7307 = vmatprep.subr.bf16.mxu0 %v8121_v54  ;;  %v8125_v54 = vld [vmem:[%s8905_s13 + $0x50] sm:$0xff]   ;;  %1905 = vst.msk [vmem:[#allocation3 + $0x118] sm:$0xff] %vm388_vm0, %v9089_v53  ;;  %v1931_v58 = vld [vmem:[#allocation3 + $0x28] sm:$0xff]  ;;  %626 = vst.msk [vmem:[#allocation3 + $0x180] sm:$0xff] %vm388_vm0, %v9114_v61 }
  0x5d   : >> { %1092 = vrot.lane.b32.xlu0 %v8944_v22, %s8452_s15  ;;  %v9101_v22 = vld [vmem:[#allocation2 + $0xaa] sm:$0xff]  ;;  %562 = vst.msk [vmem:[#allocation2 + $0xd9] sm:$0xff] %vm388_vm0, %v8379_v48  ;;  %563 = vst.msk [vmem:[#allocation2 + $0xe1] sm:$0xff] %vm388_vm0, %v8375_v47 }
  0x5e   : >> { %712 = vrot.lane.b32.xlu1 %v8952_v13, %s8450_s28  ;;  %v8126_v13 = vld [vmem:[%s8905_s13 + $0x10] sm:$0xff]   ;;  %1904 = vst.msk [vmem:[#allocation3 + $0x100] sm:$0xff] %vm388_vm0, %v9101_v22  ;;  %564 = vst.msk [vmem:[#allocation2 + $0xf1] sm:$0xff] %vm388_vm0, %v8371_v46  ;;  %v11094_v46 = vld [vmem:[%s2624_s12] ss:$0 sm:$0xff] }
  0x5f   : >> { %7308 = vmatpush3.bf16.msra.mxu0 %v8122_v16  ;;  %v8130_v16 = vld [vmem:[%s8905_s13 + $0x88] sm:$0xff]   ;;  %565 = vst.msk [vmem:[#allocation2 + $0xf9] sm:$0xff] %vm388_vm0, %v8367_v45  ;;  %566 = vst.msk [vmem:[#allocation2 + $0x109] sm:$0xff] %vm388_vm0, %v8363_v44 }
  0x60   : >> { %7309 = vmatprep.subr.bf16.mxu0 %v8123_v50  ;;  %v8127_v50 = vld [vmem:[%s8905_s13 + $0x48] sm:$0xff]   ;;  %7696 = vmatprep.subr.bf16.mxu1 %v8130_v16  ;;  %567 = vst.msk [vmem:[#allocation2 + $0x111] sm:$0xff] %vm388_vm0, %v8359_v43  ;;  %568 = vst.msk [vmem:[#allocation2 + $0x121] sm:$0xff] %vm388_vm0, %v8355_v42 }
  0x61   : >> { %1353 = vrot.lane.b32.xlu0 %v8954_v30, %s8450_s28  ;;  %7697 = vmatpush3.bf16.msra.mxu1 %v8130_v16  ;;  %v9116_v63 = vld [vmem:[#allocation2 + $0xc9] sm:$0xff]  ;;  %569 = vst.msk [vmem:[#allocation2 + $0x129] sm:$0xff] %vm388_vm0, %v8351_v41  ;;  %570 = vst.msk [vmem:[#allocation2 + $0x139] sm:$0xff] %vm388_vm0, %v8347_v40 }
  0x62   : >> { %1548 = vrot.lane.b32.xlu1 %v8956_v32, %s8451_s14  ;;  %7698 = vmatprep.subr.bf16.mxu1 %v8132_v56  ;;  %1268 = vst.msk [vmem:[#allocation3 + $0x170] sm:$0xff] %vm388_vm0, %v9116_v63  ;;  %571 = vst.msk [vmem:[#allocation2 + $0x141] sm:$0xff] %vm388_vm0, %v8343_v39 }
  0x63   : >> { %7310 = vmatpush3.bf16.msra.mxu0 %v8124_v55  ;;  %v2024_v55 = vpack.c.bf16 %v1931_v58, %v1928_v57  ;;  %v8131_v57 = vld [vmem:[%s8905_s13] sm:$0xff]   ;;  %572 = vst.msk [vmem:[#allocation2 + $0x151] sm:$0xff] %vm388_vm0, %v8339_v38  ;;  %573 = vst.msk [vmem:[#allocation2 + $0x159] sm:$0xff] %vm388_vm0, %v8335_v37  ;;  %s7257_s13 = sshll.u32 %s8447_s27, 2 }
  0x64   : >> { %7311 = vmatprep.subr.bf16.mxu0 %v8125_v54  ;;  %v1934_v54 = vld [vmem:[#allocation3 + $0x40] sm:$0xff]  ;;  %v9147_v16 = vld [vmem:[#allocation2 + $0xe0] sm:$0xff]  ;;  %574 = vst.msk [vmem:[#allocation2 + $0x169] sm:$0xff] %vm388_vm0, %v8331_v36  ;;  %575 = vst.msk [vmem:[#allocation2 + $0x171] sm:$0xff] %vm388_vm0, %v8327_v35  ;;  %s4768_s16 = scalar_lea.vmem %s12797_s7, %s7257_s13 }
  0x65   : >> { %710 = vrot.lane.b32.xlu0 %v8964_v23, %s8450_s28  ;;  %7700 = vmatprep.mubr.msk.bf16.mxu1 %vm388_vm0, %v2024_v55  ;;  %v9123_v23 = vld [vmem:[#allocation2 + $0xca] sm:$0xff]  ;;  %v2027_v58 = vpack.c.bf16 %v1937_v62, %v1934_v54  ;;  %629 = vst.msk [vmem:[#allocation3 + $0x1c8] sm:$0xff] %vm388_vm0, %v9147_v16  ;;  %v588_v55 = vld [vmem:[#allocation2 + $0x78] sm:$0xff]  ;;  %576 = vst.msk [vmem:[#allocation2 + $0x181] sm:$0xff] %vm388_vm0, %v8323_v34 }
  0x66   : >> { %905 = vrot.lane.b32.xlu1 %v8926_v19, %s8451_s14  ;;  %v9121_v19 = vld [vmem:[#allocation2 + $0xc1] sm:$0xff]  ;;  %1907 = vst.msk [vmem:[#allocation3 + $0x148] sm:$0xff] %vm388_vm0, %v9123_v23  ;;  %7699 = vmatpush3.bf16.msra.mxu1 %v8132_v56  ;;  %620 = vst.msk [vmem:[#allocation3 + $0xf0] sm:$0xff] %vm388_vm0, %v588_v55 }
  0x67   : >> { %7312 = vmatpush3.bf16.msra.mxu0 %v8126_v13  ;;  %1267 = vst.msk [vmem:[#allocation3 + $0x158] sm:$0xff] %vm388_vm0, %v9121_v19  ;;  %v9145_v13 = vld [vmem:[#allocation2 + $0xc2] sm:$0xff]  ;;  %v9293_v54 = vld [vmem:[#allocation2 + $0x10a] sm:$0xff]  ;;  %577 = vst.msk [vmem:[#allocation2 + $0x189] sm:$0xff] %vm388_vm0, %v8319_v33 }
  0x68   : >> { %7313 = vmatprep.subr.bf16.mxu0 %v8127_v50  ;;  %1906 = vst.msk [vmem:[#allocation3 + $0x130] sm:$0xff] %vm388_vm0, %v9145_v13  ;;  %v9163_v56 = vld [vmem:[#allocation2 + $0xe1] sm:$0xff]  ;;  %1912 = vst.msk [vmem:[#allocation3 + $0x1c0] sm:$0xff] %vm388_vm0, %v9293_v54 }
  0x69   : >> { %1546 = vrot.lane.b32.xlu0 %v8966_v29, %s8451_s14  ;;  %7701 = vmatmul.mubr.msk.bf16.vlgmr.msra.gmra.mxu1 %vm388_vm0, %v2027_v58  ;;  %1270 = vst.msk [vmem:[#allocation3 + $0x1a0] sm:$0xff] %vm388_vm0, %v9163_v56  ;;  %v9225_v50 = vld [vmem:[#allocation2 + $0xfa] sm:$0xff]  ;;  %v9326_v55 = vld [vmem:[#allocation2 + $0xa8] sm:$0xff] }
  0x6a   : >> { %1740 = vrot.lane.b32.xlu1 %v8968_v31, %s8452_s15  ;;  %1911 = vst.msk [vmem:[#allocation3 + $0x1a8] sm:$0xff] %vm388_vm0, %v9225_v50 }
  0x6b   : >> { %7314 = vmatpush3.bf16.msra.mxu0 %v8128_v59  ;;  %v9179_v59 = vld [vmem:[#allocation2 + $0xe2] sm:$0xff] }
  0x6c   : >> { %7315 = vmatprep.subr.bf16.mxu0 %v8129_v60  ;;  %1909 = vst.msk [vmem:[#allocation3 + $0x178] sm:$0xff] %vm388_vm0, %v9179_v59  ;;  %v1943_v60 = vld [vmem:[#allocation3 + $0x88] sm:$0xff] }
  0x6d   : >> { %903 = vrot.lane.b32.xlu0 %v8922_v24, %s8451_s14  ;;  %v1946_v24 = vld [vmem:[#allocation3 + $0xa0] sm:$0xff] }
  0x6e   : >> { %1098 = vrot.lane.b32.xlu1 %v8924_v20, %s8452_s15  ;;  %v9161_v20 = vld [vmem:[#allocation2 + $0xd8] sm:$0xff] }
  0x6f   : >> { %7316 = vmatpush3.bf16.msra.mxu0 %v8131_v57  ;;  %628 = vst.msk [vmem:[#allocation3 + $0x1b0] sm:$0xff] %vm388_vm0, %v9161_v20  ;;  %v1955_v57 = vld [vmem:[#allocation3 + $0xe8] sm:$0xff] }
  0x71   : >> { %1738 = vrot.lane.b32.xlu0 %v8979_v26, %s8452_s15 }
  0x72   : >> { %1359 = vrot.lane.b32.xlu1 %v8981_v28, %s8450_s28 }
  0x75   : >> { %1096 = vrot.lane.b32.xlu0 %v8932_v21, %s8452_s15  ;;  %v1949_v21 = vld [vmem:[#allocation3 + $0xb8] sm:$0xff] }
  0x76   : >> { %716 = vrot.lane.b32.xlu1 %v8934_v17, %s8450_s28  ;;  %v9177_v17 = vld [vmem:[#allocation2 + $0xd9] sm:$0xff] }
  0x77   : >> { %1269 = vst.msk [vmem:[#allocation3 + $0x188] sm:$0xff] %vm388_vm0, %v9177_v17 }
  0x79   : >> { %1357 = vrot.lane.b32.xlu0 %v8983_v25, %s8450_s28 }
  0x7a   : >> { %1552 = vrot.lane.b32.xlu1 %v8991_v12, %s8451_s14 }
  0x7d   : >> { %714 = vrot.lane.b32.xlu0 %v8940_v15, %s8450_s28  ;;  %v1940_v15 = vld [vmem:[#allocation3 + $0x70] sm:$0xff] }
  0x7e   : >> { %909 = vrot.lane.b32.xlu1 %v8942_v14, %s8451_s14  ;;  %v9197_v14 = vld [vmem:[#allocation2 + $0xda] sm:$0xff]  ;;  %v2030_v62 = vpack.c.bf16 %v1943_v60, %v1940_v15  ;;  %v1958_v60 = vld [vmem:[#allocation3 + $0x100] sm:$0xff] }
  0x7f   : >> { %1908 = vst.msk [vmem:[#allocation3 + $0x160] sm:$0xff] %vm388_vm0, %v9197_v14 }
  0x80   : >> { %7704 = vmatprep.mubr.msk.bf16.mxu1 %vm388_vm0, %v2030_v62  ;;  %v1961_v62 = vld [vmem:[#allocation3 + $0x118] sm:$0xff] }
  0x81   : >> { %1550 = vrot.lane.b32.xlu0 %v8993_v27, %s8451_s14 }
  0x82   : >> { %1744 = vrot.lane.b32.xlu1 %v8995_v18, %s8452_s15 }
  0x85   : >> { %907 = vrot.lane.b32.xlu0 %v8954_v30, %s8451_s14  ;;  %v2033_v30 = vpack.c.bf16 %v1949_v21, %v1946_v24  ;;  %v2039_v24 = vpack.c.bf16 %v1961_v62, %v1958_v60  ;;  %v9305_v21 = vld [vmem:[#allocation2 + $0xb0] sm:$0xff] }
  0x86   : >> { %1102 = vrot.lane.b32.xlu1 %v8956_v32, %s8452_s15  ;;  %v9211_v32 = vld [vmem:[#allocation2 + $0xf9] sm:$0xff]  ;;  %v590_v60 = vld [vmem:[#allocation2 + $0x90] sm:$0xff] }
  0x87   : >> { %7705 = vmatmul.mubr.msk.bf16.gmra.mxu1 %vm388_vm0, %v2033_v30  ;;  %1272 = vst.msk [vmem:[#allocation3 + $0x1d0] sm:$0xff] %vm388_vm0, %v9211_v32  ;;  %622 = vst.msk [vmem:[#allocation3 + $0x120] sm:$0xff] %vm388_vm0, %v590_v60 }
  0x89   : >> { %1742 = vrot.lane.b32.xlu0 %v9003_v11, %s8452_s15 }
  0x8a   : >> { %1363 = vrot.lane.b32.xlu1 %v9005_v10, %s8450_s28 }
  0x8d   : >> { %1100 = vrot.lane.b32.xlu0 %v8966_v29, %s8452_s15  ;;  %v1484_v29 = vld [vmem:[#allocation2 + $0x78] sm:$0xff] }
  0x8e   : >> { %720 = vrot.lane.b32.xlu1 %v8968_v31, %s8450_s28  ;;  %v9223_v31 = vld [vmem:[#allocation2 + $0xf1] sm:$0xff] }
  0x8f   : >> { %1271 = vst.msk [vmem:[#allocation3 + $0x1b8] sm:$0xff] %vm388_vm0, %v9223_v31 }
  0x91   : >> { %1361 = vrot.lane.b32.xlu0 %v9007_v9, %s8450_s28 }
  0x92   : >> { %1556 = vrot.lane.b32.xlu1 %v9015_v6, %s8451_s14 }
  0x95   : >> { %718 = vrot.lane.b32.xlu0 %v8979_v26, %s8450_s28  ;;  %v9242_v26 = vld [vmem:[#allocation2 + $0xf2] sm:$0xff] }
  0x96   : >> { %913 = vrot.lane.b32.xlu1 %v8981_v28, %s8451_s14  ;;  %1910 = vst.msk [vmem:[#allocation3 + $0x190] sm:$0xff] %vm388_vm0, %v9242_v26  ;;  %v9270_v28 = vld [vmem:[#allocation2 + $0x109] sm:$0xff] }
  0x97   : >> { %1273 = vst.msk [vmem:[#allocation3 + $0x1e8] sm:$0xff] %vm388_vm0, %v9270_v28 }
  0x99   : >> { %1554 = vrot.lane.b32.xlu0 %v1484_v29, %s8451_s14 }
  0x9a   : >> { %1748 = vrot.lane.b32.xlu1 %v9017_v8, %s8452_s15 }
  0x9d   : >> { %911 = vrot.lane.b32.xlu0 %v8983_v25, %s8451_s14  ;;  %v9254_v25 = vld [vmem:[#allocation2 + $0x98] sm:$0xff] }
  0x9e   : >> { %1106 = vrot.lane.b32.xlu1 %v8991_v12, %s8452_s15  ;;  %v9256_v12 = vld [vmem:[#allocation2 + $0x111] sm:$0xff] }
  0x9f   : >> { %1274 = vst.msk [vmem:[#allocation3 + $0x200] sm:$0xff] %vm388_vm0, %v9256_v12 }
  0xa1   : >> { %1746 = vrot.lane.b32.xlu0 %v9029_v5, %s8452_s15 }
  0xa2   : >> { %1367 = vrot.lane.b32.xlu1 %v9031_v7, %s8450_s28 }
  0xa5   : >> { %1104 = vrot.lane.b32.xlu0 %v8993_v27, %s8452_s15  ;;  %v9268_v27 = vld [vmem:[#allocation2 + $0x90] sm:$0xff] }
  0xa6   : >> { %724 = vrot.lane.b32.xlu1 %v8995_v18, %s8450_s28  ;;  %v9272_v18 = vld [vmem:[#allocation2 + $0x112] sm:$0xff] }
  0xa7   : >> { %1913 = vst.msk [vmem:[#allocation3 + $0x1d8] sm:$0xff] %vm388_vm0, %v9272_v18 }
  0xa9   : >> { %1365 = vrot.lane.b32.xlu0 %v9033_v2, %s8450_s28 }
  0xaa   : >> { %1560 = vrot.lane.b32.xlu1 %v9254_v25, %s8451_s14 }
  0xad   : >> { %722 = vrot.lane.b32.xlu0 %v9003_v11, %s8450_s28 }
  0xae   : >> { %917 = vrot.lane.b32.xlu1 %v9005_v10, %s8451_s14  ;;  %v707_v10 = vpop.permute.xlu1 %706 }
  0xaf   : >> { %803 = vst.msk [vmem:[#allocation3] sm:$0xff] %vm802_vm3, %v707_v10 }
  0xb1   : >> { %1558 = vrot.lane.b32.xlu0 %v9268_v27, %s8451_s14 }
  0xb2   : >> { %1752 = vrot.lane.b32.xlu1 %v9043_v1, %s8452_s15  ;;  %v709_v11 = vpop.permute.xlu1 %708 }
  0xb3   : >> { %804 = vst.msk [vmem:[#allocation3 + $0x18] sm:$0xff] %vm802_vm3, %v709_v11  ;;  %v9311_v11 = vld [vmem:[#allocation2 + $0x129] sm:$0xff] }
  0xb4   : >> { %1276 = vst.msk [vmem:[#allocation3 + $0x230] sm:$0xff] %vm388_vm0, %v9311_v11 }
  0xb5   : >> { %915 = vrot.lane.b32.xlu0 %v9007_v9, %s8451_s14  ;;  %v1952_v9 = vld [vmem:[#allocation3 + $0xd0] sm:$0xff] }
  0xb6   : >> { %1110 = vrot.lane.b32.xlu1 %v9015_v6, %s8452_s15  ;;  %v2036_v15 = vpack.c.bf16 %v1955_v57, %v1952_v9 }
  0xb8   : >> { %7708 = vmatprep.mubr.msk.bf16.mxu1 %vm388_vm0, %v2036_v15  ;;  %v9332_v15 = vld [vmem:[#allocation2 + $0x12a] sm:$0xff] }
  0xb9   : >> { %1750 = vrot.lane.b32.xlu0 %v9051_v3, %s8452_s15  ;;  %7709 = vmatmul.mubr.msk.bf16.gmra.mxu1 %vm388_vm0, %v2039_v24  ;;  %1915 = vst.msk [vmem:[#allocation3 + $0x208] sm:$0xff] %vm388_vm0, %v9332_v15 }
  0xba   : >> { %1371 = vrot.lane.b32.xlu1 %v9053_v49, %s8450_s28 }
  0xbb   : >> { %v1350_v6 = vpop.permute.xlu0 %1349 }
  0xbc   : >> { %v1545_v58 = vpop.permute.xlu1 %1544  ;;  %1445 = vst.msk [vmem:[#allocation3 + $0x8] sm:$0xff] %vm802_vm3, %v1350_v6  ;;  %v591_v6 = vld [vmem:[#allocation2 + $0x98] sm:$0xff] }
  0xbd   : >> { %1108 = vrot.lane.b32.xlu0 %v1484_v29, %s8452_s15  ;;  %623 = vst.msk [vmem:[#allocation3 + $0x138] sm:$0xff] %vm388_vm0, %v591_v6 }
  0xbe   : >> { %728 = vrot.lane.b32.xlu1 %v9017_v8, %s8450_s28 }
  0xbf   : >> { %v1352_v30 = vpop.permute.xlu0 %1351 }
  0xc0   : >> { %v902_v10 = vpop.permute.xlu1 %901  ;;  %1446 = vst.msk [vmem:[#allocation3 + $0x20] sm:$0xff] %vm802_vm3, %v1352_v30  ;;  %v9356_v30 = vld [vmem:[#allocation2 + $0x122] sm:$0xff] }
  0xc1   : >> { %997 = vst.msk [vmem:[#allocation3 + $0x18] sm:$0xff] %vm995_vm4, %v902_v10  ;;  %1639 = vst.msk [vmem:[#allocation3 + $0x20] sm:$0xff] %vm995_vm4, %v1545_v58  ;;  %1369 = vrot.lane.b32.xlu0 %v9058_v51, %s8450_s28  ;;  %v9330_v58 = vld [vmem:[#allocation2 + $0x121] sm:$0xff] }
  0xc2   : >> { %1564 = vrot.lane.b32.xlu1 %v9305_v21, %s8451_s14  ;;  %1275 = vst.msk [vmem:[#allocation3 + $0x218] sm:$0xff] %vm388_vm0, %v9330_v58  ;;  %1914 = vst.msk [vmem:[#allocation3 + $0x1f0] sm:$0xff] %vm388_vm0, %v9356_v30 }
  0xc3   : >> { %v1543_v8 = vpop.permute.xlu0 %1542 }
  0xc4   : >> { %v1737_v29 = vpop.permute.xlu1 %1736  ;;  %1638 = vst.msk [vmem:[#allocation3 + $0x8] sm:$0xff] %vm995_vm4, %v1543_v8 }
  0xc5   : >> { %1831 = vst.msk [vmem:[#allocation3 + $0x20] sm:$0xff] %vm1188_vm5, %v1737_v29  ;;  %726 = vrot.lane.b32.xlu0 %v9029_v5, %s8450_s28 }
  0xc6   : >> { %921 = vrot.lane.b32.xlu1 %v9031_v7, %s8451_s14 }
  0xc7   : >> { %v900_v9 = vpop.permute.xlu0 %899 }
  0xc8   : >> { %v1095_v57 = vpop.permute.xlu1 %1094  ;;  %996 = vst.msk [vmem:[#allocation3] sm:$0xff] %vm995_vm4, %v900_v9 }
  0xc9   : >> { %1190 = vst.msk [vmem:[#allocation3 + $0x18] sm:$0xff] %vm1188_vm5, %v1095_v57  ;;  %1562 = vrot.lane.b32.xlu0 %v9326_v55, %s8451_s14  ;;  %v9370_v57 = vld [vmem:[#allocation2 + $0xc8] sm:$0xff] }
  0xca   : >> { %1756 = vrot.lane.b32.xlu1 %v9076_v4, %s8452_s15 }
  0xcb   : >> { %v1735_v5 = vpop.permute.xlu0 %1734 }
  0xcc   : >> { %v1356_v7 = vpop.permute.xlu1 %1355  ;;  %1830 = vst.msk [vmem:[#allocation3 + $0x8] sm:$0xff] %vm1188_vm5, %v1735_v5 }
  0xcd   : >> { %1448 = vst.msk [vmem:[#allocation3 + $0x50] sm:$0xff] %vm802_vm3, %v1356_v7  ;;  %919 = vrot.lane.b32.xlu0 %v9033_v2, %s8451_s14  ;;  %v1930_v2 = vld [vmem:[#allocation3 + $0x20] sm:$0xff] }
  0xce   : >> { %1114 = vrot.lane.b32.xlu1 %v9254_v25, %s8452_s15 }
  0xcf   : >> { %v1093_v62 = vpop.permute.xlu0 %1092 }
  0xd0   : >> { %v713_v24 = vpop.permute.xlu1 %712  ;;  %1189 = vst.msk [vmem:[#allocation3] sm:$0xff] %vm1188_vm5, %v1093_v62  ;;  %v1929_v9 = vld [vmem:[#allocation3 + $0x18] sm:$0xff] }
  0xd1   : >> { %806 = vst.msk [vmem:[#allocation3 + $0x48] sm:$0xff] %vm802_vm3, %v713_v24  ;;  %1754 = vrot.lane.b32.xlu0 %v9086_v52, %s8452_s15  ;;  %v9374_v62 = vld [vmem:[#allocation2 + $0x141] sm:$0xff] }
  0xd2   : >> { %1375 = vrot.lane.b32.xlu1 %v9089_v53, %s8450_s28  ;;  %1278 = vst.msk [vmem:[#allocation3 + $0x260] sm:$0xff] %vm388_vm0, %v9374_v62 }
  0xd3   : >> { %v1354_v25 = vpop.permute.xlu0 %1353  ;;  %v1927_v8 = vld [vmem:[#allocation3 + $0x8] sm:$0xff] }
  0xd4   : >> { %v1549_v10 = vpop.permute.xlu1 %1548  ;;  %1447 = vst.msk [vmem:[#allocation3 + $0x38] sm:$0xff] %vm802_vm3, %v1354_v25  ;;  %v2023_v29 = vpack.c.bf16 %v1930_v2, %v1927_v8  ;;  %v593_v25 = vld [vmem:[#allocation2 + $0xb0] sm:$0xff]  ;;  %v9392_v8 = vld [vmem:[#allocation2 + $0x142] sm:$0xff] }
  0xd5   : >> { %1641 = vst.msk [vmem:[#allocation3 + $0x50] sm:$0xff] %vm995_vm4, %v1549_v10  ;;  %1112 = vrot.lane.b32.xlu0 %v9268_v27, %s8452_s15  ;;  %v9390_v10 = vld [vmem:[#allocation2 + $0x139] sm:$0xff] }
  0xd6   : >> { %732 = vrot.lane.b32.xlu1 %v9043_v1, %s8450_s28  ;;  %2264 = vmatprep.mubr.bf16.mxu0 %v2023_v29  ;;  %625 = vst.msk [vmem:[#allocation3 + $0x168] sm:$0xff] %vm388_vm0, %v593_v25  ;;  %1917 = vst.msk [vmem:[#allocation3 + $0x238] sm:$0xff] %vm388_vm0, %v9392_v8  ;;  %v592_v29 = vld [vmem:[#allocation2 + $0xa8] sm:$0xff] }
  0xd7   : >> { %v711_v6 = vpop.permute.xlu0 %710  ;;  %v1926_v7 = vld [vmem:[#allocation3] sm:$0xff]  ;;  %1277 = vst.msk [vmem:[#allocation3 + $0x248] sm:$0xff] %vm388_vm0, %v9390_v10  ;;  %624 = vst.msk [vmem:[#allocation3 + $0x150] sm:$0xff] %vm388_vm0, %v592_v29  ;;  %v1973_v25 = vld [vmem:[#allocation3 + $0x178] sm:$0xff] }
  0xd8   : >> { %v906_v5 = vpop.permute.xlu1 %905  ;;  %805 = vst.msk [vmem:[#allocation3 + $0x30] sm:$0xff] %vm802_vm3, %v711_v6  ;;  %v2022_v60 = vpack.c.bf16 %v1929_v9, %v1926_v7  ;;  %v1967_v7 = vld [vmem:[#allocation3 + $0x148] sm:$0xff] }
  0xd9   : >> { %999 = vst.msk [vmem:[#allocation3 + $0x48] sm:$0xff] %vm995_vm4, %v906_v5  ;;  %1373 = vrot.lane.b32.xlu0 %v9101_v22, %s8450_s28  ;;  %v9416_v5 = vld [vmem:[#allocation2 + $0x13a] sm:$0xff] }
  0xda   : >> { %1568 = vrot.lane.b32.xlu1 %v9370_v57, %s8451_s14  ;;  %2265 = vmatmul.mubr.bf16.vlgmr.msra.gmra.mxu0 %v2022_v60  ;;  %1916 = vst.msk [vmem:[#allocation3 + $0x220] sm:$0xff] %vm388_vm0, %v9416_v5 }
  0xdb   : >> { %v1547_v1 = vpop.permute.xlu0 %1546 }
  0xdc   : >> { %v1741_v27 = vpop.permute.xlu1 %1740  ;;  %1640 = vst.msk [vmem:[#allocation3 + $0x38] sm:$0xff] %vm995_vm4, %v1547_v1 }
  0xdd   : >> { %1833 = vst.msk [vmem:[#allocation3 + $0x50] sm:$0xff] %vm1188_vm5, %v1741_v27  ;;  %730 = vrot.lane.b32.xlu0 %v9051_v3, %s8450_s28 }
  0xde   : >> { %925 = vrot.lane.b32.xlu1 %v9053_v49, %s8451_s14 }
  0xdf   : >> { %v904_v24 = vpop.permute.xlu0 %903 }
  0xe0   : >> { %v1099_v2 = vpop.permute.xlu1 %1098  ;;  %998 = vst.msk [vmem:[#allocation3 + $0x30] sm:$0xff] %vm995_vm4, %v904_v24 }
  0xe1   : >> { %1192 = vst.msk [vmem:[#allocation3 + $0x48] sm:$0xff] %vm1188_vm5, %v1099_v2  ;;  %1566 = vrot.lane.b32.xlu0 %v9114_v61, %s8451_s14  ;;  %v1970_v2 = vld [vmem:[#allocation3 + $0x160] sm:$0xff] }
  0xe2   : >> { %1760 = vrot.lane.b32.xlu1 %v9116_v63, %s8452_s15 }
  0xe3   : >> { %v1739_v3 = vpop.permute.xlu0 %1738 }
  0xe4   : >> { %v1360_v49 = vpop.permute.xlu1 %1359  ;;  %1832 = vst.msk [vmem:[#allocation3 + $0x38] sm:$0xff] %vm1188_vm5, %v1739_v3 }
  0xe5   : >> { %1450 = vst.msk [vmem:[#allocation3 + $0x80] sm:$0xff] %vm802_vm3, %v1360_v49  ;;  %923 = vrot.lane.b32.xlu0 %v9058_v51, %s8451_s14  ;;  %v1936_v51 = vld [vmem:[#allocation3 + $0x50] sm:$0xff]  ;;  %v2045_v49 = vpack.c.bf16 %v1973_v25, %v1970_v2 }
  0xe6   : >> { %1118 = vrot.lane.b32.xlu1 %v9305_v21, %s8452_s15  ;;  %v1964_v21 = vld [vmem:[#allocation3 + $0x130] sm:$0xff] }
  0xe7   : >> { %v1097_v9 = vpop.permute.xlu0 %1096  ;;  %v2042_v24 = vpack.c.bf16 %v1967_v7, %v1964_v21  ;;  %v9434_v7 = vld [vmem:[#allocation2 + $0x159] sm:$0xff] }
  0xe8   : >> { %v717_v6 = vpop.permute.xlu1 %716  ;;  %1191 = vst.msk [vmem:[#allocation3 + $0x30] sm:$0xff] %vm1188_vm5, %v1097_v9  ;;  %v1935_v29 = vld [vmem:[#allocation3 + $0x48] sm:$0xff] }
  0xe9   : >> { %808 = vst.msk [vmem:[#allocation3 + $0x78] sm:$0xff] %vm802_vm3, %v717_v6  ;;  %1758 = vrot.lane.b32.xlu0 %v9121_v19, %s8452_s15  ;;  %7712 = vmatprep.mubr.msk.bf16.mxu1 %vm388_vm0, %v2042_v24  ;;  %v9450_v24 = vld [vmem:[#allocation2 + $0x151] sm:$0xff]  ;;  %v9452_v2 = vld [vmem:[#allocation2 + $0x15a] sm:$0xff] }
  0xea   : >> { %1379 = vrot.lane.b32.xlu1 %v9123_v23, %s8450_s28  ;;  %7713 = vmatmul.mubr.msk.bf16.gmra.mxu1 %vm388_vm0, %v2045_v49  ;;  %1280 = vst.msk [vmem:[#allocation3 + $0x290] sm:$0xff] %vm388_vm0, %v9434_v7  ;;  %1279 = vst.msk [vmem:[#allocation3 + $0x278] sm:$0xff] %vm388_vm0, %v9450_v24  ;;  %v9475_v49 = vld [vmem:[#allocation2 + $0x152] sm:$0xff] }
  0xeb   : >> { %v1358_v60 = vpop.permute.xlu0 %1357  ;;  %v1933_v27 = vld [vmem:[#allocation3 + $0x38] sm:$0xff]  ;;  %1919 = vst.msk [vmem:[#allocation3 + $0x268] sm:$0xff] %vm388_vm0, %v9452_v2  ;;  %1918 = vst.msk [vmem:[#allocation3 + $0x250] sm:$0xff] %vm388_vm0, %v9475_v49 }
  0xec   : >> { %v1553_v1 = vpop.permute.xlu1 %1552  ;;  %1449 = vst.msk [vmem:[#allocation3 + $0x68] sm:$0xff] %vm802_vm3, %v1358_v60  ;;  %v2026_v3 = vpack.c.bf16 %v1936_v51, %v1933_v27  ;;  %v595_v27 = vld [vmem:[#allocation2 + $0xc8] sm:$0xff] }
  0xed   : >> { %1643 = vst.msk [vmem:[#allocation3 + $0x80] sm:$0xff] %vm995_vm4, %v1553_v1  ;;  %1116 = vrot.lane.b32.xlu0 %v9326_v55, %s8452_s15 }
  0xee   : >> { %736 = vrot.lane.b32.xlu1 %v9076_v4, %s8450_s28  ;;  %2272 = vmatprep.mubr.bf16.mxu0 %v2026_v3  ;;  %627 = vst.msk [vmem:[#allocation3 + $0x198] sm:$0xff] %vm388_vm0, %v595_v27  ;;  %v9493_v27 = vld [vmem:[#allocation2 + $0x171] sm:$0xff] }
  0xef   : >> { %v715_v9 = vpop.permute.xlu0 %714  ;;  %v1932_v21 = vld [vmem:[#allocation3 + $0x30] sm:$0xff]  ;;  %1282 = vst.msk [vmem:[#allocation3 + $0x2c0] sm:$0xff] %vm388_vm0, %v9493_v27 }
  0xf0   : >> { %v910_v6 = vpop.permute.xlu1 %909  ;;  %807 = vst.msk [vmem:[#allocation3 + $0x60] sm:$0xff] %vm802_vm3, %v715_v9  ;;  %v2025_v51 = vpack.c.bf16 %v1935_v29, %v1932_v21 }
  0xf1   : >> { %1001 = vst.msk [vmem:[#allocation3 + $0x78] sm:$0xff] %vm995_vm4, %v910_v6  ;;  %1377 = vrot.lane.b32.xlu0 %v9145_v13, %s8450_s28 }
  0xf2   : >> { %1572 = vrot.lane.b32.xlu1 %v9147_v16, %s8451_s14  ;;  %2273 = vmatmul.mubr.bf16.gmra.mxu0 %v2025_v51  ;;  %v9489_v51 = vld [vmem:[#allocation2 + $0xf8] sm:$0xff] }
  0xf3   : >> { %v1551_v4 = vpop.permute.xlu0 %1550 }
  0xf4   : >> { %v1745_v55 = vpop.permute.xlu1 %1744  ;;  %1642 = vst.msk [vmem:[#allocation3 + $0x68] sm:$0xff] %vm995_vm4, %v1551_v4 }
  0xf5   : >> { %1835 = vst.msk [vmem:[#allocation3 + $0x80] sm:$0xff] %vm1188_vm5, %v1745_v55  ;;  %734 = vrot.lane.b32.xlu0 %v9086_v52, %s8450_s28 }
  0xf6   : >> { %929 = vrot.lane.b32.xlu1 %v9089_v53, %s8451_s14 }
  0xf7   : >> { %v908_v60 = vpop.permute.xlu0 %907 }
  0xf8   : >> { %v1103_v1 = vpop.permute.xlu1 %1102  ;;  %1000 = vst.msk [vmem:[#allocation3 + $0x60] sm:$0xff] %vm995_vm4, %v908_v60 }
  0xf9   : >> { %1194 = vst.msk [vmem:[#allocation3 + $0x78] sm:$0xff] %vm1188_vm5, %v1103_v1  ;;  %1570 = vrot.lane.b32.xlu0 %v9161_v20, %s8451_s14 }
  0xfa   : >> { %1764 = vrot.lane.b32.xlu1 %v9163_v56, %s8452_s15 }
  0xfb   : >> { %v1743_v52 = vpop.permute.xlu0 %1742 }
  0xfc   : >> { %v1364_v53 = vpop.permute.xlu1 %1363  ;;  %1834 = vst.msk [vmem:[#allocation3 + $0x68] sm:$0xff] %vm1188_vm5, %v1743_v52  ;;  %v1942_v29 = vld [vmem:[#allocation3 + $0x80] sm:$0xff] }
  0xfd   : >> { %1452 = vst.msk [vmem:[#allocation3 + $0xb0] sm:$0xff] %vm802_vm3, %v1364_v53  ;;  %927 = vrot.lane.b32.xlu0 %v9101_v22, %s8451_s14  ;;  %v9507_v52 = vld [vmem:[#allocation2 + $0xf0] sm:$0xff] }
  0xfe   : >> { %1122 = vrot.lane.b32.xlu1 %v9370_v57, %s8452_s15 }
  0xff   : >> { %v1101_v25 = vpop.permute.xlu0 %1100 }
 0x100   : >> { %v721_v3 = vpop.permute.xlu1 %720  ;;  %1193 = vst.msk [vmem:[#allocation3 + $0x60] sm:$0xff] %vm1188_vm5, %v1101_v25  ;;  %v1941_v21 = vld [vmem:[#allocation3 + $0x78] sm:$0xff] }
 0x101   : >> { %810 = vst.msk [vmem:[#allocation3 + $0xa8] sm:$0xff] %vm802_vm3, %v721_v3  ;;  %1762 = vrot.lane.b32.xlu0 %v9177_v17, %s8452_s15  ;;  %v9511_v3 = vld [vmem:[#allocation2 + $0x169] sm:$0xff] }
 0x102   : >> { %1383 = vrot.lane.b32.xlu1 %v9179_v59, %s8450_s28  ;;  %1281 = vst.msk [vmem:[#allocation3 + $0x2a8] sm:$0xff] %vm388_vm0, %v9511_v3 }
 0x103   : >> { %v1362_v22 = vpop.permute.xlu0 %1361  ;;  %v1939_v9 = vld [vmem:[#allocation3 + $0x68] sm:$0xff] }
 0x104   : >> { %v1557_v57 = vpop.permute.xlu1 %1556  ;;  %1451 = vst.msk [vmem:[#allocation3 + $0x98] sm:$0xff] %vm802_vm3, %v1362_v22  ;;  %v2029_v6 = vpack.c.bf16 %v1942_v29, %v1939_v9  ;;  %v9513_v29 = vld [vmem:[#allocation2 + $0x172] sm:$0xff]  ;;  %v9535_v9 = vld [vmem:[#allocation2 + $0x16a] sm:$0xff] }
 0x105   : >> { %1645 = vst.msk [vmem:[#allocation3 + $0xb0] sm:$0xff] %vm995_vm4, %v1557_v57  ;;  %1120 = vrot.lane.b32.xlu0 %v9114_v61, %s8452_s15 }
 0x106   : >> { %740 = vrot.lane.b32.xlu1 %v9116_v63, %s8450_s28  ;;  %2280 = vmatprep.mubr.bf16.mxu0 %v2029_v6  ;;  %1921 = vst.msk [vmem:[#allocation3 + $0x298] sm:$0xff] %vm388_vm0, %v9513_v29  ;;  %1920 = vst.msk [vmem:[#allocation3 + $0x280] sm:$0xff] %vm388_vm0, %v9535_v9 }
 0x107   : >> { %v719_v4 = vpop.permute.xlu0 %718  ;;  %v1938_v60 = vld [vmem:[#allocation3 + $0x60] sm:$0xff] }
 0x108   : >> { %v914_v55 = vpop.permute.xlu1 %913  ;;  %809 = vst.msk [vmem:[#allocation3 + $0x90] sm:$0xff] %vm802_vm3, %v719_v4  ;;  %v2028_v1 = vpack.c.bf16 %v1941_v21, %v1938_v60 }
 0x109   : >> { %1003 = vst.msk [vmem:[#allocation3 + $0xa8] sm:$0xff] %vm995_vm4, %v914_v55  ;;  %1381 = vrot.lane.b32.xlu0 %v9197_v14, %s8450_s28 }
 0x10a   : >> { %1576 = vrot.lane.b32.xlu1 %v9489_v51, %s8451_s14  ;;  %2281 = vmatmul.mubr.bf16.gmra.mxu0 %v2028_v1  ;;  %v1982_v1 = vld [vmem:[#allocation3 + $0x1c0] sm:$0xff] }
 0x10b   : >> { %v1555_v61 = vpop.permute.xlu0 %1554 }
 0x10c   : >> { %v1749_v63 = vpop.permute.xlu1 %1748  ;;  %1644 = vst.msk [vmem:[#allocation3 + $0x98] sm:$0xff] %vm995_vm4, %v1555_v61  ;;  %v1985_v61 = vld [vmem:[#allocation3 + $0x1d8] sm:$0xff] }
 0x10d   : >> { %1837 = vst.msk [vmem:[#allocation3 + $0xb0] sm:$0xff] %vm1188_vm5, %v1749_v63  ;;  %738 = vrot.lane.b32.xlu0 %v9121_v19, %s8450_s28 }
 0x10e   : >> { %933 = vrot.lane.b32.xlu1 %v9123_v23, %s8451_s14 }
 0x10f   : >> { %v912_v53 = vpop.permute.xlu0 %911 }
 0x110   : >> { %v1107_v25 = vpop.permute.xlu1 %1106  ;;  %1002 = vst.msk [vmem:[#allocation3 + $0x90] sm:$0xff] %vm995_vm4, %v912_v53  ;;  %v2051_v53 = vpack.c.bf16 %v1985_v61, %v1982_v1  ;;  %v598_v61 = vld [vmem:[#allocation2 + $0xf0] sm:$0xff] }
 0x111   : >> { %1196 = vst.msk [vmem:[#allocation3 + $0xa8] sm:$0xff] %vm1188_vm5, %v1107_v25  ;;  %1574 = vrot.lane.b32.xlu0 %v9507_v52, %s8451_s14 }
 0x112   : >> { %1768 = vrot.lane.b32.xlu1 %v9211_v32, %s8452_s15  ;;  %630 = vst.msk [vmem:[#allocation3 + $0x1e0] sm:$0xff] %vm388_vm0, %v598_v61 }
 0x113   : >> { %v1747_v19 = vpop.permute.xlu0 %1746 }
 0x114   : >> { %v1368_v23 = vpop.permute.xlu1 %1367  ;;  %1836 = vst.msk [vmem:[#allocation3 + $0x98] sm:$0xff] %vm1188_vm5, %v1747_v19  ;;  %v1948_v6 = vld [vmem:[#allocation3 + $0xb0] sm:$0xff]  ;;  %v9549_v19 = vld [vmem:[#allocation2 + $0x110] sm:$0xff] }
 0x115   : >> { %1454 = vst.msk [vmem:[#allocation3 + $0xe0] sm:$0xff] %vm802_vm3, %v1368_v23  ;;  %931 = vrot.lane.b32.xlu0 %v9145_v13, %s8451_s14  ;;  %v1976_v13 = vld [vmem:[#allocation3 + $0x190] sm:$0xff] }
 0x116   : >> { %1126 = vrot.lane.b32.xlu1 %v9147_v16, %s8452_s15  ;;  %v1979_v16 = vld [vmem:[#allocation3 + $0x1a8] sm:$0xff] }
 0x117   : >> { %v1105_v22 = vpop.permute.xlu0 %1104  ;;  %v2048_v60 = vpack.c.bf16 %v1979_v16, %v1976_v13  ;;  %v9569_v16 = vld [vmem:[#allocation2 + $0x108] sm:$0xff] }
 0x118   : >> { %v725_v57 = vpop.permute.xlu1 %724  ;;  %1195 = vst.msk [vmem:[#allocation3 + $0x90] sm:$0xff] %vm1188_vm5, %v1105_v22  ;;  %v1947_v25 = vld [vmem:[#allocation3 + $0xa8] sm:$0xff] }
 0x119   : >> { %812 = vst.msk [vmem:[#allocation3 + $0xd8] sm:$0xff] %vm802_vm3, %v725_v57  ;;  %1766 = vrot.lane.b32.xlu0 %v9223_v31, %s8452_s15  ;;  %7716 = vmatprep.mubr.msk.bf16.mxu1 %vm388_vm0, %v2048_v60  ;;  %v9575_v60 = vld [vmem:[#allocation2 + $0x18a] sm:$0xff] }
 0x11a   : >> { %1387 = vrot.lane.b32.xlu1 %v9225_v50, %s8450_s28  ;;  %7717 = vmatmul.mubr.msk.bf16.gmra.mxu1 %vm388_vm0, %v2051_v53  ;;  %1923 = vst.msk [vmem:[#allocation3 + $0x2c8] sm:$0xff] %vm388_vm0, %v9575_v60 }
 0x11b   : >> { %v1366_v21 = vpop.permute.xlu0 %1365  ;;  %v1945_v55 = vld [vmem:[#allocation3 + $0x98] sm:$0xff] }
 0x11c   : >> { %v1561_v4 = vpop.permute.xlu1 %1560  ;;  %1453 = vst.msk [vmem:[#allocation3 + $0xc8] sm:$0xff] %vm802_vm3, %v1366_v21  ;;  %v2032_v63 = vpack.c.bf16 %v1948_v6, %v1945_v55  ;;  %v9573_v55 = vld [vmem:[#allocation2 + $0x181] sm:$0xff] }
 0x11d   : >> { %1647 = vst.msk [vmem:[#allocation3 + $0xe0] sm:$0xff] %vm995_vm4, %v1561_v4  ;;  %1124 = vrot.lane.b32.xlu0 %v9161_v20, %s8452_s15  ;;  %v9555_v20 = vld [vmem:[#allocation2 + $0x189] sm:$0xff] }
 0x11e   : >> { %744 = vrot.lane.b32.xlu1 %v9163_v56, %s8450_s28  ;;  %2288 = vmatprep.mubr.bf16.mxu0 %v2032_v63  ;;  %1284 = vst.msk [vmem:[#allocation3 + $0x2f0] sm:$0xff] %vm388_vm0, %v9555_v20  ;;  %1283 = vst.msk [vmem:[#allocation3 + $0x2d8] sm:$0xff] %vm388_vm0, %v9573_v55 }
 0x11f   : >> { %v723_v23 = vpop.permute.xlu0 %722  ;;  %v1944_v57 = vld [vmem:[#allocation3 + $0x90] sm:$0xff] }
 0x120   : >> { %v918_v22 = vpop.permute.xlu1 %917  ;;  %811 = vst.msk [vmem:[#allocation3 + $0xc0] sm:$0xff] %vm802_vm3, %v723_v23  ;;  %v2031_v6 = vpack.c.bf16 %v1947_v25, %v1944_v57  ;;  %v9595_v25 = vld [vmem:[#allocation2 + $0x182] sm:$0xff] }
 0x121   : >> { %1005 = vst.msk [vmem:[#allocation3 + $0xd8] sm:$0xff] %vm995_vm4, %v918_v22  ;;  %1385 = vrot.lane.b32.xlu0 %v9242_v26, %s8450_s28 }
 0x122   : >> { %1580 = vrot.lane.b32.xlu1 %v9549_v19, %s8451_s14  ;;  %2289 = vmatmul.mubr.bf16.gmra.mxu0 %v2031_v6  ;;  %1922 = vst.msk [vmem:[#allocation3 + $0x2b0] sm:$0xff] %vm388_vm0, %v9595_v25 }
 0x123   : >> { %v1559_v56 = vpop.permute.xlu0 %1558 }
 0x124   : >> { %v1753_v13 = vpop.permute.xlu1 %1752  ;;  %1646 = vst.msk [vmem:[#allocation3 + $0xc8] sm:$0xff] %vm995_vm4, %v1559_v56  ;;  %v9609_v56 = vld [vmem:[#allocation2 + $0x128] sm:$0xff] }
 0x125   : >> { %1839 = vst.msk [vmem:[#allocation3 + $0xe0] sm:$0xff] %vm1188_vm5, %v1753_v13  ;;  %742 = vrot.lane.b32.xlu0 %v9177_v17, %s8450_s28  ;;  %v599_v17 = vld [vmem:[#allocation2 + $0xf8] sm:$0xff] }
 0x126   : >> { %937 = vrot.lane.b32.xlu1 %v9179_v59, %s8451_s14  ;;  %631 = vst.msk [vmem:[#allocation3 + $0x1f8] sm:$0xff] %vm388_vm0, %v599_v17 }
 0x127   : >> { %v916_v21 = vpop.permute.xlu0 %915 }
 0x128   : >> { %v1111_v4 = vpop.permute.xlu1 %1110  ;;  %1004 = vst.msk [vmem:[#allocation3 + $0xc0] sm:$0xff] %vm995_vm4, %v916_v21 }
 0x129   : >> { %1198 = vst.msk [vmem:[#allocation3 + $0xd8] sm:$0xff] %vm1188_vm5, %v1111_v4  ;;  %1578 = vrot.lane.b32.xlu0 %v9569_v16, %s8451_s14 }
 0x12a   : >> { %1772 = vrot.lane.b32.xlu1 %v9256_v12, %s8452_s15 }
 0x12b   : >> { %v1751_v59 = vpop.permute.xlu0 %1750 }
 0x12c   : >> { %v1372_v1 = vpop.permute.xlu1 %1371  ;;  %1838 = vst.msk [vmem:[#allocation3 + $0xc8] sm:$0xff] %vm1188_vm5, %v1751_v59  ;;  %v9623_v59 = vld [vmem:[#allocation2 + $0x120] sm:$0xff] }
 0x12d   : >> { %1456 = vst.msk [vmem:[#allocation3 + $0x110] sm:$0xff] %vm802_vm3, %v1372_v1  ;;  %935 = vrot.lane.b32.xlu0 %v9197_v14, %s8451_s14  ;;  %v1954_v14 = vld [vmem:[#allocation3 + $0xe0] sm:$0xff] }
 0x12e   : >> { %1130 = vrot.lane.b32.xlu1 %v9489_v51, %s8452_s15 }
 0x12f   : >> { %v1109_v63 = vpop.permute.xlu0 %1108 }
 0x130   : >> { %v729_v53 = vpop.permute.xlu1 %728  ;;  %1197 = vst.msk [vmem:[#allocation3 + $0xc0] sm:$0xff] %vm1188_vm5, %v1109_v63  ;;  %v1953_v6 = vld [vmem:[#allocation3 + $0xd8] sm:$0xff]  ;;  %v601_v63 = vld [vmem:[#allocation2 + $0x110] sm:$0xff] }
 0x131   : >> { %814 = vst.msk [vmem:[#allocation3 + $0x108] sm:$0xff] %vm802_vm3, %v729_v53  ;;  %1770 = vrot.lane.b32.xlu0 %v9270_v28, %s8452_s15 }
 0x132   : >> { %1391 = vrot.lane.b32.xlu1 %v9272_v18, %s8450_s28  ;;  %633 = vst.msk [vmem:[#allocation3 + $0x228] sm:$0xff] %vm388_vm0, %v601_v63 }
 0x133   : >> { %v1370_v51 = vpop.permute.xlu0 %1369  ;;  %v1951_v22 = vld [vmem:[#allocation3 + $0xc8] sm:$0xff] }
 0x134   : >> { %v1565_v23 = vpop.permute.xlu1 %1564  ;;  %1455 = vst.msk [vmem:[#allocation3 + $0xf8] sm:$0xff] %vm802_vm3, %v1370_v51  ;;  %v2035_v57 = vpack.c.bf16 %v1954_v14, %v1951_v22  ;;  %v1991_v22 = vld [vmem:[#allocation3 + $0x208] sm:$0xff] }
 0x135   : >> { %1649 = vst.msk [vmem:[#allocation3 + $0x110] sm:$0xff] %vm995_vm4, %v1565_v23  ;;  %1128 = vrot.lane.b32.xlu0 %v9507_v52, %s8452_s15 }
 0x136   : >> { %748 = vrot.lane.b32.xlu1 %v9211_v32, %s8450_s28  ;;  %2296 = vmatprep.mubr.bf16.mxu0 %v2035_v57 }
 0x137   : >> { %v727_v13 = vpop.permute.xlu0 %726  ;;  %v1950_v4 = vld [vmem:[#allocation3 + $0xc0] sm:$0xff] }
 0x138   : >> { %v922_v21 = vpop.permute.xlu1 %921  ;;  %813 = vst.msk [vmem:[#allocation3 + $0xf0] sm:$0xff] %vm802_vm3, %v727_v13  ;;  %v2034_v17 = vpack.c.bf16 %v1953_v6, %v1950_v4  ;;  %v1997_v4 = vld [vmem:[#allocation3 + $0x238] sm:$0xff] }
 0x139   : >> { %1007 = vst.msk [vmem:[#allocation3 + $0x108] sm:$0xff] %vm995_vm4, %v922_v21  ;;  %1389 = vrot.lane.b32.xlu0 %v9293_v54, %s8450_s28  ;;  %v1994_v21 = vld [vmem:[#allocation3 + $0x220] sm:$0xff] }
 0x13a   : >> { %1584 = vrot.lane.b32.xlu1 %v9609_v56, %s8451_s14  ;;  %2297 = vmatmul.mubr.bf16.gmra.mxu0 %v2034_v17 }
 0x13b   : >> { %v1563_v32 = vpop.permute.xlu0 %1562 }
 0x13c   : >> { %v1757_v52 = vpop.permute.xlu1 %1756  ;;  %1648 = vst.msk [vmem:[#allocation3 + $0xf8] sm:$0xff] %vm995_vm4, %v1563_v32  ;;  %v2057_v32 = vpack.c.bf16 %v1997_v4, %v1994_v21  ;;  %v9695_v4 = vld [vmem:[#allocation2 + $0x158] sm:$0xff] }
 0x13d   : >> { %1841 = vst.msk [vmem:[#allocation3 + $0x110] sm:$0xff] %vm1188_vm5, %v1757_v52  ;;  %746 = vrot.lane.b32.xlu0 %v9223_v31, %s8450_s28 }
 0x13e   : >> { %941 = vrot.lane.b32.xlu1 %v9225_v50, %s8451_s14  ;;  %v600_v50 = vld [vmem:[#allocation2 + $0x108] sm:$0xff] }
 0x13f   : >> { %v920_v1 = vpop.permute.xlu0 %919  ;;  %632 = vst.msk [vmem:[#allocation3 + $0x210] sm:$0xff] %vm388_vm0, %v600_v50  ;;  %v9667_v50 = vld [vmem:[#allocation2 + $0x138] sm:$0xff] }
 0x140   : >> { %v1115_v61 = vpop.permute.xlu1 %1114  ;;  %1006 = vst.msk [vmem:[#allocation3 + $0xf0] sm:$0xff] %vm995_vm4, %v920_v1  ;;  %v9651_v1 = vld [vmem:[#allocation2 + $0x140] sm:$0xff] }
 0x141   : >> { %1200 = vst.msk [vmem:[#allocation3 + $0x108] sm:$0xff] %vm1188_vm5, %v1115_v61  ;;  %1582 = vrot.lane.b32.xlu0 %v9623_v59, %s8451_s14 }
 0x142   : >> { %1776 = vrot.lane.b32.xlu1 %v9311_v11, %s8452_s15 }
 0x143   : >> { %v1755_v31 = vpop.permute.xlu0 %1754 }
 0x144   : >> { %v1376_v53 = vpop.permute.xlu1 %1375  ;;  %1840 = vst.msk [vmem:[#allocation3 + $0xf8] sm:$0xff] %vm1188_vm5, %v1755_v31  ;;  %v1960_v23 = vld [vmem:[#allocation3 + $0x110] sm:$0xff] }
 0x145   : >> { %1458 = vst.msk [vmem:[#allocation3 + $0x140] sm:$0xff] %vm802_vm3, %v1376_v53  ;;  %939 = vrot.lane.b32.xlu0 %v9242_v26, %s8451_s14  ;;  %v1988_v26 = vld [vmem:[#allocation3 + $0x1f0] sm:$0xff] }
 0x146   : >> { %1134 = vrot.lane.b32.xlu1 %v9549_v19, %s8452_s15  ;;  %v2054_v13 = vpack.c.bf16 %v1991_v22, %v1988_v26 }
 0x147   : >> { %v1113_v14 = vpop.permute.xlu0 %1112 }
 0x148   : >> { %v733_v51 = vpop.permute.xlu1 %732  ;;  %1199 = vst.msk [vmem:[#allocation3 + $0xf0] sm:$0xff] %vm1188_vm5, %v1113_v14  ;;  %v1959_v52 = vld [vmem:[#allocation3 + $0x108] sm:$0xff]  ;;  %7720 = vmatprep.mubr.msk.bf16.mxu1 %vm388_vm0, %v2054_v13 }
 0x149   : >> { %816 = vst.msk [vmem:[#allocation3 + $0x138] sm:$0xff] %vm802_vm3, %v733_v51  ;;  %1774 = vrot.lane.b32.xlu0 %v9330_v58, %s8452_s15  ;;  %7721 = vmatmul.mubr.msk.bf16.gmra.mxu1 %vm388_vm0, %v2057_v32 }
 0x14a   : >> { %1395 = vrot.lane.b32.xlu1 %v9332_v15, %s8450_s28 }
 0x14b   : >> { %v1374_v57 = vpop.permute.xlu0 %1373  ;;  %v1957_v6 = vld [vmem:[#allocation3 + $0xf8] sm:$0xff] }
 0x14c   : >> { %v1569_v19 = vpop.permute.xlu1 %1568  ;;  %1457 = vst.msk [vmem:[#allocation3 + $0x128] sm:$0xff] %vm802_vm3, %v1374_v57  ;;  %v2038_v17 = vpack.c.bf16 %v1960_v23, %v1957_v6  ;;  %v603_v23 = vld [vmem:[#allocation2 + $0x128] sm:$0xff] }
 0x14d   : >> { %1651 = vst.msk [vmem:[#allocation3 + $0x140] sm:$0xff] %vm995_vm4, %v1569_v19  ;;  %1132 = vrot.lane.b32.xlu0 %v9569_v16, %s8452_s15 }
 0x14e   : >> { %752 = vrot.lane.b32.xlu1 %v9256_v12, %s8450_s28  ;;  %2304 = vmatprep.mubr.bf16.mxu0 %v2038_v17  ;;  %635 = vst.msk [vmem:[#allocation3 + $0x258] sm:$0xff] %vm388_vm0, %v603_v23 }
 0x14f   : >> { %v731_v61 = vpop.permute.xlu0 %730  ;;  %v1956_v31 = vld [vmem:[#allocation3 + $0xf0] sm:$0xff] }
 0x150   : >> { %v926_v63 = vpop.permute.xlu1 %925  ;;  %815 = vst.msk [vmem:[#allocation3 + $0x120] sm:$0xff] %vm802_vm3, %v731_v61  ;;  %v2037_v53 = vpack.c.bf16 %v1959_v52, %v1956_v31 }
 0x151   : >> { %1009 = vst.msk [vmem:[#allocation3 + $0x138] sm:$0xff] %vm995_vm4, %v926_v63  ;;  %1393 = vrot.lane.b32.xlu0 %v9356_v30, %s8450_s28  ;;  %v9709_v63 = vld [vmem:[#allocation2 + $0x150] sm:$0xff] }
 0x152   : >> { %1588 = vrot.lane.b32.xlu1 %v9651_v1, %s8451_s14  ;;  %2305 = vmatmul.mubr.bf16.gmra.mxu0 %v2037_v53 }
 0x153   : >> { %v1567_v12 = vpop.permute.xlu0 %1566 }
 0x154   : >> { %v1761_v16 = vpop.permute.xlu1 %1760  ;;  %1650 = vst.msk [vmem:[#allocation3 + $0x128] sm:$0xff] %vm995_vm4, %v1567_v12  ;;  %v605_v12 = vld [vmem:[#allocation2 + $0x140] sm:$0xff] }
 0x155   : >> { %1843 = vst.msk [vmem:[#allocation3 + $0x140] sm:$0xff] %vm1188_vm5, %v1761_v16  ;;  %750 = vrot.lane.b32.xlu0 %v9270_v28, %s8450_s28 }
 0x156   : >> { %945 = vrot.lane.b32.xlu1 %v9272_v18, %s8451_s14  ;;  %v602_v18 = vld [vmem:[#allocation2 + $0x120] sm:$0xff]  ;;  %637 = vst.msk [vmem:[#allocation3 + $0x288] sm:$0xff] %vm388_vm0, %v605_v12 }
 0x157   : >> { %v924_v14 = vpop.permute.xlu0 %923  ;;  %634 = vst.msk [vmem:[#allocation3 + $0x240] sm:$0xff] %vm388_vm0, %v602_v18  ;;  %v2003_v18 = vld [vmem:[#allocation3 + $0x268] sm:$0xff] }
 0x158   : >> { %v1119_v51 = vpop.permute.xlu1 %1118  ;;  %1008 = vst.msk [vmem:[#allocation3 + $0x120] sm:$0xff] %vm995_vm4, %v924_v14 }
 0x159   : >> { %1202 = vst.msk [vmem:[#allocation3 + $0x138] sm:$0xff] %vm1188_vm5, %v1119_v51  ;;  %1586 = vrot.lane.b32.xlu0 %v9667_v50, %s8451_s14 }
 0x15a   : >> { %1780 = vrot.lane.b32.xlu1 %v9374_v62, %s8452_s15 }
 0x15b   : >> { %v1759_v28 = vpop.permute.xlu0 %1758 }
 0x15c   : >> { %v1380_v26 = vpop.permute.xlu1 %1379  ;;  %1842 = vst.msk [vmem:[#allocation3 + $0x128] sm:$0xff] %vm1188_vm5, %v1759_v28  ;;  %v1966_v19 = vld [vmem:[#allocation3 + $0x140] sm:$0xff] }
 0x15d   : >> { %1460 = vst.msk [vmem:[#allocation3 + $0x170] sm:$0xff] %vm802_vm3, %v1380_v26  ;;  %943 = vrot.lane.b32.xlu0 %v9293_v54, %s8451_s14 }
 0x15e   : >> { %1138 = vrot.lane.b32.xlu1 %v9609_v56, %s8452_s15 }
 0x15f   : >> { %v1117_v22 = vpop.permute.xlu0 %1116 }
 0x160   : >> { %v737_v57 = vpop.permute.xlu1 %736  ;;  %1201 = vst.msk [vmem:[#allocation3 + $0x120] sm:$0xff] %vm1188_vm5, %v1117_v22  ;;  %v1965_v21 = vld [vmem:[#allocation3 + $0x138] sm:$0xff] }
 0x161   : >> { %818 = vst.msk [vmem:[#allocation3 + $0x168] sm:$0xff] %vm802_vm3, %v737_v57  ;;  %1778 = vrot.lane.b32.xlu0 %v9390_v10, %s8452_s15 }
 0x162   : >> { %1399 = vrot.lane.b32.xlu1 %v9392_v8, %s8450_s28 }
 0x163   : >> { %v1378_v54 = vpop.permute.xlu0 %1377  ;;  %v1963_v13 = vld [vmem:[#allocation3 + $0x128] sm:$0xff] }
 0x164   : >> { %v1573_v6 = vpop.permute.xlu1 %1572  ;;  %1459 = vst.msk [vmem:[#allocation3 + $0x158] sm:$0xff] %vm802_vm3, %v1378_v54  ;;  %v2041_v56 = vpack.c.bf16 %v1966_v19, %v1963_v13  ;;  %v2006_v19 = vld [vmem:[#allocation3 + $0x280] sm:$0xff]  ;;  %v2009_v54 = vld [vmem:[#allocation3 + $0x298] sm:$0xff] }
 0x165   : >> { %1653 = vst.msk [vmem:[#allocation3 + $0x170] sm:$0xff] %vm995_vm4, %v1573_v6  ;;  %1136 = vrot.lane.b32.xlu0 %v9623_v59, %s8452_s15  ;;  %v2063_v13 = vpack.c.bf16 %v2009_v54, %v2006_v19  ;;  %v9800_v54 = vld [vmem:[%s9795_s19] ss:$0 sm:$0xff] }
 0x166   : >> { %756 = vrot.lane.b32.xlu1 %v9311_v11, %s8450_s28  ;;  %2312 = vmatprep.mubr.bf16.mxu0 %v2041_v56  ;;  %v9737_v56 = vld [vmem:[#allocation2 + $0x170] sm:$0xff] }
 0x167   : >> { %v735_v17 = vpop.permute.xlu0 %734  ;;  %v1962_v52 = vld [vmem:[#allocation3 + $0x120] sm:$0xff] }
 0x168   : >> { %v930_v32 = vpop.permute.xlu1 %929  ;;  %817 = vst.msk [vmem:[#allocation3 + $0x150] sm:$0xff] %vm802_vm3, %v735_v17  ;;  %v2040_v61 = vpack.c.bf16 %v1965_v21, %v1962_v52 }
 0x169   : >> { %1011 = vst.msk [vmem:[#allocation3 + $0x168] sm:$0xff] %vm995_vm4, %v930_v32  ;;  %1397 = vrot.lane.b32.xlu0 %v9416_v5, %s8450_s28 }
 0x16a   : >> { %1592 = vrot.lane.b32.xlu1 %v9695_v4, %s8451_s14  ;;  %2313 = vmatmul.mubr.bf16.gmra.mxu0 %v2040_v61  ;;  %v9753_v61 = vld [vmem:[#allocation2 + $0x168] sm:$0xff] }
 0x16b   : >> { %v1571_v11 = vpop.permute.xlu0 %1570 }
 0x16c   : >> { %v1765_v59 = vpop.permute.xlu1 %1764  ;;  %1652 = vst.msk [vmem:[#allocation3 + $0x158] sm:$0xff] %vm995_vm4, %v1571_v11 }
 0x16d   : >> { %1845 = vst.msk [vmem:[#allocation3 + $0x170] sm:$0xff] %vm1188_vm5, %v1765_v59  ;;  %754 = vrot.lane.b32.xlu0 %v9330_v58, %s8450_s28 }
 0x16e   : >> { %949 = vrot.lane.b32.xlu1 %v9332_v15, %s8451_s14  ;;  %v604_v15 = vld [vmem:[#allocation2 + $0x138] sm:$0xff] }
 0x16f   : >> { %v928_v31 = vpop.permute.xlu0 %927  ;;  %636 = vst.msk [vmem:[#allocation3 + $0x270] sm:$0xff] %vm388_vm0, %v604_v15 }
 0x170   : >> { %v1123_v53 = vpop.permute.xlu1 %1122  ;;  %1010 = vst.msk [vmem:[#allocation3 + $0x150] sm:$0xff] %vm995_vm4, %v928_v31  ;;  %v607_v31 = vld [vmem:[#allocation2 + $0x158] sm:$0xff] }
 0x171   : >> { %1204 = vst.msk [vmem:[#allocation3 + $0x168] sm:$0xff] %vm1188_vm5, %v1123_v53  ;;  %1590 = vrot.lane.b32.xlu0 %v9709_v63, %s8451_s14 }
 0x172   : >> { %1784 = vrot.lane.b32.xlu1 %v9434_v7, %s8452_s15  ;;  %639 = vst.msk [vmem:[#allocation3 + $0x2b8] sm:$0xff] %vm388_vm0, %v607_v31 }
 0x173   : >> { %v1763_v58 = vpop.permute.xlu0 %1762 }
 0x174   : >> { %v1384_v16 = vpop.permute.xlu1 %1383  ;;  %1844 = vst.msk [vmem:[#allocation3 + $0x158] sm:$0xff] %vm1188_vm5, %v1763_v58  ;;  %v1972_v23 = vld [vmem:[#allocation3 + $0x170] sm:$0xff] }
 0x175   : >> { %1462 = vst.msk [vmem:[#allocation3 + $0x1a0] sm:$0xff] %vm802_vm3, %v1384_v16  ;;  %947 = vrot.lane.b32.xlu0 %v9356_v30, %s8451_s14 }
 0x176   : >> { %1142 = vrot.lane.b32.xlu1 %v9651_v1, %s8452_s15  ;;  %v2000_v1 = vld [vmem:[#allocation3 + $0x250] sm:$0xff] }
 0x177   : >> { %v1121_v14 = vpop.permute.xlu0 %1120  ;;  %v2060_v57 = vpack.c.bf16 %v2003_v18, %v2000_v1 }
 0x178   : >> { %v741_v51 = vpop.permute.xlu1 %740  ;;  %1203 = vst.msk [vmem:[#allocation3 + $0x150] sm:$0xff] %vm1188_vm5, %v1121_v14  ;;  %v1971_v6 = vld [vmem:[#allocation3 + $0x168] sm:$0xff] }
 0x179   : >> { %820 = vst.msk [vmem:[#allocation3 + $0x198] sm:$0xff] %vm802_vm3, %v741_v51  ;;  %1782 = vrot.lane.b32.xlu0 %v9450_v24, %s8452_s15  ;;  %7724 = vmatprep.mubr.msk.bf16.mxu1 %vm388_vm0, %v2060_v57 }
 0x17a   : >> { %1403 = vrot.lane.b32.xlu1 %v9452_v2, %s8450_s28  ;;  %7725 = vmatmul.mubr.msk.bf16.gmra.mxu1 %vm388_vm0, %v2063_v13 }
 0x17b   : >> { %v1382_v30 = vpop.permute.xlu0 %1381  ;;  %v1969_v26 = vld [vmem:[#allocation3 + $0x158] sm:$0xff] }
 0x17c   : >> { %v1577_v28 = vpop.permute.xlu1 %1576  ;;  %1461 = vst.msk [vmem:[#allocation3 + $0x188] sm:$0xff] %vm802_vm3, %v1382_v30  ;;  %v2044_v22 = vpack.c.bf16 %v1972_v23, %v1969_v26  ;;  %v9781_v23 = vld [vmem:[#allocation2 + $0x188] sm:$0xff]  ;;  %v9783_v30 = vpop.f32.mrf.mxu1 }
 0x17d   : >> { %1655 = vst.msk [vmem:[#allocation3 + $0x1a0] sm:$0xff] %vm995_vm4, %v1577_v28  ;;  %1140 = vrot.lane.b32.xlu0 %v9667_v50, %s8452_s15 }
 0x17e   : >> { %760 = vrot.lane.b32.xlu1 %v9374_v62, %s8450_s28  ;;  %2320 = vmatprep.mubr.bf16.mxu0 %v2044_v22 }
 0x17f   : >> { %v739_v21 = vpop.permute.xlu0 %738  ;;  %v1968_v32 = vld [vmem:[#allocation3 + $0x150] sm:$0xff] }
 0x180   : >> { %v934_v17 = vpop.permute.xlu1 %933  ;;  %819 = vst.msk [vmem:[#allocation3 + $0x180] sm:$0xff] %vm802_vm3, %v739_v21  ;;  %v2043_v50 = vpack.c.bf16 %v1971_v6, %v1968_v32  ;;  %v9806_v21 = vld [vmem:[#allocation2 + $0x180] sm:$0xff] }
 0x181   : >> { %1013 = vst.msk [vmem:[#allocation3 + $0x198] sm:$0xff] %vm995_vm4, %v934_v17  ;;  %1401 = vrot.lane.b32.xlu0 %v9475_v49, %s8450_s28 }
 0x182   : >> { %1596 = vrot.lane.b32.xlu1 %v9737_v56, %s8451_s14  ;;  %2321 = vmatmul.mubr.bf16.gmra.mxu0 %v2043_v50 }
 0x183   : >> { %v1575_v62 = vpop.permute.xlu0 %1574 }
 0x184   : >> { %v1769_v52 = vpop.permute.xlu1 %1768  ;;  %1654 = vst.msk [vmem:[#allocation3 + $0x188] sm:$0xff] %vm995_vm4, %v1575_v62 }
 0x185   : >> { %1847 = vst.msk [vmem:[#allocation3 + $0x1a0] sm:$0xff] %vm1188_vm5, %v1769_v52  ;;  %758 = vrot.lane.b32.xlu0 %v9390_v10, %s8450_s28 }
 0x186   : >> { %953 = vrot.lane.b32.xlu1 %v9392_v8, %s8451_s14  ;;  %v606_v8 = vld [vmem:[#allocation2 + $0x150] sm:$0xff] }
 0x187   : >> { %v932_v11 = vpop.permute.xlu0 %931  ;;  %638 = vst.msk [vmem:[#allocation3 + $0x2a0] sm:$0xff] %vm388_vm0, %v606_v8 }
 0x188   : >> { %v1127_v59 = vpop.permute.xlu1 %1126  ;;  %1012 = vst.msk [vmem:[#allocation3 + $0x180] sm:$0xff] %vm995_vm4, %v932_v11 }
 0x189   : >> { %1206 = vst.msk [vmem:[#allocation3 + $0x198] sm:$0xff] %vm1188_vm5, %v1127_v59  ;;  %1594 = vrot.lane.b32.xlu0 %v9753_v61, %s8451_s14 }
 0x18a   : >> { %1788 = vrot.lane.b32.xlu1 %v9493_v27, %s8452_s15 }
 0x18b   : >> { %v1767_v10 = vpop.permute.xlu0 %1766 }
 0x18c   : >> { %v1388_v53 = vpop.permute.xlu1 %1387  ;;  %1846 = vst.msk [vmem:[#allocation3 + $0x188] sm:$0xff] %vm1188_vm5, %v1767_v10  ;;  %v1978_v16 = vld [vmem:[#allocation3 + $0x1a0] sm:$0xff] }
 0x18d   : >> { %1464 = vst.msk [vmem:[#allocation3 + $0x1d0] sm:$0xff] %vm802_vm3, %v1388_v53  ;;  %951 = vrot.lane.b32.xlu0 %v9416_v5, %s8451_s14 }
 0x18e   : >> { %1146 = vrot.lane.b32.xlu1 %v9695_v4, %s8452_s15 }
 0x18f   : >> { %v1125_v12 = vpop.permute.xlu0 %1124 }
 0x190   : >> { %v745_v58 = vpop.permute.xlu1 %744  ;;  %1205 = vst.msk [vmem:[#allocation3 + $0x180] sm:$0xff] %vm1188_vm5, %v1125_v12  ;;  %v1977_v51 = vld [vmem:[#allocation3 + $0x198] sm:$0xff]  ;;  %v1892_v12 = vld [vmem:[#allocation2 + $0x19a] sm:$0xff] }
 0x191   : >> { %822 = vst.msk [vmem:[#allocation3 + $0x1c8] sm:$0xff] %vm802_vm3, %v745_v58  ;;  %1786 = vrot.lane.b32.xlu0 %v9511_v3, %s8452_s15  ;;  %v1893_v58 = vld [vmem:[#allocation2 + $0x1a2] sm:$0xff] }
 0x192   : >> { %1407 = vrot.lane.b32.xlu1 %v9513_v29, %s8450_s28  ;;  %1924 = vst.msk [vmem:[#allocation3 + $0x2e0] sm:$0xff] %vm388_vm0, %v1892_v12  ;;  %1925 = vst.msk [vmem:[#allocation3 + $0x2f8] sm:$0xff] %vm388_vm0, %v1893_v58 }
 0x193   : >> { %v1386_v5 = vpop.permute.xlu0 %1385  ;;  %v1975_v14 = vld [vmem:[#allocation3 + $0x188] sm:$0xff] }
 0x194   : >> { %v1581_v15 = vpop.permute.xlu1 %1580  ;;  %1463 = vst.msk [vmem:[#allocation3 + $0x1b8] sm:$0xff] %vm802_vm3, %v1386_v5  ;;  %v2047_v4 = vpack.c.bf16 %v1978_v16, %v1975_v14  ;;  %v608_v14 = vld [vmem:[#allocation2 + $0x168] sm:$0xff] }
 0x195   : >> { %1657 = vst.msk [vmem:[#allocation3 + $0x1d0] sm:$0xff] %vm995_vm4, %v1581_v15  ;;  %1144 = vrot.lane.b32.xlu0 %v9709_v63, %s8452_s15  ;;  %v2427_v63 = vpop.f32.mrf.mxu1 }
 0x196   : >> { %764 = vrot.lane.b32.xlu1 %v9434_v7, %s8450_s28  ;;  %2328 = vmatprep.mubr.bf16.mxu0 %v2047_v4  ;;  %640 = vst.msk [vmem:[#allocation3 + $0x2d0] sm:$0xff] %vm388_vm0, %v608_v14 }
 0x197   : >> { %v743_v28 = vpop.permute.xlu0 %742  ;;  %v1974_v1 = vld [vmem:[#allocation3 + $0x180] sm:$0xff]  ;;  %v9808_v17 = vpop.f32.mrf.mxu1 }
 0x198   : >> { %v938_v26 = vpop.permute.xlu1 %937  ;;  %821 = vst.msk [vmem:[#allocation3 + $0x1b0] sm:$0xff] %vm802_vm3, %v743_v28  ;;  %v2046_v18 = vpack.c.bf16 %v1977_v51, %v1974_v1  ;;  %v2012_v28 = vld [vmem:[#allocation3 + $0x2b0] sm:$0xff] }
 0x199   : >> { %1015 = vst.msk [vmem:[#allocation3 + $0x1c8] sm:$0xff] %vm995_vm4, %v938_v26  ;;  %1405 = vrot.lane.b32.xlu0 %v9535_v9, %s8450_s28  ;;  %v2015_v26 = vld [vmem:[#allocation3 + $0x2c8] sm:$0xff] }
 0x19a   : >> { %1600 = vrot.lane.b32.xlu1 %v9781_v23, %s8451_s14  ;;  %v7317_v7 = vpop.f32.mrf.mxu0  ;;  %2329 = vmatmul.mubr.bf16.gmra.mxu0 %v2046_v18 }
 0x19b   : >> { %v1579_v22 = vpop.permute.xlu0 %1578 }
 0x19c   : >> { %v1773_v57 = vpop.permute.xlu1 %1772  ;;  %1656 = vst.msk [vmem:[#allocation3 + $0x1b8] sm:$0xff] %vm995_vm4, %v1579_v22  ;;  %v7318_v19 = vpop.f32.mrf.mxu0 }
 0x19d   : >> { %1849 = vst.msk [vmem:[#allocation3 + $0x1d0] sm:$0xff] %vm1188_vm5, %v1773_v57  ;;  %v7319_v6 = vadd.f32 %v7318_v19, %v7317_v7  ;;  %762 = vrot.lane.b32.xlu0 %v9450_v24, %s8450_s28  ;;  %v609_v24 = vld [vmem:[#allocation2 + $0x170] sm:$0xff]  ;;  %v2066_v7 = vpack.c.bf16 %v2015_v26, %v2012_v28  ;;  %v1509_v57 = vld [vmem:[#allocation2 + $0x1a0] sm:$0xff] }
 0x19e   : >> { %957 = vrot.lane.b32.xlu1 %v9452_v2, %s8451_s14  ;;  %v7320_v13 = vpop.f32.mrf.mxu0  ;;  %v2430_v2 = vpop.f32.mrf.mxu1  ;;  %641 = vst.msk [vmem:[#allocation3 + $0x2e8] sm:$0xff] %vm388_vm0, %v609_v24  ;;  %v2658_v28 = vld [vmem:[#allocation2] sm:$0xff] }
 0x19f   : >> { %v936_v32 = vpop.permute.xlu0 %935  ;;  %v2267_v62 = vadd.f32 %v7319_v6, %v9800_v54  ;;  %7728 = vmatprep.mubr.msk.bf16.mxu1 %vm388_vm0, %v2066_v7  ;;  %2690 = vst.msk [vmem:[#allocation3] sm:$0xff] %vm388_vm0, %v2658_v28 }
 0x1a0   : >> { %v1131_v50 = vpop.permute.xlu1 %1130  ;;  %1014 = vst.msk [vmem:[#allocation3 + $0x1b0] sm:$0xff] %vm995_vm4, %v936_v32  ;;  %v7321_v52 = vpop.f32.mrf.mxu0 }
 0x1a1   : >> { %1208 = vst.msk [vmem:[#allocation3 + $0x1c8] sm:$0xff] %vm1188_vm5, %v1131_v50  ;;  %v7322_v11 = vadd.f32 %v7321_v52, %v7320_v13  ;;  %v2428_v59 = vadd.f32 %v2427_v63, %v2267_v62  ;;  %1598 = vrot.lane.b32.xlu0 %v9806_v21, %s8451_s14  ;;  %v2018_v63 = vld [vmem:[#allocation3 + $0x2e0] sm:$0xff] }
 0x1a2   : >> { %1792 = vrot.lane.b32.xlu1 %v9555_v20, %s8452_s15  ;;  %4000 = vst.msk [vmem:[#allocation3 + $0x2e0] sm:$0xff] %vm388_vm0, %v1892_v12 }
 0x1a3   : >> { %v2554_v31 = vmax.f32 %v2428_v59, 0.0  ;;  %v1771_v10 = vpop.permute.xlu0 %1770  ;;  %v2270_v8 = vadd.f32 %v7322_v11, %v9800_v54 }
 0x1a4   : >> { %v1392_v53 = vpop.permute.xlu1 %1391  ;;  %1848 = vst.msk [vmem:[#allocation3 + $0x1b8] sm:$0xff] %vm1188_vm5, %v1771_v10 }
 0x1a5   : >> { %1466 = vst.msk [vmem:[#allocation3 + $0x200] sm:$0xff] %vm802_vm3, %v1392_v53  ;;  %v2431_v16 = vadd.f32 %v2430_v2, %v2270_v8  ;;  %955 = vrot.lane.b32.xlu0 %v9475_v49, %s8451_s14  ;;  %v1984_v49 = vld [vmem:[#allocation3 + $0x1d0] sm:$0xff] }
 0x1a6   : >> { %2626 = vst.msk [vmem:[#allocation2 + $0x19] sm:$0xff] %vm388_vm0, %v2554_v31  ;;  %1150 = vrot.lane.b32.xlu1 %v9737_v56, %s8452_s15  ;;  %v1701_v2 = vld [vmem:[#allocation2 + $0x1a1] sm:$0xff]  ;;  %v1508_v31 = vld [vmem:[#allocation2 + $0x198] sm:$0xff] }
 0x1a7   : >> { %v2555_v20 = vmax.f32 %v2431_v16, 0.0  ;;  %v1129_v5 = vpop.permute.xlu0 %1128  ;;  %v8133_v16 = vld [vmem:[%s9875_s22 + $0x78] sm:$0xff]  }
 0x1a8   : >> { %v749_v15 = vpop.permute.xlu1 %748  ;;  %1207 = vst.msk [vmem:[#allocation3 + $0x1b0] sm:$0xff] %vm1188_vm5, %v1129_v5  ;;  %7431 = vmatprep.subr.bf16.mxu1 %v8133_v16  ;;  %v8144_v16 = vld [vmem:[%s9875_s22 + $0x18] sm:$0xff]  }
 0x1a9   : >> { %824 = vst.msk [vmem:[#allocation3 + $0x1f8] sm:$0xff] %vm802_vm3, %v749_v15  ;;  %1790 = vrot.lane.b32.xlu0 %v9573_v55, %s8452_s15  ;;  %v1983_v55 = vld [vmem:[#allocation3 + $0x1c8] sm:$0xff] }
 0x1aa   : >> { %2627 = vst.msk [vmem:[#allocation2 + $0x21] sm:$0xff] %vm388_vm0, %v2555_v20  ;;  %1411 = vrot.lane.b32.xlu1 %v9575_v60, %s8450_s28  ;;  %v2021_v60 = vld [vmem:[#allocation3 + $0x2f8] sm:$0xff] }
 0x1ab   : >> { %v1390_v56 = vpop.permute.xlu0 %1389  ;;  %v1981_v51 = vld [vmem:[#allocation3 + $0x1b8] sm:$0xff]  ;;  %v2069_v19 = vpack.c.bf16 %v2021_v60, %v2018_v63  ;;  %4001 = vst.msk [vmem:[#allocation3 + $0x2f8] sm:$0xff] %vm388_vm0, %v1893_v58 }
 0x1ac   : >> { %v1585_v4 = vpop.permute.xlu1 %1584  ;;  %1465 = vst.msk [vmem:[#allocation3 + $0x1e8] sm:$0xff] %vm802_vm3, %v1390_v56  ;;  %v2050_v1 = vpack.c.bf16 %v1984_v49, %v1981_v51  ;;  %v2659_v58 = vld [vmem:[#allocation2 + $0x8] sm:$0xff]  ;;  %v8134_v49 = vld [vmem:[%s9875_s22 + $0x38] sm:$0xff]   ;;  %v8136_v51 = vld [vmem:[%s9875_s22 + $0x30] sm:$0xff]  }
 0x1ad   : >> { %1659 = vst.msk [vmem:[#allocation3 + $0x200] sm:$0xff] %vm995_vm4, %v1585_v4  ;;  %v9838_v18 = vld [vmem:[#allocation2 + $0x19] sm:$0xff]  ;;  %1148 = vrot.lane.b32.xlu0 %v9753_v61, %s8452_s15  ;;  %7729 = vmatmul.mubr.msk.bf16.gmra.mxu1 %vm388_vm0, %v2069_v19  ;;  %v8135_v4 = vld [vmem:[%s9875_s22 + $0x70] sm:$0xff]   ;;  %v8139_v60 = vld [vmem:[%s9875_s22 + $0x28] sm:$0xff]  }
 0x1ae   : >> { %768 = vrot.lane.b32.xlu1 %v9493_v27, %s8450_s28  ;;  %3330 = vst.msk [vmem:[#allocation3 + $0x8] sm:$0xff] %vm388_vm0, %v9838_v18  ;;  %v2660_v22 = vld [vmem:[#allocation2 + $0x18] sm:$0xff]  ;;  %2336 = vmatprep.mubr.bf16.mxu0 %v2050_v1  ;;  %2691 = vst.msk [vmem:[#allocation3 + $0x18] sm:$0xff] %vm388_vm0, %v2659_v58 }
 0x1af   : >> { %2692 = vst.msk [vmem:[#allocation3 + $0x30] sm:$0xff] %vm388_vm0, %v2660_v22  ;;  %v747_v61 = vpop.permute.xlu0 %746  ;;  %v1980_v27 = vld [vmem:[#allocation3 + $0x1b0] sm:$0xff]  ;;  %7432 = vmatpush3.bf16.msra.mxu1 %v8134_v49  ;;  %v8145_v49 = vld [vmem:[%s9875_s22 + $0x50] sm:$0xff]  }
 0x1b0   : >> { %v942_v6 = vpop.permute.xlu1 %941  ;;  %823 = vst.msk [vmem:[#allocation3 + $0x1e0] sm:$0xff] %vm802_vm3, %v747_v61  ;;  %v2049_v13 = vpack.c.bf16 %v1983_v55, %v1980_v27  ;;  %v1700_v56 = vld [vmem:[#allocation2 + $0x199] sm:$0xff]  ;;  %7433 = vmatprep.subr.bf16.mxu1 %v8135_v4  ;;  %v8138_v55 = vld [vmem:[%s9875_s22 + $0x88] sm:$0xff]  }
 0x1b1   : >> { %1017 = vst.msk [vmem:[#allocation3 + $0x1f8] sm:$0xff] %vm995_vm4, %v942_v6  ;;  %1409 = vrot.lane.b32.xlu0 %v9595_v25, %s8450_s28  ;;  %v9856_v32 = vld [vmem:[#allocation2 + $0x21] sm:$0xff]  ;;  %7732 = vmatprep.subr.bf16.mxu0 %v8138_v55 }
 0x1b2   : >> { %1604 = vrot.lane.b32.xlu1 %v1509_v57, %s8451_s14  ;;  %v2661_v50 = vld [vmem:[#allocation2 + $0x20] sm:$0xff]  ;;  %v7323_v62 = vpop.f32.mrf.mxu0  ;;  %2337 = vmatmul.mubr.bf16.gmra.mxu0 %v2049_v13  ;;  %3331 = vst.msk [vmem:[#allocation3 + $0x20] sm:$0xff] %vm388_vm0, %v9856_v32 }
 0x1b3   : >> { %2693 = vst.msk [vmem:[#allocation3 + $0x48] sm:$0xff] %vm388_vm0, %v2661_v50  ;;  %v1583_v52 = vpop.permute.xlu0 %1582  ;;  %v9894_v63 = vld [vmem:[#allocation2 + $0x22] sm:$0xff]  ;;  %7434 = vmatpush3.bf16.msra.mxu1 %v8136_v51  ;;  %7733 = vmatpush3.bf16.msra.mxu0 %v8138_v55  ;;  %v8146_v51 = vld [vmem:[%s9875_s22 + $0x10] sm:$0xff]  }
 0x1b4   : >> { %v1777_v11 = vpop.permute.xlu1 %1776  ;;  %1658 = vst.msk [vmem:[#allocation3 + $0x1e8] sm:$0xff] %vm995_vm4, %v1583_v52  ;;  %v7324_v59 = vpop.f32.mrf.mxu0  ;;  %v8140_v27 = vld [vmem:[%s9875_s22 + $0x60] sm:$0xff]  }
 0x1b5   : >> { %1851 = vst.msk [vmem:[#allocation3 + $0x200] sm:$0xff] %vm1188_vm5, %v1777_v11  ;;  %v7325_v24 = vadd.f32 %v7324_v59, %v7323_v62  ;;  %766 = vrot.lane.b32.xlu0 %v9511_v3, %s8450_s28  ;;  %v8141_v13 = vld [vmem:[%s9875_s22 + $0x80] sm:$0xff]   ;;  %v9913_v62 = vpop.f32.mrf.mxu1 }
 0x1b6   : >> { %961 = vrot.lane.b32.xlu1 %v9513_v29, %s8451_s14  ;;  %v7326_v25 = vpop.f32.mrf.mxu0  ;;  %v8142_v52 = vld [vmem:[%s9875_s22 + $0x20] sm:$0xff]   ;;  %7734 = vmatprep.subr.bf16.mxu0 %v8141_v13 }
 0x1b7   : >> { %v2275_v10 = vadd.f32 %v7325_v24, %v9800_v54  ;;  %v940_v53 = vpop.permute.xlu0 %939  ;;  %7735 = vmatpush3.bf16.msra.mxu0 %v8141_v13  ;;  %v2443_v58 = vpop.f32.mrf.mxu1 }
 0x1b8   : >> { %v1135_v8 = vpop.permute.xlu1 %1134  ;;  %1016 = vst.msk [vmem:[#allocation3 + $0x1e0] sm:$0xff] %vm995_vm4, %v940_v53  ;;  %v7327_v12 = vpop.f32.mrf.mxu0 }
 0x1b9   : >> { %1210 = vst.msk [vmem:[#allocation3 + $0x1f8] sm:$0xff] %vm1188_vm5, %v1135_v8  ;;  %v2436_v3 = vadd.f32 %v9783_v30, %v2275_v10  ;;  %v7328_v29 = vadd.f32 %v7327_v12, %v7326_v25  ;;  %1602 = vrot.lane.b32.xlu0 %v1508_v31, %s8451_s14  ;;  %v2722_v31 = vld [vmem:[#allocation2 + $0x1] sm:$0xff]  ;;  %v2915_v10 = vld [vmem:[#allocation2 + $0xa] sm:$0xff]  ;;  %v8143_v12 = vld [vmem:[%s9875_s22 + $0x58] sm:$0xff]   ;;  %v9943_v4 = vpop.f32.mrf.mxu1 }
 0x1ba   : >> { %1796 = vrot.lane.b32.xlu1 %v1701_v2, %s8452_s15 }
 0x1bb   : >> { %v2556_v20 = vmax.f32 %v2436_v3, 0.0  ;;  %v2278_v5 = vadd.f32 %v7328_v29, %v9800_v54  ;;  %v1775_v15 = vpop.permute.xlu0 %1774 }
 0x1bc   : >> { %v1396_v14 = vpop.permute.xlu1 %1395  ;;  %1850 = vst.msk [vmem:[#allocation3 + $0x1e8] sm:$0xff] %vm1188_vm5, %v1775_v15 }
 0x1bd   : >> { %1468 = vst.msk [vmem:[#allocation3 + $0x230] sm:$0xff] %vm802_vm3, %v1396_v14  ;;  %v2439_v30 = vadd.f32 %v9808_v17, %v2278_v5  ;;  %959 = vrot.lane.b32.xlu0 %v9535_v9, %s8451_s14  ;;  %v2723_v9 = vld [vmem:[#allocation2 + $0x9] sm:$0xff] }
 0x1be   : >> { %2628 = vst.msk [vmem:[#allocation2 + $0x31] sm:$0xff] %vm388_vm0, %v2556_v20  ;;  %1154 = vrot.lane.b32.xlu1 %v9781_v23, %s8452_s15  ;;  %v1990_v23 = vld [vmem:[#allocation3 + $0x200] sm:$0xff]  ;;  %v8137_v17 = vld [vmem:[%s9875_s22 + $0x68] sm:$0xff]  }
 0x1bf   : >> { %v2557_v26 = vmax.f32 %v2439_v30, 0.0  ;;  %v1133_v1 = vpop.permute.xlu0 %1132  ;;  %7435 = vmatprep.subr.bf16.mxu1 %v8137_v17 }
 0x1c0   : >> { %v753_v7 = vpop.permute.xlu1 %752  ;;  %1209 = vst.msk [vmem:[#allocation3 + $0x1e0] sm:$0xff] %vm1188_vm5, %v1133_v1  ;;  %v1989_v6 = vld [vmem:[#allocation3 + $0x1f8] sm:$0xff]  ;;  %7436 = vmatpush3.bf16.msra.mxu1 %v8139_v60 }
 0x1c1   : >> { %826 = vst.msk [vmem:[#allocation3 + $0x228] sm:$0xff] %vm802_vm3, %v753_v7  ;;  %1794 = vrot.lane.b32.xlu0 %v1700_v56, %s8452_s15  ;;  %7437 = vmatprep.subr.bf16.mxu1 %v8140_v27 }
 0x1c2   : >> { %2629 = vst.msk [vmem:[#allocation2 + $0x39] sm:$0xff] %vm388_vm0, %v2557_v26  ;;  %3428 = vrot.lane.b32.xlu1 %v9894_v63, %s8450_s28 }
 0x1c3   : >> { %v1394_v22 = vpop.permute.xlu0 %1393  ;;  %v1987_v19 = vld [vmem:[#allocation3 + $0x1e8] sm:$0xff] }
 0x1c4   : >> { %v1589_v57 = vpop.permute.xlu1 %1588  ;;  %1467 = vst.msk [vmem:[#allocation3 + $0x218] sm:$0xff] %vm802_vm3, %v1394_v22  ;;  %v2053_v61 = vpack.c.bf16 %v1990_v23, %v1987_v19  ;;  %7438 = vmatpush3.bf16.msra.mxu1 %v8142_v52  ;;  %v8147_v22 = vld [vmem:[%s9875_s22 + $0x48] sm:$0xff]   ;;  %v3107_v52 = vld [vmem:[#allocation2 + $0x20] sm:$0xff] }
 0x1c5   : >> { %1661 = vst.msk [vmem:[#allocation3 + $0x230] sm:$0xff] %vm995_vm4, %v1589_v57  ;;  %1152 = vrot.lane.b32.xlu0 %v9806_v21, %s8452_s15  ;;  %v3300_v50 = vld [vmem:[#allocation2 + $0x31] sm:$0xff]  ;;  %v9919_v21 = vld [vmem:[#allocation2 + $0x1a] sm:$0xff]  ;;  %7439 = vmatprep.subr.bf16.mxu1 %v8143_v12  ;;  %v2446_v57 = vpop.f32.mrf.mxu1  ;;  %v2914_v19 = vld [vmem:[#allocation2 + $0x2] sm:$0xff] }
 0x1c6   : >> { %2788 = vrot.lane.b32.xlu1 %v2723_v9, %s8450_s28  ;;  %2344 = vmatprep.mubr.bf16.mxu0 %v2053_v61  ;;  %3332 = vst.msk [vmem:[#allocation3 + $0x38] sm:$0xff] %vm388_vm0, %v3300_v50  ;;  %v2662_v7 = vld [vmem:[#allocation2 + $0x30] sm:$0xff]  ;;  %v8148_v61 = vld [vmem:[%s9875_s22 + $0x8] sm:$0xff]  }
 0x1c7   : >> { %v751_v11 = vpop.permute.xlu0 %750  ;;  %v1986_v24 = vld [vmem:[#allocation3 + $0x1e0] sm:$0xff]  ;;  %2694 = vst.msk [vmem:[#allocation3 + $0x60] sm:$0xff] %vm388_vm0, %v2662_v7 }
 0x1c8   : >> { %v946_v59 = vpop.permute.xlu1 %945  ;;  %825 = vst.msk [vmem:[#allocation3 + $0x210] sm:$0xff] %vm802_vm3, %v751_v11  ;;  %v2052_v2 = vpack.c.bf16 %v1989_v6, %v1986_v24  ;;  %7440 = vmatpush3.bf16.msra.mxu1 %v8144_v16  ;;  %v9950_v23 = vld [vmem:[#allocation2 + $0x30] sm:$0xff]  ;;  %v8150_v24 = vld [vmem:[%s9875_s22] sm:$0xff]  }
 0x1c9   : >> { %1019 = vst.msk [vmem:[#allocation3 + $0x228] sm:$0xff] %vm995_vm4, %v946_v59  ;;  %v9921_v25 = vld [vmem:[#allocation2 + $0x38] sm:$0xff]  ;;  %3426 = vrot.lane.b32.xlu0 %v9919_v21, %s8450_s28  ;;  %7441 = vmatprep.subr.bf16.mxu1 %v8145_v49  ;;  %v8149_v59 = vld [vmem:[%s9875_s22 + $0x40] sm:$0xff]   ;;  %s8456_s22 = smov (%p11484_p4), 64  }
 0x1ca   : >> { %v9923_v53 = vld [vmem:[#allocation2 + $0x3a] sm:$0xff]  ;;  %3620 = vrot.lane.b32.xlu1 %v9921_v25, %s8451_s14  ;;  %v9929_v8 = vld [vmem:[#allocation2 + $0x32] sm:$0xff]  ;;  %v7329_v29 = vpop.f32.mrf.mxu0  ;;  %2345 = vmatmul.mubr.bf16.gmra.mxu0 %v2052_v2 }
 0x1cb   : >> { %3971 = vst.msk [vmem:[#allocation3 + $0x28] sm:$0xff] %vm388_vm0, %v9923_v53  ;;  %v3301_v3 = vld [vmem:[#allocation2 + $0x39] sm:$0xff]  ;;  %3970 = vst.msk [vmem:[#allocation3 + $0x10] sm:$0xff] %vm388_vm0, %v9929_v8  ;;  %v1587_v20 = vpop.permute.xlu0 %1586  ;;  %v9971_v12 = vld [vmem:[#allocation2 + $0x31] sm:$0xff] }
 0x1cc   : >> { %3333 = vst.msk [vmem:[#allocation3 + $0x50] sm:$0xff] %vm388_vm0, %v3301_v3  ;;  %v1781_v5 = vpop.permute.xlu1 %1780  ;;  %v7330_v15 = vpop.f32.mrf.mxu0  ;;  %v2663_v30 = vld [vmem:[#allocation2 + $0x38] sm:$0xff]  ;;  %7442 = vmatpush3.bf16.msra.mxu1 %v8146_v51 }
 0x1cd   : >> { %1660 = vst.msk [vmem:[#allocation3 + $0x218] sm:$0xff] %vm995_vm4, %v1587_v20  ;;  %v7331_v14 = vadd.f32 %v7330_v15, %v7329_v29  ;;  %2786 = vrot.lane.b32.xlu0 %v2722_v31, %s8450_s28  ;;  %v9952_v17 = vld [vmem:[#allocation2 + $0x39] sm:$0xff]  ;;  %7443 = vmatprep.subr.bf16.mxu1 %v8147_v22 }
 0x1ce   : >> { %1853 = vst.msk [vmem:[#allocation3 + $0x230] sm:$0xff] %vm1188_vm5, %v1781_v5  ;;  %2980 = vrot.lane.b32.xlu1 %v2915_v10, %s8451_s14  ;;  %v7332_v56 = vpop.f32.mrf.mxu0  ;;  %v3106_v20 = vld [vmem:[#allocation2 + $0x18] sm:$0xff] }
 0x1cf   : >> { %2695 = vst.msk [vmem:[#allocation3 + $0x78] sm:$0xff] %vm388_vm0, %v2663_v30  ;;  %v944_v28 = vpop.permute.xlu0 %943  ;;  %v2283_v1 = vadd.f32 %v7331_v14, %v9800_v54 }
 0x1d0   : >> { %v1139_v26 = vpop.permute.xlu1 %1138  ;;  %1018 = vst.msk [vmem:[#allocation3 + $0x210] sm:$0xff] %vm995_vm4, %v944_v28  ;;  %v7333_v9 = vpop.f32.mrf.mxu0  ;;  %7444 = vmatpush3.bf16.msra.mxu1 %v8148_v61 }
 0x1d1   : >> { %1212 = vst.msk [vmem:[#allocation3 + $0x228] sm:$0xff] %vm1188_vm5, %v1139_v26  ;;  %v7334_v55 = vadd.f32 %v7333_v9, %v7332_v56  ;;  %v2444_v60 = vadd.f32 %v2443_v58, %v2283_v1  ;;  %3618 = vrot.lane.b32.xlu0 %v9950_v23, %s8451_s14  ;;  %7445 = vmatprep.subr.bf16.mxu1 %v8149_v59 }
 0x1d2   : >> { %3812 = vrot.lane.b32.xlu1 %v9952_v17, %s8452_s15 }
 0x1d3   : >> { %v2558_v6 = vmax.f32 %v2444_v60, 0.0  ;;  %v1779_v27 = vpop.permute.xlu0 %1778  ;;  %v2286_v50 = vadd.f32 %v7334_v55, %v9800_v54 }
 0x1d4   : >> { %v1400_v13 = vpop.permute.xlu1 %1399  ;;  %1852 = vst.msk [vmem:[#allocation3 + $0x218] sm:$0xff] %vm1188_vm5, %v1779_v27  ;;  %7446 = vmatpush3.bf16.msra.mxu1 %v8150_v24 }
 0x1d5   : >> { %1470 = vst.msk [vmem:[#allocation3 + $0x260] sm:$0xff] %vm802_vm3, %v1400_v13  ;;  %v2447_v11 = vadd.f32 %v2446_v57, %v2286_v50  ;;  %2978 = vrot.lane.b32.xlu0 %v2914_v19, %s8451_s14  ;;  %v1996_v3 = vld [vmem:[#allocation3 + $0x230] sm:$0xff] }
 0x1d6   : >> { %2630 = vst.msk [vmem:[#allocation2 + $0x49] sm:$0xff] %vm388_vm0, %v2558_v6  ;;  %3172 = vrot.lane.b32.xlu1 %v3107_v52, %s8452_s15 }
 0x1d7   : >> { %v2559_v2 = vmax.f32 %v2447_v11, 0.0  ;;  %v1137_v31 = vpop.permute.xlu0 %1136 }
 0x1d8   : >> { %v757_v10 = vpop.permute.xlu1 %756  ;;  %1211 = vst.msk [vmem:[#allocation3 + $0x210] sm:$0xff] %vm1188_vm5, %v1137_v31  ;;  %v1995_v14 = vld [vmem:[#allocation3 + $0x228] sm:$0xff] }
 0x1d9   : >> { %828 = vst.msk [vmem:[#allocation3 + $0x258] sm:$0xff] %vm802_vm3, %v757_v10  ;;  %3810 = vrot.lane.b32.xlu0 %v9971_v12, %s8452_s15 }
 0x1da   : >> { %2631 = vst.msk [vmem:[#allocation2 + $0x51] sm:$0xff] %vm388_vm0, %v2559_v2  ;;  %3432 = vrot.lane.b32.xlu1 %v9923_v53, %s8450_s28 }
 0x1db   : >> { %v1398_v29 = vpop.permute.xlu0 %1397  ;;  %v1993_v16 = vld [vmem:[#allocation3 + $0x218] sm:$0xff] }
 0x1dc   : >> { %v1593_v58 = vpop.permute.xlu1 %1592  ;;  %1469 = vst.msk [vmem:[#allocation3 + $0x248] sm:$0xff] %vm802_vm3, %v1398_v29  ;;  %v2056_v5 = vpack.c.bf16 %v1996_v3, %v1993_v16 }
 0x1dd   : >> { %1663 = vst.msk [vmem:[#allocation3 + $0x260] sm:$0xff] %vm995_vm4, %v1593_v58  ;;  %v3302_v15 = vld [vmem:[#allocation2 + $0x49] sm:$0xff]  ;;  %3170 = vrot.lane.b32.xlu0 %v3106_v20, %s8452_s15 }
 0x1de   : >> { %2792 = vrot.lane.b32.xlu1 %v9856_v32, %s8450_s28  ;;  %3334 = vst.msk [vmem:[#allocation3 + $0x68] sm:$0xff] %vm388_vm0, %v3302_v15  ;;  %v2664_v49 = vld [vmem:[#allocation2 + $0x48] sm:$0xff]  ;;  %2352 = vmatprep.mubr.bf16.mxu0 %v2056_v5 }
 0x1df   : >> { %2696 = vst.msk [vmem:[#allocation3 + $0x90] sm:$0xff] %vm388_vm0, %v2664_v49  ;;  %v755_v30 = vpop.permute.xlu0 %754  ;;  %v1992_v51 = vld [vmem:[#allocation3 + $0x210] sm:$0xff]  ;;  %v10012_v52 = vld [vmem:[#allocation2 + $0x48] sm:$0xff]  ;;  %v10046_v49 = vpop.f32.mrf.mxu1 }
 0x1e0   : >> { %v950_v56 = vpop.permute.xlu1 %949  ;;  %827 = vst.msk [vmem:[#allocation3 + $0x240] sm:$0xff] %vm802_vm3, %v755_v30  ;;  %v2055_v26 = vpack.c.bf16 %v1995_v14, %v1992_v51  ;;  %v10032_v58 = vld [vmem:[#allocation2 + $0x49] sm:$0xff] }
 0x1e1   : >> { %1021 = vst.msk [vmem:[#allocation3 + $0x258] sm:$0xff] %vm995_vm4, %v950_v56  ;;  %v9987_v28 = vld [vmem:[#allocation2 + $0x50] sm:$0xff]  ;;  %3430 = vrot.lane.b32.xlu0 %v9929_v8, %s8450_s28 }
 0x1e2   : >> { %v9989_v1 = vld [vmem:[#allocation2 + $0x52] sm:$0xff]  ;;  %3624 = vrot.lane.b32.xlu1 %v9987_v28, %s8451_s14  ;;  %v9995_v32 = vld [vmem:[#allocation2 + $0x4a] sm:$0xff]  ;;  %v7335_v55 = vpop.f32.mrf.mxu0  ;;  %2353 = vmatmul.mubr.bf16.gmra.mxu0 %v2055_v26 }
 0x1e3   : >> { %3973 = vst.msk [vmem:[#allocation3 + $0x58] sm:$0xff] %vm388_vm0, %v9989_v1  ;;  %v3303_v7 = vld [vmem:[#allocation2 + $0x51] sm:$0xff]  ;;  %3972 = vst.msk [vmem:[#allocation3 + $0x40] sm:$0xff] %vm388_vm0, %v9995_v32  ;;  %v1591_v60 = vpop.permute.xlu0 %1590 }
 0x1e4   : >> { %v2665_v9 = vld [vmem:[#allocation2 + $0x50] sm:$0xff]  ;;  %3335 = vst.msk [vmem:[#allocation3 + $0x80] sm:$0xff] %vm388_vm0, %v3303_v7  ;;  %v1785_v22 = vpop.permute.xlu1 %1784  ;;  %v7336_v57 = vpop.f32.mrf.mxu0 }
 0x1e5   : >> { %2697 = vst.msk [vmem:[#allocation3 + $0xa8] sm:$0xff] %vm388_vm0, %v2665_v9  ;;  %v7337_v19 = vadd.f32 %v7336_v57, %v7335_v55  ;;  %2790 = vrot.lane.b32.xlu0 %v9838_v18, %s8450_s28  ;;  %v10014_v11 = vld [vmem:[#allocation2 + $0x51] sm:$0xff] }
 0x1e6   : >> { %1662 = vst.msk [vmem:[#allocation3 + $0x248] sm:$0xff] %vm995_vm4, %v1591_v60  ;;  %2984 = vrot.lane.b32.xlu1 %v9894_v63, %s8451_s14  ;;  %v7338_v61 = vpop.f32.mrf.mxu0 }
 0x1e7   : >> { %1855 = vst.msk [vmem:[#allocation3 + $0x260] sm:$0xff] %vm1188_vm5, %v1785_v22  ;;  %v2291_v6 = vadd.f32 %v7337_v19, %v9800_v54  ;;  %v948_v27 = vpop.permute.xlu0 %947  ;;  %v2459_v22 = vpop.f32.mrf.mxu1 }
 0x1e8   : >> { %v1143_v13 = vpop.permute.xlu1 %1142  ;;  %1020 = vst.msk [vmem:[#allocation3 + $0x240] sm:$0xff] %vm995_vm4, %v948_v27  ;;  %v7339_v50 = vpop.f32.mrf.mxu0 }
 0x1e9   : >> { %1214 = vst.msk [vmem:[#allocation3 + $0x258] sm:$0xff] %vm1188_vm5, %v1143_v13  ;;  %v2452_v59 = vadd.f32 %v9913_v62, %v2291_v6  ;;  %v7340_v18 = vadd.f32 %v7339_v50, %v7338_v61  ;;  %3622 = vrot.lane.b32.xlu0 %v10012_v52, %s8451_s14  ;;  %v10073_v13 = vpop.f32.mrf.mxu1 }
 0x1ea   : >> { %3816 = vrot.lane.b32.xlu1 %v10014_v11, %s8452_s15 }
 0x1eb   : >> { %v2560_v63 = vmax.f32 %v2452_v59, 0.0  ;;  %v2294_v24 = vadd.f32 %v7340_v18, %v9800_v54  ;;  %v1783_v2 = vpop.permute.xlu0 %1782 }
 0x1ec   : >> { %v1404_v31 = vpop.permute.xlu1 %1403  ;;  %1854 = vst.msk [vmem:[#allocation3 + $0x248] sm:$0xff] %vm1188_vm5, %v1783_v2 }
 0x1ed   : >> { %1472 = vst.msk [vmem:[#allocation3 + $0x290] sm:$0xff] %vm802_vm3, %v1404_v31  ;;  %v2455_v62 = vadd.f32 %v9943_v4, %v2294_v24  ;;  %2982 = vrot.lane.b32.xlu0 %v9919_v21, %s8451_s14 }
 0x1ee   : >> { %2632 = vst.msk [vmem:[#allocation2 + $0x61] sm:$0xff] %vm388_vm0, %v2560_v63  ;;  %3176 = vrot.lane.b32.xlu1 %v9921_v25, %s8452_s15  ;;  %v2002_v21 = vld [vmem:[#allocation3 + $0x260] sm:$0xff] }
 0x1ef   : >> { %v2561_v10 = vmax.f32 %v2455_v62, 0.0  ;;  %v1141_v3 = vpop.permute.xlu0 %1140 }
 0x1f0   : >> { %v761_v29 = vpop.permute.xlu1 %760  ;;  %1213 = vst.msk [vmem:[#allocation3 + $0x240] sm:$0xff] %vm1188_vm5, %v1141_v3  ;;  %v2001_v15 = vld [vmem:[#allocation3 + $0x258] sm:$0xff] }
 0x1f1   : >> { %830 = vst.msk [vmem:[#allocation3 + $0x288] sm:$0xff] %vm802_vm3, %v761_v29  ;;  %3814 = vrot.lane.b32.xlu0 %v10032_v58, %s8452_s15 }
 0x1f2   : >> { %2633 = vst.msk [vmem:[#allocation2 + $0x69] sm:$0xff] %vm388_vm0, %v2561_v10  ;;  %3436 = vrot.lane.b32.xlu1 %v9989_v1, %s8450_s28 }
 0x1f3   : >> { %v1402_v4 = vpop.permute.xlu0 %1401  ;;  %v1999_v16 = vld [vmem:[#allocation3 + $0x248] sm:$0xff] }
 0x1f4   : >> { %v1597_v25 = vpop.permute.xlu1 %1596  ;;  %1471 = vst.msk [vmem:[#allocation3 + $0x278] sm:$0xff] %vm802_vm3, %v1402_v4  ;;  %v2059_v20 = vpack.c.bf16 %v2002_v21, %v1999_v16 }
 0x1f5   : >> { %1665 = vst.msk [vmem:[#allocation3 + $0x290] sm:$0xff] %vm995_vm4, %v1597_v25  ;;  %v3304_v5 = vld [vmem:[#allocation2 + $0x61] sm:$0xff]  ;;  %3174 = vrot.lane.b32.xlu0 %v9950_v23, %s8452_s15 }
 0x1f6   : >> { %2796 = vrot.lane.b32.xlu1 %v9952_v17, %s8450_s28  ;;  %3336 = vst.msk [vmem:[#allocation3 + $0x98] sm:$0xff] %vm388_vm0, %v3304_v5  ;;  %v2666_v14 = vld [vmem:[#allocation2 + $0x60] sm:$0xff]  ;;  %2360 = vmatprep.mubr.bf16.mxu0 %v2059_v20 }
 0x1f7   : >> { %2698 = vst.msk [vmem:[#allocation3 + $0xc0] sm:$0xff] %vm388_vm0, %v2666_v14  ;;  %v759_v30 = vpop.permute.xlu0 %758  ;;  %v1998_v51 = vld [vmem:[#allocation3 + $0x240] sm:$0xff]  ;;  %v10078_v24 = vld [vmem:[#allocation2 + $0x60] sm:$0xff] }
 0x1f8   : >> { %v954_v56 = vpop.permute.xlu1 %953  ;;  %829 = vst.msk [vmem:[#allocation3 + $0x270] sm:$0xff] %vm802_vm3, %v759_v30  ;;  %v2058_v26 = vpack.c.bf16 %v2001_v15, %v1998_v51  ;;  %v10096_v20 = vld [vmem:[#allocation2 + $0x61] sm:$0xff] }
 0x1f9   : >> { %1023 = vst.msk [vmem:[#allocation3 + $0x288] sm:$0xff] %vm995_vm4, %v954_v56  ;;  %v10051_v23 = vld [vmem:[#allocation2 + $0x68] sm:$0xff]  ;;  %3434 = vrot.lane.b32.xlu0 %v9995_v32, %s8450_s28 }
 0x1fa   : >> { %v10053_v17 = vld [vmem:[#allocation2 + $0x6a] sm:$0xff]  ;;  %3628 = vrot.lane.b32.xlu1 %v10051_v23, %s8451_s14  ;;  %v10059_v7 = vld [vmem:[#allocation2 + $0x62] sm:$0xff]  ;;  %v7341_v60 = vpop.f32.mrf.mxu0  ;;  %2361 = vmatmul.mubr.bf16.gmra.mxu0 %v2058_v26 }
 0x1fb   : >> { %3975 = vst.msk [vmem:[#allocation3 + $0x88] sm:$0xff] %vm388_vm0, %v10053_v17  ;;  %v3305_v9 = vld [vmem:[#allocation2 + $0x69] sm:$0xff]  ;;  %3974 = vst.msk [vmem:[#allocation3 + $0x70] sm:$0xff] %vm388_vm0, %v10059_v7  ;;  %v1595_v57 = vpop.permute.xlu0 %1594 }
 0x1fc   : >> { %v2667_v55 = vld [vmem:[#allocation2 + $0x68] sm:$0xff]  ;;  %3337 = vst.msk [vmem:[#allocation3 + $0xb0] sm:$0xff] %vm388_vm0, %v3305_v9  ;;  %v1789_v19 = vpop.permute.xlu1 %1788  ;;  %v7342_v61 = vpop.f32.mrf.mxu0 }
 0x1fd   : >> { %2699 = vst.msk [vmem:[#allocation3 + $0xd8] sm:$0xff] %vm388_vm0, %v2667_v55  ;;  %v7343_v6 = vadd.f32 %v7342_v61, %v7341_v60  ;;  %2794 = vrot.lane.b32.xlu0 %v9971_v12, %s8450_s28  ;;  %v10080_v2 = vld [vmem:[#allocation2 + $0x69] sm:$0xff] }
 0x1fe   : >> { %1664 = vst.msk [vmem:[#allocation3 + $0x278] sm:$0xff] %vm995_vm4, %v1595_v57  ;;  %2988 = vrot.lane.b32.xlu1 %v9923_v53, %s8451_s14  ;;  %v7344_v27 = vpop.f32.mrf.mxu0  ;;  %v2462_v53 = vpop.f32.mrf.mxu1 }
 0x1ff   : >> { %1857 = vst.msk [vmem:[#allocation3 + $0x290] sm:$0xff] %vm1188_vm5, %v1789_v19  ;;  %v952_v50 = vpop.permute.xlu0 %951  ;;  %v2299_v18 = vadd.f32 %v7343_v6, %v9800_v54 }
 0x200   : >> { %v1147_v59 = vpop.permute.xlu1 %1146  ;;  %1022 = vst.msk [vmem:[#allocation3 + $0x270] sm:$0xff] %vm995_vm4, %v952_v50  ;;  %v7345_v63 = vpop.f32.mrf.mxu0 }
 0x201   : >> { %1216 = vst.msk [vmem:[#allocation3 + $0x288] sm:$0xff] %vm1188_vm5, %v1147_v59  ;;  %v7346_v12 = vadd.f32 %v7345_v63, %v7344_v27  ;;  %v2460_v31 = vadd.f32 %v2459_v22, %v2299_v18  ;;  %3626 = vrot.lane.b32.xlu0 %v10078_v24, %s8451_s14 }
 0x202   : >> { %3820 = vrot.lane.b32.xlu1 %v10080_v2, %s8452_s15 }
 0x203   : >> { %v2562_v62 = vmax.f32 %v2460_v31, 0.0  ;;  %v1787_v10 = vpop.permute.xlu0 %1786  ;;  %v2302_v29 = vadd.f32 %v7346_v12, %v9800_v54 }
 0x204   : >> { %v1408_v3 = vpop.permute.xlu1 %1407  ;;  %1856 = vst.msk [vmem:[#allocation3 + $0x278] sm:$0xff] %vm1188_vm5, %v1787_v10 }
 0x205   : >> { %1474 = vst.msk [vmem:[#allocation3 + $0x2c0] sm:$0xff] %vm802_vm3, %v1408_v3  ;;  %v2463_v21 = vadd.f32 %v2462_v53, %v2302_v29  ;;  %2986 = vrot.lane.b32.xlu0 %v9929_v8, %s8451_s14 }
 0x206   : >> { %2634 = vst.msk [vmem:[#allocation2 + $0x79] sm:$0xff] %vm388_vm0, %v2562_v62  ;;  %3180 = vrot.lane.b32.xlu1 %v9987_v28, %s8452_s15  ;;  %v2008_v8 = vld [vmem:[#allocation3 + $0x290] sm:$0xff] }
 0x207   : >> { %v2563_v4 = vmax.f32 %v2463_v21, 0.0  ;;  %v1145_v25 = vpop.permute.xlu0 %1144 }
 0x208   : >> { %v765_v16 = vpop.permute.xlu1 %764  ;;  %1215 = vst.msk [vmem:[#allocation3 + $0x270] sm:$0xff] %vm1188_vm5, %v1145_v25  ;;  %v2007_v56 = vld [vmem:[#allocation3 + $0x288] sm:$0xff] }
 0x209   : >> { %832 = vst.msk [vmem:[#allocation3 + $0x2b8] sm:$0xff] %vm802_vm3, %v765_v16  ;;  %3818 = vrot.lane.b32.xlu0 %v10096_v20, %s8452_s15 }
 0x20a   : >> { %2635 = vst.msk [vmem:[#allocation2 + $0x81] sm:$0xff] %vm388_vm0, %v2563_v4  ;;  %3440 = vrot.lane.b32.xlu1 %v10053_v17, %s8450_s28 }
 0x20b   : >> { %v1406_v5 = vpop.permute.xlu0 %1405  ;;  %v2005_v15 = vld [vmem:[#allocation3 + $0x278] sm:$0xff] }
 0x20c   : >> { %v1601_v28 = vpop.permute.xlu1 %1600  ;;  %1473 = vst.msk [vmem:[#allocation3 + $0x2a8] sm:$0xff] %vm802_vm3, %v1406_v5  ;;  %v2062_v14 = vpack.c.bf16 %v2008_v8, %v2005_v15 }
 0x20d   : >> { %1667 = vst.msk [vmem:[#allocation3 + $0x2c0] sm:$0xff] %vm995_vm4, %v1601_v28  ;;  %v3306_v30 = vld [vmem:[#allocation2 + $0x79] sm:$0xff]  ;;  %3178 = vrot.lane.b32.xlu0 %v10012_v52, %s8452_s15 }
 0x20e   : >> { %2800 = vrot.lane.b32.xlu1 %v10014_v11, %s8450_s28  ;;  %3338 = vst.msk [vmem:[#allocation3 + $0xc8] sm:$0xff] %vm388_vm0, %v3306_v30  ;;  %v2668_v51 = vld [vmem:[#allocation2 + $0x78] sm:$0xff]  ;;  %2368 = vmatprep.mubr.bf16.mxu0 %v2062_v14 }
 0x20f   : >> { %2700 = vst.msk [vmem:[#allocation3 + $0xf0] sm:$0xff] %vm388_vm0, %v2668_v51  ;;  %v763_v26 = vpop.permute.xlu0 %762  ;;  %v2004_v55 = vld [vmem:[#allocation3 + $0x270] sm:$0xff]  ;;  %v10138_v62 = vld [vmem:[#allocation2 + $0x78] sm:$0xff] }
 0x210   : >> { %v958_v9 = vpop.permute.xlu1 %957  ;;  %831 = vst.msk [vmem:[#allocation3 + $0x2a0] sm:$0xff] %vm802_vm3, %v763_v26  ;;  %v2061_v52 = vpack.c.bf16 %v2007_v56, %v2004_v55  ;;  %v10172_v56 = vpop.f32.mrf.mxu1 }
 0x211   : >> { %1025 = vst.msk [vmem:[#allocation3 + $0x2b8] sm:$0xff] %vm995_vm4, %v958_v9  ;;  %v10113_v60 = vld [vmem:[#allocation2 + $0x80] sm:$0xff]  ;;  %3438 = vrot.lane.b32.xlu0 %v10059_v7, %s8450_s28 }
 0x212   : >> { %v10115_v22 = vld [vmem:[#allocation2 + $0x82] sm:$0xff]  ;;  %3632 = vrot.lane.b32.xlu1 %v10113_v60, %s8451_s14  ;;  %v10121_v11 = vld [vmem:[#allocation2 + $0x7a] sm:$0xff]  ;;  %v7347_v61 = vpop.f32.mrf.mxu0  ;;  %2369 = vmatmul.mubr.bf16.gmra.mxu0 %v2061_v52 }
 0x213   : >> { %3977 = vst.msk [vmem:[#allocation3 + $0xb8] sm:$0xff] %vm388_vm0, %v10115_v22  ;;  %v3307_v57 = vld [vmem:[#allocation2 + $0x81] sm:$0xff]  ;;  %3976 = vst.msk [vmem:[#allocation3 + $0xa0] sm:$0xff] %vm388_vm0, %v10121_v11  ;;  %v1599_v6 = vpop.permute.xlu0 %1598 }
 0x214   : >> { %v2669_v19 = vld [vmem:[#allocation2 + $0x80] sm:$0xff]  ;;  %3339 = vst.msk [vmem:[#allocation3 + $0xe0] sm:$0xff] %vm388_vm0, %v3307_v57  ;;  %v1793_v27 = vpop.permute.xlu1 %1792  ;;  %v7348_v50 = vpop.f32.mrf.mxu0 }
 0x215   : >> { %2701 = vst.msk [vmem:[#allocation3 + $0x108] sm:$0xff] %vm388_vm0, %v2669_v19  ;;  %v7349_v59 = vadd.f32 %v7348_v50, %v7347_v61  ;;  %2798 = vrot.lane.b32.xlu0 %v10032_v58, %s8450_s28  ;;  %v10140_v10 = vld [vmem:[#allocation2 + $0x81] sm:$0xff] }
 0x216   : >> { %1666 = vst.msk [vmem:[#allocation3 + $0x2a8] sm:$0xff] %vm995_vm4, %v1599_v6  ;;  %2992 = vrot.lane.b32.xlu1 %v9989_v1, %s8451_s14  ;;  %v7350_v18 = vpop.f32.mrf.mxu0  ;;  %v2475_v6 = vpop.f32.mrf.mxu1 }
 0x217   : >> { %1859 = vst.msk [vmem:[#allocation3 + $0x2c0] sm:$0xff] %vm1188_vm5, %v1793_v27  ;;  %v2307_v63 = vadd.f32 %v7349_v59, %v9800_v54  ;;  %v956_v12 = vpop.permute.xlu0 %955 }
 0x218   : >> { %v1151_v31 = vpop.permute.xlu1 %1150  ;;  %1024 = vst.msk [vmem:[#allocation3 + $0x2a0] sm:$0xff] %vm995_vm4, %v956_v12  ;;  %v7351_v53 = vpop.f32.mrf.mxu0 }
 0x219   : >> { %1218 = vst.msk [vmem:[#allocation3 + $0x2b8] sm:$0xff] %vm1188_vm5, %v1151_v31  ;;  %v2468_v3 = vadd.f32 %v10046_v49, %v2307_v63  ;;  %v7352_v58 = vadd.f32 %v7351_v53, %v7350_v18  ;;  %3630 = vrot.lane.b32.xlu0 %v10138_v62, %s8451_s14  ;;  %v10199_v12 = vpop.f32.mrf.mxu1 }
 0x21a   : >> { %3824 = vrot.lane.b32.xlu1 %v10140_v10, %s8452_s15 }
 0x21b   : >> { %v2564_v1 = vmax.f32 %v2468_v3, 0.0  ;;  %v2310_v29 = vadd.f32 %v7352_v58, %v9800_v54  ;;  %v1791_v21 = vpop.permute.xlu0 %1790  ;;  %v10158_v54 = vld [vmem:[#allocation2 + $0x79] sm:$0xff] }
 0x21c   : >> { %v1412_v4 = vpop.permute.xlu1 %1411  ;;  %1858 = vst.msk [vmem:[#allocation3 + $0x2a8] sm:$0xff] %vm1188_vm5, %v1791_v21  ;;  %v10202_v3 = vld [vmem:[%s9795_s19] ss:$0 sm:$0xff] }
 0x21d   : >> { %1476 = vst.msk [vmem:[#allocation3 + $0x2f0] sm:$0xff] %vm802_vm3, %v1412_v4  ;;  %v2471_v49 = vadd.f32 %v10073_v13, %v2310_v29  ;;  %2990 = vrot.lane.b32.xlu0 %v9995_v32, %s8451_s14  ;;  %v2478_v4 = vpop.f32.mrf.mxu1 }
 0x21e   : >> { %2636 = vst.msk [vmem:[#allocation2 + $0x91] sm:$0xff] %vm388_vm0, %v2564_v1  ;;  %3184 = vrot.lane.b32.xlu1 %v10051_v23, %s8452_s15  ;;  %v2014_v32 = vld [vmem:[#allocation3 + $0x2c0] sm:$0xff] }
 0x21f   : >> { %v2565_v25 = vmax.f32 %v2471_v49, 0.0  ;;  %v1149_v16 = vpop.permute.xlu0 %1148 }
 0x220   : >> { %v769_v8 = vpop.permute.xlu1 %768  ;;  %1217 = vst.msk [vmem:[#allocation3 + $0x2a0] sm:$0xff] %vm1188_vm5, %v1149_v16  ;;  %v2013_v14 = vld [vmem:[#allocation3 + $0x2b8] sm:$0xff] }
 0x221   : >> { %834 = vst.msk [vmem:[#allocation3 + $0x2e8] sm:$0xff] %vm802_vm3, %v769_v8  ;;  %3822 = vrot.lane.b32.xlu0 %v10158_v54, %s8452_s15 }
 0x222   : >> { %2637 = vst.msk [vmem:[#allocation2 + $0x99] sm:$0xff] %vm388_vm0, %v2565_v25  ;;  %3444 = vrot.lane.b32.xlu1 %v10115_v22, %s8450_s28 }
 0x223   : >> { %v1410_v23 = vpop.permute.xlu0 %1409  ;;  %v2011_v5 = vld [vmem:[#allocation3 + $0x2a8] sm:$0xff] }
 0x224   : >> { %v1605_v13 = vpop.permute.xlu1 %1604  ;;  %1475 = vst.msk [vmem:[#allocation3 + $0x2d8] sm:$0xff] %vm802_vm3, %v1410_v23  ;;  %v2065_v28 = vpack.c.bf16 %v2014_v32, %v2011_v5 }
 0x225   : >> { %1669 = vst.msk [vmem:[#allocation3 + $0x2f0] sm:$0xff] %vm995_vm4, %v1605_v13  ;;  %v3308_v15 = vld [vmem:[#allocation2 + $0x91] sm:$0xff]  ;;  %3182 = vrot.lane.b32.xlu0 %v10078_v24, %s8452_s15 }
 0x226   : >> { %2804 = vrot.lane.b32.xlu1 %v10080_v2, %s8450_s28  ;;  %3340 = vst.msk [vmem:[#allocation3 + $0xf8] sm:$0xff] %vm388_vm0, %v3308_v15  ;;  %v2670_v30 = vld [vmem:[#allocation2 + $0x90] sm:$0xff]  ;;  %2376 = vmatprep.mubr.bf16.mxu0 %v2065_v28 }
 0x227   : >> { %2702 = vst.msk [vmem:[#allocation3 + $0x120] sm:$0xff] %vm388_vm0, %v2670_v30  ;;  %v767_v26 = vpop.permute.xlu0 %766  ;;  %v2010_v9 = vld [vmem:[#allocation3 + $0x2a0] sm:$0xff] }
 0x228   : >> { %v962_v51 = vpop.permute.xlu1 %961  ;;  %833 = vst.msk [vmem:[#allocation3 + $0x2d0] sm:$0xff] %vm802_vm3, %v767_v26  ;;  %v2064_v55 = vpack.c.bf16 %v2013_v14, %v2010_v9  ;;  %v10207_v29 = vld [vmem:[#allocation2 + $0x90] sm:$0xff] }
 0x229   : >> { %1027 = vst.msk [vmem:[#allocation3 + $0x2e8] sm:$0xff] %vm995_vm4, %v962_v51  ;;  %v10177_v24 = vld [vmem:[#allocation2 + $0x98] sm:$0xff]  ;;  %3442 = vrot.lane.b32.xlu0 %v10121_v11, %s8450_s28 }
 0x22a   : >> { %v10179_v2 = vld [vmem:[#allocation2 + $0x9a] sm:$0xff]  ;;  %3636 = vrot.lane.b32.xlu1 %v10177_v24, %s8451_s14  ;;  %v10185_v52 = vld [vmem:[#allocation2 + $0x92] sm:$0xff]  ;;  %v7353_v61 = vpop.f32.mrf.mxu0  ;;  %2377 = vmatmul.mubr.bf16.gmra.mxu0 %v2064_v55 }
 0x22b   : >> { %3979 = vst.msk [vmem:[#allocation3 + $0xe8] sm:$0xff] %vm388_vm0, %v10179_v2  ;;  %v3309_v57 = vld [vmem:[#allocation2 + $0x99] sm:$0xff]  ;;  %3978 = vst.msk [vmem:[#allocation3 + $0xd0] sm:$0xff] %vm388_vm0, %v10185_v52  ;;  %v1603_v50 = vpop.permute.xlu0 %1602  ;;  %v10225_v28 = vld [vmem:[#allocation2 + $0x91] sm:$0xff] }
 0x22c   : >> { %v2671_v19 = vld [vmem:[#allocation2 + $0x98] sm:$0xff]  ;;  %3341 = vst.msk [vmem:[#allocation3 + $0x110] sm:$0xff] %vm388_vm0, %v3309_v57  ;;  %v1797_v27 = vpop.permute.xlu1 %1796  ;;  %v7354_v59 = vpop.f32.mrf.mxu0  ;;  %v4004_v55 = vld [vmem:[#allocation3 + $0x10] sm:$0xff] }
 0x22d   : >> { %2703 = vst.msk [vmem:[#allocation3 + $0x138] sm:$0xff] %vm388_vm0, %v2671_v19  ;;  %v7355_v18 = vadd.f32 %v7354_v59, %v7353_v61  ;;  %2802 = vrot.lane.b32.xlu0 %v10096_v20, %s8450_s28  ;;  %v10209_v20 = vld [vmem:[#allocation2 + $0x99] sm:$0xff] }
 0x22e   : >> { %1861 = vst.msk [vmem:[#allocation3 + $0x2f0] sm:$0xff] %vm1188_vm5, %v1797_v27  ;;  %2996 = vrot.lane.b32.xlu1 %v10053_v17, %s8451_s14  ;;  %v7356_v63 = vpop.f32.mrf.mxu0  ;;  %v4007_v57 = vld [vmem:[#allocation3 + $0x28] sm:$0xff] }
 0x22f   : >> { %1668 = vst.msk [vmem:[#allocation3 + $0x2d8] sm:$0xff] %vm995_vm4, %v1603_v50  ;;  %v960_v31 = vpop.permute.xlu0 %959  ;;  %v2315_v58 = vadd.f32 %v10202_v3, %v7355_v18  ;;  %v4100_v50 = vpack.c.bf16 %v4007_v57, %v4004_v55  ;;  %v4022_v55 = vld [vmem:[#allocation3 + $0xa0] sm:$0xff]  ;;  %v4025_v57 = vld [vmem:[#allocation3 + $0xb8] sm:$0xff] }
 0x230   : >> { %v1155_v53 = vpop.permute.xlu1 %1154  ;;  %1026 = vst.msk [vmem:[#allocation3 + $0x2d0] sm:$0xff] %vm995_vm4, %v960_v31  ;;  %v7357_v1 = vpop.f32.mrf.mxu0 }
 0x231   : >> { %1220 = vst.msk [vmem:[#allocation3 + $0x2e8] sm:$0xff] %vm1188_vm5, %v1155_v53  ;;  %v7358_v21 = vadd.f32 %v7357_v1, %v7356_v63  ;;  %v2476_v17 = vadd.f32 %v2475_v6, %v2315_v58  ;;  %3634 = vrot.lane.b32.xlu0 %v10207_v29, %s8451_s14 }
 0x232   : >> { %3828 = vrot.lane.b32.xlu1 %v10209_v20, %s8452_s15 }
 0x233   : >> { %v2566_v49 = vmax.f32 %v2476_v17, 0.0  ;;  %v1795_v25 = vpop.permute.xlu0 %1794  ;;  %v2318_v8 = vadd.f32 %v10202_v3, %v7358_v21  ;;  %v4010_v17 = vld [vmem:[#allocation3 + $0x40] sm:$0xff] }
 0x234   : >> { %v3429_v16 = vpop.permute.xlu1 %3428  ;;  %1860 = vst.msk [vmem:[#allocation3 + $0x2d8] sm:$0xff] %vm1188_vm5, %v1795_v25  ;;  %v4016_v25 = vld [vmem:[#allocation3 + $0x70] sm:$0xff] }
 0x235   : >> { %3523 = vst.msk [vmem:[#allocation3 + $0x20] sm:$0xff] %vm802_vm3, %v3429_v16  ;;  %v2479_v32 = vadd.f32 %v2478_v4, %v2318_v8  ;;  %2994 = vrot.lane.b32.xlu0 %v10059_v7, %s8451_s14  ;;  %v2020_v7 = vld [vmem:[#allocation3 + $0x2f0] sm:$0xff]  ;;  %v4013_v4 = vld [vmem:[#allocation3 + $0x58] sm:$0xff]  ;;  %v4019_v16 = vld [vmem:[#allocation3 + $0x88] sm:$0xff] }
 0x236   : >> { %2638 = vst.msk [vmem:[#allocation2 + $0xa9] sm:$0xff] %vm388_vm0, %v2566_v49  ;;  %3188 = vrot.lane.b32.xlu1 %v10113_v60, %s8452_s15 }
 0x237   : >> { %v2567_v13 = vmax.f32 %v2479_v32, 0.0  ;;  %v1153_v23 = vpop.permute.xlu0 %1152 }
 0x238   : >> { %v2789_v5 = vpop.permute.xlu1 %2788  ;;  %1219 = vst.msk [vmem:[#allocation3 + $0x2d0] sm:$0xff] %vm1188_vm5, %v1153_v23  ;;  %v2019_v9 = vld [vmem:[#allocation3 + $0x2e8] sm:$0xff] }
 0x239   : >> { %2883 = vst.msk [vmem:[#allocation3 + $0x18] sm:$0xff] %vm802_vm3, %v2789_v5  ;;  %3826 = vrot.lane.b32.xlu0 %v10225_v28, %s8452_s15 }
 0x23a   : >> { %2639 = vst.msk [vmem:[#allocation2 + $0xb1] sm:$0xff] %vm388_vm0, %v2567_v13  ;;  %3448 = vrot.lane.b32.xlu1 %v10179_v2, %s8450_s28 }
 0x23b   : >> { %v3427_v15 = vpop.permute.xlu0 %3426  ;;  %v2017_v14 = vld [vmem:[#allocation3 + $0x2d8] sm:$0xff] }
 0x23c   : >> { %v3621_v60 = vpop.permute.xlu1 %3620  ;;  %3522 = vst.msk [vmem:[#allocation3 + $0x8] sm:$0xff] %vm802_vm3, %v3427_v15  ;;  %v2068_v30 = vpack.c.bf16 %v2020_v7, %v2017_v14  ;;  %v4103_v7 = vpack.c.bf16 %v4013_v4, %v4010_v17  ;;  %v10311_v4 = vpop.f32.mrf.mxu1 }
 0x23d   : >> { %3715 = vst.msk [vmem:[#allocation3 + $0x20] sm:$0xff] %vm995_vm4, %v3621_v60  ;;  %v10234_v51 = vld [vmem:[#allocation2 + $0xa9] sm:$0xff]  ;;  %3186 = vrot.lane.b32.xlu0 %v10138_v62, %s8452_s15  ;;  %v4106_v60 = vpack.c.bf16 %v4019_v16, %v4016_v25 }
 0x23e   : >> { %v2672_v26 = vld [vmem:[#allocation2 + $0xa8] sm:$0xff]  ;;  %2808 = vrot.lane.b32.xlu1 %v10140_v10, %s8450_s28  ;;  %3342 = vst.msk [vmem:[#allocation3 + $0x128] sm:$0xff] %vm388_vm0, %v10234_v51  ;;  %2384 = vmatprep.mubr.bf16.mxu0 %v2068_v30 }
 0x23f   : >> { %2704 = vst.msk [vmem:[#allocation3 + $0x150] sm:$0xff] %vm388_vm0, %v2672_v26  ;;  %v2787_v19 = vpop.permute.xlu0 %2786  ;;  %v2016_v6 = vld [vmem:[#allocation3 + $0x2d0] sm:$0xff]  ;;  %v10271_v5 = vld [vmem:[#allocation2 + $0xa8] sm:$0xff] }
 0x240   : >> { %v2981_v61 = vpop.permute.xlu1 %2980  ;;  %2882 = vst.msk [vmem:[#allocation3] sm:$0xff] %vm802_vm3, %v2787_v19  ;;  %v2067_v27 = vpack.c.bf16 %v2019_v9, %v2016_v6  ;;  %v4028_v19 = vld [vmem:[#allocation3 + $0xd0] sm:$0xff] }
 0x241   : >> { %3075 = vst.msk [vmem:[#allocation3 + $0x18] sm:$0xff] %vm995_vm4, %v2981_v61  ;;  %v10245_v62 = vld [vmem:[#allocation2 + $0xb0] sm:$0xff]  ;;  %3446 = vrot.lane.b32.xlu0 %v10185_v52, %s8450_s28  ;;  %v4031_v61 = vld [vmem:[#allocation3 + $0xe8] sm:$0xff] }
 0x242   : >> { %v10247_v10 = vld [vmem:[#allocation2 + $0xb2] sm:$0xff]  ;;  %3640 = vrot.lane.b32.xlu1 %v10245_v62, %s8451_s14  ;;  %v10253_v59 = vld [vmem:[#allocation2 + $0xaa] sm:$0xff]  ;;  %v7359_v31 = vpop.f32.mrf.mxu0  ;;  %2385 = vmatmul.mubr.bf16.gmra.mxu0 %v2067_v27 }
 0x243   : >> { %3981 = vst.msk [vmem:[#allocation3 + $0x118] sm:$0xff] %vm388_vm0, %v10247_v10  ;;  %v3311_v18 = vld [vmem:[#allocation2 + $0xb1] sm:$0xff]  ;;  %3980 = vst.msk [vmem:[#allocation3 + $0x100] sm:$0xff] %vm388_vm0, %v10253_v59  ;;  %v3619_v53 = vpop.permute.xlu0 %3618  ;;  %7736 = vmatprep.mubr.msk.bf16.mxu0 %vm388_vm0, %v4100_v50 }
 0x244   : >> { %v2673_v63 = vld [vmem:[#allocation2 + $0xb0] sm:$0xff]  ;;  %3343 = vst.msk [vmem:[#allocation3 + $0x140] sm:$0xff] %vm388_vm0, %v3311_v18  ;;  %v3813_v58 = vpop.permute.xlu1 %3812  ;;  %v7360_v1 = vpop.f32.mrf.mxu0  ;;  %v4109_v18 = vpack.c.bf16 %v4025_v57, %v4022_v55 }
 0x245   : >> { %2705 = vst.msk [vmem:[#allocation3 + $0x168] sm:$0xff] %vm388_vm0, %v2673_v63  ;;  %v7361_v21 = vadd.f32 %v7360_v1, %v7359_v31  ;;  %2806 = vrot.lane.b32.xlu0 %v10158_v54, %s8450_s28  ;;  %v10273_v54 = vld [vmem:[#allocation2 + $0xb1] sm:$0xff] }
 0x246   : >> { %3714 = vst.msk [vmem:[#allocation3 + $0x8] sm:$0xff] %vm995_vm4, %v3619_v53  ;;  %3000 = vrot.lane.b32.xlu1 %v10115_v22, %s8451_s14  ;;  %v7362_v49 = vpop.f32.mrf.mxu0 }
 0x247   : >> { %3907 = vst.msk [vmem:[#allocation3 + $0x20] sm:$0xff] %vm1188_vm5, %v3813_v58  ;;  %v2323_v8 = vadd.f32 %v10202_v3, %v7361_v21  ;;  %v2979_v32 = vpop.permute.xlu0 %2978 }
 0x248   : >> { %v3173_v13 = vpop.permute.xlu1 %3172  ;;  %3074 = vst.msk [vmem:[#allocation3] sm:$0xff] %vm995_vm4, %v2979_v32  ;;  %v7363_v23 = vpop.f32.mrf.mxu0 }
 0x249   : >> { %3267 = vst.msk [vmem:[#allocation3 + $0x18] sm:$0xff] %vm1188_vm5, %v3173_v13  ;;  %v2484_v22 = vadd.f32 %v10172_v56, %v2323_v8  ;;  %v7364_v15 = vadd.f32 %v7363_v23, %v7362_v49  ;;  %3638 = vrot.lane.b32.xlu0 %v10271_v5, %s8451_s14 }
 0x24a   : >> { %3832 = vrot.lane.b32.xlu1 %v10273_v54, %s8452_s15  ;;  %7737 = vmatmul.mubr.msk.bf16.vlgmr.msra.gmra.mxu0 %vm388_vm0, %v4103_v7  ;;  %v4034_v21 = vld [vmem:[#allocation3 + $0x100] sm:$0xff]  ;;  %v4037_v17 = vld [vmem:[#allocation3 + $0x118] sm:$0xff] }
 0x24b   : >> { %v2568_v14 = vmax.f32 %v2484_v22, 0.0  ;;  %v2326_v30 = vadd.f32 %v10202_v3, %v7364_v15  ;;  %v3811_v26 = vpop.permute.xlu0 %3810  ;;  %7740 = vmatprep.mubr.msk.bf16.mxu0 %vm388_vm0, %v4106_v60  ;;  %v4115_v32 = vpack.c.bf16 %v4037_v17, %v4034_v21  ;;  %v2491_v60 = vpop.f32.mrf.mxu1 }
 0x24c   : >> { %v3433_v9 = vpop.permute.xlu1 %3432  ;;  %3906 = vst.msk [vmem:[#allocation3 + $0x8] sm:$0xff] %vm1188_vm5, %v3811_v26 }
 0x24d   : >> { %3525 = vst.msk [vmem:[#allocation3 + $0x50] sm:$0xff] %vm802_vm3, %v3433_v9  ;;  %v2487_v56 = vadd.f32 %v10199_v12, %v2326_v30  ;;  %2998 = vrot.lane.b32.xlu0 %v10121_v11, %s8451_s14  ;;  %v4112_v11 = vpack.c.bf16 %v4031_v61, %v4028_v19  ;;  %v10341_v55 = vpop.f32.mrf.mxu1 }
 0x24e   : >> { %2640 = vst.msk [vmem:[#allocation2 + $0xc1] sm:$0xff] %vm388_vm0, %v2568_v14  ;;  %3192 = vrot.lane.b32.xlu1 %v10177_v24, %s8452_s15  ;;  %v4006_v31 = vld [vmem:[#allocation3 + $0x20] sm:$0xff] }
 0x24f   : >> { %v2569_v6 = vmax.f32 %v2487_v56, 0.0  ;;  %v3171_v27 = vpop.permute.xlu0 %3170 }
 0x250   : >> { %v2793_v50 = vpop.permute.xlu1 %2792  ;;  %3266 = vst.msk [vmem:[#allocation3] sm:$0xff] %vm1188_vm5, %v3171_v27  ;;  %v4005_v8 = vld [vmem:[#allocation3 + $0x18] sm:$0xff] }
 0x251   : >> { %2885 = vst.msk [vmem:[#allocation3 + $0x48] sm:$0xff] %vm802_vm3, %v2793_v50  ;;  %3830 = vrot.lane.b32.xlu0 %v10234_v51, %s8452_s15 }
 0x252   : >> { %2641 = vst.msk [vmem:[#allocation2 + $0xc9] sm:$0xff] %vm388_vm0, %v2569_v6  ;;  %3452 = vrot.lane.b32.xlu1 %v10247_v10, %s8450_s28  ;;  %7741 = vmatmul.mubr.msk.bf16.gmra.mxu0 %vm388_vm0, %v4109_v18 }
 0x253   : >> { %v3431_v24 = vpop.permute.xlu0 %3430  ;;  %7744 = vmatprep.mubr.msk.bf16.mxu0 %vm388_vm0, %v4112_v11  ;;  %v4003_v63 = vld [vmem:[#allocation3 + $0x8] sm:$0xff] }
 0x254   : >> { %v3625_v12 = vpop.permute.xlu1 %3624  ;;  %3524 = vst.msk [vmem:[#allocation3 + $0x38] sm:$0xff] %vm802_vm3, %v3431_v24  ;;  %v4099_v53 = vpack.c.bf16 %v4006_v31, %v4003_v63  ;;  %v2494_v24 = vpop.f32.mrf.mxu1 }
 0x255   : >> { %3717 = vst.msk [vmem:[#allocation3 + $0x50] sm:$0xff] %vm995_vm4, %v3625_v12  ;;  %v10302_v58 = vld [vmem:[#allocation2 + $0xc1] sm:$0xff]  ;;  %3190 = vrot.lane.b32.xlu0 %v10207_v29, %s8452_s15 }
 0x256   : >> { %v2674_v1 = vld [vmem:[#allocation2 + $0xc0] sm:$0xff]  ;;  %2812 = vrot.lane.b32.xlu1 %v10209_v20, %s8450_s28  ;;  %3344 = vst.msk [vmem:[#allocation3 + $0x158] sm:$0xff] %vm388_vm0, %v10302_v58  ;;  %4340 = vmatprep.mubr.bf16.mxu1 %v4099_v53 }
 0x257   : >> { %2706 = vst.msk [vmem:[#allocation3 + $0x180] sm:$0xff] %vm388_vm0, %v2674_v1  ;;  %v2791_v49 = vpop.permute.xlu0 %2790  ;;  %v4002_v16 = vld [vmem:[#allocation3] sm:$0xff]  ;;  %v10346_v27 = vld [vmem:[#allocation2 + $0xc0] sm:$0xff] }
 0x258   : >> { %v2985_v25 = vpop.permute.xlu1 %2984  ;;  %2884 = vst.msk [vmem:[#allocation3 + $0x30] sm:$0xff] %vm802_vm3, %v2791_v49  ;;  %v4098_v20 = vpack.c.bf16 %v4005_v8, %v4002_v16 }
 0x259   : >> { %3077 = vst.msk [vmem:[#allocation3 + $0x48] sm:$0xff] %vm995_vm4, %v2985_v25  ;;  %v10315_v29 = vld [vmem:[#allocation2 + $0xc8] sm:$0xff]  ;;  %3450 = vrot.lane.b32.xlu0 %v10253_v59, %s8450_s28 }
 0x25a   : >> { %v10317_v13 = vld [vmem:[#allocation2 + $0xc9] sm:$0xff]  ;;  %3644 = vrot.lane.b32.xlu1 %v10315_v29, %s8451_s14  ;;  %v7365_v15 = vpop.f32.mrf.mxu0  ;;  %4341 = vmatmul.mubr.bf16.vlgmr.msra.gmra.mxu1 %v4098_v20 }
 0x25b   : >> { %v10319_v23 = vld [vmem:[#allocation2 + $0xc2] sm:$0xff]  ;;  %v10325_v7 = vld [vmem:[#allocation2 + $0xca] sm:$0xff]  ;;  %3345 = vst.msk [vmem:[#allocation3 + $0x170] sm:$0xff] %vm388_vm0, %v10317_v13  ;;  %7745 = vmatmul.mubr.msk.bf16.gmra.mxu0 %vm388_vm0, %v4115_v32  ;;  %v3623_v14 = vpop.permute.xlu0 %3622 }
 0x25c   : >> { %3982 = vst.msk [vmem:[#allocation3 + $0x130] sm:$0xff] %vm388_vm0, %v10319_v23  ;;  %v2675_v22 = vld [vmem:[#allocation2 + $0xc8] sm:$0xff]  ;;  %3983 = vst.msk [vmem:[#allocation3 + $0x148] sm:$0xff] %vm388_vm0, %v10325_v7  ;;  %v3817_v30 = vpop.permute.xlu1 %3816  ;;  %v7366_v26 = vpop.f32.mrf.mxu0 }
 0x25d   : >> { %2707 = vst.msk [vmem:[#allocation3 + $0x198] sm:$0xff] %vm388_vm0, %v2675_v22  ;;  %v7367_v9 = vadd.f32 %v7366_v26, %v7365_v15  ;;  %2810 = vrot.lane.b32.xlu0 %v10225_v28, %s8450_s28 }
 0x25e   : >> { %3716 = vst.msk [vmem:[#allocation3 + $0x38] sm:$0xff] %vm995_vm4, %v3623_v14  ;;  %3004 = vrot.lane.b32.xlu1 %v10179_v2, %s8451_s14  ;;  %v7368_v56 = vpop.f32.mrf.mxu0 }
 0x25f   : >> { %3909 = vst.msk [vmem:[#allocation3 + $0x50] sm:$0xff] %vm1188_vm5, %v3817_v30  ;;  %v2983_v57 = vpop.permute.xlu0 %2982  ;;  %v2331_v61 = vadd.f32 %v10202_v3, %v7367_v9 }
 0x260   : >> { %v3177_v19 = vpop.permute.xlu1 %3176  ;;  %3076 = vst.msk [vmem:[#allocation3 + $0x30] sm:$0xff] %vm995_vm4, %v2983_v57  ;;  %v7369_v6 = vpop.f32.mrf.mxu0 }
 0x261   : >> { %3269 = vst.msk [vmem:[#allocation3 + $0x48] sm:$0xff] %vm1188_vm5, %v3177_v19  ;;  %v7370_v18 = vadd.f32 %v7369_v6, %v7368_v56  ;;  %v2492_v28 = vadd.f32 %v2491_v60, %v2331_v61  ;;  %3642 = vrot.lane.b32.xlu0 %v10346_v27, %s8451_s14 }
 0x262   : >> { %3836 = vrot.lane.b32.xlu1 %v10317_v13, %s8452_s15 }
 0x263   : >> { %v4040_v50 = vld [vmem:[#allocation3 + $0x130] sm:$0xff]  ;;  %v4043_v2 = vld [vmem:[#allocation3 + $0x148] sm:$0xff]  ;;  %v2570_v12 = vmax.f32 %v2492_v28, 0.0  ;;  %v3815_v63 = vpop.permute.xlu0 %3814  ;;  %v2334_v53 = vadd.f32 %v10202_v3, %v7370_v18 }
 0x264   : >> { %v4118_v11 = vpack.c.bf16 %v4043_v2, %v4040_v50  ;;  %v3437_v31 = vpop.permute.xlu1 %3436  ;;  %3908 = vst.msk [vmem:[#allocation3 + $0x38] sm:$0xff] %vm1188_vm5, %v3815_v63 }
 0x265   : >> { %3527 = vst.msk [vmem:[#allocation3 + $0x80] sm:$0xff] %vm802_vm3, %v3437_v31  ;;  %v2495_v1 = vadd.f32 %v2494_v24, %v2334_v53  ;;  %3002 = vrot.lane.b32.xlu0 %v10185_v52, %s8451_s14 }
 0x266   : >> { %7748 = vmatprep.mubr.msk.bf16.mxu0 %vm388_vm0, %v4118_v11  ;;  %2642 = vst.msk [vmem:[#allocation2 + $0xd9] sm:$0xff] %vm388_vm0, %v2570_v12  ;;  %3196 = vrot.lane.b32.xlu1 %v10245_v62, %s8452_s15  ;;  %v4012_v8 = vld [vmem:[#allocation3 + $0x50] sm:$0xff] }
 0x267   : >> { %v2571_v21 = vmax.f32 %v2495_v1, 0.0  ;;  %v3175_v17 = vpop.permute.xlu0 %3174 }
 0x268   : >> { %v2797_v49 = vpop.permute.xlu1 %2796  ;;  %3268 = vst.msk [vmem:[#allocation3 + $0x30] sm:$0xff] %vm1188_vm5, %v3175_v17  ;;  %v4011_v14 = vld [vmem:[#allocation3 + $0x48] sm:$0xff] }
 0x269   : >> { %2887 = vst.msk [vmem:[#allocation3 + $0x78] sm:$0xff] %vm802_vm3, %v2797_v49  ;;  %3834 = vrot.lane.b32.xlu0 %v10302_v58, %s8452_s15 }
 0x26a   : >> { %2643 = vst.msk [vmem:[#allocation2 + $0xe1] sm:$0xff] %vm388_vm0, %v2571_v21  ;;  %3456 = vrot.lane.b32.xlu1 %v10325_v7, %s8450_s28 }
 0x26b   : >> { %v3435_v25 = vpop.permute.xlu0 %3434  ;;  %v4009_v16 = vld [vmem:[#allocation3 + $0x38] sm:$0xff] }
 0x26c   : >> { %v3629_v52 = vpop.permute.xlu1 %3628  ;;  %3526 = vst.msk [vmem:[#allocation3 + $0x68] sm:$0xff] %vm802_vm3, %v3435_v25  ;;  %v4102_v62 = vpack.c.bf16 %v4012_v8, %v4009_v16 }
 0x26d   : >> { %3719 = vst.msk [vmem:[#allocation3 + $0x80] sm:$0xff] %vm995_vm4, %v3629_v52  ;;  %v10370_v20 = vld [vmem:[#allocation2 + $0xd9] sm:$0xff]  ;;  %3194 = vrot.lane.b32.xlu0 %v10271_v5, %s8452_s15 }
 0x26e   : >> { %v2676_v32 = vld [vmem:[#allocation2 + $0xd8] sm:$0xff]  ;;  %2816 = vrot.lane.b32.xlu1 %v10273_v54, %s8450_s28  ;;  %3346 = vst.msk [vmem:[#allocation3 + $0x188] sm:$0xff] %vm388_vm0, %v10370_v20  ;;  %4348 = vmatprep.mubr.bf16.mxu1 %v4102_v62 }
 0x26f   : >> { %2708 = vst.msk [vmem:[#allocation3 + $0x1b0] sm:$0xff] %vm388_vm0, %v2676_v32  ;;  %v2795_v22 = vpop.permute.xlu0 %2794  ;;  %v4008_v60 = vld [vmem:[#allocation3 + $0x30] sm:$0xff]  ;;  %v10409_v12 = vld [vmem:[#allocation2 + $0xd8] sm:$0xff] }
 0x270   : >> { %v2989_v15 = vpop.permute.xlu1 %2988  ;;  %2886 = vst.msk [vmem:[#allocation3 + $0x60] sm:$0xff] %vm802_vm3, %v2795_v22  ;;  %v4101_v5 = vpack.c.bf16 %v4011_v14, %v4008_v60 }
 0x271   : >> { %3079 = vst.msk [vmem:[#allocation3 + $0x78] sm:$0xff] %vm995_vm4, %v2989_v15  ;;  %v10381_v30 = vld [vmem:[#allocation2 + $0xe0] sm:$0xff]  ;;  %3454 = vrot.lane.b32.xlu0 %v10319_v23, %s8450_s28  ;;  %v10444_v15 = vpop.f32.mrf.mxu1 }
 0x272   : >> { %v10383_v26 = vld [vmem:[#allocation2 + $0xe1] sm:$0xff]  ;;  %3648 = vrot.lane.b32.xlu1 %v10381_v30, %s8451_s14  ;;  %v7371_v57 = vpop.f32.mrf.mxu0  ;;  %4349 = vmatmul.mubr.bf16.gmra.mxu1 %v4101_v5 }
 0x273   : >> { %v10385_v54 = vld [vmem:[#allocation2 + $0xda] sm:$0xff]  ;;  %v10391_v9 = vld [vmem:[#allocation2 + $0xe2] sm:$0xff]  ;;  %3347 = vst.msk [vmem:[#allocation3 + $0x1a0] sm:$0xff] %vm388_vm0, %v10383_v26  ;;  %v3627_v19 = vpop.permute.xlu0 %3626 }
 0x274   : >> { %3984 = vst.msk [vmem:[#allocation3 + $0x160] sm:$0xff] %vm388_vm0, %v10385_v54  ;;  %v2677_v56 = vld [vmem:[#allocation2 + $0xe0] sm:$0xff]  ;;  %3985 = vst.msk [vmem:[#allocation3 + $0x178] sm:$0xff] %vm388_vm0, %v10391_v9  ;;  %v3821_v61 = vpop.permute.xlu1 %3820  ;;  %v7372_v6 = vpop.f32.mrf.mxu0 }
 0x275   : >> { %2709 = vst.msk [vmem:[#allocation3 + $0x1c8] sm:$0xff] %vm388_vm0, %v2677_v56  ;;  %v7373_v50 = vadd.f32 %v7372_v6, %v7371_v57  ;;  %2814 = vrot.lane.b32.xlu0 %v10234_v51, %s8450_s28 }
 0x276   : >> { %3718 = vst.msk [vmem:[#allocation3 + $0x68] sm:$0xff] %vm995_vm4, %v3627_v19  ;;  %3008 = vrot.lane.b32.xlu1 %v10247_v10, %s8451_s14  ;;  %v7374_v18 = vpop.f32.mrf.mxu0 }
 0x277   : >> { %3911 = vst.msk [vmem:[#allocation3 + $0x80] sm:$0xff] %vm1188_vm5, %v3821_v61  ;;  %v2339_v28 = vadd.f32 %v10202_v3, %v7373_v50  ;;  %v2987_v2 = vpop.permute.xlu0 %2986 }
 0x278   : >> { %v3181_v11 = vpop.permute.xlu1 %3180  ;;  %3078 = vst.msk [vmem:[#allocation3 + $0x60] sm:$0xff] %vm995_vm4, %v2987_v2  ;;  %v7375_v24 = vpop.f32.mrf.mxu0 }
 0x279   : >> { %3271 = vst.msk [vmem:[#allocation3 + $0x78] sm:$0xff] %vm1188_vm5, %v3181_v11  ;;  %v2500_v31 = vadd.f32 %v10311_v4, %v2339_v28  ;;  %v7376_v53 = vadd.f32 %v7375_v24, %v7374_v18  ;;  %3646 = vrot.lane.b32.xlu0 %v10409_v12, %s8451_s14  ;;  %v2507_v18 = vpop.f32.mrf.mxu1 }
 0x27a   : >> { %3840 = vrot.lane.b32.xlu1 %v10383_v26, %s8452_s15 }
 0x27b   : >> { %v4046_v63 = vld [vmem:[#allocation3 + $0x160] sm:$0xff]  ;;  %v4049_v51 = vld [vmem:[#allocation3 + $0x178] sm:$0xff]  ;;  %v2572_v1 = vmax.f32 %v2500_v31, 0.0  ;;  %v2342_v21 = vadd.f32 %v10202_v3, %v7376_v53  ;;  %v3819_v17 = vpop.permute.xlu0 %3818  ;;  %v10473_v31 = vpop.f32.mrf.mxu1 }
 0x27c   : >> { %v4121_v10 = vpack.c.bf16 %v4049_v51, %v4046_v63  ;;  %v3441_v49 = vpop.permute.xlu1 %3440  ;;  %3910 = vst.msk [vmem:[#allocation3 + $0x68] sm:$0xff] %vm1188_vm5, %v3819_v17 }
 0x27d   : >> { %3529 = vst.msk [vmem:[#allocation3 + $0xb0] sm:$0xff] %vm802_vm3, %v3441_v49  ;;  %v2503_v4 = vadd.f32 %v10341_v55, %v2342_v21  ;;  %3006 = vrot.lane.b32.xlu0 %v10253_v59, %s8451_s14 }
 0x27e   : >> { %7749 = vmatmul.mubr.msk.bf16.gmra.mxu0 %vm388_vm0, %v4121_v10  ;;  %2644 = vst.msk [vmem:[#allocation2 + $0xf1] sm:$0xff] %vm388_vm0, %v2572_v1  ;;  %3200 = vrot.lane.b32.xlu1 %v10315_v29, %s8452_s15  ;;  %v4018_v62 = vld [vmem:[#allocation3 + $0x80] sm:$0xff] }
 0x27f   : >> { %v2573_v25 = vmax.f32 %v2503_v4, 0.0  ;;  %v3179_v52 = vpop.permute.xlu0 %3178 }
 0x280   : >> { %v2801_v16 = vpop.permute.xlu1 %2800  ;;  %3270 = vst.msk [vmem:[#allocation3 + $0x60] sm:$0xff] %vm1188_vm5, %v3179_v52  ;;  %v4017_v56 = vld [vmem:[#allocation3 + $0x78] sm:$0xff] }
 0x281   : >> { %2889 = vst.msk [vmem:[#allocation3 + $0xa8] sm:$0xff] %vm802_vm3, %v2801_v16  ;;  %3838 = vrot.lane.b32.xlu0 %v10370_v20, %s8452_s15 }
 0x282   : >> { %2645 = vst.msk [vmem:[#allocation2 + $0xf9] sm:$0xff] %vm388_vm0, %v2573_v25  ;;  %3460 = vrot.lane.b32.xlu1 %v10391_v9, %s8450_s28  ;;  %v2510_v25 = vpop.f32.mrf.mxu1 }
 0x283   : >> { %v3439_v55 = vpop.permute.xlu0 %3438  ;;  %v4015_v8 = vld [vmem:[#allocation3 + $0x68] sm:$0xff] }
 0x284   : >> { %v3633_v59 = vpop.permute.xlu1 %3632  ;;  %3528 = vst.msk [vmem:[#allocation3 + $0x98] sm:$0xff] %vm802_vm3, %v3439_v55  ;;  %v4105_v29 = vpack.c.bf16 %v4018_v62, %v4015_v8 }
 0x285   : >> { %3721 = vst.msk [vmem:[#allocation3 + $0xb0] sm:$0xff] %vm995_vm4, %v3633_v59  ;;  %v10435_v32 = vld [vmem:[#allocation2 + $0xf1] sm:$0xff]  ;;  %3198 = vrot.lane.b32.xlu0 %v10346_v27, %s8452_s15 }
 0x286   : >> { %v2678_v22 = vld [vmem:[#allocation2 + $0xf0] sm:$0xff]  ;;  %2820 = vrot.lane.b32.xlu1 %v10317_v13, %s8450_s28  ;;  %3348 = vst.msk [vmem:[#allocation3 + $0x1b8] sm:$0xff] %vm388_vm0, %v10435_v32  ;;  %4356 = vmatprep.mubr.bf16.mxu1 %v4105_v29 }
 0x287   : >> { %2710 = vst.msk [vmem:[#allocation3 + $0x1e0] sm:$0xff] %vm388_vm0, %v2678_v22  ;;  %v2799_v60 = vpop.permute.xlu0 %2798  ;;  %v4014_v5 = vld [vmem:[#allocation3 + $0x60] sm:$0xff] }
 0x288   : >> { %v2993_v14 = vpop.permute.xlu1 %2992  ;;  %2888 = vst.msk [vmem:[#allocation3 + $0x90] sm:$0xff] %vm802_vm3, %v2799_v60  ;;  %v4104_v57 = vpack.c.bf16 %v4017_v56, %v4014_v5  ;;  %v10478_v21 = vld [vmem:[#allocation2 + $0xf0] sm:$0xff] }
 0x289   : >> { %3081 = vst.msk [vmem:[#allocation3 + $0xa8] sm:$0xff] %vm995_vm4, %v2993_v14  ;;  %v10448_v27 = vld [vmem:[#allocation2 + $0xf8] sm:$0xff]  ;;  %3458 = vrot.lane.b32.xlu0 %v10385_v54, %s8450_s28 }
 0x28a   : >> { %v10450_v13 = vld [vmem:[#allocation2 + $0xf9] sm:$0xff]  ;;  %3652 = vrot.lane.b32.xlu1 %v10448_v27, %s8451_s14  ;;  %v7377_v50 = vpop.f32.mrf.mxu0  ;;  %4357 = vmatmul.mubr.bf16.gmra.mxu1 %v4104_v57 }
 0x28b   : >> { %v10452_v19 = vld [vmem:[#allocation2 + $0xf2] sm:$0xff]  ;;  %v10458_v61 = vld [vmem:[#allocation2 + $0xfa] sm:$0xff]  ;;  %3349 = vst.msk [vmem:[#allocation3 + $0x1d0] sm:$0xff] %vm388_vm0, %v10450_v13  ;;  %v3631_v28 = vpop.permute.xlu0 %3630 }
 0x28c   : >> { %3986 = vst.msk [vmem:[#allocation3 + $0x190] sm:$0xff] %vm388_vm0, %v10452_v19  ;;  %v2679_v6 = vld [vmem:[#allocation2 + $0xf8] sm:$0xff]  ;;  %3987 = vst.msk [vmem:[#allocation3 + $0x1a8] sm:$0xff] %vm388_vm0, %v10458_v61  ;;  %v3825_v2 = vpop.permute.xlu1 %3824  ;;  %v7378_v11 = vpop.f32.mrf.mxu0 }
 0x28d   : >> { %2711 = vst.msk [vmem:[#allocation3 + $0x1f8] sm:$0xff] %vm388_vm0, %v2679_v6  ;;  %v7379_v24 = vadd.f32 %v7378_v11, %v7377_v50  ;;  %2818 = vrot.lane.b32.xlu0 %v10302_v58, %s8450_s28 }
 0x28e   : >> { %3720 = vst.msk [vmem:[#allocation3 + $0x98] sm:$0xff] %vm995_vm4, %v3631_v28  ;;  %3012 = vrot.lane.b32.xlu1 %v10325_v7, %s8451_s14  ;;  %v7380_v63 = vpop.f32.mrf.mxu0 }
 0x28f   : >> { %3913 = vst.msk [vmem:[#allocation3 + $0xb0] sm:$0xff] %vm1188_vm5, %v3825_v2  ;;  %v2991_v53 = vpop.permute.xlu0 %2990  ;;  %v2347_v10 = vadd.f32 %v10202_v3, %v7379_v24 }
 0x290   : >> { %v3185_v51 = vpop.permute.xlu1 %3184  ;;  %3080 = vst.msk [vmem:[#allocation3 + $0x90] sm:$0xff] %vm995_vm4, %v2991_v53  ;;  %v7381_v1 = vpop.f32.mrf.mxu0 }
 0x291   : >> { %3273 = vst.msk [vmem:[#allocation3 + $0xa8] sm:$0xff] %vm1188_vm5, %v3185_v51  ;;  %v7382_v49 = vadd.f32 %v7381_v1, %v7380_v63  ;;  %v2508_v58 = vadd.f32 %v2507_v18, %v2347_v10  ;;  %3650 = vrot.lane.b32.xlu0 %v10478_v21, %s8451_s14 }
 0x292   : >> { %3844 = vrot.lane.b32.xlu1 %v10450_v13, %s8452_s15 }
 0x293   : >> { %v4052_v17 = vld [vmem:[#allocation3 + $0x190] sm:$0xff]  ;;  %v4055_v7 = vld [vmem:[#allocation3 + $0x1a8] sm:$0xff]  ;;  %v2574_v52 = vmax.f32 %v2508_v58, 0.0  ;;  %v3823_v16 = vpop.permute.xlu0 %3822  ;;  %v2350_v59 = vadd.f32 %v10202_v3, %v7382_v49 }
 0x294   : >> { %v4124_v4 = vpack.c.bf16 %v4055_v7, %v4052_v17  ;;  %v3445_v55 = vpop.permute.xlu1 %3444  ;;  %3912 = vst.msk [vmem:[#allocation3 + $0x98] sm:$0xff] %vm1188_vm5, %v3823_v16 }
 0x295   : >> { %3531 = vst.msk [vmem:[#allocation3 + $0xe0] sm:$0xff] %vm802_vm3, %v3445_v55  ;;  %v2511_v8 = vadd.f32 %v2510_v25, %v2350_v59  ;;  %3010 = vrot.lane.b32.xlu0 %v10319_v23, %s8451_s14 }
 0x296   : >> { %7752 = vmatprep.mubr.msk.bf16.mxu0 %vm388_vm0, %v4124_v4  ;;  %2646 = vst.msk [vmem:[#allocation2 + $0x109] sm:$0xff] %vm388_vm0, %v2574_v52  ;;  %3204 = vrot.lane.b32.xlu1 %v10381_v30, %s8452_s15  ;;  %v4024_v5 = vld [vmem:[#allocation3 + $0xb0] sm:$0xff] }
 0x297   : >> { %v2575_v62 = vmax.f32 %v2511_v8, 0.0  ;;  %v3183_v29 = vpop.permute.xlu0 %3182 }
 0x298   : >> { %v2805_v22 = vpop.permute.xlu1 %2804  ;;  %3272 = vst.msk [vmem:[#allocation3 + $0x90] sm:$0xff] %vm1188_vm5, %v3183_v29  ;;  %v4023_v28 = vld [vmem:[#allocation3 + $0xa8] sm:$0xff] }
 0x299   : >> { %2891 = vst.msk [vmem:[#allocation3 + $0xd8] sm:$0xff] %vm802_vm3, %v2805_v22  ;;  %3842 = vrot.lane.b32.xlu0 %v10435_v32, %s8452_s15 }
 0x29a   : >> { %2647 = vst.msk [vmem:[#allocation2 + $0x111] sm:$0xff] %vm388_vm0, %v2575_v62  ;;  %3464 = vrot.lane.b32.xlu1 %v10458_v61, %s8450_s28 }
 0x29b   : >> { %v3443_v60 = vpop.permute.xlu0 %3442  ;;  %v4021_v14 = vld [vmem:[#allocation3 + $0x98] sm:$0xff] }
 0x29c   : >> { %v3637_v23 = vpop.permute.xlu1 %3636  ;;  %3530 = vst.msk [vmem:[#allocation3 + $0xc8] sm:$0xff] %vm802_vm3, %v3443_v60  ;;  %v4108_v30 = vpack.c.bf16 %v4024_v5, %v4021_v14 }
 0x29d   : >> { %3723 = vst.msk [vmem:[#allocation3 + $0xe0] sm:$0xff] %vm995_vm4, %v3637_v23  ;;  %v10502_v56 = vld [vmem:[#allocation2 + $0x109] sm:$0xff]  ;;  %3202 = vrot.lane.b32.xlu0 %v10409_v12, %s8452_s15 }
 0x29e   : >> { %v2680_v57 = vld [vmem:[#allocation2 + $0x108] sm:$0xff]  ;;  %2824 = vrot.lane.b32.xlu1 %v10383_v26, %s8450_s28  ;;  %3350 = vst.msk [vmem:[#allocation3 + $0x1e8] sm:$0xff] %vm388_vm0, %v10502_v56  ;;  %4364 = vmatprep.mubr.bf16.mxu1 %v4108_v30 }
 0x29f   : >> { %2712 = vst.msk [vmem:[#allocation3 + $0x210] sm:$0xff] %vm388_vm0, %v2680_v57  ;;  %v2803_v6 = vpop.permute.xlu0 %2802  ;;  %v4020_v18 = vld [vmem:[#allocation3 + $0x90] sm:$0xff]  ;;  %v10541_v52 = vld [vmem:[#allocation2 + $0x108] sm:$0xff] }
 0x2a0   : >> { %v2997_v50 = vpop.permute.xlu1 %2996  ;;  %2890 = vst.msk [vmem:[#allocation3 + $0xc0] sm:$0xff] %vm802_vm3, %v2803_v6  ;;  %v4107_v12 = vpack.c.bf16 %v4023_v28, %v4020_v18 }
 0x2a1   : >> { %3083 = vst.msk [vmem:[#allocation3 + $0xd8] sm:$0xff] %vm995_vm4, %v2997_v50  ;;  %v10513_v2 = vld [vmem:[#allocation2 + $0x110] sm:$0xff]  ;;  %3462 = vrot.lane.b32.xlu0 %v10452_v19, %s8450_s28  ;;  %v10576_v50 = vpop.f32.mrf.mxu1 }
 0x2a2   : >> { %v10515_v11 = vld [vmem:[#allocation2 + $0x111] sm:$0xff]  ;;  %3656 = vrot.lane.b32.xlu1 %v10513_v2, %s8451_s14  ;;  %v7383_v53 = vpop.f32.mrf.mxu0  ;;  %4365 = vmatmul.mubr.bf16.gmra.mxu1 %v4107_v12 }
 0x2a3   : >> { %v10517_v26 = vld [vmem:[#allocation2 + $0x10a] sm:$0xff]  ;;  %v10523_v24 = vld [vmem:[#allocation2 + $0x112] sm:$0xff]  ;;  %3351 = vst.msk [vmem:[#allocation3 + $0x200] sm:$0xff] %vm388_vm0, %v10515_v11  ;;  %v3635_v51 = vpop.permute.xlu0 %3634 }
 0x2a4   : >> { %3988 = vst.msk [vmem:[#allocation3 + $0x1c0] sm:$0xff] %vm388_vm0, %v10517_v26  ;;  %v2681_v63 = vld [vmem:[#allocation2 + $0x110] sm:$0xff]  ;;  %3989 = vst.msk [vmem:[#allocation3 + $0x1d8] sm:$0xff] %vm388_vm0, %v10523_v24  ;;  %v3829_v10 = vpop.permute.xlu1 %3828  ;;  %v7384_v1 = vpop.f32.mrf.mxu0 }
 0x2a5   : >> { %2713 = vst.msk [vmem:[#allocation3 + $0x228] sm:$0xff] %vm388_vm0, %v2681_v63  ;;  %v7385_v17 = vadd.f32 %v7384_v1, %v7383_v53  ;;  %2822 = vrot.lane.b32.xlu0 %v10370_v20, %s8450_s28 }
 0x2a6   : >> { %3722 = vst.msk [vmem:[#allocation3 + $0xc8] sm:$0xff] %vm995_vm4, %v3635_v51  ;;  %3016 = vrot.lane.b32.xlu1 %v10391_v9, %s8451_s14  ;;  %v7386_v49 = vpop.f32.mrf.mxu0 }
 0x2a7   : >> { %3915 = vst.msk [vmem:[#allocation3 + $0xe0] sm:$0xff] %vm1188_vm5, %v3829_v10  ;;  %v2355_v58 = vadd.f32 %v10202_v3, %v7385_v17  ;;  %v2995_v7 = vpop.permute.xlu0 %2994 }
 0x2a8   : >> { %v3189_v4 = vpop.permute.xlu1 %3188  ;;  %3082 = vst.msk [vmem:[#allocation3 + $0xc0] sm:$0xff] %vm995_vm4, %v2995_v7  ;;  %v7387_v25 = vpop.f32.mrf.mxu0 }
 0x2a9   : >> { %3275 = vst.msk [vmem:[#allocation3 + $0xd8] sm:$0xff] %vm1188_vm5, %v3189_v4  ;;  %v2516_v55 = vadd.f32 %v10444_v15, %v2355_v58  ;;  %v7388_v59 = vadd.f32 %v7387_v25, %v7386_v49  ;;  %3654 = vrot.lane.b32.xlu0 %v10541_v52, %s8451_s14  ;;  %v2523_v49 = vpop.f32.mrf.mxu1 }
 0x2aa   : >> { %3848 = vrot.lane.b32.xlu1 %v10515_v11, %s8452_s15 }
 0x2ab   : >> { %v4058_v16 = vld [vmem:[#allocation3 + $0x1c0] sm:$0xff]  ;;  %v4061_v20 = vld [vmem:[#allocation3 + $0x1d8] sm:$0xff]  ;;  %v2576_v8 = vmax.f32 %v2516_v55, 0.0  ;;  %v2358_v62 = vadd.f32 %v10202_v3, %v7388_v59  ;;  %v3827_v29 = vpop.permute.xlu0 %3826  ;;  %v10605_v55 = vpop.f32.mrf.mxu1 }
 0x2ac   : >> { %v4127_v9 = vpack.c.bf16 %v4061_v20, %v4058_v16  ;;  %v3449_v22 = vpop.permute.xlu1 %3448  ;;  %3914 = vst.msk [vmem:[#allocation3 + $0xc8] sm:$0xff] %vm1188_vm5, %v3827_v29 }
 0x2ad   : >> { %3533 = vst.msk [vmem:[#allocation3 + $0x110] sm:$0xff] %vm802_vm3, %v3449_v22  ;;  %v2519_v15 = vadd.f32 %v10473_v31, %v2358_v62  ;;  %3014 = vrot.lane.b32.xlu0 %v10385_v54, %s8451_s14 }
 0x2ae   : >> { %7753 = vmatmul.mubr.msk.bf16.gmra.mxu0 %vm388_vm0, %v4127_v9  ;;  %2648 = vst.msk [vmem:[#allocation2 + $0x121] sm:$0xff] %vm388_vm0, %v2576_v8  ;;  %3208 = vrot.lane.b32.xlu1 %v10448_v27, %s8452_s15  ;;  %v4030_v30 = vld [vmem:[#allocation3 + $0xe0] sm:$0xff] }
 0x2af   : >> { %v2577_v60 = vmax.f32 %v2519_v15, 0.0  ;;  %v3187_v23 = vpop.permute.xlu0 %3186 }
 0x2b0   : >> { %v2809_v14 = vpop.permute.xlu1 %2808  ;;  %3274 = vst.msk [vmem:[#allocation3 + $0xc0] sm:$0xff] %vm1188_vm5, %v3187_v23  ;;  %v4029_v63 = vld [vmem:[#allocation3 + $0xd8] sm:$0xff] }
 0x2b1   : >> { %2893 = vst.msk [vmem:[#allocation3 + $0x108] sm:$0xff] %vm802_vm3, %v2809_v14  ;;  %3846 = vrot.lane.b32.xlu0 %v10502_v56, %s8452_s15 }
 0x2b2   : >> { %2649 = vst.msk [vmem:[#allocation2 + $0x129] sm:$0xff] %vm388_vm0, %v2577_v60  ;;  %3468 = vrot.lane.b32.xlu1 %v10523_v24, %s8450_s28  ;;  %v2526_v60 = vpop.f32.mrf.mxu1 }
 0x2b3   : >> { %v3447_v31 = vpop.permute.xlu0 %3446  ;;  %v4027_v5 = vld [vmem:[#allocation3 + $0xc8] sm:$0xff] }
 0x2b4   : >> { %v3641_v54 = vpop.permute.xlu1 %3640  ;;  %3532 = vst.msk [vmem:[#allocation3 + $0xf8] sm:$0xff] %vm802_vm3, %v3447_v31  ;;  %v4111_v27 = vpack.c.bf16 %v4030_v30, %v4027_v5 }
 0x2b5   : >> { %3725 = vst.msk [vmem:[#allocation3 + $0x110] sm:$0xff] %vm995_vm4, %v3641_v54  ;;  %v10567_v57 = vld [vmem:[#allocation2 + $0x121] sm:$0xff]  ;;  %3206 = vrot.lane.b32.xlu0 %v10478_v21, %s8452_s15 }
 0x2b6   : >> { %v2682_v6 = vld [vmem:[#allocation2 + $0x120] sm:$0xff]  ;;  %2828 = vrot.lane.b32.xlu1 %v10450_v13, %s8450_s28  ;;  %3352 = vst.msk [vmem:[#allocation3 + $0x218] sm:$0xff] %vm388_vm0, %v10567_v57  ;;  %4372 = vmatprep.mubr.bf16.mxu1 %v4111_v27 }
 0x2b7   : >> { %2714 = vst.msk [vmem:[#allocation3 + $0x240] sm:$0xff] %vm388_vm0, %v2682_v6  ;;  %v2807_v18 = vpop.permute.xlu0 %2806  ;;  %v4026_v12 = vld [vmem:[#allocation3 + $0xc0] sm:$0xff]  ;;  %v10610_v62 = vld [vmem:[#allocation2 + $0x120] sm:$0xff] }
 0x2b8   : >> { %v3001_v28 = vpop.permute.xlu1 %3000  ;;  %2892 = vst.msk [vmem:[#allocation3 + $0xf0] sm:$0xff] %vm802_vm3, %v2807_v18  ;;  %v4110_v53 = vpack.c.bf16 %v4029_v63, %v4026_v12 }
 0x2b9   : >> { %3085 = vst.msk [vmem:[#allocation3 + $0x108] sm:$0xff] %vm995_vm4, %v3001_v28  ;;  %v10580_v21 = vld [vmem:[#allocation2 + $0x128] sm:$0xff]  ;;  %3466 = vrot.lane.b32.xlu0 %v10517_v26, %s8450_s28 }
 0x2ba   : >> { %v10582_v13 = vld [vmem:[#allocation2 + $0x129] sm:$0xff]  ;;  %3660 = vrot.lane.b32.xlu1 %v10580_v21, %s8451_s14  ;;  %v7389_v17 = vpop.f32.mrf.mxu0  ;;  %4373 = vmatmul.mubr.bf16.gmra.mxu1 %v4110_v53 }
 0x2bb   : >> { %v10584_v51 = vld [vmem:[#allocation2 + $0x122] sm:$0xff]  ;;  %v10590_v10 = vld [vmem:[#allocation2 + $0x12a] sm:$0xff]  ;;  %3353 = vst.msk [vmem:[#allocation3 + $0x230] sm:$0xff] %vm388_vm0, %v10582_v13  ;;  %v3639_v58 = vpop.permute.xlu0 %3638 }
 0x2bc   : >> { %3990 = vst.msk [vmem:[#allocation3 + $0x1f0] sm:$0xff] %vm388_vm0, %v10584_v51  ;;  %v2683_v1 = vld [vmem:[#allocation2 + $0x128] sm:$0xff]  ;;  %3991 = vst.msk [vmem:[#allocation3 + $0x208] sm:$0xff] %vm388_vm0, %v10590_v10  ;;  %v3833_v7 = vpop.permute.xlu1 %3832  ;;  %v7390_v4 = vpop.f32.mrf.mxu0 }
 0x2bd   : >> { %2715 = vst.msk [vmem:[#allocation3 + $0x258] sm:$0xff] %vm388_vm0, %v2683_v1  ;;  %v7391_v25 = vadd.f32 %v7390_v4, %v7389_v17  ;;  %2826 = vrot.lane.b32.xlu0 %v10435_v32, %s8450_s28 }
 0x2be   : >> { %3724 = vst.msk [vmem:[#allocation3 + $0xf8] sm:$0xff] %vm995_vm4, %v3639_v58  ;;  %3020 = vrot.lane.b32.xlu1 %v10458_v61, %s8451_s14  ;;  %v7392_v16 = vpop.f32.mrf.mxu0 }
 0x2bf   : >> { %3917 = vst.msk [vmem:[#allocation3 + $0x110] sm:$0xff] %vm1188_vm5, %v3833_v7  ;;  %v2999_v59 = vpop.permute.xlu0 %2998  ;;  %v2363_v9 = vadd.f32 %v10202_v3, %v7391_v25 }
 0x2c0   : >> { %v3193_v20 = vpop.permute.xlu1 %3192  ;;  %3084 = vst.msk [vmem:[#allocation3 + $0xf0] sm:$0xff] %vm995_vm4, %v2999_v59  ;;  %v7393_v8 = vpop.f32.mrf.mxu0 }
 0x2c1   : >> { %3277 = vst.msk [vmem:[#allocation3 + $0x108] sm:$0xff] %vm1188_vm5, %v3193_v20  ;;  %v7394_v22 = vadd.f32 %v7393_v8, %v7392_v16  ;;  %v2524_v32 = vadd.f32 %v2523_v49, %v2363_v9  ;;  %3658 = vrot.lane.b32.xlu0 %v10610_v62, %s8451_s14 }
 0x2c2   : >> { %3852 = vrot.lane.b32.xlu1 %v10582_v13, %s8452_s15 }
 0x2c3   : >> { %v4064_v29 = vld [vmem:[#allocation3 + $0x1f0] sm:$0xff]  ;;  %v4067_v61 = vld [vmem:[#allocation3 + $0x208] sm:$0xff]  ;;  %v2578_v23 = vmax.f32 %v2524_v32, 0.0  ;;  %v3831_v14 = vpop.permute.xlu0 %3830  ;;  %v2366_v54 = vadd.f32 %v10202_v3, %v7394_v22 }
 0x2c4   : >> { %v4130_v15 = vpack.c.bf16 %v4067_v61, %v4064_v29  ;;  %v3453_v31 = vpop.permute.xlu1 %3452  ;;  %3916 = vst.msk [vmem:[#allocation3 + $0xf8] sm:$0xff] %vm1188_vm5, %v3831_v14  ;;  %v10674_v22 = vld [vmem:[%s9795_s19] ss:$0 sm:$0xff] }
 0x2c5   : >> { %3535 = vst.msk [vmem:[#allocation3 + $0x140] sm:$0xff] %vm802_vm3, %v3453_v31  ;;  %v2527_v5 = vadd.f32 %v2526_v60, %v2366_v54  ;;  %3018 = vrot.lane.b32.xlu0 %v10452_v19, %s8451_s14 }
 0x2c6   : >> { %7756 = vmatprep.mubr.msk.bf16.mxu0 %vm388_vm0, %v4130_v15  ;;  %2650 = vst.msk [vmem:[#allocation2 + $0x139] sm:$0xff] %vm388_vm0, %v2578_v23  ;;  %3212 = vrot.lane.b32.xlu1 %v10513_v2, %s8452_s15  ;;  %v4036_v28 = vld [vmem:[#allocation3 + $0x110] sm:$0xff] }
 0x2c7   : >> { %v2579_v30 = vmax.f32 %v2527_v5, 0.0  ;;  %v3191_v27 = vpop.permute.xlu0 %3190 }
 0x2c8   : >> { %v2813_v6 = vpop.permute.xlu1 %2812  ;;  %3276 = vst.msk [vmem:[#allocation3 + $0xf0] sm:$0xff] %vm1188_vm5, %v3191_v27  ;;  %v4035_v49 = vld [vmem:[#allocation3 + $0x108] sm:$0xff] }
 0x2c9   : >> { %2895 = vst.msk [vmem:[#allocation3 + $0x138] sm:$0xff] %vm802_vm3, %v2813_v6  ;;  %3850 = vrot.lane.b32.xlu0 %v10567_v57, %s8452_s15 }
 0x2ca   : >> { %2651 = vst.msk [vmem:[#allocation2 + $0x141] sm:$0xff] %vm388_vm0, %v2579_v30  ;;  %3472 = vrot.lane.b32.xlu1 %v10590_v10, %s8450_s28 }
 0x2cb   : >> { %v3451_v3 = vpop.permute.xlu0 %3450  ;;  %v4033_v18 = vld [vmem:[#allocation3 + $0xf8] sm:$0xff] }
 0x2cc   : >> { %v3645_v19 = vpop.permute.xlu1 %3644  ;;  %3534 = vst.msk [vmem:[#allocation3 + $0x128] sm:$0xff] %vm802_vm3, %v3451_v3  ;;  %v4114_v2 = vpack.c.bf16 %v4036_v28, %v4033_v18 }
 0x2cd   : >> { %3727 = vst.msk [vmem:[#allocation3 + $0x140] sm:$0xff] %vm995_vm4, %v3645_v19  ;;  %v10634_v12 = vld [vmem:[#allocation2 + $0x138] sm:$0xff]  ;;  %3210 = vrot.lane.b32.xlu0 %v10541_v52, %s8452_s15 }
 0x2ce   : >> { %v10636_v63 = vld [vmem:[#allocation2 + $0x139] sm:$0xff]  ;;  %2832 = vrot.lane.b32.xlu1 %v10515_v11, %s8450_s28  ;;  %2716 = vst.msk [vmem:[#allocation3 + $0x270] sm:$0xff] %vm388_vm0, %v10634_v12  ;;  %4380 = vmatprep.mubr.bf16.mxu1 %v4114_v2 }
 0x2cf   : >> { %3354 = vst.msk [vmem:[#allocation3 + $0x248] sm:$0xff] %vm388_vm0, %v10636_v63  ;;  %v2811_v53 = vpop.permute.xlu0 %2810  ;;  %v4032_v17 = vld [vmem:[#allocation3 + $0xf0] sm:$0xff] }
 0x2d0   : >> { %v3005_v1 = vpop.permute.xlu1 %3004  ;;  %2894 = vst.msk [vmem:[#allocation3 + $0x120] sm:$0xff] %vm802_vm3, %v2811_v53  ;;  %v4113_v52 = vpack.c.bf16 %v4035_v49, %v4032_v17 }
 0x2d1   : >> { %3087 = vst.msk [vmem:[#allocation3 + $0x138] sm:$0xff] %vm995_vm4, %v3005_v1  ;;  %v10648_v58 = vld [vmem:[#allocation2 + $0x140] sm:$0xff]  ;;  %3470 = vrot.lane.b32.xlu0 %v10584_v51, %s8450_s28  ;;  %v10715_v1 = vpop.f32.mrf.mxu1 }
 0x2d2   : >> { %v10650_v7 = vld [vmem:[#allocation2 + $0x141] sm:$0xff]  ;;  %3664 = vrot.lane.b32.xlu1 %v10648_v58, %s8451_s14  ;;  %v7395_v16 = vpop.f32.mrf.mxu0  ;;  %4381 = vmatmul.mubr.bf16.gmra.mxu1 %v4113_v52 }
 0x2d3   : >> { %v10652_v11 = vld [vmem:[#allocation2 + $0x13a] sm:$0xff]  ;;  %v10658_v4 = vld [vmem:[#allocation2 + $0x142] sm:$0xff]  ;;  %3355 = vst.msk [vmem:[#allocation3 + $0x260] sm:$0xff] %vm388_vm0, %v10650_v7  ;;  %v3643_v59 = vpop.permute.xlu0 %3642 }
 0x2d4   : >> { %3992 = vst.msk [vmem:[#allocation3 + $0x220] sm:$0xff] %vm388_vm0, %v10652_v11  ;;  %v2685_v25 = vld [vmem:[#allocation2 + $0x140] sm:$0xff]  ;;  %3993 = vst.msk [vmem:[#allocation3 + $0x238] sm:$0xff] %vm388_vm0, %v10658_v4  ;;  %v3837_v20 = vpop.permute.xlu1 %3836  ;;  %v7396_v9 = vpop.f32.mrf.mxu0 }
 0x2d5   : >> { %2717 = vst.msk [vmem:[#allocation3 + $0x288] sm:$0xff] %vm388_vm0, %v2685_v25  ;;  %v7397_v8 = vadd.f32 %v7396_v9, %v7395_v16  ;;  %2830 = vrot.lane.b32.xlu0 %v10502_v56, %s8450_s28 }
 0x2d6   : >> { %3726 = vst.msk [vmem:[#allocation3 + $0x128] sm:$0xff] %vm995_vm4, %v3643_v59  ;;  %3024 = vrot.lane.b32.xlu1 %v10523_v24, %s8451_s14  ;;  %v7398_v29 = vpop.f32.mrf.mxu0 }
 0x2d7   : >> { %3919 = vst.msk [vmem:[#allocation3 + $0x140] sm:$0xff] %vm1188_vm5, %v3837_v20  ;;  %v2371_v32 = vadd.f32 %v10674_v22, %v7397_v8  ;;  %v3003_v61 = vpop.permute.xlu0 %3002  ;;  %v2539_v8 = vpop.f32.mrf.mxu1 }
 0x2d8   : >> { %v3197_v15 = vpop.permute.xlu1 %3196  ;;  %3086 = vst.msk [vmem:[#allocation3 + $0x120] sm:$0xff] %vm995_vm4, %v3003_v61  ;;  %v7399_v60 = vpop.f32.mrf.mxu0 }
 0x2d9   : >> { %3279 = vst.msk [vmem:[#allocation3 + $0x138] sm:$0xff] %vm1188_vm5, %v3197_v15  ;;  %v2532_v14 = vadd.f32 %v10576_v50, %v2371_v32  ;;  %v7400_v31 = vadd.f32 %v7399_v60, %v7398_v29  ;;  %3662 = vrot.lane.b32.xlu0 %v10634_v12, %s8451_s14 }
 0x2da   : >> { %3856 = vrot.lane.b32.xlu1 %v10650_v7, %s8452_s15 }
 0x2db   : >> { %v4070_v23 = vld [vmem:[#allocation3 + $0x220] sm:$0xff]  ;;  %v4073_v56 = vld [vmem:[#allocation3 + $0x238] sm:$0xff]  ;;  %v2580_v54 = vmax.f32 %v2532_v14, 0.0  ;;  %v2374_v5 = vadd.f32 %v10674_v22, %v7400_v31  ;;  %v3835_v30 = vpop.permute.xlu0 %3834 }
 0x2dc   : >> { %v4133_v24 = vpack.c.bf16 %v4073_v56, %v4070_v23  ;;  %v3457_v27 = vpop.permute.xlu1 %3456  ;;  %3918 = vst.msk [vmem:[#allocation3 + $0x128] sm:$0xff] %vm1188_vm5, %v3835_v30  ;;  %v10745_v23 = vpop.f32.mrf.mxu1 }
 0x2dd   : >> { %3537 = vst.msk [vmem:[#allocation3 + $0x170] sm:$0xff] %vm802_vm3, %v3457_v27  ;;  %v2535_v50 = vadd.f32 %v10605_v55, %v2374_v5  ;;  %3022 = vrot.lane.b32.xlu0 %v10517_v26, %s8451_s14 }
 0x2de   : >> { %7757 = vmatmul.mubr.msk.bf16.gmra.mxu0 %vm388_vm0, %v4133_v24  ;;  %2652 = vst.msk [vmem:[#allocation2 + $0x151] sm:$0xff] %vm388_vm0, %v2580_v54  ;;  %3216 = vrot.lane.b32.xlu1 %v10580_v21, %s8452_s15  ;;  %v4042_v28 = vld [vmem:[#allocation3 + $0x140] sm:$0xff]  ;;  %v2542_v27 = vpop.f32.mrf.mxu1 }
 0x2df   : >> { %v2581_v6 = vmax.f32 %v2535_v50, 0.0  ;;  %v3195_v3 = vpop.permute.xlu0 %3194 }
 0x2e0   : >> { %v2817_v19 = vpop.permute.xlu1 %2816  ;;  %3278 = vst.msk [vmem:[#allocation3 + $0x120] sm:$0xff] %vm1188_vm5, %v3195_v3  ;;  %v4041_v25 = vld [vmem:[#allocation3 + $0x138] sm:$0xff] }
 0x2e1   : >> { %2897 = vst.msk [vmem:[#allocation3 + $0x168] sm:$0xff] %vm802_vm3, %v2817_v19  ;;  %3854 = vrot.lane.b32.xlu0 %v10636_v63, %s8452_s15 }
 0x2e2   : >> { %2653 = vst.msk [vmem:[#allocation2 + $0x159] sm:$0xff] %vm388_vm0, %v2581_v6  ;;  %3476 = vrot.lane.b32.xlu1 %v10658_v4, %s8450_s28 }
 0x2e3   : >> { %v3455_v55 = vpop.permute.xlu0 %3454  ;;  %v4039_v18 = vld [vmem:[#allocation3 + $0x128] sm:$0xff] }
 0x2e4   : >> { %v3649_v26 = vpop.permute.xlu1 %3648  ;;  %3536 = vst.msk [vmem:[#allocation3 + $0x158] sm:$0xff] %vm802_vm3, %v3455_v55  ;;  %v4117_v21 = vpack.c.bf16 %v4042_v28, %v4039_v18 }
 0x2e5   : >> { %3729 = vst.msk [vmem:[#allocation3 + $0x170] sm:$0xff] %vm995_vm4, %v3649_v26  ;;  %v10703_v2 = vld [vmem:[#allocation2 + $0x150] sm:$0xff]  ;;  %3214 = vrot.lane.b32.xlu0 %v10610_v62, %s8452_s15 }
 0x2e6   : >> { %v10705_v53 = vld [vmem:[#allocation2 + $0x151] sm:$0xff]  ;;  %2836 = vrot.lane.b32.xlu1 %v10582_v13, %s8450_s28  ;;  %2718 = vst.msk [vmem:[#allocation3 + $0x2a0] sm:$0xff] %vm388_vm0, %v10703_v2  ;;  %4388 = vmatprep.mubr.bf16.mxu1 %v4117_v21 }
 0x2e7   : >> { %3356 = vst.msk [vmem:[#allocation3 + $0x278] sm:$0xff] %vm388_vm0, %v10705_v53  ;;  %v2815_v17 = vpop.permute.xlu0 %2814  ;;  %v4038_v52 = vld [vmem:[#allocation3 + $0x120] sm:$0xff] }
 0x2e8   : >> { %v3009_v49 = vpop.permute.xlu1 %3008  ;;  %2896 = vst.msk [vmem:[#allocation3 + $0x150] sm:$0xff] %vm802_vm3, %v2815_v17  ;;  %v4116_v13 = vpack.c.bf16 %v4041_v25, %v4038_v52 }
 0x2e9   : >> { %3089 = vst.msk [vmem:[#allocation3 + $0x168] sm:$0xff] %vm995_vm4, %v3009_v49  ;;  %v10719_v62 = vld [vmem:[#allocation2 + $0x158] sm:$0xff]  ;;  %3474 = vrot.lane.b32.xlu0 %v10652_v11, %s8450_s28 }
 0x2ea   : >> { %v10721_v16 = vld [vmem:[#allocation2 + $0x159] sm:$0xff]  ;;  %3668 = vrot.lane.b32.xlu1 %v10719_v62, %s8451_s14  ;;  %2719 = vst.msk [vmem:[#allocation3 + $0x2b8] sm:$0xff] %vm388_vm0, %v10719_v62  ;;  %v7401_v9 = vpop.f32.mrf.mxu0  ;;  %4389 = vmatmul.mubr.bf16.gmra.mxu1 %v4116_v13 }
 0x2eb   : >> { %v10723_v59 = vld [vmem:[#allocation2 + $0x152] sm:$0xff]  ;;  %v10729_v20 = vld [vmem:[#allocation2 + $0x15a] sm:$0xff]  ;;  %3357 = vst.msk [vmem:[#allocation3 + $0x290] sm:$0xff] %vm388_vm0, %v10721_v16  ;;  %v3647_v29 = vpop.permute.xlu0 %3646 }
 0x2ec   : >> { %3994 = vst.msk [vmem:[#allocation3 + $0x250] sm:$0xff] %vm388_vm0, %v10723_v59  ;;  %3995 = vst.msk [vmem:[#allocation3 + $0x268] sm:$0xff] %vm388_vm0, %v10729_v20  ;;  %v3841_v32 = vpop.permute.xlu1 %3840  ;;  %v7402_v61 = vpop.f32.mrf.mxu0 }
 0x2ed   : >> { %3728 = vst.msk [vmem:[#allocation3 + $0x158] sm:$0xff] %vm995_vm4, %v3647_v29  ;;  %v7403_v15 = vadd.f32 %v7402_v61, %v7401_v9  ;;  %2834 = vrot.lane.b32.xlu0 %v10567_v57, %s8450_s28 }
 0x2ee   : >> { %3921 = vst.msk [vmem:[#allocation3 + $0x170] sm:$0xff] %vm1188_vm5, %v3841_v32  ;;  %3028 = vrot.lane.b32.xlu1 %v10590_v10, %s8451_s14  ;;  %v7404_v60 = vpop.f32.mrf.mxu0 }
 0x2ef   : >> { %v3007_v14 = vpop.permute.xlu0 %3006  ;;  %v2379_v56 = vadd.f32 %v10674_v22, %v7403_v15 }
 0x2f0   : >> { %v3201_v31 = vpop.permute.xlu1 %3200  ;;  %3088 = vst.msk [vmem:[#allocation3 + $0x150] sm:$0xff] %vm995_vm4, %v3007_v14  ;;  %v7405_v24 = vpop.f32.mrf.mxu0 }
 0x2f1   : >> { %3281 = vst.msk [vmem:[#allocation3 + $0x168] sm:$0xff] %vm1188_vm5, %v3201_v31  ;;  %v7406_v5 = vadd.f32 %v7405_v24, %v7404_v60  ;;  %v2540_v30 = vadd.f32 %v2539_v8, %v2379_v56  ;;  %3666 = vrot.lane.b32.xlu0 %v10703_v2, %s8451_s14 }
 0x2f2   : >> { %3860 = vrot.lane.b32.xlu1 %v10721_v16, %s8452_s15 }
 0x2f3   : >> { %v4076_v54 = vld [vmem:[#allocation3 + $0x250] sm:$0xff]  ;;  %v4079_v57 = vld [vmem:[#allocation3 + $0x268] sm:$0xff]  ;;  %v2582_v50 = vmax.f32 %v2540_v30, 0.0  ;;  %v3839_v6 = vpop.permute.xlu0 %3838  ;;  %v2382_v19 = vadd.f32 %v10674_v22, %v7406_v5 }
 0x2f4   : >> { %v4136_v10 = vpack.c.bf16 %v4079_v57, %v4076_v54  ;;  %v3461_v3 = vpop.permute.xlu1 %3460  ;;  %3920 = vst.msk [vmem:[#allocation3 + $0x158] sm:$0xff] %vm1188_vm5, %v3839_v6 }
 0x2f5   : >> { %3539 = vst.msk [vmem:[#allocation3 + $0x1a0] sm:$0xff] %vm802_vm3, %v3461_v3  ;;  %v2543_v55 = vadd.f32 %v2542_v27, %v2382_v19  ;;  %3026 = vrot.lane.b32.xlu0 %v10584_v51, %s8451_s14  ;;  %v4048_v49 = vld [vmem:[#allocation3 + $0x170] sm:$0xff] }
 0x2f6   : >> { %7760 = vmatprep.mubr.msk.bf16.mxu0 %vm388_vm0, %v4136_v10  ;;  %2654 = vst.msk [vmem:[#allocation2 + $0x169] sm:$0xff] %vm388_vm0, %v2582_v50  ;;  %3220 = vrot.lane.b32.xlu1 %v10648_v58, %s8452_s15 }
 0x2f7   : >> { %v2583_v26 = vmax.f32 %v2543_v55, 0.0  ;;  %v3199_v18 = vpop.permute.xlu0 %3198 }
 0x2f8   : >> { %v2821_v28 = vpop.permute.xlu1 %2820  ;;  %3280 = vst.msk [vmem:[#allocation3 + $0x150] sm:$0xff] %vm1188_vm5, %v3199_v18  ;;  %v4047_v29 = vld [vmem:[#allocation3 + $0x168] sm:$0xff] }
 0x2f9   : >> { %2899 = vst.msk [vmem:[#allocation3 + $0x198] sm:$0xff] %vm802_vm3, %v2821_v28  ;;  %3858 = vrot.lane.b32.xlu0 %v10705_v53, %s8452_s15 }
 0x2fa   : >> { %2655 = vst.msk [vmem:[#allocation2 + $0x171] sm:$0xff] %vm388_vm0, %v2583_v26  ;;  %3480 = vrot.lane.b32.xlu1 %v10729_v20, %s8450_s28 }
 0x2fb   : >> { %v3459_v21 = vpop.permute.xlu0 %3458  ;;  %v4045_v17 = vld [vmem:[#allocation3 + $0x158] sm:$0xff] }
 0x2fc   : >> { %v3653_v51 = vpop.permute.xlu1 %3652  ;;  %3538 = vst.msk [vmem:[#allocation3 + $0x188] sm:$0xff] %vm802_vm3, %v3459_v21  ;;  %v4120_v58 = vpack.c.bf16 %v4048_v49, %v4045_v17 }
 0x2fd   : >> { %3731 = vst.msk [vmem:[#allocation3 + $0x1a0] sm:$0xff] %vm995_vm4, %v3653_v51  ;;  %v10772_v52 = vld [vmem:[#allocation2 + $0x168] sm:$0xff]  ;;  %3218 = vrot.lane.b32.xlu0 %v10634_v12, %s8452_s15 }
 0x2fe   : >> { %v10774_v25 = vld [vmem:[#allocation2 + $0x169] sm:$0xff]  ;;  %2840 = vrot.lane.b32.xlu1 %v10650_v7, %s8450_s28  ;;  %2720 = vst.msk [vmem:[#allocation3 + $0x2d0] sm:$0xff] %vm388_vm0, %v10772_v52  ;;  %4396 = vmatprep.mubr.bf16.mxu1 %v4120_v58 }
 0x2ff   : >> { %3358 = vst.msk [vmem:[#allocation3 + $0x2a8] sm:$0xff] %vm388_vm0, %v10774_v25  ;;  %v2819_v13 = vpop.permute.xlu0 %2818  ;;  %v4044_v8 = vld [vmem:[#allocation3 + $0x150] sm:$0xff] }
 0x300   : >> { %v3013_v9 = vpop.permute.xlu1 %3012  ;;  %2898 = vst.msk [vmem:[#allocation3 + $0x180] sm:$0xff] %vm802_vm3, %v2819_v13  ;;  %v4119_v12 = vpack.c.bf16 %v4047_v29, %v4044_v8 }
 0x301   : >> { %3091 = vst.msk [vmem:[#allocation3 + $0x198] sm:$0xff] %vm995_vm4, %v3013_v9  ;;  %v10786_v32 = vld [vmem:[#allocation2 + $0x170] sm:$0xff]  ;;  %3478 = vrot.lane.b32.xlu0 %v10723_v59, %s8450_s28 }
 0x302   : >> { %v10788_v61 = vld [vmem:[#allocation2 + $0x171] sm:$0xff]  ;;  %3672 = vrot.lane.b32.xlu1 %v10786_v32, %s8451_s14  ;;  %2721 = vst.msk [vmem:[#allocation3 + $0x2e8] sm:$0xff] %vm388_vm0, %v10786_v32  ;;  %v7407_v60 = vpop.f32.mrf.mxu0  ;;  %4397 = vmatmul.mubr.bf16.gmra.mxu1 %v4119_v12 }
 0x303   : >> { %v10790_v7 = vld [vmem:[#allocation2 + $0x16a] sm:$0xff]  ;;  %v10796_v15 = vld [vmem:[#allocation2 + $0x172] sm:$0xff]  ;;  %3359 = vst.msk [vmem:[#allocation3 + $0x2c0] sm:$0xff] %vm388_vm0, %v10788_v61  ;;  %v3651_v14 = vpop.permute.xlu0 %3650 }
 0x304   : >> { %3996 = vst.msk [vmem:[#allocation3 + $0x280] sm:$0xff] %vm388_vm0, %v10790_v7  ;;  %3997 = vst.msk [vmem:[#allocation3 + $0x298] sm:$0xff] %vm388_vm0, %v10796_v15  ;;  %v3845_v31 = vpop.permute.xlu1 %3844  ;;  %v7408_v56 = vpop.f32.mrf.mxu0 }
 0x305   : >> { %3730 = vst.msk [vmem:[#allocation3 + $0x188] sm:$0xff] %vm995_vm4, %v3651_v14  ;;  %v7409_v24 = vadd.f32 %v7408_v56, %v7407_v60  ;;  %2838 = vrot.lane.b32.xlu0 %v10636_v63, %s8450_s28 }
 0x306   : >> { %3923 = vst.msk [vmem:[#allocation3 + $0x1a0] sm:$0xff] %vm1188_vm5, %v3845_v31  ;;  %3032 = vrot.lane.b32.xlu1 %v10658_v4, %s8451_s14  ;;  %v7410_v54 = vpop.f32.mrf.mxu0 }
 0x307   : >> { %v2387_v5 = vadd.f32 %v10674_v22, %v7409_v24  ;;  %v3011_v30 = vpop.permute.xlu0 %3010 }
 0x308   : >> { %v3205_v57 = vpop.permute.xlu1 %3204  ;;  %3090 = vst.msk [vmem:[#allocation3 + $0x180] sm:$0xff] %vm995_vm4, %v3011_v30  ;;  %v7411_v10 = vpop.f32.mrf.mxu0 }
 0x309   : >> { %3283 = vst.msk [vmem:[#allocation3 + $0x198] sm:$0xff] %vm1188_vm5, %v3205_v57  ;;  %v2548_v50 = vadd.f32 %v10715_v1, %v2387_v5  ;;  %v7412_v6 = vadd.f32 %v7411_v10, %v7410_v54  ;;  %3670 = vrot.lane.b32.xlu0 %v10772_v52, %s8451_s14 }
 0x30a   : >> { %3864 = vrot.lane.b32.xlu1 %v10788_v61, %s8452_s15 }
 0x30b   : >> { %v4082_v27 = vld [vmem:[#allocation3 + $0x280] sm:$0xff]  ;;  %v4085_v63 = vld [vmem:[#allocation3 + $0x298] sm:$0xff]  ;;  %v2584_v3 = vmax.f32 %v2548_v50, 0.0  ;;  %v2390_v19 = vadd.f32 %v10674_v22, %v7412_v6  ;;  %v3843_v55 = vpop.permute.xlu0 %3842 }
 0x30c   : >> { %v4139_v4 = vpack.c.bf16 %v4085_v63, %v4082_v27  ;;  %v3465_v26 = vpop.permute.xlu1 %3464  ;;  %3922 = vst.msk [vmem:[#allocation3 + $0x188] sm:$0xff] %vm1188_vm5, %v3843_v55 }
 0x30d   : >> { %3541 = vst.msk [vmem:[#allocation3 + $0x1d0] sm:$0xff] %vm802_vm3, %v3465_v26  ;;  %v2551_v1 = vadd.f32 %v10745_v23, %v2390_v19  ;;  %3030 = vrot.lane.b32.xlu0 %v10652_v11, %s8451_s14  ;;  %v4054_v51 = vld [vmem:[#allocation3 + $0x1a0] sm:$0xff] }
 0x30e   : >> { %7761 = vmatmul.mubr.msk.bf16.gmra.mxu0 %vm388_vm0, %v4139_v4  ;;  %2656 = vst.msk [vmem:[#allocation2 + $0x181] sm:$0xff] %vm388_vm0, %v2584_v3  ;;  %3224 = vrot.lane.b32.xlu1 %v10719_v62, %s8452_s15 }
 0x30f   : >> { %v2585_v18 = vmax.f32 %v2551_v1, 0.0  ;;  %v3203_v22 = vpop.permute.xlu0 %3202 }
 0x310   : >> { %v2825_v28 = vpop.permute.xlu1 %2824  ;;  %3282 = vst.msk [vmem:[#allocation3 + $0x180] sm:$0xff] %vm1188_vm5, %v3203_v22  ;;  %v4053_v9 = vld [vmem:[#allocation3 + $0x198] sm:$0xff] }
 0x311   : >> { %2901 = vst.msk [vmem:[#allocation3 + $0x1c8] sm:$0xff] %vm802_vm3, %v2825_v28  ;;  %3862 = vrot.lane.b32.xlu0 %v10774_v25, %s8452_s15 }
 0x312   : >> { %2657 = vst.msk [vmem:[#allocation2 + $0x189] sm:$0xff] %vm388_vm0, %v2585_v18  ;;  %3484 = vrot.lane.b32.xlu1 %v10796_v15, %s8450_s28 }
 0x313   : >> { %v3463_v23 = vpop.permute.xlu0 %3462  ;;  %v4051_v21 = vld [vmem:[#allocation3 + $0x188] sm:$0xff] }
 0x314   : >> { %v3657_v11 = vpop.permute.xlu1 %3656  ;;  %3540 = vst.msk [vmem:[#allocation3 + $0x1b8] sm:$0xff] %vm802_vm3, %v3463_v23  ;;  %v4123_v62 = vpack.c.bf16 %v4054_v51, %v4051_v21  ;;  %v4097_v23 = vld [vmem:[#allocation3 + $0x2f8] sm:$0xff]  ;;  %v3584_v21 = vld [vmem:[#allocation2 + $0x198] sm:$0xff] }
 0x315   : >> { %3733 = vst.msk [vmem:[#allocation3 + $0x1d0] sm:$0xff] %vm995_vm4, %v3657_v11  ;;  %v3774_v17 = vld [vmem:[#allocation2 + $0x181] sm:$0xff]  ;;  %3222 = vrot.lane.b32.xlu0 %v10703_v2, %s8452_s15 }
 0x316   : >> { %2844 = vrot.lane.b32.xlu1 %v10721_v16, %s8450_s28  ;;  %3360 = vst.msk [vmem:[#allocation3 + $0x2d8] sm:$0xff] %vm388_vm0, %v3774_v17  ;;  %4404 = vmatprep.mubr.bf16.mxu1 %v4123_v62  ;;  %v10865_v30 = vld [vmem:[#allocation2 + $0x180] sm:$0xff] }
 0x317   : >> { %v2823_v49 = vpop.permute.xlu0 %2822  ;;  %v4050_v13 = vld [vmem:[#allocation3 + $0x180] sm:$0xff]  ;;  %v3777_v51 = vld [vmem:[#allocation2 + $0x1a1] sm:$0xff] }
 0x318   : >> { %v3017_v58 = vpop.permute.xlu1 %3016  ;;  %2900 = vst.msk [vmem:[#allocation3 + $0x1b0] sm:$0xff] %vm802_vm3, %v2823_v49  ;;  %v4122_v29 = vpack.c.bf16 %v4053_v9, %v4050_v13 }
 0x319   : >> { %3093 = vst.msk [vmem:[#allocation3 + $0x1c8] sm:$0xff] %vm995_vm4, %v3017_v58  ;;  %v10846_v8 = vld [vmem:[#allocation2 + $0x188] sm:$0xff]  ;;  %3482 = vrot.lane.b32.xlu0 %v10790_v7, %s8450_s28 }
 0x31a   : >> { %v3775_v12 = vld [vmem:[#allocation2 + $0x189] sm:$0xff]  ;;  %3676 = vrot.lane.b32.xlu1 %v10846_v8, %s8451_s14  ;;  %v7447_v16 = vpop.f32.mrf.mxu1  ;;  %4405 = vmatmul.mubr.bf16.gmra.mxu1 %v4122_v29 }
 0x31b   : >> { %v3966_v60 = vld [vmem:[#allocation2 + $0x182] sm:$0xff]  ;;  %v3967_v2 = vld [vmem:[#allocation2 + $0x18a] sm:$0xff]  ;;  %3361 = vst.msk [vmem:[#allocation3 + $0x2f0] sm:$0xff] %vm388_vm0, %v3775_v12  ;;  %v3655_v14 = vpop.permute.xlu0 %3654 }
 0x31c   : >> { %3998 = vst.msk [vmem:[#allocation3 + $0x2b0] sm:$0xff] %vm388_vm0, %v3966_v60  ;;  %3999 = vst.msk [vmem:[#allocation3 + $0x2c8] sm:$0xff] %vm388_vm0, %v3967_v2  ;;  %v3849_v31 = vpop.permute.xlu1 %3848  ;;  %v7448_v56 = vpop.f32.mrf.mxu1 }
 0x31d   : >> { %3732 = vst.msk [vmem:[#allocation3 + $0x1b8] sm:$0xff] %vm995_vm4, %v3655_v14  ;;  %v10857_v24 = vadd.f32 %v7448_v56, %v7447_v16  ;;  %2842 = vrot.lane.b32.xlu0 %v10705_v53, %s8450_s28 }
 0x31e   : >> { %3925 = vst.msk [vmem:[#allocation3 + $0x1d0] sm:$0xff] %vm1188_vm5, %v3849_v31  ;;  %3036 = vrot.lane.b32.xlu1 %v10729_v20, %s8451_s14 }
 0x31f   : >> { %v3015_v54 = vpop.permute.xlu0 %3014 }
 0x320   : >> { %v3209_v5 = vpop.permute.xlu1 %3208  ;;  %3092 = vst.msk [vmem:[#allocation3 + $0x1b0] sm:$0xff] %vm995_vm4, %v3015_v54 }
 0x321   : >> { %3285 = vst.msk [vmem:[#allocation3 + $0x1c8] sm:$0xff] %vm1188_vm5, %v3209_v5  ;;  %3674 = vrot.lane.b32.xlu0 %v10865_v30, %s8451_s14 }
 0x322   : >> { %3868 = vrot.lane.b32.xlu1 %v3775_v12, %s8452_s15 }
 0x323   : >> { %v4088_v57 = vld [vmem:[#allocation3 + $0x2b0] sm:$0xff]  ;;  %v4091_v10 = vld [vmem:[#allocation3 + $0x2c8] sm:$0xff]  ;;  %v3847_v53 = vpop.permute.xlu0 %3846 }
 0x324   : >> { %v4142_v27 = vpack.c.bf16 %v4091_v10, %v4088_v57  ;;  %v3469_v50 = vpop.permute.xlu1 %3468  ;;  %3924 = vst.msk [vmem:[#allocation3 + $0x1b8] sm:$0xff] %vm1188_vm5, %v3847_v53 }
 0x325   : >> { %3543 = vst.msk [vmem:[#allocation3 + $0x200] sm:$0xff] %vm802_vm3, %v3469_v50  ;;  %3034 = vrot.lane.b32.xlu0 %v10723_v59, %s8451_s14  ;;  %v4060_v19 = vld [vmem:[#allocation3 + $0x1d0] sm:$0xff] }
 0x326   : >> { %7764 = vmatprep.mubr.msk.bf16.mxu0 %vm388_vm0, %v4142_v27  ;;  %3228 = vrot.lane.b32.xlu1 %v10786_v32, %s8452_s15  ;;  %v3585_v32 = vld [vmem:[#allocation2 + $0x1a0] sm:$0xff] }
 0x327   : >> { %v3207_v20 = vpop.permute.xlu0 %3206 }
 0x328   : >> { %v2829_v6 = vpop.permute.xlu1 %2828  ;;  %3284 = vst.msk [vmem:[#allocation3 + $0x1b0] sm:$0xff] %vm1188_vm5, %v3207_v20  ;;  %v4059_v18 = vld [vmem:[#allocation3 + $0x1c8] sm:$0xff] }
 0x329   : >> { %2903 = vst.msk [vmem:[#allocation3 + $0x1f8] sm:$0xff] %vm802_vm3, %v2829_v6  ;;  %3866 = vrot.lane.b32.xlu0 %v3774_v17, %s8452_s15 }
 0x32a   : >> { %3488 = vrot.lane.b32.xlu1 %v3967_v2, %s8450_s28 }
 0x32b   : >> { %v3467_v63 = vpop.permute.xlu0 %3466  ;;  %v4057_v3 = vld [vmem:[#allocation3 + $0x1b8] sm:$0xff] }
 0x32c   : >> { %v3661_v4 = vpop.permute.xlu1 %3660  ;;  %3542 = vst.msk [vmem:[#allocation3 + $0x1e8] sm:$0xff] %vm802_vm3, %v3467_v63  ;;  %v4126_v59 = vpack.c.bf16 %v4060_v19, %v4057_v3 }
 0x32d   : >> { %3735 = vst.msk [vmem:[#allocation3 + $0x200] sm:$0xff] %vm995_vm4, %v3661_v4  ;;  %3226 = vrot.lane.b32.xlu0 %v10772_v52, %s8452_s15 }
 0x32e   : >> { %2848 = vrot.lane.b32.xlu1 %v10788_v61, %s8450_s28  ;;  %4412 = vmatprep.mubr.bf16.mxu1 %v4126_v59  ;;  %v4094_v61 = vld [vmem:[#allocation3 + $0x2e0] sm:$0xff] }
 0x32f   : >> { %v2827_v55 = vpop.permute.xlu0 %2826  ;;  %v4056_v1 = vld [vmem:[#allocation3 + $0x1b0] sm:$0xff]  ;;  %v4145_v11 = vpack.c.bf16 %v4097_v23, %v4094_v61 }
 0x330   : >> { %v3021_v26 = vpop.permute.xlu1 %3020  ;;  %2902 = vst.msk [vmem:[#allocation3 + $0x1e0] sm:$0xff] %vm802_vm3, %v2827_v55  ;;  %v4125_v22 = vpack.c.bf16 %v4059_v18, %v4056_v1 }
 0x331   : >> { %3095 = vst.msk [vmem:[#allocation3 + $0x1f8] sm:$0xff] %vm995_vm4, %v3021_v26  ;;  %3486 = vrot.lane.b32.xlu0 %v3966_v60, %s8450_s28  ;;  %7765 = vmatmul.mubr.msk.bf16.gmra.mxu0 %vm388_vm0, %v4145_v11 }
 0x332   : >> { %3680 = vrot.lane.b32.xlu1 %v3585_v32, %s8451_s14  ;;  %4413 = vmatmul.mubr.bf16.gmra.mxu1 %v4125_v22 }
 0x333   : >> { %v3659_v52 = vpop.permute.xlu0 %3658 }
 0x334   : >> { %v3853_v28 = vpop.permute.xlu1 %3852  ;;  %3734 = vst.msk [vmem:[#allocation3 + $0x1e8] sm:$0xff] %vm995_vm4, %v3659_v52 }
 0x335   : >> { %3927 = vst.msk [vmem:[#allocation3 + $0x200] sm:$0xff] %vm1188_vm5, %v3853_v28  ;;  %2846 = vrot.lane.b32.xlu0 %v10774_v25, %s8450_s28  ;;  %s10966_s28 = scalar_lea.vmem %s12795_s5, %s7300_s23  ;;  %s4770_s23 = scalar_lea.vmem %s12798_s8, %s8447_s27 }
 0x336   : >> { %3040 = vrot.lane.b32.xlu1 %v10796_v15, %s8451_s14  ;;  %v3776_v15 = vld [vmem:[#allocation2 + $0x199] sm:$0xff]  ;;  %s13062_s27 = smov %s471_s24 }
 0x337   : >> { %v3019_v62 = vpop.permute.xlu0 %3018  ;;  %s8455_s27 = smov (%p11484_p4), 32  }
 0x338   : >> { %v3213_v17 = vpop.permute.xlu1 %3212  ;;  %3094 = vst.msk [vmem:[#allocation3 + $0x1e0] sm:$0xff] %vm995_vm4, %v3019_v62 }
 0x339   : >> { %3287 = vst.msk [vmem:[#allocation3 + $0x1f8] sm:$0xff] %vm1188_vm5, %v3213_v17  ;;  %3678 = vrot.lane.b32.xlu0 %v3584_v21, %s8451_s14 }
 0x33a   : >> { %3872 = vrot.lane.b32.xlu1 %v3777_v51, %s8452_s15 }
 0x33b   : >> { %v3851_v49 = vpop.permute.xlu0 %3850 }
 0x33c   : >> { %v3473_v25 = vpop.permute.xlu1 %3472  ;;  %3926 = vst.msk [vmem:[#allocation3 + $0x1e8] sm:$0xff] %vm1188_vm5, %v3851_v49  ;;  %v4066_v60 = vld [vmem:[#allocation3 + $0x200] sm:$0xff] }
 0x33d   : >> { %3545 = vst.msk [vmem:[#allocation3 + $0x230] sm:$0xff] %vm802_vm3, %v3473_v25  ;;  %3038 = vrot.lane.b32.xlu0 %v10790_v7, %s8451_s14  ;;  %s8457_s14 = smov (%p11484_p4), 96  }
 0x33e   : >> { %3232 = vrot.lane.b32.xlu1 %v10846_v8, %s8452_s15 }
 0x33f   : >> { %v3211_v58 = vpop.permute.xlu0 %3210 }
 0x340   : >> { %v2833_v13 = vpop.permute.xlu1 %2832  ;;  %3286 = vst.msk [vmem:[#allocation3 + $0x1e0] sm:$0xff] %vm1188_vm5, %v3211_v58  ;;  %v4065_v14 = vld [vmem:[#allocation3 + $0x1f8] sm:$0xff] }
 0x341   : >> { %2905 = vst.msk [vmem:[#allocation3 + $0x228] sm:$0xff] %vm802_vm3, %v2833_v13  ;;  %3870 = vrot.lane.b32.xlu0 %v3776_v15, %s8452_s15 }
 0x343   : >> { %v3471_v9 = vpop.permute.xlu0 %3470  ;;  %v4063_v12 = vld [vmem:[#allocation3 + $0x1e8] sm:$0xff] }
 0x344   : >> { %v3665_v29 = vpop.permute.xlu1 %3664  ;;  %3544 = vst.msk [vmem:[#allocation3 + $0x218] sm:$0xff] %vm802_vm3, %v3471_v9  ;;  %v4129_v7 = vpack.c.bf16 %v4066_v60, %v4063_v12 }
 0x345   : >> { %3737 = vst.msk [vmem:[#allocation3 + $0x230] sm:$0xff] %vm995_vm4, %v3665_v29  ;;  %3230 = vrot.lane.b32.xlu0 %v10865_v30, %s8452_s15 }
 0x346   : >> { %4420 = vmatprep.mubr.bf16.mxu1 %v4129_v7 }
 0x347   : >> { %v2831_v8 = vpop.permute.xlu0 %2830  ;;  %v4062_v16 = vld [vmem:[#allocation3 + $0x1e0] sm:$0xff] }
 0x348   : >> { %v3025_v2 = vpop.permute.xlu1 %3024  ;;  %2904 = vst.msk [vmem:[#allocation3 + $0x210] sm:$0xff] %vm802_vm3, %v2831_v8  ;;  %v4128_v31 = vpack.c.bf16 %v4065_v14, %v4062_v16 }
 0x349   : >> { %3097 = vst.msk [vmem:[#allocation3 + $0x228] sm:$0xff] %vm995_vm4, %v3025_v2 }
 0x34a   : >> { %4421 = vmatmul.mubr.bf16.gmra.mxu1 %v4128_v31 }
 0x34b   : >> { %v3663_v56 = vpop.permute.xlu0 %3662 }
 0x34c   : >> { %v3857_v54 = vpop.permute.xlu1 %3856  ;;  %3736 = vst.msk [vmem:[#allocation3 + $0x218] sm:$0xff] %vm995_vm4, %v3663_v56 }
 0x34d   : >> { %3929 = vst.msk [vmem:[#allocation3 + $0x230] sm:$0xff] %vm1188_vm5, %v3857_v54 }
 0x34f   : >> { %v3023_v5 = vpop.permute.xlu0 %3022 }
 0x350   : >> { %v3217_v57 = vpop.permute.xlu1 %3216  ;;  %3096 = vst.msk [vmem:[#allocation3 + $0x210] sm:$0xff] %vm995_vm4, %v3023_v5 }
 0x351   : >> { %3289 = vst.msk [vmem:[#allocation3 + $0x228] sm:$0xff] %vm1188_vm5, %v3217_v57 }
 0x353   : >> { %v3855_v30 = vpop.permute.xlu0 %3854 }
 0x354   : >> { %v3477_v10 = vpop.permute.xlu1 %3476  ;;  %3928 = vst.msk [vmem:[#allocation3 + $0x218] sm:$0xff] %vm1188_vm5, %v3855_v30  ;;  %v4072_v63 = vld [vmem:[#allocation3 + $0x230] sm:$0xff] }
 0x355   : >> { %3547 = vst.msk [vmem:[#allocation3 + $0x260] sm:$0xff] %vm802_vm3, %v3477_v10 }
 0x357   : >> { %v3215_v27 = vpop.permute.xlu0 %3214 }
 0x358   : >> { %v2837_v53 = vpop.permute.xlu1 %2836  ;;  %3288 = vst.msk [vmem:[#allocation3 + $0x210] sm:$0xff] %vm1188_vm5, %v3215_v27  ;;  %v4071_v32 = vld [vmem:[#allocation3 + $0x228] sm:$0xff] }
 0x359   : >> { %2907 = vst.msk [vmem:[#allocation3 + $0x258] sm:$0xff] %vm802_vm3, %v2837_v53 }
 0x35b   : >> { %v3475_v50 = vpop.permute.xlu0 %3474  ;;  %v4069_v6 = vld [vmem:[#allocation3 + $0x218] sm:$0xff] }
 0x35c   : >> { %v3669_v20 = vpop.permute.xlu1 %3668  ;;  %3546 = vst.msk [vmem:[#allocation3 + $0x248] sm:$0xff] %vm802_vm3, %v3475_v50  ;;  %v4132_v4 = vpack.c.bf16 %v4072_v63, %v4069_v6 }
 0x35d   : >> { %3739 = vst.msk [vmem:[#allocation3 + $0x260] sm:$0xff] %vm995_vm4, %v3669_v20 }
 0x35e   : >> { %4428 = vmatprep.mubr.bf16.mxu1 %v4132_v4  ;;  %v12849_v4 = vmov 0.0  }
 0x35f   : >> { %v2835_v3 = vpop.permute.xlu0 %2834  ;;  %v4068_v59 = vld [vmem:[#allocation3 + $0x210] sm:$0xff]  ;;  %7768 = vmatprep.subr.bf16.mxu1 %v12849_v4 }
 0x360   : >> { %v3029_v19 = vpop.permute.xlu1 %3028  ;;  %2906 = vst.msk [vmem:[#allocation3 + $0x240] sm:$0xff] %vm802_vm3, %v2835_v3  ;;  %v4131_v55 = vpack.c.bf16 %v4071_v32, %v4068_v59 }
 0x361   : >> { %3099 = vst.msk [vmem:[#allocation3 + $0x258] sm:$0xff] %vm995_vm4, %v3029_v19 }
 0x362   : >> { %4429 = vmatmul.mubr.bf16.gmra.mxu1 %v4131_v55 }
 0x363   : >> { %v3667_v26 = vpop.permute.xlu0 %3666 }
 0x364   : >> { %v3861_v1 = vpop.permute.xlu1 %3860  ;;  %3738 = vst.msk [vmem:[#allocation3 + $0x248] sm:$0xff] %vm995_vm4, %v3667_v26 }
 0x365   : >> { %3931 = vst.msk [vmem:[#allocation3 + $0x260] sm:$0xff] %vm1188_vm5, %v3861_v1 }
 0x367   : >> { %v3027_v18 = vpop.permute.xlu0 %3026 }
 0x368   : >> { %v3221_v22 = vpop.permute.xlu1 %3220  ;;  %3098 = vst.msk [vmem:[#allocation3 + $0x240] sm:$0xff] %vm995_vm4, %v3027_v18 }
 0x369   : >> { %3291 = vst.msk [vmem:[#allocation3 + $0x258] sm:$0xff] %vm1188_vm5, %v3221_v22 }
 0x36b   : >> { %v3859_v52 = vpop.permute.xlu0 %3858 }
 0x36c   : >> { %v3481_v28 = vpop.permute.xlu1 %3480  ;;  %3930 = vst.msk [vmem:[#allocation3 + $0x248] sm:$0xff] %vm1188_vm5, %v3859_v52  ;;  %v4078_v62 = vld [vmem:[#allocation3 + $0x260] sm:$0xff]  ;;  %v8151_v52 = vld [vmem:[%s10966_s28 + $0x8] sm:$0xff]  }
 0x36d   : >> { %3549 = vst.msk [vmem:[#allocation3 + $0x290] sm:$0xff] %vm802_vm3, %v3481_v28  ;;  %7769 = vmatpush3.bf16.msra.mxu1 %v8151_v52 }
 0x36e   : >> { %7770 = vmatprep.subr.bf16.mxu1 %v12849_v4 }
 0x36f   : >> { %v3219_v61 = vpop.permute.xlu0 %3218 }
 0x370   : >> { %v2841_v23 = vpop.permute.xlu1 %2840  ;;  %3290 = vst.msk [vmem:[#allocation3 + $0x240] sm:$0xff] %vm1188_vm5, %v3219_v61  ;;  %v4077_v58 = vld [vmem:[#allocation3 + $0x258] sm:$0xff] }
 0x371   : >> { %2909 = vst.msk [vmem:[#allocation3 + $0x288] sm:$0xff] %vm802_vm3, %v2841_v23 }
 0x373   : >> { %v3479_v11 = vpop.permute.xlu0 %3478  ;;  %v4075_v51 = vld [vmem:[#allocation3 + $0x248] sm:$0xff] }
 0x374   : >> { %v3673_v21 = vpop.permute.xlu1 %3672  ;;  %3548 = vst.msk [vmem:[#allocation3 + $0x278] sm:$0xff] %vm802_vm3, %v3479_v11  ;;  %v4135_v17 = vpack.c.bf16 %v4078_v62, %v4075_v51 }
 0x375   : >> { %3741 = vst.msk [vmem:[#allocation3 + $0x290] sm:$0xff] %vm995_vm4, %v3673_v21 }
 0x376   : >> { %4436 = vmatprep.mubr.bf16.mxu1 %v4135_v17 }
 0x377   : >> { %v2839_v49 = vpop.permute.xlu0 %2838  ;;  %v4074_v15 = vld [vmem:[#allocation3 + $0x240] sm:$0xff] }
 0x378   : >> { %v3033_v25 = vpop.permute.xlu1 %3032  ;;  %2908 = vst.msk [vmem:[#allocation3 + $0x270] sm:$0xff] %vm802_vm3, %v2839_v49  ;;  %v4134_v13 = vpack.c.bf16 %v4077_v58, %v4074_v15 }
 0x379   : >> { %3101 = vst.msk [vmem:[#allocation3 + $0x288] sm:$0xff] %vm995_vm4, %v3033_v25  ;;  %v10978_v25 = vpop.f32.mrf.mxu1 }
 0x37a   : >> { %4437 = vmatmul.mubr.bf16.gmra.mxu1 %v4134_v13 }
 0x37b   : >> { %v3671_v9 = vpop.permute.xlu0 %3670  ;;  %v10981_v58 = vpop.f32.mrf.mxu1 }
 0x37c   : >> { %v3865_v29 = vpop.permute.xlu1 %3864  ;;  %3740 = vst.msk [vmem:[#allocation3 + $0x278] sm:$0xff] %vm995_vm4, %v3671_v9  ;;  %v7452_v44 = vadd.f32 %v10981_v58, %v10978_v25 }
 0x37d   : >> { %3933 = vst.msk [vmem:[#allocation3 + $0x290] sm:$0xff] %vm1188_vm5, %v3865_v29  ;;  %v10983_v9 = vpop.f32.mrf.mxu1 }
 0x37e   : >> { %v4346_v0 = vadd.f32 %v7452_v44, %v11094_v46 }
 0x37f   : >> { %v3031_v12 = vpop.permute.xlu0 %3030 }
 0x380   : >> { %v3225_v60 = vpop.permute.xlu1 %3224  ;;  %3100 = vst.msk [vmem:[#allocation3 + $0x270] sm:$0xff] %vm995_vm4, %v3031_v12 }
 0x381   : >> { %3293 = vst.msk [vmem:[#allocation3 + $0x288] sm:$0xff] %vm1188_vm5, %v3225_v60  ;;  %v10986_v60 = vpop.f32.mrf.mxu1 }
 0x382   : >> { %v7455_v47 = vadd.f32 %v10986_v60, %v10983_v9 }
 0x383   : >> { %v3863_v7 = vpop.permute.xlu0 %3862 }
 0x384   : >> { %v3485_v8 = vpop.permute.xlu1 %3484  ;;  %3932 = vst.msk [vmem:[#allocation3 + $0x278] sm:$0xff] %vm1188_vm5, %v3863_v7  ;;  %v4084_v54 = vld [vmem:[#allocation3 + $0x290] sm:$0xff]  ;;  %v4351_v25 = vadd.f32 %v7455_v47, %v11094_v46 }
 0x385   : >> { %3551 = vst.msk [vmem:[#allocation3 + $0x2c0] sm:$0xff] %vm802_vm3, %v3485_v8 }
 0x387   : >> { %v3223_v2 = vpop.permute.xlu0 %3222 }
 0x388   : >> { %v2845_v16 = vpop.permute.xlu1 %2844  ;;  %3292 = vst.msk [vmem:[#allocation3 + $0x270] sm:$0xff] %vm1188_vm5, %v3223_v2  ;;  %v4083_v27 = vld [vmem:[#allocation3 + $0x288] sm:$0xff] }
 0x389   : >> { %2911 = vst.msk [vmem:[#allocation3 + $0x2b8] sm:$0xff] %vm802_vm3, %v2845_v16  ;;  %v10988_v16 = vpop.f32.mrf.mxu1 }
 0x38b   : >> { %v3483_v14 = vpop.permute.xlu0 %3482  ;;  %v4081_v56 = vld [vmem:[#allocation3 + $0x278] sm:$0xff] }
 0x38c   : >> { %v3677_v31 = vpop.permute.xlu1 %3676  ;;  %3550 = vst.msk [vmem:[#allocation3 + $0x2a8] sm:$0xff] %vm802_vm3, %v3483_v14  ;;  %v4138_v5 = vpack.c.bf16 %v4084_v54, %v4081_v56 }
 0x38d   : >> { %3743 = vst.msk [vmem:[#allocation3 + $0x2c0] sm:$0xff] %vm995_vm4, %v3677_v31  ;;  %v10990_v31 = vpop.f32.mrf.mxu1 }
 0x38e   : >> { %4444 = vmatprep.mubr.bf16.mxu1 %v4138_v5 }
 0x38f   : >> { %v2843_v57 = vpop.permute.xlu0 %2842  ;;  %v4080_v10 = vld [vmem:[#allocation3 + $0x270] sm:$0xff]  ;;  %v10992_v56 = vpop.f32.mrf.mxu1 }
 0x390   : >> { %v3037_v30 = vpop.permute.xlu1 %3036  ;;  %2910 = vst.msk [vmem:[#allocation3 + $0x2a0] sm:$0xff] %vm802_vm3, %v2843_v57  ;;  %v4137_v53 = vpack.c.bf16 %v4083_v27, %v4080_v10 }
 0x391   : >> { %3103 = vst.msk [vmem:[#allocation3 + $0x2b8] sm:$0xff] %vm995_vm4, %v3037_v30  ;;  %v10994_v54 = vpop.f32.mrf.mxu1 }
 0x392   : >> { %4445 = vmatmul.mubr.bf16.gmra.mxu1 %v4137_v53  ;;  %v8152_v53 = vld [vmem:[%s10966_s28] sm:$0xff]   ;;  %v7461_v58 = vadd.f32 %v10994_v54, %v10992_v56 }
 0x393   : >> { %v3675_v50 = vpop.permute.xlu0 %3674  ;;  %v10996_v5 = vpop.f32.mrf.mxu1  ;;  %7771 = vmatpush3.bf16.msra.mxu1 %v8152_v53 }
 0x394   : >> { %v3869_v20 = vpop.permute.xlu1 %3868  ;;  %3742 = vst.msk [vmem:[#allocation3 + $0x2a8] sm:$0xff] %vm995_vm4, %v3675_v50  ;;  %7776 = vmatprep.subr.bf16.mxu1 %v12849_v4  ;;  %v4359_v47 = vadd.f32 %v7461_v58, %v11094_v46 }
 0x395   : >> { %3935 = vst.msk [vmem:[#allocation3 + $0x2c0] sm:$0xff] %vm1188_vm5, %v3869_v20  ;;  %v10998_v57 = vpop.f32.mrf.mxu1 }
 0x397   : >> { %v3035_v6 = vpop.permute.xlu0 %3034  ;;  %v11000_v30 = vpop.f32.mrf.mxu1 }
 0x398   : >> { %v3229_v63 = vpop.permute.xlu1 %3228  ;;  %3102 = vst.msk [vmem:[#allocation3 + $0x2a0] sm:$0xff] %vm995_vm4, %v3035_v6 }
 0x399   : >> { %3295 = vst.msk [vmem:[#allocation3 + $0x2b8] sm:$0xff] %vm1188_vm5, %v3229_v63  ;;  %v11002_v10 = vpop.f32.mrf.mxu1 }
 0x39a   : >> { %v7467_v56 = vadd.f32 %v11002_v10, %v11000_v30 }
 0x39b   : >> { %v3867_v3 = vpop.permute.xlu0 %3866  ;;  %v11004_v27 = vpop.f32.mrf.mxu1 }
 0x39c   : >> { %v3489_v19 = vpop.permute.xlu1 %3488  ;;  %3934 = vst.msk [vmem:[#allocation3 + $0x2a8] sm:$0xff] %vm1188_vm5, %v3867_v3  ;;  %v4090_v18 = vld [vmem:[#allocation3 + $0x2c0] sm:$0xff] }
 0x39d   : >> { %3553 = vst.msk [vmem:[#allocation3 + $0x2f0] sm:$0xff] %vm802_vm3, %v3489_v19  ;;  %v11007_v50 = vpop.f32.mrf.mxu1 }
 0x39f   : >> { %v3227_v59 = vpop.permute.xlu0 %3226  ;;  %v11010_v20 = vpop.f32.mrf.mxu1 }
 0x3a0   : >> { %v2849_v32 = vpop.permute.xlu1 %2848  ;;  %3294 = vst.msk [vmem:[#allocation3 + $0x2a0] sm:$0xff] %vm1188_vm5, %v3227_v59  ;;  %v4089_v11 = vld [vmem:[#allocation3 + $0x2b8] sm:$0xff] }
 0x3a1   : >> { %2913 = vst.msk [vmem:[#allocation3 + $0x2e8] sm:$0xff] %vm802_vm3, %v2849_v32  ;;  %v11012_v6 = vpop.f32.mrf.mxu1 }
 0x3a3   : >> { %v3487_v55 = vpop.permute.xlu0 %3486  ;;  %v4087_v1 = vld [vmem:[#allocation3 + $0x2a8] sm:$0xff]  ;;  %v11014_v63 = vpop.f32.mrf.mxu1 }
 0x3a4   : >> { %v3681_v26 = vpop.permute.xlu1 %3680  ;;  %3552 = vst.msk [vmem:[#allocation3 + $0x2d8] sm:$0xff] %vm802_vm3, %v3487_v55  ;;  %v4141_v22 = vpack.c.bf16 %v4090_v18, %v4087_v1 }
 0x3a5   : >> { %3745 = vst.msk [vmem:[#allocation3 + $0x2f0] sm:$0xff] %vm995_vm4, %v3681_v26  ;;  %v11016_v3 = vpop.f32.mrf.mxu1 }
 0x3a6   : >> { %4452 = vmatprep.mubr.bf16.mxu1 %v4141_v22 }
 0x3a7   : >> { %v2847_v28 = vpop.permute.xlu0 %2846  ;;  %v4086_v23 = vld [vmem:[#allocation3 + $0x2a0] sm:$0xff]  ;;  %v11018_v19 = vpop.f32.mrf.mxu1 }
 0x3a8   : >> { %v3041_v61 = vpop.permute.xlu1 %3040  ;;  %2912 = vst.msk [vmem:[#allocation3 + $0x2d0] sm:$0xff] %vm802_vm3, %v2847_v28  ;;  %v4140_v21 = vpack.c.bf16 %v4089_v11, %v4086_v23  ;;  %v7738_v28 = vpop.f32.mrf.mxu0 }
 0x3a9   : >> { %3105 = vst.msk [vmem:[#allocation3 + $0x2e8] sm:$0xff] %vm995_vm4, %v3041_v61  ;;  %v11020_v59 = vpop.f32.mrf.mxu1 }
 0x3aa   : >> { %4453 = vmatmul.mubr.bf16.gmra.mxu1 %v4140_v21  ;;  %v4503_v23 = vpop.f32.mrf.mxu0 }
 0x3ab   : >> { %v3679_v51 = vpop.permute.xlu0 %3678  ;;  %v11022_v32 = vpop.f32.mrf.mxu1 }
 0x3ac   : >> { %v3873_v62 = vpop.permute.xlu1 %3872  ;;  %3744 = vst.msk [vmem:[#allocation3 + $0x2d8] sm:$0xff] %vm995_vm4, %v3679_v51  ;;  %v7739_v21 = vpop.f32.mrf.mxu0 }
 0x3ad   : >> { %3937 = vst.msk [vmem:[#allocation3 + $0x2f0] sm:$0xff] %vm1188_vm5, %v3873_v62  ;;  %v11024_v55 = vpop.f32.mrf.mxu1 }
 0x3af   : >> { %v3039_v17 = vpop.permute.xlu0 %3038  ;;  %v11026_v26 = vpop.f32.mrf.mxu1 }
 0x3b0   : >> { %v3233_v49 = vpop.permute.xlu1 %3232  ;;  %3104 = vst.msk [vmem:[#allocation3 + $0x2d0] sm:$0xff] %vm995_vm4, %v3039_v17  ;;  %v4506_v17 = vpop.f32.mrf.mxu0 }
 0x3b1   : >> { %3297 = vst.msk [vmem:[#allocation3 + $0x2e8] sm:$0xff] %vm1188_vm5, %v3233_v49  ;;  %v11028_v1 = vpop.f32.mrf.mxu1  ;;  %v11114_v60 = vadd.f32 %v4506_v17, %v4346_v0 }
 0x3b3   : >> { %v3871_v15 = vpop.permute.xlu0 %3870  ;;  %v11030_v18 = vpop.f32.mrf.mxu1  ;;  %v4631_v0 = vsel %vm388_vm0, %v11114_v60, 0.0 }
 0x3b4   : >> { %3936 = vst.msk [vmem:[#allocation3 + $0x2d8] sm:$0xff] %vm1188_vm5, %v3871_v15  ;;  %v4096_v29 = vld [vmem:[#allocation3 + $0x2f0] sm:$0xff]  ;;  %v11048_v15 = vpop.f32.mrf.mxu0 }
 0x3b5   : >> { %v11032_v22 = vpop.f32.mrf.mxu1 }
 0x3b7   : >> { %v3231_v13 = vpop.permute.xlu0 %3230 }
 0x3b8   : >> { %3296 = vst.msk [vmem:[#allocation3 + $0x2d0] sm:$0xff] %vm1188_vm5, %v3231_v13  ;;  %v4095_v2 = vld [vmem:[#allocation3 + $0x2e8] sm:$0xff] }
 0x3bb   : >> { %v4093_v12 = vld [vmem:[#allocation3 + $0x2d8] sm:$0xff] }
 0x3bc   : >> { %v4144_v7 = vpack.c.bf16 %v4096_v29, %v4093_v12  ;;  %v4519_v29 = vpop.f32.mrf.mxu0 }
 0x3bd   : >> { %v11143_v10 = vadd.f32 %v4519_v29, %v4359_v47 }
 0x3be   : >> { %4460 = vmatprep.mubr.bf16.mxu1 %v4144_v7  ;;  %v11054_v7 = vpop.f32.mrf.mxu0 }
 0x3bf   : >> { %v4092_v8 = vld [vmem:[#allocation3 + $0x2d0] sm:$0xff]  ;;  %v4637_v47 = vsel %vm388_vm0, %v11143_v10, 0.0 }
 0x3c0   : >> { %v4143_v14 = vpack.c.bf16 %v4095_v2, %v4092_v8  ;;  %v4522_v2 = vpop.f32.mrf.mxu0 }
 0x3c2   : >> { %4461 = vmatmul.mubr.bf16.gmra.mxu1 %v4143_v14  ;;  %v11034_v52 = vpop.f32.mrf.mxu1  ;;  %v11060_v53 = vpop.f32.mrf.mxu0 }
 0x3c3   : >> { %7772 = vmatprep.mubr.msk.bf16.mxu1 %vm8454_vm6, %v12849_v4 }
 0x3c4   : >> { %v11036_v61 = vpop.f32.mrf.mxu1  ;;  %v11064_v33 = vpop.f32.mrf.mxu0 }
 0x3c6   : >> { %v11038_v11 = vpop.f32.mrf.mxu1  ;;  %v11070_v36 = vpop.f32.mrf.mxu0 }
 0x3c8   : >> { %v11040_v51 = vpop.f32.mrf.mxu1  ;;  %v11074_v38 = vpop.f32.mrf.mxu0 }
 0x3ca   : >> { %v11076_v39 = vpop.f32.mrf.mxu0 }
 0x3cc   : >> { %v11080_v41 = vpop.f32.mrf.mxu0 }
 0x3ce   : >> { %v11092_v45 = vpop.f32.mrf.mxu0 }
 0x3da   : >> { %v11042_v62 = vpop.f32.mrf.mxu1 }
 0x3dc   : >> { %v11046_v49 = vpop.f32.mrf.mxu1 }
 0x3de   : >> { %v11050_v13 = vpop.f32.mrf.mxu1 }
 0x3e0   : >> { %v11052_v12 = vpop.f32.mrf.mxu1 }
 0x3f2   : >> { %v11056_v8 = vpop.f32.mrf.mxu1 }
 0x3f4   : >> { %v11058_v14 = vpop.f32.mrf.mxu1 }
 0x3f6   : >> { %v11062_v4 = vpop.f32.mrf.mxu1 }
 0x3f8   : >> { %v11066_v34 = vpop.f32.mrf.mxu1 }
 0x40a   : >> { %v11068_v35 = vpop.f32.mrf.mxu1 }
 0x40c   : >> { %v11072_v37 = vpop.f32.mrf.mxu1 }
 0x40d   : >> { %12964 = vst [vmem:[#allocation68_spill] sm:$0xff] %v11072_v37 }
 0x40e   : >> { %v11078_v40 = vpop.f32.mrf.mxu1 }
 0x40f   : >> { %12965 = vst [vmem:[#allocation69_spill] sm:$0xff] %v11078_v40  ;;  %v11105_v40 = vpop.f32.mrf.mxu0 }
 0x410   : >> { %v11082_v42 = vpop.f32.mrf.mxu1 }
 0x411   : >> { %12966 = vst [vmem:[#allocation70_spill] sm:$0xff] %v11082_v42  ;;  %v7458_v42 = vadd.f32 %v10990_v31, %v10988_v16  ;;  %v11110_v37 = vpop.f32.mrf.mxu0  ;;  %v7464_v16 = vadd.f32 %v10998_v57, %v10996_v5 }
 0x413   : >> { %v4354_v44 = vadd.f32 %v7458_v42, %v11094_v46  ;;  %v11126_v54 = vpop.f32.mrf.mxu0  ;;  %v4362_v5 = vadd.f32 %v7464_v16, %v11094_v46 }
 0x415   : >> { %v11132_v42 = vadd.f32 %v7739_v21, %v4354_v44  ;;  %v7473_v21 = vadd.f32 %v11012_v6, %v11010_v20  ;;  %v7476_v44 = vadd.f32 %v11016_v3, %v11014_v63 }
 0x417   : >> { %v4375_v6 = vadd.f32 %v7473_v21, %v11094_v46 }
 0x422   : >> { %v11088_v43 = vpop.f32.mrf.mxu1 }
 0x423   : >> { %12967 = vst [vmem:[#allocation71_spill] sm:$0xff] %v11088_v43  ;;  %v4343_v43 = vadd.f32 %v10857_v24, %v11094_v46  ;;  %v11121_v24 = vadd.f32 %v7738_v28, %v4351_v25  ;;  %v11148_v25 = vpop.f32.mrf.mxu0 }
 0x424   : >> { %v11098_v48 = vpop.f32.mrf.mxu1 }
 0x425   : >> { %12968 = vst [vmem:[#allocation72_spill] sm:$0xff] %v11098_v48  ;;  %v11119_v31 = vadd.f32 %v4503_v23, %v4343_v43  ;;  %v7470_v43 = vadd.f32 %v11007_v50, %v11004_v27  ;;  %v4633_v30 = vsel %vm388_vm0, %v11121_v24, 0.0  ;;  %v4367_v23 = vadd.f32 %v7467_v56, %v11094_v46 }
 0x426   : >> { %v11112_v9 = vpop.f32.mrf.mxu1  ;;  %v4635_v27 = vsel %vm388_vm0, %v11132_v42, 0.0  ;;  %v11152_v50 = vadd.f32 %v4522_v2, %v4362_v5  ;;  %v7479_v2 = vadd.f32 %v11020_v59, %v11018_v19  ;;  %v4378_v5 = vadd.f32 %v7476_v44, %v11094_v46 }
 0x427   : >> { %v4630_v57 = vsel %vm388_vm0, %v11119_v31, 0.0  ;;  %v4370_v58 = vadd.f32 %v7470_v43, %v11094_v46  ;;  %v11162_v20 = vadd.f32 %v11048_v15, %v4367_v23  ;;  %v7482_v15 = vadd.f32 %v11024_v55, %v11022_v32 }
 0x428   : >> { %v11128_v48 = vpop.f32.mrf.mxu1  ;;  %v4632_v17 = vadd.f32 %v4631_v0, %v4630_v57  ;;  %v11167_v0 = vpop.f32.mrf.mxu0  ;;  %v4639_v63 = vsel %vm388_vm0, %v11152_v50, 0.0  ;;  %v11184_v59 = vadd.f32 %v11064_v33, %v4375_v6  ;;  %v4383_v23 = vadd.f32 %v7479_v2, %v11094_v46 }
 0x429   : >> { %v11172_v3 = vadd.f32 %v11054_v7, %v4370_v58  ;;  %v4641_v19 = vsel %vm388_vm0, %v11162_v20, 0.0  ;;  %v7485_v7 = vadd.f32 %v11028_v1, %v11026_v26  ;;  %v11192_v55 = vadd.f32 %v11074_v38, %v4378_v5 }
 0x42a   : >> { %v4634_v29 = vadd.f32 %v4633_v30, %v4632_v17  ;;  %v11177_v57 = vpop.f32.mrf.mxu0  ;;  %v4386_v17 = vadd.f32 %v7482_v15, %v11094_v46  ;;  %v4645_v26 = vsel %vm388_vm0, %v11184_v59, 0.0  ;;  %v11204_v1 = vadd.f32 %v11060_v53, %v4383_v23 }
 0x42b   : >> { %v4643_v32 = vsel %vm388_vm0, %v11172_v3, 0.0  ;;  %v7491_v38 = vadd.f32 %v11036_v61, %v11034_v52  ;;  %v7494_v53 = vadd.f32 %v11040_v51, %v11038_v11  ;;  %v7500_v23 = vadd.f32 %v11052_v12, %v11050_v13 }
 0x42c   : >> { %v4636_v56 = vadd.f32 %v4635_v27, %v4634_v29  ;;  %v7488_v27 = vadd.f32 %v11032_v22, %v11030_v18  ;;  %v11197_v33 = vpop.f32.mrf.mxu0  ;;  %v4391_v29 = vadd.f32 %v7485_v7, %v11094_v46  ;;  %v4647_v18 = vsel %vm388_vm0, %v11192_v55, 0.0 }
 0x42d   : >> { %v11214_v22 = vadd.f32 %v11070_v36, %v4386_v17  ;;  %v4649_v52 = vsel %vm388_vm0, %v11204_v1, 0.0  ;;  %v4399_v5 = vadd.f32 %v7491_v38, %v11094_v46  ;;  %v7497_v36 = vadd.f32 %v11046_v49, %v11042_v62  ;;  %v12969_v38 = vld [vmem:[#allocation68_spill] sm:$0xff] }
 0x42e   : >> { %v4638_v43 = vadd.f32 %v4637_v47, %v4636_v56  ;;  %v4394_v2 = vadd.f32 %v7488_v27, %v11094_v46  ;;  %v11224_v61 = vadd.f32 %v11080_v41, %v4391_v29  ;;  %v4402_v51 = vadd.f32 %v7494_v53, %v11094_v46 }
 0x42f   : >> { %v11240_v62 = vadd.f32 %v11076_v39, %v4399_v5  ;;  %v4407_v49 = vadd.f32 %v7497_v36, %v11094_v46  ;;  %v7506_v39 = vadd.f32 %v11066_v34, %v11062_v4 }
 0x430   : >> { %v4640_v21 = vadd.f32 %v4639_v63, %v4638_v43  ;;  %v11219_v63 = vpop.f32.mrf.mxu0  ;;  %v11232_v11 = vadd.f32 %v11105_v40, %v4394_v2  ;;  %v11250_v12 = vadd.f32 %v11092_v45, %v4402_v51  ;;  %v12972_v51 = vld [vmem:[#allocation71_spill] sm:$0xff] }
 0x431   : >> { %v4657_v29 = vsel %vm388_vm0, %v11240_v62, 0.0  ;;  %v4418_v4 = vadd.f32 %v7506_v39, %v11094_v46 }
 0x432   : >> { %v4642_v58 = vadd.f32 %v4641_v19, %v4640_v21  ;;  %v4651_v19 = vsel %vm388_vm0, %v11214_v22, 0.0  ;;  %v4586_v7 = vpop.f32.mrf.mxu0  ;;  %v4653_v21 = vsel %vm388_vm0, %v11224_v61, 0.0  ;;  %v4655_v13 = vsel %vm388_vm0, %v11232_v11, 0.0 }
 0x433   : >> { %v4659_v53 = vsel %vm388_vm0, %v11250_v12, 0.0 }
 0x434   : >> { %v4644_v47 = vadd.f32 %v4643_v32, %v4642_v58  ;;  %v7503_v32 = vadd.f32 %v11058_v14, %v11056_v8  ;;  %v11245_v17 = vpop.f32.mrf.mxu0  ;;  %v4410_v58 = vadd.f32 %v7500_v23, %v11094_v46  ;;  %v11258_v8 = vadd.f32 %v11126_v54, %v4407_v49  ;;  %v12973_v23 = vld [vmem:[#allocation72_spill] sm:$0xff] }
 0x436   : >> { %v4646_v56 = vadd.f32 %v4645_v26, %v4644_v47  ;;  %v4415_v14 = vadd.f32 %v7503_v32, %v11094_v46  ;;  %v7509_v47 = vadd.f32 %v12969_v38, %v11068_v35  ;;  %v4599_v45 = vpop.f32.mrf.mxu0  ;;  %v11266_v34 = vadd.f32 %v11167_v0, %v4410_v58 }
 0x437   : >> { %v11282_v32 = vadd.f32 %v11148_v25, %v4418_v4 }
 0x438   : >> { %v4648_v15 = vadd.f32 %v4647_v18, %v4646_v56  ;;  %v12970_v56 = vld [vmem:[#allocation69_spill] sm:$0xff]  ;;  %v11274_v35 = vadd.f32 %v11110_v37, %v4415_v14  ;;  %v4663_v49 = vsel %vm388_vm0, %v11266_v34, 0.0 }
 0x43a   : >> { %v11139_v28 = vpop.f32.mrf.mxu1  ;;  %v4650_v41 = vadd.f32 %v4649_v52, %v4648_v15  ;;  %v12971_v52 = vld [vmem:[#allocation70_spill] sm:$0xff]  ;;  %v4661_v15 = vsel %vm388_vm0, %v11258_v8, 0.0  ;;  %v4665_v39 = vsel %vm388_vm0, %v11274_v35, 0.0 }
 0x43b   : >> { %v7512_v54 = vadd.f32 %v12971_v52, %v12970_v56 }
 0x43c   : >> { %v11157_v16 = vpop.f32.mrf.mxu1  ;;  %v4652_v40 = vadd.f32 %v4651_v19, %v4650_v41  ;;  %v4423_v19 = vadd.f32 %v7509_v47, %v11094_v46  ;;  %v7515_v41 = vadd.f32 %v12973_v23, %v12972_v51  ;;  %v4667_v47 = vsel %vm388_vm0, %v11282_v32, 0.0 }
 0x43d   : >> { %v7521_v14 = vadd.f32 %v11157_v16, %v11139_v28 }
 0x43e   : >> { %v11179_v30 = vpop.f32.mrf.mxu1  ;;  %v4654_v26 = vadd.f32 %v4653_v21, %v4652_v40  ;;  %v7763_v21 = vpop.f32.mrf.mxu0  ;;  %v4426_v40 = vadd.f32 %v7512_v54, %v11094_v46 }
 0x43f   : >> { %v4439_v16 = vadd.f32 %v7521_v14, %v11094_v46 }
 0x440   : >> { %v11199_v44 = vpop.f32.mrf.mxu1  ;;  %v4656_v18 = vadd.f32 %v4655_v13, %v4654_v26  ;;  %v7518_v13 = vadd.f32 %v11128_v48, %v11112_v9  ;;  %v11290_v26 = vadd.f32 %v11197_v33, %v4423_v19  ;;  %v4602_v25 = vpop.f32.mrf.mxu0 }
 0x441   : >> { %v7524_v9 = vadd.f32 %v11199_v44, %v11179_v30  ;;  %v11317_v23 = vadd.f32 %v4599_v45, %v4439_v16 }
 0x442   : >> { %v4658_v5 = vadd.f32 %v4657_v29, %v4656_v18  ;;  %v4431_v29 = vadd.f32 %v7515_v41, %v11094_v46  ;;  %v11297_v18 = vadd.f32 %v4586_v7, %v4426_v40  ;;  %v4434_v48 = vadd.f32 %v7518_v13, %v11094_v46  ;;  %v7766_v4 = vpop.f32.mrf.mxu0 }
 0x443   : >> { %v4669_v56 = vsel %vm388_vm0, %v11290_v26, 0.0  ;;  %v4442_v30 = vadd.f32 %v7524_v9, %v11094_v46  ;;  %v4677_v13 = vsel %vm388_vm0, %v11317_v23, 0.0 }
 0x444   : >> { %v4660_v0 = vadd.f32 %v4659_v53, %v4658_v5  ;;  %v11305_v28 = vadd.f32 %v11177_v57, %v4431_v29  ;;  %v4671_v54 = vsel %vm388_vm0, %v11297_v18, 0.0  ;;  %v11312_v5 = vadd.f32 %v11219_v63, %v4434_v48  ;;  %v4615_v51 = vpop.f32.mrf.mxu0 }
 0x445   : >> { %v11322_v63 = vadd.f32 %v4602_v25, %v4442_v30 }
 0x446   : >> { %v4662_v37 = vadd.f32 %v4661_v15, %v4660_v0  ;;  %v4673_v57 = vsel %vm388_vm0, %v11305_v28, 0.0  ;;  %v4675_v0 = vsel %vm388_vm0, %v11312_v5, 0.0  ;;  %v7767_v40 = vpop.f32.mrf.mxu0 }
 0x448   : >> { %v4664_v38 = vadd.f32 %v4663_v49, %v4662_v37  ;;  %v4618_v25 = vpop.f32.mrf.mxu0 }
 0x44a   : >> { %v4666_v53 = vadd.f32 %v4665_v39, %v4664_v38 }
 0x44c   : >> { %v4668_v7 = vadd.f32 %v4667_v47, %v4666_v53 }
 0x44e   : >> { %v4670_v15 = vadd.f32 %v4669_v56, %v4668_v7 }
 0x450   : >> { %v4672_v41 = vadd.f32 %v4671_v54, %v4670_v15 }
 0x452   : >> { %v11209_v6 = vpop.f32.mrf.mxu1 }
 0x454   : >> { %v7526_v43 = vpop.f32.mrf.mxu1 }
 0x455   : >> { %v7527_v52 = vadd.f32 %v7526_v43, %v11209_v6 }
 0x456   : >> { %v7528_v27 = vpop.f32.mrf.mxu1 }
 0x457   : >> { %v4447_v6 = vadd.f32 %v7527_v52, %v11094_v46 }
 0x458   : >> { %v7529_v2 = vpop.f32.mrf.mxu1 }
 0x459   : >> { %v7530_v44 = vadd.f32 %v7529_v2, %v7528_v27  ;;  %v4674_v2 = vadd.f32 %v4673_v57, %v4672_v41  ;;  %v11328_v45 = vadd.f32 %v11245_v17, %v4447_v6 }
 0x45b   : >> { %v4450_v49 = vadd.f32 %v7530_v44, %v11094_v46  ;;  %v4681_v47 = vsel %vm388_vm0, %v11328_v45, 0.0 }
 0x45d   : >> { %v11333_v39 = vadd.f32 %v7763_v21, %v4450_v49 }
 0x45f   : >> { %v4683_v53 = vsel %vm388_vm0, %v11333_v39, 0.0 }
 0x46a   : >> { %v7531_v36 = vpop.f32.mrf.mxu1 }
 0x46c   : >> { %v7532_v58 = vpop.f32.mrf.mxu1 }
 0x46d   : >> { %v7533_v43 = vadd.f32 %v7532_v58, %v7531_v36  ;;  %v4676_v36 = vadd.f32 %v4675_v0, %v4674_v2  ;;  %v4679_v58 = vsel %vm388_vm0, %v11322_v63, 0.0 }
 0x46e   : >> { %v7534_v33 = vpop.f32.mrf.mxu1 }
 0x46f   : >> { %v4455_v37 = vadd.f32 %v7533_v43, %v11094_v46  ;;  %v4678_v14 = vadd.f32 %v4677_v13, %v4676_v36 }
 0x470   : >> { %v7535_v19 = vpop.f32.mrf.mxu1 }
 0x471   : >> { %v7536_v27 = vadd.f32 %v7535_v19, %v7534_v33  ;;  %v11338_v48 = vadd.f32 %v4615_v51, %v4455_v37  ;;  %v4680_v17 = vadd.f32 %v4679_v58, %v4678_v14  ;;  %v4769_v58 = vld [vmem:[%s4768_s16] sm:$0xf] }
 0x472   : >> { %v4778_v14 = vsel %vm4776_vm7, %v4769_v58, 0 }
 0x473   : >> { %v4458_v29 = vadd.f32 %v7536_v27, %v11094_v46  ;;  %v4682_v21 = vadd.f32 %v4681_v47, %v4680_v17  ;;  %v4685_v52 = vsel %vm388_vm0, %v11338_v48, 0.0 }
 0x475   : >> { %v11342_v33 = vadd.f32 %v4618_v25, %v4458_v29  ;;  %v4684_v54 = vadd.f32 %v4683_v53, %v4682_v21  ;;  %v12974_v25 = vmov 0.0  }
 0x477   : >> { %v4687_v44 = vsel %vm388_vm0, %v11342_v33, 0.0  ;;  %v4686_v51 = vadd.f32 %v4685_v52, %v4684_v54  ;;  %v4771_v52 = vld [vmem:[%s4770_s23] sm:$0x1] }
 0x479   : >> { %v4688_v43 = vadd.f32 %v4687_v44, %v4686_v51 }
 0x482   : >> { %v7537_v38 = vpop.f32.mrf.mxu1 }
 0x484   : >> { %v7538_v9 = vpop.f32.mrf.mxu1 }
 0x485   : >> { %v7539_v56 = vadd.f32 %v7538_v9, %v7537_v38  ;;  %v4709_v38 = vld [vmem:[%s4708_s20] sm:$0x1] }
 0x486   : >> { %v7540_v16 = vpop.f32.mrf.mxu1 }
 0x487   : >> { %v4463_v7 = vadd.f32 %v7539_v56, %v11094_v46 }
 0x488   : >> { %v7541_v30 = vpop.f32.mrf.mxu1 }
 0x489   : >> { %v11349_v15 = vadd.f32 %v7766_v4, %v4463_v7  ;;  %v7542_v19 = vadd.f32 %v7541_v30, %v7540_v16 }
 0x48b   : >> { %v4689_v57 = vsel %vm388_vm0, %v11349_v15, 0.0  ;;  %v4466_v6 = vadd.f32 %v7542_v19, %v11094_v46 }
 0x48c   : >> { %v4690_v0 = vadd.f32 %v4689_v57, %v4688_v43 }
 0x48d   : >> { %v11354_v41 = vadd.f32 %v7767_v40, %v4466_v6 }
 0x48f   : >> { %v4691_v49 = vsel %vm388_vm0, %v11354_v41, 0.0 }
 0x490   : >> { %v4692_v27 = vadd.f32 %v4691_v49, %v4690_v0  ;;  %v4825_v0 = vlaneseq }
 0x492   : >> { %v4693_v2 = vrot.slane %v4692_v27, 4  ;;  %v4826_v49 = vshrl.u32 %v4825_v0, 7 }
 0x494   : >> { %v4694_v13 = vadd.f32 %v4693_v2, %v4692_v27  ;;  %v4827_v27 = vsub.s32 0, %v4826_v49  ;;  %v13001_v49 = vld [vmem:[#allocation54_spill] sm:$0xff] }
 0x496   : >> { %v4695_v4 = vrot.slane %v4694_v13, 2 }
 0x498   : >> { %v4696_v37 = vadd.f32 %v4695_v4, %v4694_v13 }
 0x49a   : >> { %v4697_v36 = vrot.slane %v4696_v37, 1 }
 0x49c   : >> { %v4698_v46 = vadd.f32 %v4697_v36, %v4696_v37 }
 0x49e   : >> { %v4699_v40 = vmul.f32 0.00390625, %v4698_v46 }
 0x4a0   : >> { %v4700_v29 = vpack.c.bf16 %v4699_v40, %v4699_v40 }
 0x4a2   : >> { %7773 = vmatmul.mubr.msk.bf16.vlgmr.msra.gmra.mxu1 %vm388_vm0, %v4700_v29 }
 0x4a3   : >> { %7777 = vmatpush3.bf16.msra.mxu1 %v4778_v14  ;;  %7778 = vmatprep.mubr.msk.bf16.mxu1 %vm8454_vm6, %v12974_v25 }
 0x562   : >> { %v4759_v47 = vpop.f32.mrf.mxu1 }
 0x563   : >> { %v4760_v17 = vadd.f32 %v4759_v47, %v4709_v38  ;;  %v12975_v47 = vld [vmem:[#allocation67_spill] sm:$0xff] }
 0x564   : >> { %v7774_v9 = vpop.f32.mrf.mxu1 }
 0x565   : >> { %v4765_v53 = vmax.f32 %v4760_v17, 0.0  ;;  %v12979_v17 = vld [vmem:[#allocation65_spill] sm:$0xff] }
 0x566   : >> { %v4762_v56 = vpop.f32.mrf.mxu1 }
 0x567   : >> { %v4766_v21 = vpack.c.bf16 %v4765_v53, %v4765_v53 }
 0x568   : >> { %v7775_v16 = vpop.f32.mrf.mxu1 }
 0x569   : >> { %7779 = vmatmul.mubr.msk.bf16.vlgmr.msra.gmra.mxu1 %vm4772_vm8, %v4766_v21 }
 0x629   : >> { %v4814_v7 = vpop.f32.mrf.mxu1 }
 0x62a   : >> { %v4815_v54 = vadd.f32 %v4814_v7, %v4771_v52  ;;  %v12987_v52 = vld [vmem:[#allocation61_spill] sm:$0xff] }
 0x62b   : >> { %v7780_v30 = vpop.f32.mrf.mxu1 }
 0x62c   : >> { %v4820_v44 = vsub.f32 0.0, %v4815_v54  ;;  %v12991_v54 = vld [vmem:[#allocation59_spill] sm:$0xff] }
 0x62d   : >> { %v4817_v19 = vpop.f32.mrf.mxu1 }
 0x62e   : >> { %v4821_v51 = vmul.f32 1.442695, %v4820_v44 }
 0x62f   : >> { %v7781_v57 = vpop.f32.mrf.mxu1 }
 0x630   : >> { %8153 = vpow2.f32 %v4821_v51  ;;  %v12995_v51 = vld [vmem:[#allocation57_spill] sm:$0xff] }
 0x63d   : >> { %v8154_v6 = vpop.eup %8153 }
 0x63e   : >> { %v4823_v43 = vadd.f32 1.0, %v8154_v6 }
 0x640   : >> { %8155 = vrcp.f32 %v4823_v43  ;;  %v12997_v43 = vld [vmem:[#allocation56_spill] sm:$0xff] }
 0x64d   : >> { %v8156_v2 = vpop.eup %8155 }
 0x64e   : >> { %v4828_v13 = vrot.slane %v8156_v2, %v4827_v27 }
 0x650   : >> { %v4829_v4 = vmul.f32 %v4828_v13, %v11119_v31  ;;  %v4830_v37 = vmul.f32 %v4828_v13, %v11114_v60  ;;  %v4831_v36 = vmul.f32 %v4828_v13, %v11121_v24  ;;  %v4832_v46 = vmul.f32 %v4828_v13, %v11132_v42 }
 0x651   : >> { %v4833_v58 = vmul.f32 %v4828_v13, %v11143_v10  ;;  %v4834_v40 = vmul.f32 %v4828_v13, %v11152_v50  ;;  %v4835_v29 = vmul.f32 %v4828_v13, %v11162_v20  ;;  %v4836_v14 = vmul.f32 %v4828_v13, %v11172_v3 }
 0x652   : >> { %v4837_v25 = vmul.f32 %v4828_v13, %v11184_v59  ;;  %v4838_v38 = vmul.f32 %v4828_v13, %v11192_v55  ;;  %v4839_v31 = vmul.f32 %v4828_v13, %v11204_v1  ;;  %v4840_v60 = vmul.f32 %v4828_v13, %v11214_v22 }
 0x653   : >> { %v4841_v24 = vmul.f32 %v4828_v13, %v11224_v61  ;;  %v4842_v42 = vmul.f32 %v4828_v13, %v11232_v11  ;;  %v4843_v10 = vmul.f32 %v4828_v13, %v11240_v62  ;;  %v4844_v50 = vmul.f32 %v4828_v13, %v11250_v12 }
 0x654   : >> { %v4845_v20 = vmul.f32 %v4828_v13, %v11258_v8  ;;  %v4846_v3 = vmul.f32 %v4828_v13, %v11266_v34  ;;  %v4847_v59 = vmul.f32 %v4828_v13, %v11274_v35  ;;  %v4848_v55 = vmul.f32 %v4828_v13, %v11282_v32 }
 0x655   : >> { %v4849_v1 = vmul.f32 %v4828_v13, %v11290_v26  ;;  %v4850_v22 = vmul.f32 %v4828_v13, %v11297_v18  ;;  %v4851_v61 = vmul.f32 %v4828_v13, %v11305_v28  ;;  %v4852_v11 = vmul.f32 %v4828_v13, %v11312_v5  ;;  %v12977_v5 = vld [vmem:[#allocation66_spill] sm:$0xff] }
 0x656   : >> { %v4853_v62 = vmul.f32 %v4828_v13, %v11317_v23  ;;  %v4854_v12 = vmul.f32 %v4828_v13, %v11322_v63  ;;  %v4855_v8 = vmul.f32 %v4828_v13, %v11328_v45  ;;  %v4856_v34 = vmul.f32 %v4828_v13, %v11333_v39  ;;  %v12981_v45 = vld [vmem:[#allocation64_spill] sm:$0xff]  ;;  %v12983_v39 = vld [vmem:[#allocation63_spill] sm:$0xff] }
 0x657   : >> { %v4857_v35 = vmul.f32 %v4828_v13, %v11338_v48  ;;  %v4858_v32 = vmul.f32 %v4828_v13, %v11342_v33  ;;  %v4859_v26 = vmul.f32 %v4828_v13, %v11349_v15  ;;  %v4860_v18 = vmul.f32 %v4828_v13, %v11354_v41  ;;  %v12985_v33 = vld [vmem:[#allocation62_spill] sm:$0xff]  ;;  %v12989_v41 = vld [vmem:[#allocation60_spill] sm:$0xff] }
 0x658   : >> { %v11406_v0 = vadd.f32 %v12975_v47, %v4829_v4   ;;  %v11409_v63 = vadd.f32 %v12977_v5, %v4830_v37   ;;  %v11412_v9 = vadd.f32 %v12979_v17, %v4831_v36   ;;  %v11415_v53 = vadd.f32 %v12981_v45, %v4832_v46   ;;  %v13003_v37 = vld [vmem:[#allocation53_spill] sm:$0xff]  ;;  %v13005_v36 = vld [vmem:[#allocation52_spill] sm:$0xff]  ;;  %v13007_v46 = vld [vmem:[#allocation51_spill] sm:$0xff] }
 0x659   : >> { %v11418_v48 = vadd.f32 %v12983_v39, %v4833_v58   ;;  %v11421_v56 = vadd.f32 %v12985_v33, %v4834_v40   ;;  %v11424_v58 = vadd.f32 %v12987_v52, %v4835_v29   ;;  %v11427_v57 = vadd.f32 %v12989_v41, %v4836_v14   ;;  %v13011_v40 = vld [vmem:[#allocation49_spill] sm:$0xff]  ;;  %v13021_v39 = vld [vmem:[#allocation43_spill] sm:$0xff] }
 0x65a   : >> { %12976 = vst [vmem:[#allocation73_spill] sm:$0xff] %v11406_v0  ;;  %12978 = vst [vmem:[#allocation74_spill] sm:$0xff] %v11409_v63  ;;  %v12993_v63 = vld [vmem:[#allocation58_spill] sm:$0xff]  ;;  %v12999_v0 = vld [vmem:[#allocation55_spill] sm:$0xff]  ;;  %v4885_v23 = vadd.f32 %v13021_v39, %v4853_v62  }
 0x65b   : >> { %12980 = vst [vmem:[#allocation75_spill] sm:$0xff] %v11412_v9  ;;  %12982 = vst [vmem:[#allocation76_spill] sm:$0xff] %v11415_v53  ;;  %v11433_v44 = vadd.f32 %v12993_v63, %v4838_v38   ;;  %v11439_v53 = vadd.f32 %v12997_v43, %v4840_v60   ;;  %v11442_v52 = vadd.f32 %v12999_v0, %v4841_v24   ;;  %v13013_v38 = vld [vmem:[#allocation48_spill] sm:$0xff]  ;;  %v13015_v60 = vld [vmem:[#allocation47_spill] sm:$0xff] }
 0x65c   : >> { %12984 = vst [vmem:[#allocation77_spill] sm:$0xff] %v11418_v48  ;;  %12986 = vst [vmem:[#allocation78_spill] sm:$0xff] %v11421_v56  ;;  %v11430_v56 = vadd.f32 %v12991_v54, %v4837_v25   ;;  %v11436_v54 = vadd.f32 %v12995_v51, %v4839_v31   ;;  %v11445_v51 = vadd.f32 %v13001_v49, %v4842_v42   ;;  %v13017_v42 = vld [vmem:[#allocation46_spill] sm:$0xff] }
 0x65d   : >> { %12988 = vst [vmem:[#allocation79_spill] sm:$0xff] %v11424_v58  ;;  %12990 = vst [vmem:[#allocation80_spill] sm:$0xff] %v11427_v57  ;;  %v12994_v6 = vmov %v11433_v44  ;;  %v12998_v2 = vmov %v11439_v53  ;;  %v13000_v13 = vmov %v11442_v52  ;;  %v11448_v57 = vadd.f32 %v13003_v37, %v4843_v10   ;;  %v13009_v58 = vld [vmem:[#allocation50_spill] sm:$0xff]  ;;  %v13020_v53 = vld [vmem:[#allocation44_spill] sm:$0xff] }
 0x65e   : >> { %v12992_v19 = vmov %v11430_v56  ;;  %v12996_v27 = vmov %v11436_v54  ;;  %v13002_v4 = vmov %v11445_v51  ;;  %v11451_v49 = vadd.f32 %v13005_v36, %v4844_v50   ;;  %v13019_v50 = vld [vmem:[#allocation45_spill] sm:$0xff]  ;;  %4955 = vst.msk [vmem:[#allocation2 + $0x139] sm:$0xff] (%p11484_p4), %vm388_vm0, %v4885_v23  ;;  %4940 = vst.msk [vmem:[#allocation2 + $0x81] sm:$0xff] (%p11484_p4), %vm388_vm0, %v12994_v6 }
 0x65f   : >> { %v13004_v29 = vmov %v11448_v57  ;;  %v11454_v48 = vadd.f32 %v13007_v46, %v4845_v20   ;;  %v11457_v47 = vadd.f32 %v13009_v58, %v4846_v3   ;;  %v11460_v46 = vadd.f32 %v13011_v40, %v4847_v59   ;;  %v13022_v3 = vld [vmem:[#allocation42_spill] sm:$0xff]  ;;  %v13024_v59 = vld [vmem:[#allocation40_spill] sm:$0xff]  ;;  %4939 = vst.msk [vmem:[#allocation2 + $0x79] sm:$0xff] (%p11484_p4), %vm388_vm0, %v12992_v19  ;;  %4941 = vst.msk [vmem:[#allocation2 + $0x91] sm:$0xff] (%p11484_p4), %vm388_vm0, %v12996_v27 }
 0x660   : >> { %v13006_v14 = vmov %v11451_v49  ;;  %v11463_v45 = vadd.f32 %v13013_v38, %v4848_v55   ;;  %v11466_v44 = vadd.f32 %v13015_v60, %v4849_v1   ;;  %v11469_v43 = vadd.f32 %v13017_v42, %v4850_v22   ;;  %v13025_v55 = vld [vmem:[#allocation39_spill] sm:$0xff]  ;;  %v13028_v22 = vld [vmem:[#allocation36_spill] sm:$0xff]  ;;  %4942 = vst.msk [vmem:[#allocation2 + $0x99] sm:$0xff] (%p11484_p4), %vm388_vm0, %v12998_v2  ;;  %4943 = vst.msk [vmem:[#allocation2 + $0xa9] sm:$0xff] (%p11484_p4), %vm388_vm0, %v13000_v13 }
 0x661   : >> { %v13008_v25 = vmov %v11454_v48  ;;  %v13010_v31 = vmov %v11457_v47  ;;  %v13012_v5 = vmov %v11460_v46  ;;  %v4883_v28 = vadd.f32 %v13019_v50, %v4851_v61   ;;  %v13023_v47 = vld [vmem:[#allocation41_spill] sm:$0xff]  ;;  %v13061_v0 = vld [vmem:[#allocation73_spill] sm:$0xff]  ;;  %4944 = vst.msk [vmem:[#allocation2 + $0xb1] sm:$0xff] (%p11484_p4), %vm388_vm0, %v13002_v4  ;;  %4945 = vst.msk [vmem:[#allocation2 + $0xc1] sm:$0xff] (%p11484_p4), %vm388_vm0, %v13004_v29 }
 0x662   : >> { %v13014_v24 = vmov %v11463_v45  ;;  %v13016_v17 = vmov %v11466_v44  ;;  %v13018_v10 = vmov %v11469_v43  ;;  %v4884_v20 = vadd.f32 %v13020_v53, %v4852_v11   ;;  %v13026_v45 = vld [vmem:[#allocation38_spill] sm:$0xff]  ;;  %v13027_v48 = vld [vmem:[#allocation37_spill] sm:$0xff]  ;;  %v13058_v61 = vld [vmem:[#allocation76_spill] sm:$0xff]  ;;  %4946 = vst.msk [vmem:[#allocation2 + $0xc9] sm:$0xff] (%p11484_p4), %vm388_vm0, %v13006_v14 }
 0x663   : >> { %v4886_v9 = vadd.f32 %v13022_v3, %v4854_v12   ;;  %v4887_v21 = vadd.f32 %v13023_v47, %v4855_v8   ;;  %v4888_v16 = vadd.f32 %v13024_v59, %v4856_v34   ;;  %v4889_v15 = vadd.f32 %v13025_v55, %v4857_v35   ;;  %v13056_v59 = vld [vmem:[#allocation78_spill] sm:$0xff]  ;;  %v13057_v60 = vld [vmem:[#allocation77_spill] sm:$0xff]  ;;  %v13059_v62 = vld [vmem:[#allocation75_spill] sm:$0xff]  ;;  %4953 = vst.msk [vmem:[#allocation2 + $0x121] sm:$0xff] (%p11484_p4), %vm388_vm0, %v4883_v28 }
 0x664   : >> { %v4890_v1 = vadd.f32 %v13026_v45, %v4858_v32   ;;  %v4891_v7 = vadd.f32 %v13027_v48, %v4859_v26   ;;  %v4892_v30 = vadd.f32 %v13028_v22, %v4860_v18   ;;  %v13037_v40 = vmov %v4885_v23  ;;  %v13054_v57 = vld [vmem:[#allocation80_spill] sm:$0xff]  ;;  %v13055_v58 = vld [vmem:[#allocation79_spill] sm:$0xff]  ;;  %v13060_v63 = vld [vmem:[#allocation74_spill] sm:$0xff]  ;;  %4954 = vst.msk [vmem:[#allocation2 + $0x129] sm:$0xff] (%p11484_p4), %vm388_vm0, %v4884_v20 }
 0x665   : >> { %v13033_v36 = vmov %v4889_v15  ;;  %v13034_v37 = vmov %v4888_v16  ;;  %v13035_v38 = vmov %v4887_v21  ;;  %v13036_v39 = vmov %v4886_v9  ;;  %v5027_v11 = vld [vmem:[#allocation2 + $0x1] sm:$0xff] (%p11484_p4)  ;;  %v13063_v12 = vld [vmem:[#allocation73_spill] sm:$0xff] (%p11484_p4)  ;;  %v13065_v32 = vld [vmem:[#allocation74_spill] sm:$0xff] (%p11484_p4)  ;;  %4956 = vst.msk [vmem:[#allocation2 + $0x141] sm:$0xff] (%p11484_p4), %vm388_vm0, %v4886_v9 }
 0x666   : >> { %v13030_v33 = vmov %v4892_v30  ;;  %v13031_v34 = vmov %v4891_v7  ;;  %v13032_v35 = vmov %v4890_v1  ;;  %v13038_v41 = vmov %v4884_v20  ;;  %470 = sbr.rel (!%p11484_p4) target bundleno = 49 (0x31), region = 114  ;;  %4931 = vst.msk [vmem:[#allocation2 + $0x19] sm:$0xff] (%p11484_p4), %vm388_vm0, %v13063_v12  ;;  %v13064_v8 = vld [vmem:[#allocation75_spill] sm:$0xff] (%p11484_p4)  ;;  %4932 = vst.msk [vmem:[#allocation2 + $0x21] sm:$0xff] (%p11484_p4), %vm388_vm0, %v13065_v32  ;;  %v13066_v26 = vld [vmem:[#allocation77_spill] sm:$0xff] (%p11484_p4)  ;;  %5091 = vrot.lane.b32.xlu0 (%p11484_p4), %v5027_v11, %s8455_s27 }
 0x667   : >> { %v13039_v42 = vmov %v4883_v28  ;;  %v13040_v43 = vmov %v13018_v10  ;;  %v13041_v44 = vmov %v13016_v17  ;;  %v13042_v45 = vmov %v13014_v24  ;;  %4933 = vst.msk [vmem:[#allocation2 + $0x31] sm:$0xff] (%p11484_p4), %vm388_vm0, %v13064_v8  ;;  %4935 = vst.msk [vmem:[#allocation2 + $0x49] sm:$0xff] (%p11484_p4), %vm388_vm0, %v13066_v26  ;;  %v13067_v18 = vld [vmem:[#allocation76_spill] sm:$0xff] (%p11484_p4)  ;;  %v13068_v0 = vld [vmem:[#allocation79_spill] sm:$0xff] (%p11484_p4) }
 0x668   : >> { %v13043_v46 = vmov %v13012_v5  ;;  %v13044_v47 = vmov %v13010_v31  ;;  %v13045_v48 = vmov %v13008_v25  ;;  %v13046_v49 = vmov %v13006_v14  ;;  %4934 = vst.msk [vmem:[#allocation2 + $0x39] sm:$0xff] (%p11484_p4), %vm388_vm0, %v13067_v18  ;;  %4937 = vst.msk [vmem:[#allocation2 + $0x61] sm:$0xff] (%p11484_p4), %vm388_vm0, %v13068_v0  ;;  %v13069_v3 = vld [vmem:[#allocation78_spill] sm:$0xff] (%p11484_p4)  ;;  %v13070_v61 = vld [vmem:[#allocation80_spill] sm:$0xff] (%p11484_p4) }
 0x669   : >> { %v13047_v50 = vmov %v13004_v29  ;;  %v13048_v51 = vmov %v13002_v4  ;;  %v13049_v52 = vmov %v13000_v13  ;;  %v13050_v53 = vmov %v12998_v2  ;;  %4936 = vst.msk [vmem:[#allocation2 + $0x51] sm:$0xff] (%p11484_p4), %vm388_vm0, %v13069_v3  ;;  %4957 = vst.msk [vmem:[#allocation2 + $0x151] sm:$0xff] (%p11484_p4), %vm388_vm0, %v4887_v21  ;;  %v5028_v62 = vld [vmem:[#allocation2 + $0x9] sm:$0xff] (%p11484_p4)  ;;  %v4963_v34 = vld [vmem:[#allocation2] sm:$0xff] (%p11484_p4) }
 0x66a   : >> { %v13051_v54 = vmov %v12996_v27  ;;  %v13052_v55 = vmov %v12994_v6  ;;  %v13053_v56 = vmov %v12992_v19  ;;  %4958 = vst.msk [vmem:[#allocation2 + $0x159] sm:$0xff] (%p11484_p4), %vm388_vm0, %v4888_v16  ;;  %4959 = vst.msk [vmem:[#allocation2 + $0x169] sm:$0xff] (%p11484_p4), %vm388_vm0, %v4889_v15  ;;  %v4964_v35 = vld [vmem:[#allocation2 + $0x8] sm:$0xff] (%p11484_p4)  ;;  %v8159_v28 = vld [vmem:[%s12799_s9 + $0x78] sm:$0xff] (%p11484_p4)   ;;  %5093 = vrot.lane.b32.xlu0 (%p11484_p4), %v5028_v62, %s8455_s27 }
 0x66b   : > { %4960 = vst.msk [vmem:[#allocation2 + $0x171] sm:$0xff] %vm388_vm0, %v4890_v1  ;;  %4938 = vst.msk [vmem:[#allocation2 + $0x69] sm:$0xff] %vm388_vm0, %v13070_v61  ;;  %v8160_v23 = vld [vmem:[%s12799_s9 + $0x38] sm:$0xff]   ;;  %7566 = vmatprep.subr.bf16.mxu0 %v8159_v28  ;;  %7818 = vmatprep.subr.bf16.mxu1 %v8159_v28  ;;  %v8161_v14 = vld [vmem:[%s12799_s9 + $0x70] sm:$0xff]  }
 0x66c   : > { %4961 = vst.msk [vmem:[#allocation2 + $0x181] sm:$0xff] %vm388_vm0, %v4891_v7  ;;  %4962 = vst.msk [vmem:[#allocation2 + $0x189] sm:$0xff] %vm388_vm0, %v4892_v30  ;;  %7567 = vmatpush3.bf16.msra.mxu0 %v8160_v23  ;;  %7826 = vmatpush3.bf16.msra.mxu1 %v8160_v23  ;;  %v11696_v51 = vld [vmem:[#allocation2 + $0x140] sm:$0xff]  ;;  %v11700_v27 = vld [vmem:[#allocation2 + $0x138] sm:$0xff] }
 0x66d   : > { %4947 = vst.msk [vmem:[#allocation2 + $0xd9] sm:$0xff] %vm388_vm0, %v13008_v25  ;;  %4948 = vst.msk [vmem:[#allocation2 + $0xe1] sm:$0xff] %vm388_vm0, %v13010_v31  ;;  %v5029_v9 = vld [vmem:[#allocation2 + $0x19] sm:$0xff]  ;;  %v5030_v16 = vld [vmem:[#allocation2 + $0x21] sm:$0xff]  ;;  %7568 = vmatprep.subr.bf16.mxu0 %v8161_v14  ;;  %7819 = vmatprep.subr.bf16.mxu1 %v8161_v14 }
 0x66e   : > { %4949 = vst.msk [vmem:[#allocation2 + $0xf1] sm:$0xff] %vm388_vm0, %v13012_v5  ;;  %4950 = vst.msk [vmem:[#allocation2 + $0xf9] sm:$0xff] %vm388_vm0, %v13014_v24  ;;  %v11644_v21 = vld [vmem:[#allocation2 + $0x31] sm:$0xff]  ;;  %5095 = vrot.lane.b32.xlu1 %v5029_v9, %s8455_s27  ;;  %v11647_v33 = vld [vmem:[#allocation2 + $0x49] sm:$0xff] }
 0x66f   : > { %4951 = vst.msk [vmem:[#allocation2 + $0x109] sm:$0xff] %vm388_vm0, %v13016_v17  ;;  %4952 = vst.msk [vmem:[#allocation2 + $0x111] sm:$0xff] %vm388_vm0, %v13018_v10  ;;  %v11649_v56 = vld [vmem:[#allocation2 + $0x39] sm:$0xff]  ;;  %5099 = vrot.lane.b32.xlu0 %v11644_v21, %s8455_s27  ;;  %v11665_v7 = vld [vmem:[#allocation2 + $0x30] sm:$0xff] }
 0x670   : > { %4995 = vst.msk [vmem:[#allocation3] sm:$0xff] %vm388_vm0, %v4963_v34  ;;  %4996 = vst.msk [vmem:[#allocation3 + $0x18] sm:$0xff] %vm388_vm0, %v4964_v35  ;;  %v11657_v15 = vld [vmem:[#allocation2 + $0x51] sm:$0xff]  ;;  %v11667_v41 = vld [vmem:[#allocation2 + $0x20] sm:$0xff] }
 0x671   : > { %5639 = vst.msk [vmem:[#allocation3 + $0x20] sm:$0xff] %vm388_vm0, %v5030_v16  ;;  %5638 = vst.msk [vmem:[#allocation3 + $0x8] sm:$0xff] %vm388_vm0, %v5029_v9  ;;  %v11663_v52 = vld [vmem:[#allocation2 + $0x38] sm:$0xff]  ;;  %v11686_v19 = vld [vmem:[#allocation2 + $0x61] sm:$0xff] }
 0x672   : > { %5640 = vst.msk [vmem:[#allocation3 + $0x38] sm:$0xff] %vm388_vm0, %v11644_v21  ;;  %5641 = vst.msk [vmem:[#allocation3 + $0x50] sm:$0xff] %vm388_vm0, %v11649_v56  ;;  %v11671_v30 = vld [vmem:[#allocation2 + $0x18] sm:$0xff]  ;;  %5097 = vrot.lane.b32.xlu1 %v5030_v16, %s8455_s27  ;;  %v11688_v63 = vld [vmem:[#allocation2 + $0x150] sm:$0xff] }
 0x673   : > { %5642 = vst.msk [vmem:[#allocation3 + $0x68] sm:$0xff] %vm388_vm0, %v11647_v33  ;;  %5643 = vst.msk [vmem:[#allocation3 + $0x80] sm:$0xff] %vm388_vm0, %v11657_v15  ;;  %v11680_v54 = vld [vmem:[#allocation2 + $0x158] sm:$0xff]  ;;  %5103 = vrot.lane.b32.xlu0 %v11647_v33, %s8455_s27  ;;  %v11710_v43 = vld [vmem:[#allocation2 + $0x50] sm:$0xff] }
 0x674   : > { %4999 = vst.msk [vmem:[#allocation3 + $0x60] sm:$0xff] %vm388_vm0, %v11665_v7  ;;  %4998 = vst.msk [vmem:[#allocation3 + $0x48] sm:$0xff] %vm388_vm0, %v11667_v41  ;;  %v11692_v44 = vld [vmem:[#allocation2 + $0x159] sm:$0xff]  ;;  %v11694_v6 = vld [vmem:[#allocation2 + $0x151] sm:$0xff] }
 0x675   : > { %5000 = vst.msk [vmem:[#allocation3 + $0x78] sm:$0xff] %vm388_vm0, %v11663_v52  ;;  %4997 = vst.msk [vmem:[#allocation3 + $0x30] sm:$0xff] %vm388_vm0, %v11671_v30  ;;  %v11712_v2 = vld [vmem:[#allocation2 + $0x48] sm:$0xff]  ;;  %v11720_v49 = vld [vmem:[#allocation2 + $0x139] sm:$0xff] }
 0x676   : > { %5024 = vst.msk [vmem:[#allocation3 + $0x2b8] sm:$0xff] %vm388_vm0, %v11680_v54  ;;  %5023 = vst.msk [vmem:[#allocation3 + $0x2a0] sm:$0xff] %vm388_vm0, %v11688_v63  ;;  %5101 = vrot.lane.b32.xlu1 %v11649_v56, %s8455_s27  ;;  %v11718_v13 = vld [vmem:[#allocation2 + $0x141] sm:$0xff]  ;;  %v11728_v37 = vld [vmem:[#allocation2 + $0x171] sm:$0xff] }
 0x677   : > { %5665 = vst.msk [vmem:[#allocation3 + $0x290] sm:$0xff] %vm388_vm0, %v11692_v44  ;;  %5664 = vst.msk [vmem:[#allocation3 + $0x278] sm:$0xff] %vm388_vm0, %v11694_v6  ;;  %5107 = vrot.lane.b32.xlu0 %v11686_v19, %s8455_s27  ;;  %v11726_v4 = vld [vmem:[#allocation2 + $0x22] sm:$0xff]  ;;  %v11746_v36 = vld [vmem:[#allocation2 + $0x1a] sm:$0xff] }
 0x678   : > { %5022 = vst.msk [vmem:[#allocation3 + $0x288] sm:$0xff] %vm388_vm0, %v11696_v51  ;;  %5021 = vst.msk [vmem:[#allocation3 + $0x270] sm:$0xff] %vm388_vm0, %v11700_v27  ;;  %v11734_v57 = vld [vmem:[#allocation2 + $0x169] sm:$0xff]  ;;  %v8165_v31 = vld [vmem:[%s12799_s9 + $0x60] sm:$0xff]  }
 0x679   : > { %5001 = vst.msk [vmem:[#allocation3 + $0x90] sm:$0xff] %vm388_vm0, %v11712_v2  ;;  %5002 = vst.msk [vmem:[#allocation3 + $0xa8] sm:$0xff] %vm388_vm0, %v11710_v43  ;;  %v11740_v29 = vld [vmem:[#allocation2 + $0x69] sm:$0xff]  ;;  %v11771_v5 = vld [vmem:[#allocation2 + $0x181] sm:$0xff] }
 0x67a   : > { %5663 = vst.msk [vmem:[#allocation3 + $0x260] sm:$0xff] %vm388_vm0, %v11718_v13  ;;  %5662 = vst.msk [vmem:[#allocation3 + $0x248] sm:$0xff] %vm388_vm0, %v11720_v49  ;;  %5105 = vrot.lane.b32.xlu1 %v11657_v15, %s8455_s27  ;;  %v8162_v46 = vld [vmem:[%s12799_s9 + $0x30] sm:$0xff]   ;;  %v8163_v25 = vld [vmem:[%s12799_s9 + $0x68] sm:$0xff]  }
 0x67b   : > { %5667 = vst.msk [vmem:[#allocation3 + $0x2c0] sm:$0xff] %vm388_vm0, %v11728_v37  ;;  %5666 = vst.msk [vmem:[#allocation3 + $0x2a8] sm:$0xff] %vm388_vm0, %v11734_v57  ;;  %5736 = vrot.lane.b32.xlu0 %v11726_v4, %s8455_s27  ;;  %7569 = vmatpush3.bf16.msra.mxu0 %v8162_v46  ;;  %v8164_v58 = vld [vmem:[%s12799_s9 + $0x28] sm:$0xff]   ;;  %v8166_v60 = vld [vmem:[%s12799_s9 + $0x20] sm:$0xff]  }
 0x67c   : > { %5645 = vst.msk [vmem:[#allocation3 + $0xb0] sm:$0xff] %vm388_vm0, %v11740_v29  ;;  %7570 = vmatprep.subr.bf16.mxu0 %v8163_v25  ;;  %v11769_v40 = vld [vmem:[#allocation2 + $0x189] sm:$0xff]  ;;  %7827 = vmatpush3.bf16.msra.mxu1 %v8162_v46  ;;  %5668 = vst.msk [vmem:[#allocation3 + $0x2d8] sm:$0xff] %vm388_vm0, %v11771_v5  ;;  %v8167_v17 = vld [vmem:[%s12799_s9 + $0x58] sm:$0xff]  }
 0x67d   : > { %v5221_v38 = vld [vmem:[#allocation2 + $0xa] sm:$0xff]  ;;  %5669 = vst.msk [vmem:[#allocation3 + $0x2f0] sm:$0xff] %vm388_vm0, %v11769_v40  ;;  %v5220_v24 = vld [vmem:[#allocation2 + $0x2] sm:$0xff]  ;;  %7820 = vmatprep.subr.bf16.mxu1 %v8163_v25  ;;  %v8168_v42 = vld [vmem:[%s12799_s9 + $0x18] sm:$0xff]  }
 0x67e   : > { %5734 = vrot.lane.b32.xlu1 %v11746_v36, %s8455_s27  ;;  %v8169_v10 = vld [vmem:[%s12799_s9 + $0x50] sm:$0xff]   ;;  %v4988_v50 = vld [vmem:[#allocation2 + $0x128] sm:$0xff]  ;;  %v4987_v53 = vld [vmem:[#allocation2 + $0x120] sm:$0xff] }
 0x67f   : > { %5929 = vrot.lane.b32.xlu0 %v11663_v52, %s8456_s22  ;;  %7571 = vmatpush3.bf16.msra.mxu0 %v8164_v58  ;;  %v8170_v20 = vld [vmem:[%s12799_s9 + $0x10] sm:$0xff]   ;;  %5020 = vst.msk [vmem:[#allocation3 + $0x258] sm:$0xff] %vm388_vm0, %v4988_v50  ;;  %5019 = vst.msk [vmem:[#allocation3 + $0x240] sm:$0xff] %vm388_vm0, %v4987_v53  ;;  %v8171_v39 = vld [vmem:[%s12799_s9 + $0x48] sm:$0xff]  }
 0x680   : > { %7572 = vmatprep.subr.bf16.mxu0 %v8165_v31  ;;  %7828 = vmatpush3.bf16.msra.mxu1 %v8164_v58  ;;  %v4971_v47 = vld [vmem:[#allocation2 + $0x60] sm:$0xff]  ;;  %v8172_v1 = vld [vmem:[%s12799_s9 + $0x8] sm:$0xff]   ;;  %v5672_v0 = vld [vmem:[#allocation2 + $0x32] sm:$0xff] }
 0x681   : > { %7821 = vmatprep.subr.bf16.mxu1 %v8165_v31  ;;  %v11807_v59 = vld [vmem:[#allocation2 + $0x142] sm:$0xff]  ;;  %5003 = vst.msk [vmem:[#allocation3 + $0xc0] sm:$0xff] %vm388_vm0, %v4971_v47  ;;  %v11812_v45 = vld [vmem:[#allocation2 + $0x79] sm:$0xff]  ;;  %v5245_v32 = vld [vmem:[#allocation2 + $0x12a] sm:$0xff] }
 0x682   : > { %5927 = vrot.lane.b32.xlu1 %v11665_v7, %s8456_s22  ;;  %v11810_v55 = vld [vmem:[#allocation2 + $0x81] sm:$0xff]  ;;  %5646 = vst.msk [vmem:[#allocation3 + $0xc8] sm:$0xff] %vm388_vm0, %v11812_v45  ;;  %v5052_v11 = vld [vmem:[#allocation2 + $0x129] sm:$0xff]  ;;  %v11878_v34 = vld [vmem:[#allocation2 + $0x152] sm:$0xff] }
 0x683   : > { %5286 = vrot.lane.b32.xlu0 %v5221_v38, %s8456_s22  ;;  %7573 = vmatpush3.bf16.msra.mxu0 %v8166_v60  ;;  %5647 = vst.msk [vmem:[#allocation3 + $0xe0] sm:$0xff] %vm388_vm0, %v11810_v55  ;;  %v5694_v48 = vld [vmem:[#allocation2 + $0x13a] sm:$0xff]  ;;  %v5244_v26 = vld [vmem:[#allocation2 + $0x122] sm:$0xff]  ;;  %v11880_v35 = vld [vmem:[#allocation2 + $0x91] sm:$0xff] }
 0x684   : > { %7574 = vmatprep.subr.bf16.mxu0 %v8167_v17  ;;  %7829 = vmatpush3.bf16.msra.mxu1 %v8166_v60  ;;  %v8173_v22 = vld [vmem:[%s12799_s9 + $0x40] sm:$0xff]   ;;  %5648 = vst.msk [vmem:[#allocation3 + $0xf8] sm:$0xff] %vm388_vm0, %v11880_v35  ;;  %v11892_v23 = vld [vmem:[#allocation2 + $0x170] sm:$0xff]  ;;  %v11898_v9 = vld [vmem:[#allocation2 + $0x168] sm:$0xff] }
 0x685   : > { %7822 = vmatprep.subr.bf16.mxu1 %v8167_v17  ;;  %v8174_v12 = vld [vmem:[%s12799_s9] sm:$0xff]   ;;  %v11981_v46 = vld [vmem:[#allocation2 + $0x188] sm:$0xff] }
 0x686   : > { %5284 = vrot.lane.b32.xlu1 %v5220_v24, %s8456_s22  ;;  %v5051_v8 = vld [vmem:[#allocation2 + $0x121] sm:$0xff]  ;;  %v11882_v28 = vld [vmem:[#allocation2 + $0x99] sm:$0xff]  ;;  %v11986_v31 = vld [vmem:[#allocation2 + $0xc9] sm:$0xff] }
 0x687   : > { %6121 = vrot.lane.b32.xlu0 %v11649_v56, %s8457_s14  ;;  %7575 = vmatpush3.bf16.msra.mxu0 %v8168_v42  ;;  %v5673_v18 = vld [vmem:[#allocation2 + $0x3a] sm:$0xff]  ;;  %v11860_v61 = vld [vmem:[#allocation2 + $0x82] sm:$0xff]  ;;  %5649 = vst.msk [vmem:[#allocation3 + $0x110] sm:$0xff] %vm388_vm0, %v11882_v28  ;;  %v11925_v56 = vld [vmem:[#allocation2 + $0x4a] sm:$0xff] }
 0x688   : > { %7576 = vmatprep.subr.bf16.mxu0 %v8169_v10  ;;  %7830 = vmatpush3.bf16.msra.mxu1 %v8168_v42  ;;  %v11852_v3 = vld [vmem:[#allocation2 + $0x7a] sm:$0xff]  ;;  %6286 = vst.msk [vmem:[#allocation3 + $0xb8] sm:$0xff] %vm388_vm0, %v11860_v61  ;;  %5653 = vst.msk [vmem:[#allocation3 + $0x170] sm:$0xff] %vm388_vm0, %v11986_v31  ;;  %v12007_v42 = vld [vmem:[#allocation2 + $0xc2] sm:$0xff] }
 0x689   : > { %7823 = vmatprep.subr.bf16.mxu1 %v8169_v10  ;;  %6285 = vst.msk [vmem:[#allocation3 + $0xa0] sm:$0xff] %vm388_vm0, %v11852_v3  ;;  %v11872_v62 = vld [vmem:[#allocation2 + $0x15a] sm:$0xff]  ;;  %v12009_v10 = vld [vmem:[#allocation2 + $0xca] sm:$0xff]  ;;  %6291 = vst.msk [vmem:[#allocation3 + $0x130] sm:$0xff] %vm388_vm0, %v12007_v42 }
 0x68a   : > { %6119 = vrot.lane.b32.xlu1 %v11644_v21, %s8457_s14  ;;  %v11900_v21 = vld [vmem:[#allocation2 + $0x92] sm:$0xff]  ;;  %v11902_v16 = vld [vmem:[#allocation2 + $0x9a] sm:$0xff]  ;;  %6292 = vst.msk [vmem:[#allocation3 + $0x148] sm:$0xff] %vm388_vm0, %v12009_v10 }
 0x68b   : > { %5479 = vrot.lane.b32.xlu0 %v11667_v41, %s8457_s14  ;;  %7577 = vmatpush3.bf16.msra.mxu0 %v8170_v20  ;;  %6287 = vst.msk [vmem:[#allocation3 + $0xd0] sm:$0xff] %vm388_vm0, %v11900_v21  ;;  %6288 = vst.msk [vmem:[#allocation3 + $0xe8] sm:$0xff] %vm388_vm0, %v11902_v16  ;;  %v11941_v41 = vld [vmem:[#allocation2 + $0x60] sm:$0xff] }
 0x68c   : > { %7578 = vmatprep.subr.bf16.mxu0 %v8171_v39  ;;  %7831 = vmatpush3.bf16.msra.mxu1 %v8170_v20  ;;  %v11984_v58 = vld [vmem:[#allocation2 + $0xc1] sm:$0xff] }
 0x68d   : > { %7824 = vmatprep.subr.bf16.mxu1 %v8171_v39  ;;  %5652 = vst.msk [vmem:[#allocation3 + $0x158] sm:$0xff] %vm388_vm0, %v11984_v58  ;;  %v12026_v39 = vld [vmem:[#allocation2 + $0x6a] sm:$0xff] }
 0x68e   : > { %5477 = vrot.lane.b32.xlu1 %v11671_v30, %s8457_s14 }
 0x68f   : > { %5784 = vrot.lane.b32.xlu0 %v11807_v59, %s8455_s27  ;;  %7579 = vmatpush3.bf16.msra.mxu0 %v8172_v1 }
 0x690   : > { %7580 = vmatprep.subr.bf16.mxu0 %v8173_v22  ;;  %7832 = vmatpush3.bf16.msra.mxu1 %v8172_v1 }
 0x691   : > { %7825 = vmatprep.subr.bf16.mxu1 %v8173_v22  ;;  %v12044_v22 = vld [vmem:[#allocation2 + $0x78] sm:$0xff] }
 0x692   : > { %5782 = vrot.lane.b32.xlu1 %v5694_v48, %s8455_s27 }
 0x693   : > { %5141 = vrot.lane.b32.xlu0 %v5052_v11, %s8455_s27  ;;  %7581 = vmatpush3.bf16.msra.mxu0 %v8174_v12 }
 0x694   : > { %7833 = vmatpush3.bf16.msra.mxu1 %v8174_v12 }
 0x696   : > { %5139 = vrot.lane.b32.xlu1 %v5051_v8, %s8455_s27 }
 0x697   : > { %5977 = vrot.lane.b32.xlu0 %v11680_v54, %s8456_s22 }
 0x69a   : > { %5975 = vrot.lane.b32.xlu1 %v11688_v63, %s8456_s22 }
 0x69b   : > { %5334 = vrot.lane.b32.xlu0 %v5245_v32, %s8456_s22 }
 0x69e   : > { %5332 = vrot.lane.b32.xlu1 %v5244_v26, %s8456_s22  ;;  %v12047_v26 = vld [vmem:[#allocation2 + $0xd9] sm:$0xff] }
 0x69f   : > { %6169 = vrot.lane.b32.xlu0 %v11692_v44, %s8457_s14  ;;  %5654 = vst.msk [vmem:[#allocation3 + $0x188] sm:$0xff] %vm388_vm0, %v12047_v26 }
 0x6a2   : > { %6167 = vrot.lane.b32.xlu1 %v11694_v6, %s8457_s14 }
 0x6a3   : > { %5527 = vrot.lane.b32.xlu0 %v11696_v51, %s8457_s14  ;;  %v11949_v51 = vld [vmem:[#allocation2 + $0xb2] sm:$0xff] }
 0x6a4   : > { %6290 = vst.msk [vmem:[#allocation3 + $0x118] sm:$0xff] %vm388_vm0, %v11949_v51 }
 0x6a6   : > { %5525 = vrot.lane.b32.xlu1 %v11700_v27, %s8457_s14 }
 0x6a7   : > { %5740 = vrot.lane.b32.xlu0 %v5673_v18, %s8455_s27 }
 0x6aa   : > { %5738 = vrot.lane.b32.xlu1 %v5672_v0, %s8455_s27 }
 0x6ab   : > { %5933 = vrot.lane.b32.xlu0 %v11710_v43, %s8456_s22 }
 0x6ae   : > { %5931 = vrot.lane.b32.xlu1 %v11712_v2, %s8456_s22 }
 0x6af   : > { %5290 = vrot.lane.b32.xlu0 %v11726_v4, %s8456_s22  ;;  %v11965_v4 = vld [vmem:[#allocation2 + $0x172] sm:$0xff] }
 0x6b2   : > { %5288 = vrot.lane.b32.xlu1 %v11746_v36, %s8456_s22 }
 0x6b3   : > { %6125 = vrot.lane.b32.xlu0 %v11657_v15, %s8457_s14  ;;  %v11927_v15 = vld [vmem:[#allocation2 + $0x68] sm:$0xff] }
 0x6b6   : > { %6123 = vrot.lane.b32.xlu1 %v11647_v33, %s8457_s14  ;;  %v11919_v33 = vld [vmem:[#allocation2 + $0x52] sm:$0xff] }
 0x6b7   : > { %5483 = vrot.lane.b32.xlu0 %v11663_v52, %s8457_s14  ;;  %v11929_v52 = vld [vmem:[#allocation2 + $0xa9] sm:$0xff] }
 0x6b8   : > { %5650 = vst.msk [vmem:[#allocation3 + $0x128] sm:$0xff] %vm388_vm0, %v11929_v52 }
 0x6ba   : > { %5481 = vrot.lane.b32.xlu1 %v11665_v7, %s8457_s14  ;;  %v11931_v7 = vld [vmem:[#allocation2 + $0xb1] sm:$0xff] }
 0x6bb   : > { %5788 = vrot.lane.b32.xlu0 %v11872_v62, %s8455_s27  ;;  %5651 = vst.msk [vmem:[#allocation3 + $0x140] sm:$0xff] %vm388_vm0, %v11931_v7 }
 0x6be   : > { %5786 = vrot.lane.b32.xlu1 %v11878_v34, %s8455_s27 }
 0x6bf   : > { %5145 = vrot.lane.b32.xlu0 %v11718_v13, %s8455_s27 }
 0x6c2   : > { %5143 = vrot.lane.b32.xlu1 %v11720_v49, %s8455_s27 }
 0x6c3   : > { %5981 = vrot.lane.b32.xlu0 %v11892_v23, %s8456_s22 }
 0x6c6   : > { %5979 = vrot.lane.b32.xlu1 %v11898_v9, %s8456_s22 }
 0x6c7   : > { %5338 = vrot.lane.b32.xlu0 %v11807_v59, %s8456_s22  ;;  %v12036_v59 = vld [vmem:[#allocation2 + $0x80] sm:$0xff] }
 0x6ca   : > { %5336 = vrot.lane.b32.xlu1 %v5694_v48, %s8456_s22 }
 0x6cb   : > { %6173 = vrot.lane.b32.xlu0 %v11728_v37, %s8457_s14 }
 0x6ce   : > { %6171 = vrot.lane.b32.xlu1 %v11734_v57, %s8457_s14 }
 0x6cf   : > { %5531 = vrot.lane.b32.xlu0 %v11680_v54, %s8457_s14 }
 0x6d2   : > { %5529 = vrot.lane.b32.xlu1 %v11688_v63, %s8457_s14  ;;  %v11947_v63 = vld [vmem:[#allocation2 + $0xaa] sm:$0xff] }
 0x6d3   : > { %5744 = vrot.lane.b32.xlu0 %v11919_v33, %s8455_s27  ;;  %6289 = vst.msk [vmem:[#allocation3 + $0x100] sm:$0xff] %vm388_vm0, %v11947_v63 }
 0x6d6   : > { %5742 = vrot.lane.b32.xlu1 %v11925_v56, %s8455_s27 }
 0x6d7   : > { %5937 = vrot.lane.b32.xlu0 %v11927_v15, %s8456_s22 }
 0x6d8   : > { %v5092_v30 = vpop.permute.xlu0 %5091 }
 0x6d9   : > { %5188 = vst.msk [vmem:[#allocation3] sm:$0xff] %vm802_vm3, %v5092_v30  ;;  %v4994_v30 = vld [vmem:[#allocation2 + $0x170] sm:$0xff] }
 0x6da   : > { %5935 = vrot.lane.b32.xlu1 %v11941_v41, %s8456_s22  ;;  %5026 = vst.msk [vmem:[#allocation3 + $0x2e8] sm:$0xff] %vm388_vm0, %v4994_v30  ;;  %v8175_v30 = vld [vmem:[%s12799_s9 + $0x88] sm:$0xff]  }
 0x6db   : > { %5294 = vrot.lane.b32.xlu0 %v5673_v18, %s8456_s22  ;;  %v12049_v18 = vld [vmem:[#allocation2 + $0xe1] sm:$0xff]  ;;  %7782 = vmatprep.subr.bf16.mxu1 %v8175_v30 }
 0x6dc   : > { %v5094_v54 = vpop.permute.xlu0 %5093  ;;  %5655 = vst.msk [vmem:[#allocation3 + $0x1a0] sm:$0xff] %vm388_vm0, %v12049_v18 }
 0x6dd   : > { %5189 = vst.msk [vmem:[#allocation3 + $0x18] sm:$0xff] %vm802_vm3, %v5094_v54  ;;  %v4993_v54 = vld [vmem:[#allocation2 + $0x168] sm:$0xff] }
 0x6de   : > { %5292 = vrot.lane.b32.xlu1 %v5672_v0, %s8456_s22  ;;  %5025 = vst.msk [vmem:[#allocation3 + $0x2d0] sm:$0xff] %vm388_vm0, %v4993_v54 }
 0x6df   : > { %6129 = vrot.lane.b32.xlu0 %v11740_v29, %s8457_s14 }
 0x6e0   : > { %v5096_v27 = vpop.permute.xlu1 %5095 }
 0x6e1   : > { %5190 = vst.msk [vmem:[#allocation3 + $0x30] sm:$0xff] %vm802_vm3, %v5096_v27  ;;  %v5100_v13 = vpop.permute.xlu0 %5099 }
 0x6e2   : > { %6127 = vrot.lane.b32.xlu1 %v11686_v19, %s8457_s14  ;;  %5192 = vst.msk [vmem:[#allocation3 + $0x60] sm:$0xff] %vm802_vm3, %v5100_v13  ;;  %v11973_v19 = vld [vmem:[#allocation2 + $0x16a] sm:$0xff]  ;;  %v12069_v13 = vld [vmem:[#allocation2 + $0xda] sm:$0xff] }
 0x6e3   : > { %5487 = vrot.lane.b32.xlu0 %v11710_v43, %s8457_s14  ;;  %6293 = vst.msk [vmem:[#allocation3 + $0x160] sm:$0xff] %vm388_vm0, %v12069_v13 }
 0x6e4   : > { %v5098_v49 = vpop.permute.xlu1 %5097 }
 0x6e5   : > { %5191 = vst.msk [vmem:[#allocation3 + $0x48] sm:$0xff] %vm802_vm3, %v5098_v49  ;;  %v5104_v36 = vpop.permute.xlu0 %5103  ;;  %v12071_v49 = vld [vmem:[#allocation2 + $0xe2] sm:$0xff] }
 0x6e6   : > { %5485 = vrot.lane.b32.xlu1 %v11712_v2, %s8457_s14  ;;  %5194 = vst.msk [vmem:[#allocation3 + $0x90] sm:$0xff] %vm802_vm3, %v5104_v36  ;;  %v5701_v36 = vld [vmem:[#allocation2 + $0x18a] sm:$0xff] }
 0x6e7   : > { %5792 = vrot.lane.b32.xlu0 %v11965_v4, %s8455_s27  ;;  %6294 = vst.msk [vmem:[#allocation3 + $0x178] sm:$0xff] %vm388_vm0, %v12071_v49 }
 0x6e8   : > { %v5102_v14 = vpop.permute.xlu1 %5101 }
 0x6e9   : > { %5193 = vst.msk [vmem:[#allocation3 + $0x78] sm:$0xff] %vm802_vm3, %v5102_v14  ;;  %v5108_v43 = vpop.permute.xlu0 %5107 }
 0x6ea   : > { %5790 = vrot.lane.b32.xlu1 %v11973_v19, %s8455_s27  ;;  %5196 = vst.msk [vmem:[#allocation3 + $0xc0] sm:$0xff] %vm802_vm3, %v5108_v43  ;;  %v5700_v43 = vld [vmem:[#allocation2 + $0x182] sm:$0xff] }
 0x6eb   : > { %5149 = vrot.lane.b32.xlu0 %v11692_v44, %s8455_s27  ;;  %v11997_v44 = vld [vmem:[#allocation2 + $0x180] sm:$0xff] }
 0x6ec   : > { %v5106_v2 = vpop.permute.xlu1 %5105 }
 0x6ed   : > { %5195 = vst.msk [vmem:[#allocation3 + $0xa8] sm:$0xff] %vm802_vm3, %v5106_v2  ;;  %v5737_v25 = vpop.permute.xlu0 %5736 }
 0x6ee   : > { %5147 = vrot.lane.b32.xlu1 %v11694_v6, %s8455_s27  ;;  %5831 = vst.msk [vmem:[#allocation3 + $0x20] sm:$0xff] %vm802_vm3, %v5737_v25  ;;  %v5612_v6 = vld [vmem:[#allocation2 + $0x61] sm:$0xff] }
 0x6ef   : > { %5985 = vrot.lane.b32.xlu0 %v11981_v46, %s8456_s22  ;;  %5644 = vst.msk [vmem:[#allocation3 + $0x98] sm:$0xff] %vm388_vm0, %v5612_v6  ;;  %v5893_v6 = vld [vmem:[#allocation2 + $0x198] sm:$0xff] }
 0x6f0   : > { %v5735_v38 = vpop.permute.xlu1 %5734 }
 0x6f1   : > { %5830 = vst.msk [vmem:[#allocation3 + $0x8] sm:$0xff] %vm802_vm3, %v5735_v38  ;;  %v5930_v24 = vpop.permute.xlu0 %5929  ;;  %v5894_v38 = vld [vmem:[#allocation2 + $0x1a0] sm:$0xff] }
 0x6f2   : > { %5983 = vrot.lane.b32.xlu1 %v11997_v44, %s8456_s22  ;;  %6024 = vst.msk [vmem:[#allocation3 + $0x20] sm:$0xff] %vm995_vm4, %v5930_v24 }
 0x6f3   : > { %5342 = vrot.lane.b32.xlu0 %v11872_v62, %s8456_s22 }
 0x6f4   : > { %v5928_v60 = vpop.permute.xlu1 %5927 }
 0x6f5   : > { %6023 = vst.msk [vmem:[#allocation3 + $0x8] sm:$0xff] %vm995_vm4, %v5928_v60  ;;  %v5287_v17 = vpop.permute.xlu0 %5286 }
 0x6f6   : > { %5340 = vrot.lane.b32.xlu1 %v11878_v34, %s8456_s22  ;;  %5382 = vst.msk [vmem:[#allocation3 + $0x18] sm:$0xff] %vm995_vm4, %v5287_v17 }
 0x6f7   : > { %6177 = vrot.lane.b32.xlu0 %v11769_v40, %s8457_s14  ;;  %v12034_v40 = vld [vmem:[#allocation2 + $0x62] sm:$0xff] }
 0x6f8   : > { %v5285_v50 = vpop.permute.xlu1 %5284 }
 0x6f9   : > { %5381 = vst.msk [vmem:[#allocation3] sm:$0xff] %vm995_vm4, %v5285_v50  ;;  %v6122_v53 = vpop.permute.xlu0 %6121 }
 0x6fa   : > { %6175 = vrot.lane.b32.xlu1 %v11771_v5, %s8457_s14  ;;  %6216 = vst.msk [vmem:[#allocation3 + $0x20] sm:$0xff] %vm1188_vm5, %v6122_v53  ;;  %v12098_v53 = vld [vmem:[#allocation2 + $0xf1] sm:$0xff] }
 0x6fb   : > { %5535 = vrot.lane.b32.xlu0 %v11892_v23, %s8457_s14  ;;  %5656 = vst.msk [vmem:[#allocation3 + $0x1b8] sm:$0xff] %vm388_vm0, %v12098_v53 }
 0x6fc   : > { %v6120_v20 = vpop.permute.xlu1 %6119 }
 0x6fd   : > { %6215 = vst.msk [vmem:[#allocation3 + $0x8] sm:$0xff] %vm1188_vm5, %v6120_v20  ;;  %v5480_v47 = vpop.permute.xlu0 %5479  ;;  %v12100_v20 = vld [vmem:[#allocation2 + $0xf9] sm:$0xff] }
 0x6fe   : > { %5533 = vrot.lane.b32.xlu1 %v11898_v9, %s8457_s14  ;;  %5575 = vst.msk [vmem:[#allocation3 + $0x18] sm:$0xff] %vm1188_vm5, %v5480_v47 }
 0x6ff   : > { %5748 = vrot.lane.b32.xlu0 %v12026_v39, %s8455_s27  ;;  %5657 = vst.msk [vmem:[#allocation3 + $0x1d0] sm:$0xff] %vm388_vm0, %v12100_v20 }
 0x700   : > { %v5478_v5 = vpop.permute.xlu1 %5477 }
 0x701   : > { %5574 = vst.msk [vmem:[#allocation3] sm:$0xff] %vm1188_vm5, %v5478_v5  ;;  %v5785_v1 = vpop.permute.xlu0 %5784  ;;  %v6315_v48 = vld [vmem:[#allocation3 + $0x20] sm:$0xff] }
 0x702   : > { %5746 = vrot.lane.b32.xlu1 %v12034_v40, %s8455_s27  ;;  %5855 = vst.msk [vmem:[#allocation3 + $0x260] sm:$0xff] %vm802_vm3, %v5785_v1  ;;  %v6086_v1 = vld [vmem:[#allocation2 + $0x1a1] sm:$0xff] }
 0x703   : > { %5941 = vrot.lane.b32.xlu0 %v12036_v59, %s8456_s22 }
 0x704   : > { %v5783_v11 = vpop.permute.xlu1 %5782  ;;  %v6312_v12 = vld [vmem:[#allocation3 + $0x8] sm:$0xff] }
 0x705   : > { %5854 = vst.msk [vmem:[#allocation3 + $0x248] sm:$0xff] %vm802_vm3, %v5783_v11  ;;  %v6408_v8 = vpack.c.bf16 %v6315_v48, %v6312_v12  ;;  %v5142_v32 = vpop.permute.xlu0 %5141  ;;  %v6314_v0 = vld [vmem:[#allocation3 + $0x18] sm:$0xff]  ;;  %v6085_v12 = vld [vmem:[#allocation2 + $0x199] sm:$0xff] }
 0x706   : > { %5939 = vrot.lane.b32.xlu1 %v12044_v22, %s8456_s22  ;;  %5213 = vst.msk [vmem:[#allocation3 + $0x258] sm:$0xff] %vm802_vm3, %v5142_v32  ;;  %v6247_v32 = vld [vmem:[#allocation2 + $0x32] sm:$0xff] }
 0x707   : > { %6649 = vmatprep.mubr.bf16.mxu0 %v6408_v8  ;;  %5298 = vrot.lane.b32.xlu0 %v11919_v33, %s8456_s22  ;;  %v4972_v8 = vld [vmem:[#allocation2 + $0x68] sm:$0xff]  ;;  %6279 = vst.msk [vmem:[#allocation3 + $0x10] sm:$0xff] %vm388_vm0, %v6247_v32  ;;  %v12196_v32 = vld [vmem:[#allocation2 + $0x112] sm:$0xff] }
 0x708   : > { %v5140_v62 = vpop.permute.xlu1 %5139  ;;  %v6311_v34 = vld [vmem:[#allocation3] sm:$0xff]  ;;  %5004 = vst.msk [vmem:[#allocation3 + $0xd8] sm:$0xff] %vm388_vm0, %v4972_v8  ;;  %6298 = vst.msk [vmem:[#allocation3 + $0x1d8] sm:$0xff] %vm388_vm0, %v12196_v32 }
 0x709   : > { %5212 = vst.msk [vmem:[#allocation3 + $0x240] sm:$0xff] %vm802_vm3, %v5140_v62  ;;  %v6407_v23 = vpack.c.bf16 %v6314_v0, %v6311_v34  ;;  %v5978_v9 = vpop.permute.xlu0 %5977  ;;  %v6248_v0 = vld [vmem:[#allocation2 + $0x3a] sm:$0xff]  ;;  %v6249_v62 = vld [vmem:[#allocation2 + $0x4a] sm:$0xff]  ;;  %v6250_v34 = vld [vmem:[#allocation2 + $0x52] sm:$0xff] }
 0x70a   : > { %5296 = vrot.lane.b32.xlu1 %v11925_v56, %s8456_s22  ;;  %6048 = vst.msk [vmem:[#allocation3 + $0x260] sm:$0xff] %vm995_vm4, %v5978_v9  ;;  %v12121_v9 = vld [vmem:[#allocation2 + $0xfa] sm:$0xff]  ;;  %v12194_v8 = vld [vmem:[#allocation2 + $0x10a] sm:$0xff] }
 0x70b   : > { %6650 = vmatmul.mubr.bf16.vlgmr.msra.gmra.mxu0 %v6407_v23  ;;  %6133 = vrot.lane.b32.xlu0 %v11810_v55, %s8457_s14  ;;  %6280 = vst.msk [vmem:[#allocation3 + $0x28] sm:$0xff] %vm388_vm0, %v6248_v0  ;;  %v12119_v23 = vld [vmem:[#allocation2 + $0xf2] sm:$0xff]  ;;  %6281 = vst.msk [vmem:[#allocation3 + $0x40] sm:$0xff] %vm388_vm0, %v6249_v62 }
 0x70c   : > { %v5976_v27 = vpop.permute.xlu1 %5975  ;;  %6282 = vst.msk [vmem:[#allocation3 + $0x58] sm:$0xff] %vm388_vm0, %v6250_v34  ;;  %6295 = vst.msk [vmem:[#allocation3 + $0x190] sm:$0xff] %vm388_vm0, %v12119_v23 }
 0x70d   : > { %6047 = vst.msk [vmem:[#allocation3 + $0x248] sm:$0xff] %vm995_vm4, %v5976_v27  ;;  %v5335_v33 = vpop.permute.xlu0 %5334 }
 0x70e   : > { %6131 = vrot.lane.b32.xlu1 %v11812_v45, %s8457_s14  ;;  %5406 = vst.msk [vmem:[#allocation3 + $0x258] sm:$0xff] %vm995_vm4, %v5335_v33  ;;  %v8176_v33 = vld [vmem:[%s12799_s9 + $0x80] sm:$0xff]  }
 0x70f   : > { %5491 = vrot.lane.b32.xlu0 %v11927_v15, %s8457_s14  ;;  %6296 = vst.msk [vmem:[#allocation3 + $0x1a8] sm:$0xff] %vm388_vm0, %v12121_v9  ;;  %6297 = vst.msk [vmem:[#allocation3 + $0x1c0] sm:$0xff] %vm388_vm0, %v12194_v8 }
 0x710   : > { %v5333_v56 = vpop.permute.xlu1 %5332 }
 0x711   : > { %5405 = vst.msk [vmem:[#allocation3 + $0x240] sm:$0xff] %vm995_vm4, %v5333_v56  ;;  %v6170_v14 = vpop.permute.xlu0 %6169 }
 0x712   : > { %5489 = vrot.lane.b32.xlu1 %v11941_v41, %s8457_s14  ;;  %6240 = vst.msk [vmem:[#allocation3 + $0x260] sm:$0xff] %vm1188_vm5, %v6170_v14  ;;  %v6252_v14 = vld [vmem:[#allocation2 + $0x6a] sm:$0xff] }
 0x713   : > { %5796 = vrot.lane.b32.xlu0 %v5701_v36, %s8455_s27  ;;  %v12145_v36 = vld [vmem:[#allocation2 + $0x90] sm:$0xff]  ;;  %6284 = vst.msk [vmem:[#allocation3 + $0x88] sm:$0xff] %vm388_vm0, %v6252_v14 }
 0x714   : > { %v6168_v2 = vpop.permute.xlu1 %6167 }
 0x715   : > { %6239 = vst.msk [vmem:[#allocation3 + $0x248] sm:$0xff] %vm1188_vm5, %v6168_v2  ;;  %v5528_v25 = vpop.permute.xlu0 %5527  ;;  %v12149_v2 = vld [vmem:[#allocation2 + $0x108] sm:$0xff] }
 0x716   : > { %5794 = vrot.lane.b32.xlu1 %v5700_v43, %s8455_s27  ;;  %5599 = vst.msk [vmem:[#allocation3 + $0x258] sm:$0xff] %vm1188_vm5, %v5528_v25 }
 0x717   : > { %5153 = vrot.lane.b32.xlu0 %v11728_v37, %s8455_s27  ;;  %5017 = vst.msk [vmem:[#allocation3 + $0x210] sm:$0xff] %vm388_vm0, %v12149_v2 }
 0x718   : > { %v5526_v15 = vpop.permute.xlu1 %5525 }
 0x719   : > { %5598 = vst.msk [vmem:[#allocation3 + $0x240] sm:$0xff] %vm1188_vm5, %v5526_v15  ;;  %v5741_v41 = vpop.permute.xlu0 %5740  ;;  %v6387_v24 = vld [vmem:[#allocation3 + $0x260] sm:$0xff] }
 0x71a   : > { %5151 = vrot.lane.b32.xlu1 %v11734_v57, %s8455_s27  ;;  %5833 = vst.msk [vmem:[#allocation3 + $0x50] sm:$0xff] %vm802_vm3, %v5741_v41 }
 0x71b   : > { %5989 = vrot.lane.b32.xlu0 %v5894_v38, %s8456_s22 }
 0x71c   : > { %v5739_v60 = vpop.permute.xlu1 %5738  ;;  %v6384_v17 = vld [vmem:[#allocation3 + $0x248] sm:$0xff] }
 0x71d   : > { %5832 = vst.msk [vmem:[#allocation3 + $0x38] sm:$0xff] %vm802_vm3, %v5739_v60  ;;  %v6444_v50 = vpack.c.bf16 %v6387_v24, %v6384_v17  ;;  %v5934_v37 = vpop.permute.xlu0 %5933  ;;  %v6386_v57 = vld [vmem:[#allocation3 + $0x258] sm:$0xff]  ;;  %v12167_v60 = vld [vmem:[#allocation2 + $0x98] sm:$0xff] }
 0x71e   : > { %5987 = vrot.lane.b32.xlu1 %v5893_v6, %s8456_s22  ;;  %6026 = vst.msk [vmem:[#allocation3 + $0x50] sm:$0xff] %vm995_vm4, %v5934_v37 }
 0x71f   : > { %6745 = vmatprep.mubr.bf16.mxu1 %v6444_v50  ;;  %5346 = vrot.lane.b32.xlu0 %v11965_v4, %s8456_s22 }
 0x720   : > { %v5932_v47 = vpop.permute.xlu1 %5931  ;;  %v6383_v5 = vld [vmem:[#allocation3 + $0x240] sm:$0xff] }
 0x721   : > { %6025 = vst.msk [vmem:[#allocation3 + $0x38] sm:$0xff] %vm995_vm4, %v5932_v47  ;;  %v6443_v48 = vpack.c.bf16 %v6386_v57, %v6383_v5  ;;  %v5291_v11 = vpop.permute.xlu0 %5290  ;;  %v12172_v47 = vld [vmem:[#allocation2 + $0x109] sm:$0xff]  ;;  %v12174_v5 = vld [vmem:[#allocation2 + $0x111] sm:$0xff] }
 0x722   : > { %5344 = vrot.lane.b32.xlu1 %v11973_v19, %s8456_s22  ;;  %5384 = vst.msk [vmem:[#allocation3 + $0x48] sm:$0xff] %vm995_vm4, %v5291_v11 }
 0x723   : > { %6746 = vmatmul.mubr.bf16.vlgmr.msra.gmra.mxu1 %v6443_v48  ;;  %6181 = vrot.lane.b32.xlu0 %v6086_v1, %s8457_s14  ;;  %5658 = vst.msk [vmem:[#allocation3 + $0x1e8] sm:$0xff] %vm388_vm0, %v12172_v47  ;;  %5659 = vst.msk [vmem:[#allocation3 + $0x200] sm:$0xff] %vm388_vm0, %v12174_v5  ;;  %v4973_v1 = vld [vmem:[#allocation2 + $0x78] sm:$0xff]  ;;  %v4974_v48 = vld [vmem:[#allocation2 + $0x80] sm:$0xff] }
 0x724   : > { %v5289_v4 = vpop.permute.xlu1 %5288  ;;  %7783 = vmatpush3.bf16.msra.mxu1 %v8175_v30  ;;  %5005 = vst.msk [vmem:[#allocation3 + $0xf0] sm:$0xff] %vm388_vm0, %v4973_v1  ;;  %5006 = vst.msk [vmem:[#allocation3 + $0x108] sm:$0xff] %vm388_vm0, %v4974_v48 }
 0x725   : > { %5383 = vst.msk [vmem:[#allocation3 + $0x30] sm:$0xff] %vm995_vm4, %v5289_v4  ;;  %v6126_v19 = vpop.permute.xlu0 %6125  ;;  %7784 = vmatprep.subr.bf16.mxu1 %v8176_v33  ;;  %v12213_v4 = vld [vmem:[#allocation2 + $0xa8] sm:$0xff] }
 0x726   : > { %6179 = vrot.lane.b32.xlu1 %v6085_v12, %s8457_s14  ;;  %6218 = vst.msk [vmem:[#allocation3 + $0x50] sm:$0xff] %vm1188_vm5, %v6126_v19 }
 0x727   : > { %5539 = vrot.lane.b32.xlu0 %v11981_v46, %s8457_s14  ;;  %v6251_v46 = vld [vmem:[#allocation2 + $0x62] sm:$0xff] }
 0x728   : > { %v6124_v54 = vpop.permute.xlu1 %6123  ;;  %7785 = vmatpush3.bf16.msra.mxu1 %v8176_v33  ;;  %6283 = vst.msk [vmem:[#allocation3 + $0x70] sm:$0xff] %vm388_vm0, %v6251_v46  ;;  %v12229_v33 = vld [vmem:[#allocation2 + $0x122] sm:$0xff] }
 0x729   : > { %6217 = vst.msk [vmem:[#allocation3 + $0x38] sm:$0xff] %vm1188_vm5, %v6124_v54  ;;  %v5484_v27 = vpop.permute.xlu0 %5483 }
 0x72a   : > { %5537 = vrot.lane.b32.xlu1 %v11997_v44, %s8457_s14  ;;  %5577 = vst.msk [vmem:[#allocation3 + $0x48] sm:$0xff] %vm1188_vm5, %v5484_v27  ;;  %v12151_v44 = vld [vmem:[#allocation2 + $0x110] sm:$0xff] }
 0x72b   : > { %5752 = vrot.lane.b32.xlu0 %v11860_v61, %s8455_s27  ;;  %5018 = vst.msk [vmem:[#allocation3 + $0x228] sm:$0xff] %vm388_vm0, %v12151_v44  ;;  %v12225_v27 = vld [vmem:[#allocation2 + $0xb0] sm:$0xff]  ;;  %6299 = vst.msk [vmem:[#allocation3 + $0x1f0] sm:$0xff] %vm388_vm0, %v12229_v33 }
 0x72c   : > { %v5482_v56 = vpop.permute.xlu1 %5481 }
 0x72d   : > { %5576 = vst.msk [vmem:[#allocation3 + $0x30] sm:$0xff] %vm1188_vm5, %v5482_v56  ;;  %v5789_v43 = vpop.permute.xlu0 %5788  ;;  %v6321_v25 = vld [vmem:[#allocation3 + $0x50] sm:$0xff] }
 0x72e   : > { %5750 = vrot.lane.b32.xlu1 %v11852_v3, %s8455_s27  ;;  %5857 = vst.msk [vmem:[#allocation3 + $0x290] sm:$0xff] %vm802_vm3, %v5789_v43  ;;  %v12234_v43 = vld [vmem:[#allocation2 + $0x121] sm:$0xff] }
 0x72f   : > { %5943 = vrot.lane.b32.xlu0 %v12145_v36, %s8456_s22  ;;  %5660 = vst.msk [vmem:[#allocation3 + $0x218] sm:$0xff] %vm388_vm0, %v12234_v43 }
 0x730   : > { %v5787_v15 = vpop.permute.xlu1 %5786  ;;  %v6318_v38 = vld [vmem:[#allocation3 + $0x38] sm:$0xff] }
 0x731   : > { %5856 = vst.msk [vmem:[#allocation3 + $0x278] sm:$0xff] %vm802_vm3, %v5787_v15  ;;  %v6411_v41 = vpack.c.bf16 %v6321_v25, %v6318_v38  ;;  %v5146_v24 = vpop.permute.xlu0 %5145  ;;  %v6320_v6 = vld [vmem:[#allocation3 + $0x48] sm:$0xff]  ;;  %v12236_v25 = vld [vmem:[#allocation2 + $0x129] sm:$0xff] }
 0x732   : > { %5109 = vrot.lane.b32.xlu1 %v11740_v29, %s8455_s27  ;;  %5215 = vst.msk [vmem:[#allocation3 + $0x288] sm:$0xff] %vm802_vm3, %v5146_v24  ;;  %v12238_v15 = vld [vmem:[#allocation2 + $0x12a] sm:$0xff]  ;;  %v6270_v38 = vld [vmem:[#allocation2 + $0x142] sm:$0xff] }
 0x733   : > { %6657 = vmatprep.mubr.bf16.mxu0 %v6411_v41  ;;  %5300 = vrot.lane.b32.xlu0 %v12034_v40, %s8456_s22  ;;  %6300 = vst.msk [vmem:[#allocation3 + $0x208] sm:$0xff] %vm388_vm0, %v12238_v15  ;;  %5661 = vst.msk [vmem:[#allocation3 + $0x230] sm:$0xff] %vm388_vm0, %v12236_v25 }
 0x734   : > { %v5144_v17 = vpop.permute.xlu1 %5143  ;;  %v6317_v50 = vld [vmem:[#allocation3 + $0x30] sm:$0xff]  ;;  %6302 = vst.msk [vmem:[#allocation3 + $0x238] sm:$0xff] %vm388_vm0, %v6270_v38 }
 0x735   : > { %5214 = vst.msk [vmem:[#allocation3 + $0x270] sm:$0xff] %vm802_vm3, %v5144_v17  ;;  %v6410_v37 = vpack.c.bf16 %v6320_v6, %v6317_v50  ;;  %v5982_v57 = vpop.permute.xlu0 %5981  ;;  %v4975_v6 = vld [vmem:[#allocation2 + $0x90] sm:$0xff]  ;;  %v4976_v17 = vld [vmem:[#allocation2 + $0x98] sm:$0xff] }
 0x736   : > { %5945 = vrot.lane.b32.xlu1 %v12167_v60, %s8456_s22  ;;  %6050 = vst.msk [vmem:[#allocation3 + $0x290] sm:$0xff] %vm995_vm4, %v5982_v57  ;;  %v6272_v57 = vld [vmem:[#allocation2 + $0x15a] sm:$0xff] }
 0x737   : > { %6658 = vmatmul.mubr.bf16.gmra.mxu0 %v6410_v37  ;;  %6135 = vrot.lane.b32.xlu0 %v11880_v35, %s8457_s14  ;;  %5007 = vst.msk [vmem:[#allocation3 + $0x120] sm:$0xff] %vm388_vm0, %v4975_v6  ;;  %5008 = vst.msk [vmem:[#allocation3 + $0x138] sm:$0xff] %vm388_vm0, %v4976_v17  ;;  %v6271_v37 = vld [vmem:[#allocation2 + $0x152] sm:$0xff] }
 0x738   : > { %v5980_v29 = vpop.permute.xlu1 %5979  ;;  %6303 = vst.msk [vmem:[#allocation3 + $0x250] sm:$0xff] %vm388_vm0, %v6271_v37  ;;  %6304 = vst.msk [vmem:[#allocation3 + $0x268] sm:$0xff] %vm388_vm0, %v6272_v57 }
 0x739   : > { %6049 = vst.msk [vmem:[#allocation3 + $0x278] sm:$0xff] %vm995_vm4, %v5980_v29  ;;  %v5339_v40 = vpop.permute.xlu0 %5338  ;;  %v6273_v29 = vld [vmem:[#allocation2 + $0x16a] sm:$0xff] }
 0x73a   : > { %5302 = vrot.lane.b32.xlu1 %v12026_v39, %s8456_s22  ;;  %5408 = vst.msk [vmem:[#allocation3 + $0x288] sm:$0xff] %vm995_vm4, %v5339_v40 }
 0x73b   : > { %5493 = vrot.lane.b32.xlu0 %v12044_v22, %s8457_s14  ;;  %6305 = vst.msk [vmem:[#allocation3 + $0x280] sm:$0xff] %vm388_vm0, %v6273_v29 }
 0x73c   : > { %v5337_v11 = vpop.permute.xlu1 %5336 }
 0x73d   : > { %5407 = vst.msk [vmem:[#allocation3 + $0x270] sm:$0xff] %vm995_vm4, %v5337_v11  ;;  %v6174_v12 = vpop.permute.xlu0 %6173  ;;  %v6275_v11 = vld [vmem:[#allocation2 + $0x182] sm:$0xff] }
 0x73e   : > { %6137 = vrot.lane.b32.xlu1 %v11882_v28, %s8457_s14  ;;  %6242 = vst.msk [vmem:[#allocation3 + $0x290] sm:$0xff] %vm1188_vm5, %v6174_v12  ;;  %v6276_v12 = vld [vmem:[#allocation2 + $0x18a] sm:$0xff] }
 0x73f   : > { %5754 = vrot.lane.b32.xlu0 %v11900_v21, %s8455_s27  ;;  %6307 = vst.msk [vmem:[#allocation3 + $0x2b0] sm:$0xff] %vm388_vm0, %v6275_v11  ;;  %6308 = vst.msk [vmem:[#allocation3 + $0x2c8] sm:$0xff] %vm388_vm0, %v6276_v12  ;;  %v4980_v12 = vld [vmem:[#allocation2 + $0xc8] sm:$0xff] }
 0x740   : > { %v6172_v39 = vpop.permute.xlu1 %6171  ;;  %5012 = vst.msk [vmem:[#allocation3 + $0x198] sm:$0xff] %vm388_vm0, %v4980_v12 }
 0x741   : > { %6241 = vst.msk [vmem:[#allocation3 + $0x278] sm:$0xff] %vm1188_vm5, %v6172_v39  ;;  %v5532_v22 = vpop.permute.xlu0 %5531 }
 0x742   : > { %5495 = vrot.lane.b32.xlu1 %v12036_v59, %s8457_s14  ;;  %5601 = vst.msk [vmem:[#allocation3 + $0x288] sm:$0xff] %vm1188_vm5, %v5532_v22 }
 0x743   : > { %5111 = vrot.lane.b32.xlu0 %v11812_v45, %s8455_s27 }
 0x744   : > { %v5530_v0 = vpop.permute.xlu1 %5529 }
 0x745   : > { %5600 = vst.msk [vmem:[#allocation3 + $0x270] sm:$0xff] %vm1188_vm5, %v5530_v0  ;;  %v5745_v62 = vpop.permute.xlu0 %5744  ;;  %v6393_v34 = vld [vmem:[#allocation3 + $0x290] sm:$0xff] }
 0x746   : > { %5756 = vrot.lane.b32.xlu1 %v11902_v16, %s8455_s27  ;;  %5835 = vst.msk [vmem:[#allocation3 + $0x80] sm:$0xff] %vm802_vm3, %v5745_v62  ;;  %v12277_v0 = vld [vmem:[#allocation2 + $0xc0] sm:$0xff] }
 0x747   : > { %5947 = vrot.lane.b32.xlu0 %v12213_v4, %s8456_s22 }
 0x748   : > { %v5743_v59 = vpop.permute.xlu1 %5742  ;;  %v6390_v19 = vld [vmem:[#allocation3 + $0x278] sm:$0xff] }
 0x749   : > { %5834 = vst.msk [vmem:[#allocation3 + $0x68] sm:$0xff] %vm802_vm3, %v5743_v59  ;;  %v6447_v45 = vpack.c.bf16 %v6393_v34, %v6390_v19  ;;  %v5938_v30 = vpop.permute.xlu0 %5937  ;;  %v6392_v54 = vld [vmem:[#allocation3 + $0x288] sm:$0xff]  ;;  %v6278_v59 = vld [vmem:[#allocation2 + $0x1a2] sm:$0xff] }
 0x74a   : > { %5113 = vrot.lane.b32.xlu1 %v11810_v55, %s8455_s27  ;;  %6028 = vst.msk [vmem:[#allocation3 + $0x80] sm:$0xff] %vm995_vm4, %v5938_v30  ;;  %v6277_v34 = vld [vmem:[#allocation2 + $0x19a] sm:$0xff] }
 0x74b   : > { %6753 = vmatprep.mubr.bf16.mxu1 %v6447_v45  ;;  %5304 = vrot.lane.b32.xlu0 %v11852_v3, %s8456_s22  ;;  %v6269_v3 = vld [vmem:[#allocation2 + $0x13a] sm:$0xff]  ;;  %6309 = vst.msk [vmem:[#allocation3 + $0x2e0] sm:$0xff] %vm388_vm0, %v6277_v34  ;;  %6310 = vst.msk [vmem:[#allocation3 + $0x2f8] sm:$0xff] %vm388_vm0, %v6278_v59 }
 0x74c   : > { %v5936_v46 = vpop.permute.xlu1 %5935  ;;  %v6389_v56 = vld [vmem:[#allocation3 + $0x270] sm:$0xff]  ;;  %6301 = vst.msk [vmem:[#allocation3 + $0x220] sm:$0xff] %vm388_vm0, %v6269_v3  ;;  %v4978_v3 = vld [vmem:[#allocation2 + $0xb0] sm:$0xff] }
 0x74d   : > { %6027 = vst.msk [vmem:[#allocation3 + $0x68] sm:$0xff] %vm995_vm4, %v5936_v46  ;;  %v6446_v14 = vpack.c.bf16 %v6392_v54, %v6389_v56  ;;  %v5295_v55 = vpop.permute.xlu0 %5294  ;;  %v12293_v46 = vld [vmem:[#allocation2 + $0xc8] sm:$0xff] }
 0x74e   : > { %5949 = vrot.lane.b32.xlu1 %v12225_v27, %s8456_s22  ;;  %5386 = vst.msk [vmem:[#allocation3 + $0x78] sm:$0xff] %vm995_vm4, %v5295_v55 }
 0x74f   : > { %6754 = vmatmul.mubr.bf16.gmra.mxu1 %v6446_v14  ;;  %6139 = vrot.lane.b32.xlu0 %v11929_v52, %s8457_s14  ;;  %5010 = vst.msk [vmem:[#allocation3 + $0x168] sm:$0xff] %vm388_vm0, %v4978_v3 }
 0x750   : > { %v5293_v41 = vpop.permute.xlu1 %5292 }
 0x751   : > { %5385 = vst.msk [vmem:[#allocation3 + $0x60] sm:$0xff] %vm995_vm4, %v5293_v41  ;;  %v6130_v24 = vpop.permute.xlu0 %6129 }
 0x752   : > { %5306 = vrot.lane.b32.xlu1 %v11860_v61, %s8456_s22  ;;  %6220 = vst.msk [vmem:[#allocation3 + $0x80] sm:$0xff] %vm1188_vm5, %v6130_v24  ;;  %v6274_v61 = vld [vmem:[#allocation2 + $0x172] sm:$0xff] }
 0x753   : > { %5497 = vrot.lane.b32.xlu0 %v12145_v36, %s8457_s14  ;;  %6306 = vst.msk [vmem:[#allocation3 + $0x298] sm:$0xff] %vm388_vm0, %v6274_v61 }
 0x754   : > { %v6128_v50 = vpop.permute.xlu1 %6127 }
 0x755   : > { %6219 = vst.msk [vmem:[#allocation3 + $0x68] sm:$0xff] %vm1188_vm5, %v6128_v50  ;;  %v5488_v40 = vpop.permute.xlu0 %5487  ;;  %v12323_v50 = vld [vmem:[#allocation2 + $0xd8] sm:$0xff] }
 0x756   : > { %6141 = vrot.lane.b32.xlu1 %v11931_v7, %s8457_s14  ;;  %5579 = vst.msk [vmem:[#allocation3 + $0x78] sm:$0xff] %vm1188_vm5, %v5488_v40 }
 0x757   : > { %5758 = vrot.lane.b32.xlu0 %v11947_v63, %s8455_s27 }
 0x758   : > { %v5486_v36 = vpop.permute.xlu1 %5485 }
 0x759   : > { %5578 = vst.msk [vmem:[#allocation3 + $0x60] sm:$0xff] %vm1188_vm5, %v5486_v36  ;;  %v5793_v1 = vpop.permute.xlu0 %5792  ;;  %v6327_v48 = vld [vmem:[#allocation3 + $0x80] sm:$0xff]  ;;  %v12335_v36 = vld [vmem:[#allocation2 + $0xe0] sm:$0xff] }
 0x75a   : > { %5499 = vrot.lane.b32.xlu1 %v12167_v60, %s8457_s14  ;;  %5859 = vst.msk [vmem:[#allocation3 + $0x2c0] sm:$0xff] %vm802_vm3, %v5793_v1 }
 0x75b   : > { %5115 = vrot.lane.b32.xlu0 %v11880_v35, %s8455_s27 }
 0x75c   : > { %v5791_v39 = vpop.permute.xlu1 %5790  ;;  %v6324_v22 = vld [vmem:[#allocation3 + $0x68] sm:$0xff] }
 0x75d   : > { %5858 = vst.msk [vmem:[#allocation3 + $0x2a8] sm:$0xff] %vm802_vm3, %v5791_v39  ;;  %v6414_v62 = vpack.c.bf16 %v6327_v48, %v6324_v22  ;;  %v5150_v60 = vpop.permute.xlu0 %5149  ;;  %v6326_v35 = vld [vmem:[#allocation3 + $0x78] sm:$0xff] }
 0x75e   : > { %5760 = vrot.lane.b32.xlu1 %v11949_v51, %s8455_s27  ;;  %5217 = vst.msk [vmem:[#allocation3 + $0x2b8] sm:$0xff] %vm802_vm3, %v5150_v60 }
 0x75f   : > { %6665 = vmatprep.mubr.bf16.mxu0 %v6414_v62  ;;  %5951 = vrot.lane.b32.xlu0 %v12277_v0, %s8456_s22 }
 0x760   : > { %v5148_v19 = vpop.permute.xlu1 %5147  ;;  %v6323_v45 = vld [vmem:[#allocation3 + $0x60] sm:$0xff] }
 0x761   : > { %5216 = vst.msk [vmem:[#allocation3 + $0x2a0] sm:$0xff] %vm802_vm3, %v5148_v19  ;;  %v6413_v30 = vpack.c.bf16 %v6326_v35, %v6323_v45  ;;  %v5986_v54 = vpop.permute.xlu0 %5985  ;;  %v12365_v45 = vld [vmem:[#allocation2 + $0xf0] sm:$0xff] }
 0x762   : > { %5117 = vrot.lane.b32.xlu1 %v11882_v28, %s8455_s27  ;;  %6052 = vst.msk [vmem:[#allocation3 + $0x2c0] sm:$0xff] %vm995_vm4, %v5986_v54 }
 0x763   : > { %6666 = vmatmul.mubr.bf16.gmra.mxu0 %v6413_v30  ;;  %5308 = vrot.lane.b32.xlu0 %v11900_v21, %s8456_s22  ;;  %v4977_v21 = vld [vmem:[#allocation2 + $0xa8] sm:$0xff] }
 0x764   : > { %v5984_v56 = vpop.permute.xlu1 %5983  ;;  %5009 = vst.msk [vmem:[#allocation3 + $0x150] sm:$0xff] %vm388_vm0, %v4977_v21  ;;  %v4982_v21 = vld [vmem:[#allocation2 + $0xe0] sm:$0xff] }
 0x765   : > { %6051 = vst.msk [vmem:[#allocation3 + $0x2a8] sm:$0xff] %vm995_vm4, %v5984_v56  ;;  %v5343_v14 = vpop.permute.xlu0 %5342  ;;  %v12377_v56 = vld [vmem:[#allocation2 + $0xf8] sm:$0xff] }
 0x766   : > { %5953 = vrot.lane.b32.xlu1 %v12293_v46, %s8456_s22  ;;  %5410 = vst.msk [vmem:[#allocation3 + $0x2b8] sm:$0xff] %vm995_vm4, %v5343_v14 }
 0x767   : > { %6143 = vrot.lane.b32.xlu0 %v11984_v58, %s8457_s14  ;;  %5014 = vst.msk [vmem:[#allocation3 + $0x1c8] sm:$0xff] %vm388_vm0, %v4982_v21 }
 0x768   : > { %v5341_v28 = vpop.permute.xlu1 %5340 }
 0x769   : > { %5409 = vst.msk [vmem:[#allocation3 + $0x2a0] sm:$0xff] %vm995_vm4, %v5341_v28  ;;  %v6178_v55 = vpop.permute.xlu0 %6177 }
 0x76a   : > { %5310 = vrot.lane.b32.xlu1 %v11902_v16, %s8456_s22  ;;  %6244 = vst.msk [vmem:[#allocation3 + $0x2c0] sm:$0xff] %vm1188_vm5, %v6178_v55 }
 0x76b   : > { %5501 = vrot.lane.b32.xlu0 %v12213_v4, %s8457_s14 }
 0x76c   : > { %v6176_v38 = vpop.permute.xlu1 %6175 }
 0x76d   : > { %6243 = vst.msk [vmem:[#allocation3 + $0x2a8] sm:$0xff] %vm1188_vm5, %v6176_v38  ;;  %v5536_v41 = vpop.permute.xlu0 %5535 }
 0x76e   : > { %6145 = vrot.lane.b32.xlu1 %v11986_v31, %s8457_s14  ;;  %5603 = vst.msk [vmem:[#allocation3 + $0x2b8] sm:$0xff] %vm1188_vm5, %v5536_v41 }
 0x76f   : > { %5762 = vrot.lane.b32.xlu0 %v12007_v42, %s8455_s27 }
 0x770   : > { %v5534_v16 = vpop.permute.xlu1 %5533 }
 0x771   : > { %5602 = vst.msk [vmem:[#allocation3 + $0x2a0] sm:$0xff] %vm1188_vm5, %v5534_v16  ;;  %v5749_v4 = vpop.permute.xlu0 %5748  ;;  %v6399_v24 = vld [vmem:[#allocation3 + $0x2c0] sm:$0xff] }
 0x772   : > { %5503 = vrot.lane.b32.xlu1 %v12225_v27, %s8457_s14  ;;  %5837 = vst.msk [vmem:[#allocation3 + $0xb0] sm:$0xff] %vm802_vm3, %v5749_v4 }
 0x773   : > { %5119 = vrot.lane.b32.xlu0 %v11929_v52, %s8455_s27 }
 0x774   : > { %v5747_v6 = vpop.permute.xlu1 %5746  ;;  %v6396_v17 = vld [vmem:[#allocation3 + $0x2a8] sm:$0xff] }
 0x775   : > { %5836 = vst.msk [vmem:[#allocation3 + $0x98] sm:$0xff] %vm802_vm3, %v5747_v6  ;;  %v6450_v37 = vpack.c.bf16 %v6399_v24, %v6396_v17  ;;  %v5942_v57 = vpop.permute.xlu0 %5941  ;;  %v6398_v27 = vld [vmem:[#allocation3 + $0x2b8] sm:$0xff]  ;;  %v6313_v6 = vld [vmem:[#allocation3 + $0x10] sm:$0xff]  ;;  %v6316_v17 = vld [vmem:[#allocation3 + $0x28] sm:$0xff] }
 0x776   : > { %5764 = vrot.lane.b32.xlu1 %v12009_v10, %s8455_s27  ;;  %6030 = vst.msk [vmem:[#allocation3 + $0xb0] sm:$0xff] %vm995_vm4, %v5942_v57 }
 0x777   : > { %6761 = vmatprep.mubr.bf16.mxu1 %v6450_v37  ;;  %5955 = vrot.lane.b32.xlu0 %v12323_v50, %s8456_s22 }
 0x778   : > { %v5940_v29 = vpop.permute.xlu1 %5939  ;;  %v6395_v52 = vld [vmem:[#allocation3 + $0x2a0] sm:$0xff] }
 0x779   : > { %6029 = vst.msk [vmem:[#allocation3 + $0x98] sm:$0xff] %vm995_vm4, %v5940_v29  ;;  %v6449_v40 = vpack.c.bf16 %v6398_v27, %v6395_v52  ;;  %v5299_v61 = vpop.permute.xlu0 %5298  ;;  %v6409_v27 = vpack.c.bf16 %v6316_v17, %v6313_v6  ;;  %v6361_v6 = vld [vmem:[#allocation3 + $0x190] sm:$0xff]  ;;  %v6364_v17 = vld [vmem:[#allocation3 + $0x1a8] sm:$0xff] }
 0x77a   : > { %5121 = vrot.lane.b32.xlu1 %v11931_v7, %s8455_s27  ;;  %5388 = vst.msk [vmem:[#allocation3 + $0xa8] sm:$0xff] %vm995_vm4, %v5299_v61  ;;  %v6322_v61 = vld [vmem:[#allocation3 + $0x58] sm:$0xff] }
 0x77b   : > { %6762 = vmatmul.mubr.bf16.gmra.mxu1 %v6449_v40  ;;  %5312 = vrot.lane.b32.xlu0 %v11947_v63, %s8456_s22  ;;  %v4979_v63 = vld [vmem:[#allocation2 + $0xc0] sm:$0xff] }
 0x77c   : > { %v5297_v1 = vpop.permute.xlu1 %5296  ;;  %5011 = vst.msk [vmem:[#allocation3 + $0x180] sm:$0xff] %vm388_vm0, %v4979_v63 }
 0x77d   : > { %5387 = vst.msk [vmem:[#allocation3 + $0x90] sm:$0xff] %vm995_vm4, %v5297_v1  ;;  %v6134_v48 = vpop.permute.xlu0 %6133  ;;  %v6325_v1 = vld [vmem:[#allocation3 + $0x70] sm:$0xff] }
 0x77e   : > { %5957 = vrot.lane.b32.xlu1 %v12335_v36, %s8456_s22  ;;  %6222 = vst.msk [vmem:[#allocation3 + $0xb0] sm:$0xff] %vm1188_vm5, %v6134_v48  ;;  %v6328_v48 = vld [vmem:[#allocation3 + $0x88] sm:$0xff] }
 0x77f   : > { %6147 = vrot.lane.b32.xlu0 %v12047_v26, %s8457_s14  ;;  %v6415_v63 = vpack.c.bf16 %v6328_v48, %v6325_v1 }
 0x780   : > { %v6132_v7 = vpop.permute.xlu1 %6131 }
 0x781   : > { %6221 = vst.msk [vmem:[#allocation3 + $0x98] sm:$0xff] %vm1188_vm5, %v6132_v7  ;;  %v5492_v11 = vpop.permute.xlu0 %5491 }
 0x782   : > { %5314 = vrot.lane.b32.xlu1 %v11949_v51, %s8456_s22  ;;  %5581 = vst.msk [vmem:[#allocation3 + $0xa8] sm:$0xff] %vm1188_vm5, %v5492_v11 }
 0x783   : > { %5505 = vrot.lane.b32.xlu0 %v12277_v0, %s8457_s14 }
 0x784   : > { %v5490_v39 = vpop.permute.xlu1 %5489 }
 0x785   : > { %5580 = vst.msk [vmem:[#allocation3 + $0x90] sm:$0xff] %vm1188_vm5, %v5490_v39  ;;  %v5797_v22 = vpop.permute.xlu0 %5796  ;;  %v6333_v51 = vld [vmem:[#allocation3 + $0xb0] sm:$0xff]  ;;  %v6331_v39 = vld [vmem:[#allocation3 + $0xa0] sm:$0xff] }
 0x786   : > { %6149 = vrot.lane.b32.xlu1 %v12049_v18, %s8457_s14  ;;  %5861 = vst.msk [vmem:[#allocation3 + $0x2f0] sm:$0xff] %vm802_vm3, %v5797_v22 }
 0x787   : > { %5766 = vrot.lane.b32.xlu0 %v12069_v13, %s8455_s27 }
 0x788   : > { %v5795_v0 = vpop.permute.xlu1 %5794  ;;  %v6330_v62 = vld [vmem:[#allocation3 + $0x98] sm:$0xff] }
 0x789   : > { %5860 = vst.msk [vmem:[#allocation3 + $0x2d8] sm:$0xff] %vm802_vm3, %v5795_v0  ;;  %v6417_v60 = vpack.c.bf16 %v6333_v51, %v6330_v62  ;;  %v5154_v35 = vpop.permute.xlu0 %5153  ;;  %v6332_v34 = vld [vmem:[#allocation3 + $0xa8] sm:$0xff]  ;;  %v6337_v51 = vld [vmem:[#allocation3 + $0xd0] sm:$0xff] }
 0x78a   : > { %5507 = vrot.lane.b32.xlu1 %v12293_v46, %s8457_s14  ;;  %5219 = vst.msk [vmem:[#allocation3 + $0x2e8] sm:$0xff] %vm802_vm3, %v5154_v35  ;;  %v6340_v0 = vld [vmem:[#allocation3 + $0xe8] sm:$0xff] }
 0x78b   : > { %6673 = vmatprep.mubr.bf16.mxu0 %v6417_v60  ;;  %5123 = vrot.lane.b32.xlu0 %v11984_v58, %s8455_s27  ;;  %v4983_v60 = vld [vmem:[#allocation2 + $0xf0] sm:$0xff]  ;;  %v4984_v35 = vld [vmem:[#allocation2 + $0xf8] sm:$0xff] }
 0x78c   : > { %v5152_v59 = vpop.permute.xlu1 %5151  ;;  %v6329_v19 = vld [vmem:[#allocation3 + $0x90] sm:$0xff]  ;;  %5015 = vst.msk [vmem:[#allocation3 + $0x1e0] sm:$0xff] %vm388_vm0, %v4983_v60  ;;  %5016 = vst.msk [vmem:[#allocation3 + $0x1f8] sm:$0xff] %vm388_vm0, %v4984_v35  ;;  %v5885_v35 = vld [vmem:[#allocation2 + $0x138] sm:$0xff] }
 0x78d   : > { %5218 = vst.msk [vmem:[#allocation3 + $0x2d0] sm:$0xff] %vm802_vm3, %v5152_v59  ;;  %v6416_v30 = vpack.c.bf16 %v6332_v34, %v6329_v19  ;;  %v5990_v54 = vpop.permute.xlu0 %5989  ;;  %v6421_v59 = vpack.c.bf16 %v6340_v0, %v6337_v51 }
 0x78e   : > { %5768 = vrot.lane.b32.xlu1 %v12071_v49, %s8455_s27  ;;  %6054 = vst.msk [vmem:[#allocation3 + $0x2f0] sm:$0xff] %vm995_vm4, %v5990_v54  ;;  %v6343_v54 = vld [vmem:[#allocation3 + $0x100] sm:$0xff] }
 0x78f   : > { %6674 = vmatmul.mubr.bf16.gmra.mxu0 %v6416_v30  ;;  %5959 = vrot.lane.b32.xlu0 %v12365_v45, %s8456_s22 }
 0x790   : > { %v5988_v46 = vpop.permute.xlu1 %5987 }
 0x791   : > { %6053 = vst.msk [vmem:[#allocation3 + $0x2d8] sm:$0xff] %vm995_vm4, %v5988_v46  ;;  %v5347_v58 = vpop.permute.xlu0 %5346  ;;  %v6346_v46 = vld [vmem:[#allocation3 + $0x118] sm:$0xff] }
 0x792   : > { %5125 = vrot.lane.b32.xlu1 %v11986_v31, %s8455_s27  ;;  %5412 = vst.msk [vmem:[#allocation3 + $0x2e8] sm:$0xff] %vm995_vm4, %v5347_v58 }
 0x793   : > { %5316 = vrot.lane.b32.xlu0 %v12007_v42, %s8456_s22  ;;  %v4981_v42 = vld [vmem:[#allocation2 + $0xd8] sm:$0xff] }
 0x794   : > { %v5345_v14 = vpop.permute.xlu1 %5344  ;;  %5013 = vst.msk [vmem:[#allocation3 + $0x1b0] sm:$0xff] %vm388_vm0, %v4981_v42  ;;  %v6424_v42 = vpack.c.bf16 %v6346_v46, %v6343_v54 }
 0x795   : > { %5411 = vst.msk [vmem:[#allocation3 + $0x2d0] sm:$0xff] %vm995_vm4, %v5345_v14  ;;  %v6182_v28 = vpop.permute.xlu0 %6181 }
 0x796   : > { %5961 = vrot.lane.b32.xlu1 %v12377_v56, %s8456_s22  ;;  %6246 = vst.msk [vmem:[#allocation3 + $0x2f0] sm:$0xff] %vm1188_vm5, %v6182_v28  ;;  %v6349_v28 = vld [vmem:[#allocation3 + $0x130] sm:$0xff] }
 0x797   : > { %6151 = vrot.lane.b32.xlu0 %v12098_v53, %s8457_s14 }
 0x798   : > { %v6180_v31 = vpop.permute.xlu1 %6179 }
 0x799   : > { %6245 = vst.msk [vmem:[#allocation3 + $0x2d8] sm:$0xff] %vm1188_vm5, %v6180_v31  ;;  %v5540_v55 = vpop.permute.xlu0 %5539  ;;  %v6352_v31 = vld [vmem:[#allocation3 + $0x148] sm:$0xff] }
 0x79a   : > { %5318 = vrot.lane.b32.xlu1 %v12009_v10, %s8456_s22  ;;  %5605 = vst.msk [vmem:[#allocation3 + $0x2e8] sm:$0xff] %vm1188_vm5, %v5540_v55 }
 0x79b   : > { %5509 = vrot.lane.b32.xlu0 %v12323_v50, %s8457_s14 }
 0x79c   : > { %v5538_v3 = vpop.permute.xlu1 %5537 }
 0x79d   : > { %5604 = vst.msk [vmem:[#allocation3 + $0x2d0] sm:$0xff] %vm1188_vm5, %v5538_v3  ;;  %v5753_v38 = vpop.permute.xlu0 %5752  ;;  %v6405_v41 = vld [vmem:[#allocation3 + $0x2f0] sm:$0xff] }
 0x79e   : > { %6153 = vrot.lane.b32.xlu1 %v12100_v20, %s8457_s14  ;;  %5839 = vst.msk [vmem:[#allocation3 + $0xe0] sm:$0xff] %vm802_vm3, %v5753_v38  ;;  %v6427_v38 = vpack.c.bf16 %v6352_v31, %v6349_v28  ;;  %v6406_v28 = vld [vmem:[#allocation3 + $0x2f8] sm:$0xff] }
 0x79f   : > { %5770 = vrot.lane.b32.xlu0 %v12119_v23, %s8455_s27 }
 0x7a0   : > { %v5751_v10 = vpop.permute.xlu1 %5750  ;;  %v6402_v16 = vld [vmem:[#allocation3 + $0x2d8] sm:$0xff] }
 0x7a1   : > { %5838 = vst.msk [vmem:[#allocation3 + $0xc8] sm:$0xff] %vm802_vm3, %v5751_v10  ;;  %v6453_v4 = vpack.c.bf16 %v6405_v41, %v6402_v16  ;;  %v5944_v24 = vpop.permute.xlu0 %5943  ;;  %v6404_v50 = vld [vmem:[#allocation3 + $0x2e8] sm:$0xff]  ;;  %v12451_v16 = vld [vmem:[#allocation2 + $0x120] sm:$0xff] }
 0x7a2   : > { %5511 = vrot.lane.b32.xlu1 %v12335_v36, %s8457_s14  ;;  %6031 = vst.msk [vmem:[#allocation3 + $0xc8] sm:$0xff] %vm995_vm4, %v5944_v24 }
 0x7a3   : > { %6769 = vmatprep.mubr.bf16.mxu1 %v6453_v4  ;;  %5127 = vrot.lane.b32.xlu0 %v12047_v26, %s8455_s27  ;;  %v6319_v26 = vld [vmem:[#allocation3 + $0x40] sm:$0xff]  ;;  %v6358_v4 = vld [vmem:[#allocation3 + $0x178] sm:$0xff] }
 0x7a4   : > { %v5110_v37 = vpop.permute.xlu1 %5109  ;;  %v6401_v57 = vld [vmem:[#allocation3 + $0x2d0] sm:$0xff]  ;;  %v6412_v7 = vpack.c.bf16 %v6322_v61, %v6319_v26  ;;  %v6376_v61 = vld [vmem:[#allocation3 + $0x208] sm:$0xff] }
 0x7a5   : > { %5197 = vst.msk [vmem:[#allocation3 + $0xd8] sm:$0xff] %vm802_vm3, %v5110_v37  ;;  %v6452_v29 = vpack.c.bf16 %v6404_v50, %v6401_v57  ;;  %v5301_v52 = vpop.permute.xlu0 %5300  ;;  %v12464_v50 = vld [vmem:[#allocation2 + $0x128] sm:$0xff]  ;;  %v6373_v26 = vld [vmem:[#allocation3 + $0x1f0] sm:$0xff] }
 0x7a6   : > { %5772 = vrot.lane.b32.xlu1 %v12121_v9, %s8455_s27  ;;  %5389 = vst.msk [vmem:[#allocation3 + $0xc0] sm:$0xff] %vm995_vm4, %v5301_v52  ;;  %v6367_v52 = vld [vmem:[#allocation3 + $0x1c0] sm:$0xff] }
 0x7a7   : > { %6770 = vmatmul.mubr.bf16.gmra.mxu1 %v6452_v29  ;;  %5963 = vrot.lane.b32.xlu0 %v12149_v2, %s8456_s22 }
 0x7a8   : > { %v5946_v40 = vpop.permute.xlu1 %5945  ;;  %7786 = vmatprep.mubr.msk.bf16.mxu1 %vm388_vm0, %v6409_v27  ;;  %v6433_v27 = vpack.c.bf16 %v6364_v17, %v6361_v6 }
 0x7a9   : > { %6032 = vst.msk [vmem:[#allocation3 + $0xe0] sm:$0xff] %vm995_vm4, %v5946_v40  ;;  %v6136_v36 = vpop.permute.xlu0 %6135  ;;  %v6370_v40 = vld [vmem:[#allocation3 + $0x1d8] sm:$0xff] }
 0x7aa   : > { %5129 = vrot.lane.b32.xlu1 %v12049_v18, %s8455_s27  ;;  %6223 = vst.msk [vmem:[#allocation3 + $0xc8] sm:$0xff] %vm1188_vm5, %v6136_v36  ;;  %v6436_v36 = vpack.c.bf16 %v6370_v40, %v6367_v52 }
 0x7ab   : > { %5320 = vrot.lane.b32.xlu0 %v12069_v13, %s8456_s22  ;;  %v6334_v13 = vld [vmem:[#allocation3 + $0xb8] sm:$0xff] }
 0x7ac   : > { %v5303_v11 = vpop.permute.xlu1 %5302  ;;  %v6418_v62 = vpack.c.bf16 %v6334_v13, %v6331_v39  ;;  %v6385_v39 = vld [vmem:[#allocation3 + $0x250] sm:$0xff] }
 0x7ad   : > { %5390 = vst.msk [vmem:[#allocation3 + $0xd8] sm:$0xff] %vm995_vm4, %v5303_v11  ;;  %v5494_v12 = vpop.permute.xlu0 %5493 }
 0x7ae   : > { %5965 = vrot.lane.b32.xlu1 %v12151_v44, %s8456_s22  ;;  %5582 = vst.msk [vmem:[#allocation3 + $0xc0] sm:$0xff] %vm1188_vm5, %v5494_v12 }
 0x7af   : > { %7787 = vmatmul.mubr.msk.bf16.vlgmr.msra.gmra.mxu1 %vm388_vm0, %v6412_v7  ;;  %6155 = vrot.lane.b32.xlu0 %v12172_v47, %s8457_s14 }
 0x7b0   : > { %v6138_v18 = vpop.permute.xlu1 %6137  ;;  %7790 = vmatprep.mubr.msk.bf16.mxu1 %vm388_vm0, %v6415_v63  ;;  %v6382_v63 = vld [vmem:[#allocation3 + $0x238] sm:$0xff] }
 0x7b1   : > { %6224 = vst.msk [vmem:[#allocation3 + $0xe0] sm:$0xff] %vm1188_vm5, %v6138_v18  ;;  %v5755_v22 = vpop.permute.xlu0 %5754 }
 0x7b2   : > { %5322 = vrot.lane.b32.xlu1 %v12071_v49, %s8456_s22  ;;  %5840 = vst.msk [vmem:[#allocation3 + $0xf8] sm:$0xff] %vm802_vm3, %v5755_v22  ;;  %v6336_v49 = vld [vmem:[#allocation3 + $0xc8] sm:$0xff] }
 0x7b3   : > { %5513 = vrot.lane.b32.xlu0 %v12365_v45, %s8457_s14 }
 0x7b4   : > { %v5496_v34 = vpop.permute.xlu1 %5495 }
 0x7b5   : > { %5583 = vst.msk [vmem:[#allocation3 + $0xd8] sm:$0xff] %vm1188_vm5, %v5496_v34  ;;  %v5112_v19 = vpop.permute.xlu0 %5111  ;;  %v6335_v55 = vld [vmem:[#allocation3 + $0xc0] sm:$0xff]  ;;  %v6394_v34 = vld [vmem:[#allocation3 + $0x298] sm:$0xff] }
 0x7b6   : > { %6157 = vrot.lane.b32.xlu1 %v12174_v5, %s8457_s14  ;;  %5198 = vst.msk [vmem:[#allocation3 + $0xf0] sm:$0xff] %vm802_vm3, %v5112_v19  ;;  %v6397_v19 = vld [vmem:[#allocation3 + $0x2b0] sm:$0xff] }
 0x7b7   : > { %7791 = vmatmul.mubr.msk.bf16.gmra.mxu1 %vm388_vm0, %v6418_v62  ;;  %5774 = vrot.lane.b32.xlu0 %v12194_v8, %s8455_s27 }
 0x7b8   : > { %v5757_v45 = vpop.permute.xlu1 %5756  ;;  %v6339_v30 = vld [vmem:[#allocation3 + $0xe0] sm:$0xff]  ;;  %7794 = vmatprep.mubr.msk.bf16.mxu1 %vm388_vm0, %v6421_v59 }
 0x7b9   : > { %5841 = vst.msk [vmem:[#allocation3 + $0x110] sm:$0xff] %vm802_vm3, %v5757_v45  ;;  %v6420_v58 = vpack.c.bf16 %v6339_v30, %v6336_v49  ;;  %v5948_v14 = vpop.permute.xlu0 %5947  ;;  %v6400_v49 = vld [vmem:[#allocation3 + $0x2c8] sm:$0xff] }
 0x7ba   : > { %5515 = vrot.lane.b32.xlu1 %v12377_v56, %s8457_s14  ;;  %6033 = vst.msk [vmem:[#allocation3 + $0xf8] sm:$0xff] %vm995_vm4, %v5948_v14  ;;  %v6451_v54 = vpack.c.bf16 %v6400_v49, %v6397_v19  ;;  %v6403_v14 = vld [vmem:[#allocation3 + $0x2e0] sm:$0xff] }
 0x7bb   : > { %6681 = vmatprep.mubr.bf16.mxu0 %v6420_v58  ;;  %5131 = vrot.lane.b32.xlu0 %v12098_v53, %s8455_s27  ;;  %v6355_v53 = vld [vmem:[#allocation3 + $0x160] sm:$0xff]  ;;  %v6077_v58 = vld [vmem:[#allocation2 + $0x139] sm:$0xff] }
 0x7bc   : > { %v5114_v21 = vpop.permute.xlu1 %5113  ;;  %v6338_v3 = vld [vmem:[#allocation3 + $0xd8] sm:$0xff]  ;;  %v6430_v37 = vpack.c.bf16 %v6358_v4, %v6355_v53 }
 0x7bd   : > { %5199 = vst.msk [vmem:[#allocation3 + $0x108] sm:$0xff] %vm802_vm3, %v5114_v21  ;;  %v6419_v41 = vpack.c.bf16 %v6338_v3, %v6335_v55  ;;  %v5305_v10 = vpop.permute.xlu0 %5304  ;;  %v6078_v55 = vld [vmem:[#allocation2 + $0x141] sm:$0xff] }
 0x7be   : > { %5776 = vrot.lane.b32.xlu1 %v12196_v32, %s8455_s27  ;;  %5391 = vst.msk [vmem:[#allocation3 + $0xf0] sm:$0xff] %vm995_vm4, %v5305_v10 }
 0x7bf   : > { %6682 = vmatmul.mubr.bf16.gmra.mxu0 %v6419_v41  ;;  %7795 = vmatmul.mubr.msk.bf16.gmra.mxu1 %vm388_vm0, %v6424_v42  ;;  %v6454_v42 = vpack.c.bf16 %v6406_v28, %v6403_v14 }
 0x7c0   : > { %v5950_v56 = vpop.permute.xlu1 %5949  ;;  %5967 = vrot.lane.b32.xlu0 %v12451_v16, %s8456_s22  ;;  %7798 = vmatprep.mubr.msk.bf16.mxu1 %vm388_vm0, %v6427_v38 }
 0x7c1   : > { %6034 = vst.msk [vmem:[#allocation3 + $0x110] sm:$0xff] %vm995_vm4, %v5950_v56  ;;  %v6140_v24 = vpop.permute.xlu0 %6139 }
 0x7c2   : > { %5133 = vrot.lane.b32.xlu1 %v12100_v20, %s8455_s27  ;;  %6225 = vst.msk [vmem:[#allocation3 + $0xf8] sm:$0xff] %vm1188_vm5, %v6140_v24 }
 0x7c4   : > { %v5307_v57 = vpop.permute.xlu1 %5306  ;;  %5324 = vrot.lane.b32.xlu0 %v12119_v23, %s8456_s22 }
 0x7c5   : > { %5392 = vst.msk [vmem:[#allocation3 + $0x108] sm:$0xff] %vm995_vm4, %v5307_v57  ;;  %v5498_v29 = vpop.permute.xlu0 %5497 }
 0x7c6   : > { %5969 = vrot.lane.b32.xlu1 %v12464_v50, %s8456_s22  ;;  %5584 = vst.msk [vmem:[#allocation3 + $0xf0] sm:$0xff] %vm1188_vm5, %v5498_v29 }
 0x7c7   : > { %7799 = vmatmul.mubr.msk.bf16.gmra.mxu1 %vm388_vm0, %v6430_v37 }
 0x7c8   : > { %v6142_v20 = vpop.permute.xlu1 %6141  ;;  %6159 = vrot.lane.b32.xlu0 %v12234_v43, %s8457_s14  ;;  %7802 = vmatprep.mubr.msk.bf16.mxu1 %vm388_vm0, %v6433_v27  ;;  %v6439_v43 = vpack.c.bf16 %v6376_v61, %v6373_v26 }
 0x7c9   : > { %6226 = vst.msk [vmem:[#allocation3 + $0x110] sm:$0xff] %vm1188_vm5, %v6142_v20  ;;  %v5759_v23 = vpop.permute.xlu0 %5758  ;;  %v6342_v7 = vld [vmem:[#allocation3 + $0xf8] sm:$0xff] }
 0x7ca   : > { %5326 = vrot.lane.b32.xlu1 %v12121_v9, %s8456_s22  ;;  %5842 = vst.msk [vmem:[#allocation3 + $0x128] sm:$0xff] %vm802_vm3, %v5759_v23 }
 0x7cc   : > { %v5500_v1 = vpop.permute.xlu1 %5499  ;;  %5517 = vrot.lane.b32.xlu0 %v12149_v2, %s8457_s14  ;;  %v6379_v2 = vld [vmem:[#allocation3 + $0x220] sm:$0xff] }
 0x7cd   : > { %5585 = vst.msk [vmem:[#allocation3 + $0x108] sm:$0xff] %vm1188_vm5, %v5500_v1  ;;  %v5116_v48 = vpop.permute.xlu0 %5115  ;;  %v6341_v13 = vld [vmem:[#allocation3 + $0xf0] sm:$0xff]  ;;  %v6442_v22 = vpack.c.bf16 %v6382_v63, %v6379_v2 }
 0x7ce   : > { %6161 = vrot.lane.b32.xlu1 %v12236_v25, %s8457_s14  ;;  %5200 = vst.msk [vmem:[#allocation3 + $0x120] sm:$0xff] %vm802_vm3, %v5116_v48  ;;  %v6388_v25 = vld [vmem:[#allocation3 + $0x268] sm:$0xff] }
 0x7cf   : > { %7803 = vmatmul.mubr.msk.bf16.gmra.mxu1 %vm388_vm0, %v6436_v36  ;;  %v6445_v0 = vpack.c.bf16 %v6388_v25, %v6385_v39 }
 0x7d0   : > { %v5761_v9 = vpop.permute.xlu1 %5760  ;;  %v6345_v11 = vld [vmem:[#allocation3 + $0x110] sm:$0xff]  ;;  %5778 = vrot.lane.b32.xlu0 %v12229_v33, %s8455_s27  ;;  %7806 = vmatprep.mubr.msk.bf16.mxu1 %vm388_vm0, %v6439_v43 }
 0x7d1   : > { %5843 = vst.msk [vmem:[#allocation3 + $0x140] sm:$0xff] %vm802_vm3, %v5761_v9  ;;  %v6423_v12 = vpack.c.bf16 %v6345_v11, %v6342_v7  ;;  %v5952_v18 = vpop.permute.xlu0 %5951 }
 0x7d2   : > { %5519 = vrot.lane.b32.xlu1 %v12151_v44, %s8457_s14  ;;  %6035 = vst.msk [vmem:[#allocation3 + $0x128] sm:$0xff] %vm995_vm4, %v5952_v18 }
 0x7d3   : > { %6689 = vmatprep.mubr.bf16.mxu0 %v6423_v12 }
 0x7d4   : > { %v5118_v51 = vpop.permute.xlu1 %5117  ;;  %v6344_v33 = vld [vmem:[#allocation3 + $0x108] sm:$0xff]  ;;  %5135 = vrot.lane.b32.xlu0 %v12172_v47, %s8455_s27  ;;  %v6391_v47 = vld [vmem:[#allocation3 + $0x280] sm:$0xff] }
 0x7d5   : > { %5201 = vst.msk [vmem:[#allocation3 + $0x138] sm:$0xff] %vm802_vm3, %v5118_v51  ;;  %v6422_v62 = vpack.c.bf16 %v6344_v33, %v6341_v13  ;;  %v5309_v60 = vpop.permute.xlu0 %5308  ;;  %v6448_v45 = vpack.c.bf16 %v6394_v34, %v6391_v47 }
 0x7d6   : > { %5780 = vrot.lane.b32.xlu1 %v12238_v15, %s8455_s27  ;;  %5393 = vst.msk [vmem:[#allocation3 + $0x120] sm:$0xff] %vm995_vm4, %v5309_v60  ;;  %v5886_v15 = vld [vmem:[#allocation2 + $0x140] sm:$0xff] }
 0x7d7   : > { %6690 = vmatmul.mubr.bf16.gmra.mxu0 %v6422_v62  ;;  %7807 = vmatmul.mubr.msk.bf16.gmra.mxu1 %vm388_vm0, %v6442_v22 }
 0x7d8   : > { %v5954_v44 = vpop.permute.xlu1 %5953  ;;  %5971 = vrot.lane.b32.xlu0 %v5885_v35, %s8456_s22  ;;  %7810 = vmatprep.mubr.msk.bf16.mxu1 %vm388_vm0, %v6445_v0 }
 0x7d9   : > { %6036 = vst.msk [vmem:[#allocation3 + $0x140] sm:$0xff] %vm995_vm4, %v5954_v44  ;;  %v6144_v59 = vpop.permute.xlu0 %6143 }
 0x7da   : > { %5137 = vrot.lane.b32.xlu1 %v12174_v5, %s8455_s27  ;;  %6227 = vst.msk [vmem:[#allocation3 + $0x128] sm:$0xff] %vm1188_vm5, %v6144_v59 }
 0x7dc   : > { %v5311_v30 = vpop.permute.xlu1 %5310  ;;  %5328 = vrot.lane.b32.xlu0 %v12194_v8, %s8456_s22 }
 0x7dd   : > { %5394 = vst.msk [vmem:[#allocation3 + $0x138] sm:$0xff] %vm995_vm4, %v5311_v30  ;;  %v5502_v46 = vpop.permute.xlu0 %5501 }
 0x7de   : > { %5973 = vrot.lane.b32.xlu1 %v5886_v15, %s8456_s22  ;;  %5586 = vst.msk [vmem:[#allocation3 + $0x120] sm:$0xff] %vm1188_vm5, %v5502_v46 }
 0x7df   : > { %7811 = vmatmul.mubr.msk.bf16.gmra.mxu1 %vm388_vm0, %v6448_v45 }
 0x7e0   : > { %v6146_v5 = vpop.permute.xlu1 %6145  ;;  %6163 = vrot.lane.b32.xlu0 %v6077_v58, %s8457_s14  ;;  %7814 = vmatprep.mubr.msk.bf16.mxu1 %vm388_vm0, %v6451_v54 }
 0x7e1   : > { %6228 = vst.msk [vmem:[#allocation3 + $0x140] sm:$0xff] %vm1188_vm5, %v6146_v5  ;;  %v5763_v8 = vpop.permute.xlu0 %5762  ;;  %v6348_v10 = vld [vmem:[#allocation3 + $0x128] sm:$0xff] }
 0x7e2   : > { %5330 = vrot.lane.b32.xlu1 %v12196_v32, %s8456_s22  ;;  %5844 = vst.msk [vmem:[#allocation3 + $0x158] sm:$0xff] %vm802_vm3, %v5763_v8 }
 0x7e3   : > { %v7654_v31 = vpop.f32.mrf.mxu1 }
 0x7e4   : > { %v5504_v21 = vpop.permute.xlu1 %5503  ;;  %5521 = vrot.lane.b32.xlu0 %v12451_v16, %s8457_s14 }
 0x7e5   : > { %5587 = vst.msk [vmem:[#allocation3 + $0x138] sm:$0xff] %vm1188_vm5, %v5504_v21  ;;  %v7655_v3 = vpop.f32.mrf.mxu1  ;;  %v5120_v38 = vpop.permute.xlu0 %5119  ;;  %v6347_v17 = vld [vmem:[#allocation3 + $0x120] sm:$0xff] }
 0x7e6   : > { %v12522_v41 = vadd.f32 %v7655_v3, %v7654_v31  ;;  %6165 = vrot.lane.b32.xlu1 %v6078_v55, %s8457_s14  ;;  %5202 = vst.msk [vmem:[#allocation3 + $0x150] sm:$0xff] %vm802_vm3, %v5120_v38 }
 0x7e7   : > { %v7657_v32 = vpop.f32.mrf.mxu1  ;;  %7815 = vmatmul.mubr.msk.bf16.gmra.mxu1 %vm388_vm0, %v6454_v42 }
 0x7e8   : > { %v5765_v56 = vpop.permute.xlu1 %5764  ;;  %v6351_v53 = vld [vmem:[#allocation3 + $0x140] sm:$0xff] }
 0x7e9   : > { %5845 = vst.msk [vmem:[#allocation3 + $0x170] sm:$0xff] %vm802_vm3, %v5765_v56  ;;  %v7658_v4 = vpop.f32.mrf.mxu1  ;;  %v6426_v16 = vpack.c.bf16 %v6351_v53, %v6348_v10  ;;  %v5956_v24 = vpop.permute.xlu0 %5955 }
 0x7ea   : > { %v12528_v6 = vadd.f32 %v7658_v4, %v7657_v32  ;;  %5523 = vrot.lane.b32.xlu1 %v12464_v50, %s8457_s14  ;;  %6037 = vst.msk [vmem:[#allocation3 + $0x158] sm:$0xff] %vm995_vm4, %v5956_v24 }
 0x7eb   : > { %6697 = vmatprep.mubr.bf16.mxu0 %v6426_v16 }
 0x7ec   : > { %v5122_v37 = vpop.permute.xlu1 %5121  ;;  %v6350_v57 = vld [vmem:[#allocation3 + $0x138] sm:$0xff] }
 0x7ed   : > { %5203 = vst.msk [vmem:[#allocation3 + $0x168] sm:$0xff] %vm802_vm3, %v5122_v37  ;;  %v6425_v27 = vpack.c.bf16 %v6350_v57, %v6347_v17  ;;  %v5313_v29 = vpop.permute.xlu0 %5312 }
 0x7ee   : > { %5395 = vst.msk [vmem:[#allocation3 + $0x150] sm:$0xff] %vm995_vm4, %v5313_v29 }
 0x7ef   : > { %6698 = vmatmul.mubr.bf16.gmra.mxu0 %v6425_v27 }
 0x7f0   : > { %v5958_v20 = vpop.permute.xlu1 %5957 }
 0x7f1   : > { %6038 = vst.msk [vmem:[#allocation3 + $0x170] sm:$0xff] %vm995_vm4, %v5958_v20  ;;  %v6148_v52 = vpop.permute.xlu0 %6147 }
 0x7f2   : > { %6229 = vst.msk [vmem:[#allocation3 + $0x158] sm:$0xff] %vm1188_vm5, %v6148_v52 }
 0x7f4   : > { %v5315_v50 = vpop.permute.xlu1 %5314 }
 0x7f5   : > { %5396 = vst.msk [vmem:[#allocation3 + $0x168] sm:$0xff] %vm995_vm4, %v5315_v50  ;;  %v5506_v40 = vpop.permute.xlu0 %5505  ;;  %v12577_v50 = vpop.f32.mrf.mxu0 }
 0x7f6   : > { %5588 = vst.msk [vmem:[#allocation3 + $0x150] sm:$0xff] %vm1188_vm5, %v5506_v40 }
 0x7f8   : > { %v6150_v23 = vpop.permute.xlu1 %6149 }
 0x7f9   : > { %6230 = vst.msk [vmem:[#allocation3 + $0x170] sm:$0xff] %vm1188_vm5, %v6150_v23  ;;  %v5767_v26 = vpop.permute.xlu0 %5766  ;;  %v6354_v1 = vld [vmem:[#allocation3 + $0x158] sm:$0xff] }
 0x7fa   : > { %5846 = vst.msk [vmem:[#allocation3 + $0x188] sm:$0xff] %vm802_vm3, %v5767_v26 }
 0x7fc   : > { %v5508_v61 = vpop.permute.xlu1 %5507 }
 0x7fd   : > { %5589 = vst.msk [vmem:[#allocation3 + $0x168] sm:$0xff] %vm1188_vm5, %v5508_v61  ;;  %v5124_v36 = vpop.permute.xlu0 %5123  ;;  %v6353_v11 = vld [vmem:[#allocation3 + $0x150] sm:$0xff] }
 0x7fe   : > { %5204 = vst.msk [vmem:[#allocation3 + $0x180] sm:$0xff] %vm802_vm3, %v5124_v36 }
 0x800   : > { %v5769_v43 = vpop.permute.xlu1 %5768  ;;  %v6357_v48 = vld [vmem:[#allocation3 + $0x170] sm:$0xff] }
 0x801   : > { %5847 = vst.msk [vmem:[#allocation3 + $0x1a0] sm:$0xff] %vm802_vm3, %v5769_v43  ;;  %v6429_v7 = vpack.c.bf16 %v6357_v48, %v6354_v1  ;;  %v5960_v9 = vpop.permute.xlu0 %5959  ;;  %v7583_v1 = vpop.f32.mrf.mxu0 }
 0x802   : > { %6039 = vst.msk [vmem:[#allocation3 + $0x188] sm:$0xff] %vm995_vm4, %v5960_v9 }
 0x803   : > { %6705 = vmatprep.mubr.bf16.mxu0 %v6429_v7 }
 0x804   : > { %v5126_v2 = vpop.permute.xlu1 %5125  ;;  %v6356_v63 = vld [vmem:[#allocation3 + $0x168] sm:$0xff] }
 0x805   : > { %5205 = vst.msk [vmem:[#allocation3 + $0x198] sm:$0xff] %vm802_vm3, %v5126_v2  ;;  %v6428_v12 = vpack.c.bf16 %v6356_v63, %v6353_v11  ;;  %v5317_v18 = vpop.permute.xlu0 %5316  ;;  %v7585_v11 = vpop.f32.mrf.mxu0 }
 0x806   : > { %5397 = vst.msk [vmem:[#allocation3 + $0x180] sm:$0xff] %vm995_vm4, %v5317_v18 }
 0x807   : > { %6706 = vmatmul.mubr.bf16.gmra.mxu0 %v6428_v12 }
 0x808   : > { %v5962_v39 = vpop.permute.xlu1 %5961 }
 0x809   : > { %6040 = vst.msk [vmem:[#allocation3 + $0x1a0] sm:$0xff] %vm995_vm4, %v5962_v39  ;;  %v6152_v25 = vpop.permute.xlu0 %6151  ;;  %v7586_v39 = vpop.f32.mrf.mxu0 }
 0x80a   : > { %6231 = vst.msk [vmem:[#allocation3 + $0x188] sm:$0xff] %vm1188_vm5, %v6152_v25 }
 0x80c   : > { %v5319_v13 = vpop.permute.xlu1 %5318 }
 0x80d   : > { %5398 = vst.msk [vmem:[#allocation3 + $0x198] sm:$0xff] %vm995_vm4, %v5319_v13  ;;  %v5510_v22 = vpop.permute.xlu0 %5509 }
 0x80e   : > { %5590 = vst.msk [vmem:[#allocation3 + $0x180] sm:$0xff] %vm1188_vm5, %v5510_v22 }
 0x80f   : > { %v7660_v51 = vpop.f32.mrf.mxu1 }
 0x810   : > { %v6154_v33 = vpop.permute.xlu1 %6153 }
 0x811   : > { %6232 = vst.msk [vmem:[#allocation3 + $0x1a0] sm:$0xff] %vm1188_vm5, %v6154_v33  ;;  %v7661_v0 = vpop.f32.mrf.mxu1  ;;  %v5771_v62 = vpop.permute.xlu0 %5770  ;;  %v6360_v19 = vld [vmem:[#allocation3 + $0x188] sm:$0xff] }
 0x812   : > { %v12552_v60 = vadd.f32 %v7661_v0, %v7660_v51  ;;  %5848 = vst.msk [vmem:[#allocation3 + $0x1b8] sm:$0xff] %vm802_vm3, %v5771_v62  ;;  %v7588_v51 = vpop.f32.mrf.mxu0 }
 0x813   : > { %v7663_v35 = vpop.f32.mrf.mxu1 }
 0x814   : > { %v5512_v44 = vpop.permute.xlu1 %5511 }
 0x815   : > { %5591 = vst.msk [vmem:[#allocation3 + $0x198] sm:$0xff] %vm1188_vm5, %v5512_v44  ;;  %v7664_v47 = vpop.f32.mrf.mxu1  ;;  %v5128_v34 = vpop.permute.xlu0 %5127  ;;  %v6359_v54 = vld [vmem:[#allocation3 + $0x180] sm:$0xff] }
 0x816   : > { %v12556_v59 = vadd.f32 %v7664_v47, %v7663_v35  ;;  %5206 = vst.msk [vmem:[#allocation3 + $0x1b0] sm:$0xff] %vm802_vm3, %v5128_v34  ;;  %v7589_v44 = vpop.f32.mrf.mxu0 }
 0x818   : > { %v5773_v49 = vpop.permute.xlu1 %5772  ;;  %v6363_v15 = vld [vmem:[#allocation3 + $0x1a0] sm:$0xff] }
 0x819   : > { %5849 = vst.msk [vmem:[#allocation3 + $0x1d0] sm:$0xff] %vm802_vm3, %v5773_v49  ;;  %v6432_v45 = vpack.c.bf16 %v6363_v15, %v6360_v19  ;;  %v5964_v30 = vpop.permute.xlu0 %5963  ;;  %v7591_v19 = vpop.f32.mrf.mxu0 }
 0x81a   : > { %6041 = vst.msk [vmem:[#allocation3 + $0x1b8] sm:$0xff] %vm995_vm4, %v5964_v30 }
 0x81b   : > { %6713 = vmatprep.mubr.bf16.mxu0 %v6432_v45  ;;  %v7592_v45 = vpop.f32.mrf.mxu0 }
 0x81c   : > { %v5130_v46 = vpop.permute.xlu1 %5129  ;;  %v6362_v58 = vld [vmem:[#allocation3 + $0x198] sm:$0xff] }
 0x81d   : > { %5207 = vst.msk [vmem:[#allocation3 + $0x1c8] sm:$0xff] %vm802_vm3, %v5130_v46  ;;  %v6431_v5 = vpack.c.bf16 %v6362_v58, %v6359_v54  ;;  %v5321_v14 = vpop.permute.xlu0 %5320 }
 0x81e   : > { %5399 = vst.msk [vmem:[#allocation3 + $0x1b0] sm:$0xff] %vm995_vm4, %v5321_v14 }
 0x81f   : > { %6714 = vmatmul.mubr.bf16.gmra.mxu0 %v6431_v5 }
 0x820   : > { %v5966_v28 = vpop.permute.xlu1 %5965 }
 0x821   : > { %6042 = vst.msk [vmem:[#allocation3 + $0x1d0] sm:$0xff] %vm995_vm4, %v5966_v28  ;;  %v6156_v8 = vpop.permute.xlu0 %6155 }
 0x822   : > { %6233 = vst.msk [vmem:[#allocation3 + $0x1b8] sm:$0xff] %vm1188_vm5, %v6156_v8 }
 0x823   : > { %v7594_v54 = vpop.f32.mrf.mxu0 }
 0x824   : > { %v5323_v31 = vpop.permute.xlu1 %5322 }
 0x825   : > { %5400 = vst.msk [vmem:[#allocation3 + $0x1c8] sm:$0xff] %vm995_vm4, %v5323_v31  ;;  %v5514_v55 = vpop.permute.xlu0 %5513  ;;  %v7595_v58 = vpop.f32.mrf.mxu0 }
 0x826   : > { %5592 = vst.msk [vmem:[#allocation3 + $0x1b0] sm:$0xff] %vm1188_vm5, %v5514_v55 }
 0x827   : > { %v7597_v28 = vpop.f32.mrf.mxu0 }
 0x828   : > { %v6158_v42 = vpop.permute.xlu1 %6157 }
 0x829   : > { %6234 = vst.msk [vmem:[#allocation3 + $0x1d0] sm:$0xff] %vm1188_vm5, %v6158_v42  ;;  %v5775_v21 = vpop.permute.xlu0 %5774  ;;  %v6366_v10 = vld [vmem:[#allocation3 + $0x1b8] sm:$0xff]  ;;  %v7598_v42 = vpop.f32.mrf.mxu0 }
 0x82a   : > { %5850 = vst.msk [vmem:[#allocation3 + $0x1e8] sm:$0xff] %vm802_vm3, %v5775_v21 }
 0x82c   : > { %v5516_v3 = vpop.permute.xlu1 %5515 }
 0x82d   : > { %5593 = vst.msk [vmem:[#allocation3 + $0x1c8] sm:$0xff] %vm1188_vm5, %v5516_v3  ;;  %v5132_v38 = vpop.permute.xlu0 %5131  ;;  %v6365_v4 = vld [vmem:[#allocation3 + $0x1b0] sm:$0xff] }
 0x82e   : > { %5208 = vst.msk [vmem:[#allocation3 + $0x1e0] sm:$0xff] %vm802_vm3, %v5132_v38 }
 0x830   : > { %v5777_v32 = vpop.permute.xlu1 %5776  ;;  %v6369_v56 = vld [vmem:[#allocation3 + $0x1d0] sm:$0xff] }
 0x831   : > { %5851 = vst.msk [vmem:[#allocation3 + $0x200] sm:$0xff] %vm802_vm3, %v5777_v32  ;;  %v6435_v53 = vpack.c.bf16 %v6369_v56, %v6366_v10  ;;  %v7590_v32 = vadd.f32 %v7589_v44, %v7588_v51 }
 0x832   : > { %v5968_v16 = vpop.permute.xlu0 %5967 }
 0x833   : > { %6721 = vmatprep.mubr.bf16.mxu0 %v6435_v53  ;;  %6043 = vst.msk [vmem:[#allocation3 + $0x1e8] sm:$0xff] %vm995_vm4, %v5968_v16 }
 0x834   : > { %v5134_v24 = vpop.permute.xlu1 %5133  ;;  %v6368_v17 = vld [vmem:[#allocation3 + $0x1c8] sm:$0xff] }
 0x835   : > { %5209 = vst.msk [vmem:[#allocation3 + $0x1f8] sm:$0xff] %vm802_vm3, %v5134_v24  ;;  %v6434_v37 = vpack.c.bf16 %v6368_v17, %v6365_v4  ;;  %v7584_v4 = vadd.f32 %v7583_v1, %v12577_v50  ;;  %v12611_v24 = vld [vmem:[%s12800_s10] ss:$0 sm:$0xff]  ;;  %v7593_v17 = vadd.f32 %v7592_v45, %v7591_v19 }
 0x836   : > { %v5325_v57 = vpop.permute.xlu0 %5324  ;;  %v13075_v19 = vld [vmem:[#allocation10_spill] sm:$0xff] }
 0x837   : > { %6722 = vmatmul.mubr.bf16.gmra.mxu0 %v6434_v37  ;;  %5401 = vst.msk [vmem:[#allocation3 + $0x1e0] sm:$0xff] %vm995_vm4, %v5325_v57  ;;  %v6660_v37 = vadd.f32 %v7590_v32, %v12611_v24  ;;  %v6663_v1 = vadd.f32 %v7593_v17, %v12611_v24 }
 0x838   : > { %v5970_v27 = vpop.permute.xlu1 %5969 }
 0x839   : > { %6044 = vst.msk [vmem:[#allocation3 + $0x200] sm:$0xff] %vm995_vm4, %v5970_v27 }
 0x83a   : > { %v6160_v29 = vpop.permute.xlu0 %6159 }
 0x83b   : > { %v7666_v20 = vpop.f32.mrf.mxu1  ;;  %6235 = vst.msk [vmem:[#allocation3 + $0x1e8] sm:$0xff] %vm1188_vm5, %v6160_v29  ;;  %v7587_v29 = vadd.f32 %v7586_v39, %v7585_v11 }
 0x83c   : > { %v5327_v52 = vpop.permute.xlu1 %5326 }
 0x83d   : > { %5402 = vst.msk [vmem:[#allocation3 + $0x1f8] sm:$0xff] %vm995_vm4, %v5327_v52  ;;  %v7667_v40 = vpop.f32.mrf.mxu1  ;;  %v6652_v52 = vadd.f32 %v7584_v4, %v12611_v24 }
 0x83e   : > { %v12580_v23 = vadd.f32 %v7667_v40, %v7666_v20  ;;  %v5518_v26 = vpop.permute.xlu0 %5517 }
 0x83f   : > { %v7669_v61 = vpop.f32.mrf.mxu1  ;;  %5594 = vst.msk [vmem:[#allocation3 + $0x1e0] sm:$0xff] %vm1188_vm5, %v5518_v26  ;;  %v13071_v26 = vld [vmem:[#allocation6_spill] sm:$0xff] }
 0x840   : > { %v6162_v36 = vpop.permute.xlu1 %6161 }
 0x841   : > { %6236 = vst.msk [vmem:[#allocation3 + $0x200] sm:$0xff] %vm1188_vm5, %v6162_v36  ;;  %v7670_v43 = vpop.f32.mrf.mxu1 }
 0x842   : > { %v12584_v48 = vadd.f32 %v7670_v43, %v7669_v61  ;;  %v5779_v7 = vpop.permute.xlu0 %5778  ;;  %v6372_v2 = vld [vmem:[#allocation3 + $0x1e8] sm:$0xff] }
 0x843   : > { %5852 = vst.msk [vmem:[#allocation3 + $0x218] sm:$0xff] %vm802_vm3, %v5779_v7 }
 0x844   : > { %v5520_v9 = vpop.permute.xlu1 %5519 }
 0x845   : > { %5595 = vst.msk [vmem:[#allocation3 + $0x1f8] sm:$0xff] %vm1188_vm5, %v5520_v9  ;;  %v7596_v9 = vadd.f32 %v7595_v58, %v7594_v54  ;;  %v13076_v54 = vld [vmem:[#allocation8_spill] sm:$0xff] }
 0x846   : > { %v5136_v63 = vpop.permute.xlu0 %5135  ;;  %v6371_v13 = vld [vmem:[#allocation3 + $0x1e0] sm:$0xff] }
 0x847   : > { %5210 = vst.msk [vmem:[#allocation3 + $0x210] sm:$0xff] %vm802_vm3, %v5136_v63 }
 0x848   : > { %v5781_v12 = vpop.permute.xlu1 %5780  ;;  %v6375_v18 = vld [vmem:[#allocation3 + $0x200] sm:$0xff] }
 0x849   : > { %5853 = vst.msk [vmem:[#allocation3 + $0x230] sm:$0xff] %vm802_vm3, %v5781_v12  ;;  %v6438_v25 = vpack.c.bf16 %v6375_v18, %v6372_v2  ;;  %v13072_v2 = vld [vmem:[#allocation4_spill] sm:$0xff]  ;;  %v6655_v12 = vadd.f32 %v7587_v29, %v12611_v24 }
 0x84a   : > { %v5972_v22 = vpop.permute.xlu0 %5971 }
 0x84b   : > { %6729 = vmatprep.mubr.bf16.mxu0 %v6438_v25  ;;  %6045 = vst.msk [vmem:[#allocation3 + $0x218] sm:$0xff] %vm995_vm4, %v5972_v22  ;;  %v13073_v25 = vld [vmem:[#allocation7_spill] sm:$0xff] }
 0x84c   : > { %v5138_v33 = vpop.permute.xlu1 %5137  ;;  %v6374_v0 = vld [vmem:[#allocation3 + $0x1f8] sm:$0xff] }
 0x84d   : > { %5211 = vst.msk [vmem:[#allocation3 + $0x228] sm:$0xff] %vm802_vm3, %v5138_v33  ;;  %v6437_v62 = vpack.c.bf16 %v6374_v0, %v6371_v13  ;;  %v7599_v0 = vadd.f32 %v7598_v42, %v7597_v28  ;;  %v13077_v28 = vld [vmem:[#allocation11_spill] sm:$0xff] }
 0x84e   : > { %v5329_v35 = vpop.permute.xlu0 %5328 }
 0x84f   : > { %6730 = vmatmul.mubr.bf16.gmra.mxu0 %v6437_v62  ;;  %5403 = vst.msk [vmem:[#allocation3 + $0x210] sm:$0xff] %vm995_vm4, %v5329_v35  ;;  %v7600_v3 = vpop.f32.mrf.mxu0  ;;  %v13074_v62 = vld [vmem:[#allocation5_spill] sm:$0xff] }
 0x850   : > { %v5974_v47 = vpop.permute.xlu1 %5973 }
 0x851   : > { %6046 = vst.msk [vmem:[#allocation3 + $0x230] sm:$0xff] %vm995_vm4, %v5974_v47  ;;  %v7601_v56 = vpop.f32.mrf.mxu0  ;;  %v6668_v47 = vadd.f32 %v7596_v9, %v12611_v24 }
 0x852   : > { %v6164_v34 = vpop.permute.xlu0 %6163  ;;  %v7602_v50 = vadd.f32 %v7601_v56, %v7600_v3 }
 0x853   : > { %6237 = vst.msk [vmem:[#allocation3 + $0x218] sm:$0xff] %vm1188_vm5, %v6164_v34  ;;  %v7603_v57 = vpop.f32.mrf.mxu0 }
 0x854   : > { %v5331_v49 = vpop.permute.xlu1 %5330  ;;  %v6676_v51 = vadd.f32 %v7602_v50, %v12611_v24  ;;  %v13079_v50 = vld [vmem:[#allocation12_spill] sm:$0xff] }
 0x855   : > { %5404 = vst.msk [vmem:[#allocation3 + $0x228] sm:$0xff] %vm995_vm4, %v5331_v49  ;;  %v7604_v43 = vpop.f32.mrf.mxu0 }
 0x856   : > { %v5522_v15 = vpop.permute.xlu0 %5521  ;;  %v7605_v39 = vadd.f32 %v7604_v43, %v7603_v57 }
 0x857   : > { %5596 = vst.msk [vmem:[#allocation3 + $0x210] sm:$0xff] %vm1188_vm5, %v5522_v15 }
 0x858   : > { %v6166_v30 = vpop.permute.xlu1 %6165  ;;  %v6679_v45 = vadd.f32 %v7605_v39, %v12611_v24 }
 0x859   : > { %6238 = vst.msk [vmem:[#allocation3 + $0x230] sm:$0xff] %vm1188_vm5, %v6166_v30 }
 0x85a   : > { %v6378_v5 = vld [vmem:[#allocation3 + $0x218] sm:$0xff] }
 0x85c   : > { %v5524_v46 = vpop.permute.xlu1 %5523 }
 0x85d   : > { %5597 = vst.msk [vmem:[#allocation3 + $0x228] sm:$0xff] %vm1188_vm5, %v5524_v46 }
 0x85e   : > { %v6377_v31 = vld [vmem:[#allocation3 + $0x210] sm:$0xff] }
 0x860   : > { %v6381_v14 = vld [vmem:[#allocation3 + $0x230] sm:$0xff] }
 0x861   : > { %v6441_v8 = vpack.c.bf16 %v6381_v14, %v6378_v5  ;;  %v6671_v5 = vadd.f32 %v7599_v0, %v12611_v24 }
 0x863   : > { %6737 = vmatprep.mubr.bf16.mxu0 %v6441_v8 }
 0x864   : > { %v6380_v55 = vld [vmem:[#allocation3 + $0x228] sm:$0xff] }
 0x865   : > { %v6440_v21 = vpack.c.bf16 %v6380_v55, %v6377_v31 }
 0x867   : > { %6738 = vmatmul.mubr.bf16.gmra.mxu0 %v6440_v21  ;;  %v12599_v38 = vpop.f32.mrf.mxu1  ;;  %v13078_v21 = vld [vmem:[#allocation9_spill] sm:$0xff] }
 0x869   : > { %v12601_v10 = vpop.f32.mrf.mxu1 }
 0x86b   : > { %v12603_v53 = vpop.f32.mrf.mxu1 }
 0x86d   : > { %v12606_v16 = vpop.f32.mrf.mxu1 }
 0x86f   : > { %v7788_v27 = vpop.f32.mrf.mxu1 }
 0x870   : > { %v6821_v20 = vadd.f32 %v7788_v27, %v6660_v37 }
 0x871   : > { %v6812_v40 = vpop.f32.mrf.mxu1 }
 0x872   : > { %v6941_v61 = vadd.f32 %v6821_v20, %v13071_v26  ;;  %v6813_v36 = vadd.f32 %v6812_v40, %v6652_v52 }
 0x873   : > { %v7789_v7 = vpop.f32.mrf.mxu1 }
 0x874   : > { %6973 = vst.msk [vmem:[%s8584_s26 + $0x10] sm:$0xff] %vm388_vm0, %v6941_v61  ;;  %v6939_v63 = vadd.f32 %v6813_v36, %v13072_v2  ;;  %v6824_v11 = vadd.f32 %v7789_v7, %v6663_v1  ;;  %v13080_v7 = vld [vmem:[#allocation13_spill] sm:$0xff] }
 0x875   : > { %v6815_v18 = vpop.f32.mrf.mxu1 }
 0x876   : > { %6971 = vst.msk [vmem:[%s8584_s26] sm:$0xff] %vm388_vm0, %v6939_v63  ;;  %v6942_v13 = vadd.f32 %v6824_v11, %v13073_v25  ;;  %v6816_v22 = vadd.f32 %v6815_v18, %v6655_v12 }
 0x877   : > { %v7792_v33 = vpop.f32.mrf.mxu1 }
 0x878   : > { %6974 = vst.msk [vmem:[%s8584_s26 + $0x18] sm:$0xff] %vm388_vm0, %v6942_v13  ;;  %v6940_v35 = vadd.f32 %v6816_v22, %v13074_v62  ;;  %v6837_v44 = vadd.f32 %v7792_v33, %v6676_v51 }
 0x879   : > { %v6828_v34 = vpop.f32.mrf.mxu1 }
 0x87a   : > { %6972 = vst.msk [vmem:[%s8584_s26 + $0x8] sm:$0xff] %vm388_vm0, %v6940_v35  ;;  %v6945_v49 = vadd.f32 %v6837_v44, %v13075_v19  ;;  %v6829_v15 = vadd.f32 %v6828_v34, %v6668_v47  ;;  %v6756_v19 = vadd.f32 %v12552_v60, %v12611_v24 }
 0x87b   : > { %v7793_v30 = vpop.f32.mrf.mxu1 }
 0x87c   : > { %6977 = vst.msk [vmem:[%s8584_s26 + $0x30] sm:$0xff] %vm388_vm0, %v6945_v49  ;;  %v6943_v46 = vadd.f32 %v6829_v15, %v13076_v54  ;;  %v6840_v58 = vadd.f32 %v7793_v30, %v6679_v45  ;;  %v13081_v15 = vld [vmem:[#allocation14_spill] sm:$0xff] }
 0x87d   : > { %v6831_v14 = vpop.f32.mrf.mxu1 }
 0x87e   : > { %6975 = vst.msk [vmem:[%s8584_s26 + $0x20] sm:$0xff] %vm388_vm0, %v6943_v46  ;;  %v6946_v8 = vadd.f32 %v6840_v58, %v13077_v28  ;;  %v6832_v31 = vadd.f32 %v6831_v14, %v6671_v5  ;;  %v6748_v46 = vadd.f32 %v12522_v41, %v12611_v24  ;;  %v6759_v5 = vadd.f32 %v12556_v59, %v12611_v24  ;;  %v13082_v28 = vld [vmem:[#allocation30_spill] sm:$0xff]  ;;  %v13084_v41 = vld [vmem:[#allocation28_spill] sm:$0xff] }
 0x87f   : > { %v7606_v55 = vpop.f32.mrf.mxu0  ;;  %v7796_v42 = vpop.f32.mrf.mxu1  ;;  %v7674_v14 = vadd.f32 %v12601_v10, %v12599_v38  ;;  %v6751_v59 = vadd.f32 %v12528_v6, %v12611_v24  ;;  %v7677_v10 = vadd.f32 %v12606_v16, %v12603_v53  ;;  %v6764_v53 = vadd.f32 %v12580_v23, %v12611_v24 }
 0x880   : > { %6978 = vst.msk [vmem:[%s8584_s26 + $0x38] sm:$0xff] %vm388_vm0, %v6946_v8  ;;  %v6944_v3 = vadd.f32 %v6832_v31, %v13078_v21 }
 0x881   : > { %v7607_v32 = vpop.f32.mrf.mxu0  ;;  %v6844_v56 = vpop.f32.mrf.mxu1 }
 0x882   : > { %6976 = vst.msk [vmem:[%s8584_s26 + $0x28] sm:$0xff] %vm388_vm0, %v6944_v3  ;;  %v7608_v4 = vadd.f32 %v7607_v32, %v7606_v55 }
 0x883   : > { %v7609_v17 = vpop.f32.mrf.mxu0  ;;  %v7797_v37 = vpop.f32.mrf.mxu1 }
 0x884   : > { %v6684_v57 = vadd.f32 %v7608_v4, %v12611_v24 }
 0x885   : > { %v7610_v27 = vpop.f32.mrf.mxu0  ;;  %v6847_v29 = vpop.f32.mrf.mxu1 }
 0x886   : > { %v6845_v20 = vadd.f32 %v6844_v56, %v6684_v57  ;;  %v7611_v52 = vadd.f32 %v7610_v27, %v7609_v17  ;;  %v13085_v56 = vld [vmem:[#allocation31_spill] sm:$0xff]  ;;  %v13086_v27 = vld [vmem:[#allocation29_spill] sm:$0xff] }
 0x887   : > { %v12646_v40 = vpop.f32.mrf.mxu1 }
 0x888   : > { %v6947_v26 = vadd.f32 %v6845_v20, %v13079_v50  ;;  %v6687_v61 = vadd.f32 %v7611_v52, %v12611_v24  ;;  %v13087_v20 = vld [vmem:[#allocation34_spill] sm:$0xff] }
 0x889   : > { %v12650_v36 = vpop.f32.mrf.mxu1 }
 0x88a   : > { %6979 = vst.msk [vmem:[%s8584_s26 + $0x40] sm:$0xff] %vm388_vm0, %v6947_v26  ;;  %v6848_v1 = vadd.f32 %v6847_v29, %v6687_v61  ;;  %v6775_v26 = vadd.f32 %v7677_v10, %v12611_v24 }
 0x88b   : > { %v12654_v43 = vpop.f32.mrf.mxu1 }
 0x88c   : > { %v6948_v9 = vadd.f32 %v6848_v1, %v13080_v7  ;;  %v13088_v1 = vld [vmem:[#allocation32_spill] sm:$0xff] }
 0x88d   : > { %v12657_v2 = vpop.f32.mrf.mxu1 }
 0x88e   : > { %6980 = vst.msk [vmem:[%s8584_s26 + $0x48] sm:$0xff] %vm388_vm0, %v6948_v9 }
 0x88f   : > { %v12661_v63 = vpop.f32.mrf.mxu1 }
 0x891   : > { %v12663_v11 = vpop.f32.mrf.mxu1 }
 0x893   : > { %v12665_v12 = vpop.f32.mrf.mxu1 }
 0x895   : > { %v12667_v18 = vpop.f32.mrf.mxu1 }
 0x897   : > { %v7612_v39 = vpop.f32.mrf.mxu0  ;;  %v12669_v25 = vpop.f32.mrf.mxu1 }
 0x899   : > { %v7613_v13 = vpop.f32.mrf.mxu0  ;;  %v12671_v22 = vpop.f32.mrf.mxu1 }
 0x89a   : > { %v7614_v51 = vadd.f32 %v7613_v13, %v7612_v39  ;;  %v6767_v39 = vadd.f32 %v12584_v48, %v12611_v24  ;;  %v13089_v13 = vld [vmem:[#allocation35_spill] sm:$0xff] }
 0x89b   : > { %v7615_v33 = vpop.f32.mrf.mxu0  ;;  %v12673_v0 = vpop.f32.mrf.mxu1 }
 0x89c   : > { %v6692_v62 = vadd.f32 %v7614_v51, %v12611_v24 }
 0x89d   : > { %v7616_v35 = vpop.f32.mrf.mxu0  ;;  %v12676_v44 = vpop.f32.mrf.mxu1 }
 0x89e   : > { %v6853_v47 = vadd.f32 %v7796_v42, %v6692_v62  ;;  %v7617_v34 = vadd.f32 %v7616_v35, %v7615_v33  ;;  %v13083_v42 = vld [vmem:[#allocation15_spill] sm:$0xff]  ;;  %v13090_v35 = vld [vmem:[#allocation33_spill] sm:$0xff] }
 0x89f   : > { %v7812_v49 = vpop.f32.mrf.mxu1 }
 0x8a0   : > { %v6949_v45 = vadd.f32 %v6853_v47, %v13081_v15  ;;  %v6695_v30 = vadd.f32 %v7617_v34, %v12611_v24  ;;  %v6917_v54 = vadd.f32 %v7812_v49, %v6756_v19 }
 0x8a1   : > { %v6908_v58 = vpop.f32.mrf.mxu1 }
 0x8a2   : > { %6981 = vst.msk [vmem:[%s8584_s26 + $0x50] sm:$0xff] %vm388_vm0, %v6949_v45  ;;  %v6856_v60 = vadd.f32 %v7797_v37, %v6695_v30  ;;  %v6965_v8 = vadd.f32 %v6917_v54, %v13082_v28  ;;  %v6909_v31 = vadd.f32 %v6908_v58, %v6748_v46  ;;  %v6772_v37 = vadd.f32 %v7674_v14, %v12611_v24  ;;  %v13091_v54 = vld [vmem:[#allocation16_spill] sm:$0xff]  ;;  %v13092_v14 = vld [vmem:[#allocation17_spill] sm:$0xff] }
 0x8a3   : > { %v7813_v55 = vpop.f32.mrf.mxu1 }
 0x8a4   : > { %v6950_v21 = vadd.f32 %v6856_v60, %v13083_v42  ;;  %6997 = vst.msk [vmem:[%s8584_s26 + $0xd0] sm:$0xff] %vm388_vm0, %v6965_v8  ;;  %v6963_v3 = vadd.f32 %v6909_v31, %v13084_v41  ;;  %v6920_v32 = vadd.f32 %v7813_v55, %v6759_v5 }
 0x8a5   : > { %v6911_v38 = vpop.f32.mrf.mxu1 }
 0x8a6   : > { %6982 = vst.msk [vmem:[%s8584_s26 + $0x58] sm:$0xff] %vm388_vm0, %v6950_v21  ;;  %6995 = vst.msk [vmem:[%s8584_s26 + $0xc0] sm:$0xff] %vm388_vm0, %v6963_v3  ;;  %v6966_v4 = vadd.f32 %v6920_v32, %v13085_v56  ;;  %v6912_v17 = vadd.f32 %v6911_v38, %v6751_v59  ;;  %v13093_v3 = vld [vmem:[#allocation18_spill] sm:$0xff]  ;;  %v13094_v38 = vld [vmem:[#allocation19_spill] sm:$0xff] }
 0x8a7   : > { %v7816_v57 = vpop.f32.mrf.mxu1 }
 0x8a8   : > { %6998 = vst.msk [vmem:[%s8584_s26 + $0xd8] sm:$0xff] %vm388_vm0, %v6966_v4  ;;  %v6964_v6 = vadd.f32 %v6912_v17, %v13086_v27  ;;  %v6933_v29 = vadd.f32 %v7816_v57, %v6772_v37 }
 0x8a9   : > { %v6924_v16 = vpop.f32.mrf.mxu1 }
 0x8aa   : > { %6996 = vst.msk [vmem:[%s8584_s26 + $0xc8] sm:$0xff] %vm388_vm0, %v6964_v6  ;;  %v6969_v52 = vadd.f32 %v6933_v29, %v13087_v20  ;;  %v6925_v50 = vadd.f32 %v6924_v16, %v6764_v53  ;;  %v13095_v29 = vld [vmem:[#allocation20_spill] sm:$0xff]  ;;  %v13096_v20 = vld [vmem:[#allocation21_spill] sm:$0xff] }
 0x8ab   : > { %v7817_v61 = vpop.f32.mrf.mxu1 }
 0x8ac   : > { %7001 = vst.msk [vmem:[%s8584_s26 + $0xf0] sm:$0xff] %vm388_vm0, %v6969_v52  ;;  %v6967_v7 = vadd.f32 %v6925_v50, %v13088_v1  ;;  %v6936_v9 = vadd.f32 %v7817_v61, %v6775_v26 }
 0x8ad   : > { %v6927_v23 = vpop.f32.mrf.mxu1 }
 0x8ae   : > { %6999 = vst.msk [vmem:[%s8584_s26 + $0xe0] sm:$0xff] %vm388_vm0, %v6967_v7  ;;  %v6970_v51 = vadd.f32 %v6936_v9, %v13089_v13  ;;  %v6928_v33 = vadd.f32 %v6927_v23, %v6767_v39  ;;  %v13097_v23 = vld [vmem:[#allocation22_spill] sm:$0xff] }
 0x8af   : > { %v7618_v62 = vpop.f32.mrf.mxu0 }
 0x8b0   : > { %7002 = vst.msk [vmem:[%s8584_s26 + $0xf8] sm:$0xff] %vm388_vm0, %v6970_v51  ;;  %v6968_v47 = vadd.f32 %v6928_v33, %v13090_v35  ;;  %v13098_v33 = vld [vmem:[#allocation23_spill] sm:$0xff] }
 0x8b1   : > { %v7619_v34 = vpop.f32.mrf.mxu0 }
 0x8b2   : > { %7000 = vst.msk [vmem:[%s8584_s26 + $0xe8] sm:$0xff] %vm388_vm0, %v6968_v47  ;;  %v7620_v19 = vadd.f32 %v7619_v34, %v7618_v62 }
 0x8b3   : > { %v7621_v49 = vpop.f32.mrf.mxu0 }
 0x8b4   : > { %v6700_v48 = vadd.f32 %v7620_v19, %v12611_v24 }
 0x8b5   : > { %v7622_v15 = vpop.f32.mrf.mxu0 }
 0x8b6   : > { %v6861_v45 = vadd.f32 %v12650_v36, %v6700_v48  ;;  %v7623_v30 = vadd.f32 %v7622_v15, %v7621_v49 }
 0x8b8   : > { %v6951_v46 = vadd.f32 %v6861_v45, %v13091_v54  ;;  %v6703_v58 = vadd.f32 %v7623_v30, %v12611_v24  ;;  %v13099_v45 = vld [vmem:[#allocation24_spill] sm:$0xff] }
 0x8ba   : > { %6983 = vst.msk [vmem:[%s8584_s26 + $0x60] sm:$0xff] %vm388_vm0, %v6951_v46  ;;  %v6864_v5 = vadd.f32 %v12657_v2, %v6703_v58  ;;  %v13100_v46 = vld [vmem:[#allocation25_spill] sm:$0xff] }
 0x8bc   : > { %v6952_v60 = vadd.f32 %v6864_v5, %v13092_v14 }
 0x8be   : > { %6984 = vst.msk [vmem:[%s8584_s26 + $0x68] sm:$0xff] %vm388_vm0, %v6952_v60 }
 0x8c7   : > { %v7624_v28 = vpop.f32.mrf.mxu0 }
 0x8c9   : > { %v7625_v8 = vpop.f32.mrf.mxu0 }
 0x8ca   : > { %v7626_v31 = vadd.f32 %v7625_v8, %v7624_v28 }
 0x8cb   : > { %v7627_v55 = vpop.f32.mrf.mxu0 }
 0x8cc   : > { %v6708_v36 = vadd.f32 %v7626_v31, %v12611_v24 }
 0x8cd   : > { %v7628_v42 = vpop.f32.mrf.mxu0 }
 0x8ce   : > { %v6869_v21 = vadd.f32 %v12646_v40, %v6708_v36  ;;  %v7629_v41 = vadd.f32 %v7628_v42, %v7627_v55  ;;  %v13101_v36 = vld [vmem:[#allocation26_spill] sm:$0xff] }
 0x8d0   : > { %v6953_v32 = vadd.f32 %v6869_v21, %v13093_v3  ;;  %v6711_v2 = vadd.f32 %v7629_v41, %v12611_v24  ;;  %v13102_v41 = vld [vmem:[#allocation27_spill] sm:$0xff] }
 0x8d2   : > { %6985 = vst.msk [vmem:[%s8584_s26 + $0x70] sm:$0xff] %vm388_vm0, %v6953_v32  ;;  %v6872_v59 = vadd.f32 %v12654_v43, %v6711_v2 }
 0x8d4   : > { %v6954_v10 = vadd.f32 %v6872_v59, %v13094_v38 }
 0x8d6   : > { %6986 = vst.msk [vmem:[%s8584_s26 + $0x78] sm:$0xff] %vm388_vm0, %v6954_v10 }
 0x8df   : > { %v7630_v56 = vpop.f32.mrf.mxu0 }
 0x8e1   : > { %v7631_v4 = vpop.f32.mrf.mxu0 }
 0x8e2   : > { %v7632_v17 = vadd.f32 %v7631_v4, %v7630_v56 }
 0x8e3   : > { %v7633_v37 = vpop.f32.mrf.mxu0 }
 0x8e4   : > { %v6716_v40 = vadd.f32 %v7632_v17, %v12611_v24 }
 0x8e5   : > { %v7634_v57 = vpop.f32.mrf.mxu0 }
 0x8e6   : > { %v6877_v27 = vadd.f32 %v12663_v11, %v6716_v40  ;;  %v7635_v6 = vadd.f32 %v7634_v57, %v7633_v37 }
 0x8e8   : > { %v6955_v53 = vadd.f32 %v6877_v27, %v13095_v29  ;;  %v6719_v43 = vadd.f32 %v7635_v6, %v12611_v24 }
 0x8ea   : > { %6987 = vst.msk [vmem:[%s8584_s26 + $0x80] sm:$0xff] %vm388_vm0, %v6955_v53  ;;  %v6880_v16 = vadd.f32 %v12667_v18, %v6719_v43 }
 0x8ec   : > { %v6956_v52 = vadd.f32 %v6880_v16, %v13096_v20 }
 0x8ee   : > { %6988 = vst.msk [vmem:[%s8584_s26 + $0x88] sm:$0xff] %vm388_vm0, %v6956_v52 }
 0x8f7   : > { %v7636_v50 = vpop.f32.mrf.mxu0 }
 0x8f9   : > { %v7637_v26 = vpop.f32.mrf.mxu0 }
 0x8fa   : > { %v7638_v61 = vadd.f32 %v7637_v26, %v7636_v50 }
 0x8fb   : > { %v7639_v1 = vpop.f32.mrf.mxu0 }
 0x8fc   : > { %v6724_v11 = vadd.f32 %v7638_v61, %v12611_v24 }
 0x8fd   : > { %v7640_v7 = vpop.f32.mrf.mxu0 }
 0x8fe   : > { %v6885_v9 = vadd.f32 %v12661_v63, %v6724_v11  ;;  %v7641_v39 = vadd.f32 %v7640_v7, %v7639_v1 }
 0x900   : > { %v6957_v13 = vadd.f32 %v6885_v9, %v13097_v23  ;;  %v6727_v18 = vadd.f32 %v7641_v39, %v12611_v24 }
 0x902   : > { %6989 = vst.msk [vmem:[%s8584_s26 + $0x90] sm:$0xff] %vm388_vm0, %v6957_v13  ;;  %v6888_v51 = vadd.f32 %v12665_v12, %v6727_v18 }
 0x904   : > { %v6958_v62 = vadd.f32 %v6888_v51, %v13098_v33 }
 0x906   : > { %6990 = vst.msk [vmem:[%s8584_s26 + $0x98] sm:$0xff] %vm388_vm0, %v6958_v62 }
 0x90f   : > { %v7642_v35 = vpop.f32.mrf.mxu0 }
 0x911   : > { %v7643_v47 = vpop.f32.mrf.mxu0 }
 0x912   : > { %v7644_v34 = vadd.f32 %v7643_v47, %v7642_v35 }
 0x913   : > { %v7645_v19 = vpop.f32.mrf.mxu0 }
 0x914   : > { %v6732_v63 = vadd.f32 %v7644_v34, %v12611_v24 }
 0x915   : > { %v7646_v49 = vpop.f32.mrf.mxu0 }
 0x916   : > { %v6893_v48 = vadd.f32 %v12671_v22, %v6732_v63  ;;  %v7647_v15 = vadd.f32 %v7646_v49, %v7645_v19 }
 0x918   : > { %v6959_v30 = vadd.f32 %v6893_v48, %v13099_v45  ;;  %v6735_v12 = vadd.f32 %v7647_v15, %v12611_v24 }
 0x91a   : > { %6991 = vst.msk [vmem:[%s8584_s26 + $0xa0] sm:$0xff] %vm388_vm0, %v6959_v30  ;;  %v6896_v54 = vadd.f32 %v12676_v44, %v6735_v12 }
 0x91c   : > { %v6960_v58 = vadd.f32 %v6896_v54, %v13100_v46 }
 0x91e   : > { %6992 = vst.msk [vmem:[%s8584_s26 + $0xa8] sm:$0xff] %vm388_vm0, %v6960_v58 }
 0x927   : > { %v7648_v5 = vpop.f32.mrf.mxu0 }
 0x929   : > { %v7649_v14 = vpop.f32.mrf.mxu0 }
 0x92a   : > { %v7650_v60 = vadd.f32 %v7649_v14, %v7648_v5 }
 0x92b   : > { %v7651_v28 = vpop.f32.mrf.mxu0 }
 0x92c   : > { %v6740_v22 = vadd.f32 %v7650_v60, %v12611_v24 }
 0x92d   : > { %v7652_v8 = vpop.f32.mrf.mxu0 }
 0x92e   : > { %v6901_v31 = vadd.f32 %v12669_v25, %v6740_v22  ;;  %v7653_v55 = vadd.f32 %v7652_v8, %v7651_v28 }
 0x930   : > { %v6961_v42 = vadd.f32 %v6901_v31, %v13101_v36  ;;  %v6743_v21 = vadd.f32 %v7653_v55, %v12611_v24 }
 0x932   : > { %6993 = vst.msk [vmem:[%s8584_s26 + $0xb0] sm:$0xff] %vm388_vm0, %v6961_v42  ;;  %v6904_v44 = vadd.f32 %v12673_v0, %v6743_v21 }
 0x934   : > { %v6962_v3 = vadd.f32 %v6904_v44, %v13102_v41 }
 0x936   : > { %6994 = vst.msk [vmem:[%s8584_s26 + $0xb8] sm:$0xff] %vm388_vm0, %v6962_v3 }
 0x937 PF: > { %s21_s17 = sadd.s32 1, %s8315_s17  }
 0x938   : > { %p18_p5 = scmp.ge.s32.totalorder %s21_s17, 4  }
 0x93a   :  { %20 = sbr.rel (!%p18_p5) target bundleno = 1 (0x1), region = 125 }

</bundles_post_ra>
